<compile_context>
chip_gen: v7x
topology: tpu7x:2x2x1
jax: 0.10.0
libtpu: 0.0.40
codegen_flags: <defaults>
</compile_context>

<pallas_src>
import functools

import numpy as np
import jax
import jax.numpy as jnp
from jax import lax
from jax.experimental import pallas as pl
from jax.experimental.pallas import tpu as pltpu


def _round_up(x, m):
    return (x + m - 1) // m * m


# ----------------------------------------------------------------------------
# Fused Swin block kernel
# ----------------------------------------------------------------------------
def _swin_block_kernel(x_ref, qkvw_ref, qkvb_ref, bk_ref, bv_ref, e1_ref, bc_ref,
                       w1_ref, b1_ref, w2_ref, b2_ref, o_ref, *, dim, cp, nh):
    f32 = jnp.float32
    bf16 = jnp.bfloat16
    x = x_ref[...].astype(f32)                                   # [TM, CP]; pad lanes are zero
    inv_dim = 1.0 / dim
    lane = lax.broadcasted_iota(jnp.int32, (1, cp), 1)
    cmask = (lane < dim).astype(f32)

    def norm(v):
        # plain LayerNorm; gamma/beta are folded into the downstream matmul weights/biases.
        mu = jnp.sum(v, axis=-1, keepdims=True) * inv_dim
        xc = (v - mu) * cmask
        var = jnp.sum(xc * xc, axis=-1, keepdims=True) * inv_dim
        return xc * lax.rsqrt(var + 1e-5)

    # ---------- attention branch (per-token num_heads x num_heads head mixing) ----------
    h = norm(x).astype(bf16)
    qkv = jnp.dot(h, qkvw_ref[...], preferred_element_type=f32) + qkvb_ref[...]   # [TM, 3*CP]
    q = qkv[:, 0:cp]                                              # attention scale pre-folded
    k = qkv[:, cp:2 * cp].astype(bf16)
    v = qkv[:, 2 * cp:3 * cp].astype(bf16)

    # broadcast every k/v head into all head segments (0/1 matmuls, 128-aligned blocks)
    kb = jnp.dot(k, bk_ref[...], preferred_element_type=f32)     # [TM, nh*CP]
    vb = jnp.dot(v, bv_ref[...], preferred_element_type=f32)     # [TM, nh*CP] (ls_gamma1 folded)

    # per-pair products, segment-sum to 9 scores, broadcast back to segment-aligned layout
    prod = jnp.concatenate([q * kb[:, j * cp:(j + 1) * cp] for j in range(nh)], axis=-1)
    s9 = jnp.dot(prod.astype(bf16), e1_ref[...], preferred_element_type=f32)      # [TM, SW]
    sbig = jnp.dot(s9.astype(bf16), bc_ref[...], preferred_element_type=f32)      # [TM, nh*CP]

    sb = [sbig[:, j * cp:(j + 1) * cp] for j in range(nh)]
    m = sb[0]
    for j in range(1, nh):
        m = jnp.maximum(m, sb[j])
    e = [jnp.exp(sj - m) for sj in sb]
    den = e[0]
    for j in range(1, nh):
        den = den + e[j]
    r = pl.reciprocal(den, approx=False)
    attn = (e[0] * r) * vb[:, 0:cp]
    for j in range(1, nh):
        attn = attn + (e[j] * r) * vb[:, j * cp:(j + 1) * cp]
    x1 = x + attn                                                 # ls_gamma1 already folded in

    # ---------- MLP branch ----------
    # TODO(synk): Mlp wraps an external, undefined `ResMLP`; substituted with a same-width
    #             Linear -> GELU(tanh) -> Linear (LN2 gamma/beta and ls_gamma2 folded in).
    h2 = norm(x1).astype(bf16)
    m1 = jnp.dot(h2, w1_ref[...], preferred_element_type=f32) + b1_ref[...]
    m1 = jax.nn.gelu(m1)
    m2 = jnp.dot(m1.astype(bf16), w2_ref[...], preferred_element_type=f32) + b2_ref[...]
    o_ref[...] = (x1 + m2).astype(o_ref.dtype)


def _pick_tm(m_tokens):
    """256-row tiles on v6e/v7x (256-wide MXU, even grid for 2 TCs); 128 on v5e."""
    try:
        kind = jax.devices()[0].device_kind.lower()
    except Exception:  # pragma: no cover
        kind = ""
    big = 128 if ("v5e" in kind or "v5 lite" in kind or "v5lite" in kind) else 256
    if m_tokens >= big:
        return big
    if m_tokens >= 128:
        return 128
    return _round_up(m_tokens, 8)


def swin_block3d_forward(p, x):
    """SwinTransformerBlock3D.forward (eval): x [B, C=dim, D, H, W] -> [B, C, D, H, W]."""
    dim, nh, cp = p["dim"], p["nh"], p["cp"]
    B, C, D, H, W = x.shape
    assert C == dim

    tok = jnp.transpose(x, (0, 2, 3, 4, 1)).reshape(B * D * H * W, C)   # channels-last tokens
    tok = jnp.take(tok, p["perm_in"], axis=1)        # external -> internal (head-major) channels
    M = tok.shape[0]
    TM = _pick_tm(M)
    Mp = _round_up(M, TM)
    tok = jnp.pad(tok, ((0, Mp - M), (0, cp - C)))   # lane-pad channels to 128, rows to tile

    kernel = functools.partial(_swin_block_kernel, dim=dim, cp=cp, nh=nh)
    wkeys = ("qkv_w", "qkv_b", "bk", "bv", "e1", "bc", "w1", "b1", "w2", "b2")

    def wspec(a):
        return pl.BlockSpec(a.shape, lambda i: (0, 0))

    hidp = p["w1"].shape[1]
    sw = p["e1"].shape[1]
    macs_per_tok = (cp * 3 * cp) + 2 * (cp * nh * cp) + (nh * cp * sw) + (sw * nh * cp) \
        + (cp * hidp) + (hidp * cp)
    weight_bytes = sum(int(p[kk].size) * p[kk].dtype.itemsize for kk in wkeys)
    cost = pl.CostEstimate(
        flops=int(2 * Mp * macs_per_tok),
        transcendentals=int(Mp * (nh * cp + hidp + cp + 2)),
        bytes_accessed=int(Mp * cp * 4 * 2 + weight_bytes),
    )

    out = pl.pallas_call(
        kernel,
        out_shape=jax.ShapeDtypeStruct((Mp, cp), jnp.float32),
        grid=(Mp // TM,),
        in_specs=[pl.BlockSpec((TM, cp), lambda i: (i, 0))] + [wspec(p[kk]) for kk in wkeys],
        out_specs=pl.BlockSpec((TM, cp), lambda i: (i, 0)),
        compiler_params=pltpu.CompilerParams(dimension_semantics=("parallel",)),
        cost_estimate=cost,
    )(tok, *(p[kk] for kk in wkeys))

    out = out[:M, :C]
    out = jnp.take(out, p["inv_perm"], axis=1)       # internal -> external channel order
    out = out.reshape(B, D, H, W, C)
    return jnp.transpose(out, (0, 4, 1, 2, 3))


# ----------------------------------------------------------------------------
# Deterministic parameter construction + packing into kernel layout
# ----------------------------------------------------------------------------
def make_raw_params(key, dim, num_heads, mlp_ratio=4.0, ls_init_value=1e-5):
    hidden = int(dim * mlp_ratio)
    ks = jax.random.split(key, 6)
    s = 0.02
    return {
        "n1_g": jnp.ones((dim,), jnp.float32),
        "n1_b": jnp.zeros((dim,), jnp.float32),
        "qkv_w": jax.random.normal(ks[0], (dim, 3 * dim), jnp.float32) * s,
        "qkv_b": jax.random.normal(ks[1], (3 * dim,), jnp.float32) * s,
        "n2_g": jnp.ones((dim,), jnp.float32),
        "n2_b": jnp.zeros((dim,), jnp.float32),
        "mlp_w1": jax.random.normal(ks[2], (dim, hidden), jnp.float32) * s,
        "mlp_b1": jax.random.normal(ks[3], (hidden,), jnp.float32) * s,
        "mlp_w2": jax.random.normal(ks[4], (hidden, dim), jnp.float32) * s,
        "mlp_b2": jax.random.normal(ks[5], (dim,), jnp.float32) * s,
        "ls1": jnp.full((dim,), ls_init_value, jnp.float32),
        "ls2": jnp.full((dim,), ls_init_value, jnp.float32),
    }


def pack_params(raw, dim, num_heads):
    nh = num_heads
    hd = dim // nh
    assert nh * hd == dim and dim <= 128, "packed layout requires dim <= 128"
    cp = 128                        # one 128-lane block per q/k/v selector (heads packed inside)
    sw = 128                        # score block width (nh*nh columns used, rest zero)
    hidden = raw["mlp_w1"].shape[1]
    hidp = _round_up(hidden, 128)
    scale = hd ** -0.5
    f32 = np.float32

    # internal (head-major) channel order: p = head*hd + d  <->  external channel e = d*nh + head
    p_idx = np.arange(dim)
    head_of, d_of = p_idx // hd, p_idx % hd
    perm_in = (d_of * nh + head_of).astype(np.int32)   # internal p -> external channel
    inv_perm = np.zeros(dim, np.int32)
    inv_perm[perm_in] = p_idx.astype(np.int32)         # external e -> internal p

    to_np = lambda a: np.asarray(a, f32)
    g1, beta1 = to_np(raw["n1_g"]), to_np(raw["n1_b"])
    g2, beta2 = to_np(raw["n2_g"]), to_np(raw["n2_b"])
    ls1, ls2 = to_np(raw["ls1"]), to_np(raw["ls2"])
    qkv_w, qkv_b = to_np(raw["qkv_w"]), to_np(raw["qkv_b"])
    w1, b1 = to_np(raw["mlp_w1"]), to_np(raw["mlp_b1"])
    w2, b2 = to_np(raw["mlp_w2"]), to_np(raw["mlp_b2"])

    # ---- fused qkv: LN1 gamma/beta + attention scale folded in, rows permuted to internal order,
    #      columns packed as [q | k | v] with head i at lanes i*hd .. i*hd+hd ----
    w_eff = g1[:, None] * qkv_w
    b_eff = beta1 @ qkv_w + qkv_b
    qkv_w_p = np.zeros((cp, 3 * cp), f32)
    qkv_b_p = np.zeros((1, 3 * cp), f32)
    d_ar = np.arange(hd)
    for sel in range(3):
        sc = scale if sel == 0 else 1.0
        for i in range(nh):
            src = sel * dim + i * hd + d_ar
            dst = sel * cp + i * hd + d_ar
            qkv_w_p[:dim, dst] = w_eff[perm_in][:, src] * sc
            qkv_b_p[0, dst] = b_eff[src] * sc

    # ---- head-broadcast matrices (bk for k, bv for v with ls_gamma1 folded into columns) ----
    ls1_int = ls1[perm_in]
    bk = np.zeros((cp, nh * cp), f32)
    bv = np.zeros((cp, nh * cp), f32)
    for j in range(nh):
        for i in range(nh):
            bk[j * hd + d_ar, j * cp + i * hd + d_ar] = 1.0
            bv[j * hd + d_ar, j * cp + i * hd + d_ar] = ls1_int[i * hd + d_ar]

    # ---- segment-sum (scores) and score-broadcast matrices ----
    e1 = np.zeros((nh * cp, sw), f32)
    bc = np.zeros((sw, nh * cp), f32)
    for i in range(nh):
        for j in range(nh):
            col = i * nh + j
            e1[j * cp + i * hd + d_ar, col] = 1.0
            bc[col, j * cp + i * hd + d_ar] = 1.0

    # ---- MLP: LN2 gamma/beta folded into w1/b1, ls_gamma2 folded into w2/b2, channels permuted --
    w1_eff = (g2[:, None] * w1)[perm_in]               # rows -> internal order
    b1_eff = beta2 @ w1 + b1
    w2_eff = (w2 * ls2[None, :])[:, perm_in]           # cols -> internal order, ls2 folded
    b2_eff = (b2 * ls2)[perm_in]

    pad2 = lambda a, shp: np.pad(a, [(0, s - n) for s, n in zip(shp, a.shape)])
    return {
        "dim": dim, "nh": nh, "cp": cp,
        "perm_in": jnp.asarray(perm_in), "inv_perm": jnp.asarray(inv_perm),
        "qkv_w": jnp.asarray(qkv_w_p, jnp.bfloat16),
        "qkv_b": jnp.asarray(qkv_b_p, jnp.float32),
        "bk": jnp.asarray(bk, jnp.bfloat16),
        "bv": jnp.asarray(bv, jnp.bfloat16),
        "e1": jnp.asarray(e1, jnp.bfloat16),
        "bc": jnp.asarray(bc, jnp.bfloat16),
        "w1": jnp.asarray(pad2(w1_eff, (cp, hidp)), jnp.bfloat16),
        "b1": jnp.asarray(pad2(b1_eff.reshape(1, -1), (1, hidp)), jnp.float32),
        "w2": jnp.asarray(pad2(w2_eff, (hidp, cp)), jnp.bfloat16),
        "b2": jnp.asarray(pad2(b2_eff.reshape(1, -1), (1, cp)), jnp.float32),
    }


# ----------------------------------------------------------------------------
# Pure-JAX reference of the PyTorch forward (eval), for a correctness check
# ----------------------------------------------------------------------------
def reference_forward(raw, x, num_heads):
    B, C, D, H, W = x.shape
    hd = C // num_heads
    t = jnp.transpose(x, (0, 2, 3, 4, 1)).reshape(-1, C)

    def ln(v, g, b):
        mu = jnp.mean(v, axis=-1, keepdims=True)
        xc = v - mu
        var = jnp.mean(xc * xc, axis=-1, keepdims=True)
        return xc * lax.rsqrt(var + 1e-5) * g + b

    h = ln(t, raw["n1_g"], raw["n1_b"])
    qkv = (h @ raw["qkv_w"] + raw["qkv_b"]).reshape(-1, 3, num_heads, hd)
    q, k, v = qkv[:, 0], qkv[:, 1], qkv[:, 2]
    attn = jnp.einsum("mid,mjd->mij", q, k) * (hd ** -0.5)
    attn = jax.nn.softmax(attn, axis=-1)
    o = jnp.einsum("mij,mjd->mid", attn, v)
    o = jnp.transpose(o, (0, 2, 1)).reshape(-1, C)      # matches torch .transpose(1,2).reshape
    t1 = t + raw["ls1"] * o
    h2 = ln(t1, raw["n2_g"], raw["n2_b"])
    m = jax.nn.gelu(h2 @ raw["mlp_w1"] + raw["mlp_b1"])
    m = m @ raw["mlp_w2"] + raw["mlp_b2"]
    t2 = t1 + raw["ls2"] * m
    return jnp.transpose(t2.reshape(B, D, H, W, C), (0, 4, 1, 2, 3))


if __name__ == "__main__":
    key = jax.random.PRNGKey(0)
    kx, kp = jax.random.split(key)

    # small shapes consistent with the module: dim=126 divisible by num_heads=3,
    # input x: [B, C=dim, D, H, W]; window_size=(7,7,7) defaults (per-token attention => no-op).
    B, dim, D, H, W = 2, 126, 8, 8, 8
    num_heads = 3
    x = jax.random.normal(kx, (B, dim, D, H, W), jnp.float32)

    raw = make_raw_params(kp, dim, num_heads)
    packed = pack_params(raw, dim, num_heads)

    fwd = jax.jit(lambda inp: swin_block3d_forward(packed, inp))
    out = fwd(x)
    jax.block_until_ready(out)

    assert out.shape == (B, dim, D, H, W)
    assert bool(jnp.all(jnp.isfinite(out)))

    ref = reference_forward(raw, x, num_heads)
    err = float(jnp.max(jnp.abs(out - ref)))
    assert err < 1e-3, f"max abs err vs reference = {err}"
    print("KERNEL_OK")
</pallas_src>

<mosaic_0001>
module attributes {stable_mosaic.version = 11 : i64} {
  func.func @_swin_block_kernel(%arg0: i32, %arg1: memref<256x128xf32, #tpu.memory_space<vmem>>, %arg2: memref<128x384xbf16, #tpu.memory_space<vmem>>, %arg3: memref<1x384xf32, #tpu.memory_space<vmem>>, %arg4: memref<128x384xbf16, #tpu.memory_space<vmem>>, %arg5: memref<128x384xbf16, #tpu.memory_space<vmem>>, %arg6: memref<384x128xbf16, #tpu.memory_space<vmem>>, %arg7: memref<128x384xbf16, #tpu.memory_space<vmem>>, %arg8: memref<128x512xbf16, #tpu.memory_space<vmem>>, %arg9: memref<1x512xf32, #tpu.memory_space<vmem>>, %arg10: memref<512x128xbf16, #tpu.memory_space<vmem>>, %arg11: memref<1x128xf32, #tpu.memory_space<vmem>>, %arg12: memref<256x128xf32, #tpu.memory_space<vmem>>) attributes {dimension_semantics = [#tpu.dimension_semantics<parallel>], iteration_bounds = array<i64: 4>, scalar_prefetch = 0 : i64, scratch_operands = 0 : i64, tpu.core_type = #tpu.core_type<tc>, window_params = [{transform_indices = @transform_0, window_bounds = array<i64: 256, 128>}, {pipeline_mode = #tpu.pipeline_mode<synchronous>, transform_indices = @transform_1, window_bounds = array<i64: 128, 384>}, {pipeline_mode = #tpu.pipeline_mode<synchronous>, transform_indices = @transform_2, window_bounds = array<i64: 1, 384>}, {pipeline_mode = #tpu.pipeline_mode<synchronous>, transform_indices = @transform_3, window_bounds = array<i64: 128, 384>}, {pipeline_mode = #tpu.pipeline_mode<synchronous>, transform_indices = @transform_4, window_bounds = array<i64: 128, 384>}, {pipeline_mode = #tpu.pipeline_mode<synchronous>, transform_indices = @transform_5, window_bounds = array<i64: 384, 128>}, {pipeline_mode = #tpu.pipeline_mode<synchronous>, transform_indices = @transform_6, window_bounds = array<i64: 128, 384>}, {pipeline_mode = #tpu.pipeline_mode<synchronous>, transform_indices = @transform_7, window_bounds = array<i64: 128, 512>}, {pipeline_mode = #tpu.pipeline_mode<synchronous>, transform_indices = @transform_8, window_bounds = array<i64: 1, 512>}, {pipeline_mode = #tpu.pipeline_mode<synchronous>, transform_indices = @transform_9, window_bounds = array<i64: 512, 128>}, {pipeline_mode = #tpu.pipeline_mode<synchronous>, transform_indices = @transform_10, window_bounds = array<i64: 1, 128>}, {transform_indices = @transform_11, window_bounds = array<i64: 256, 128>}]} {
    %c0 = arith.constant 0 : index
    %c0_0 = arith.constant 0 : index
    %0 = vector.load %arg1[%c0, %c0_0] : memref<256x128xf32, #tpu.memory_space<vmem>>, vector<256x128xf32>
    %1 = tpu.iota {dimensions = array<i32: 1>} : vector<1x128xi32>
    %c126_i32 = arith.constant 126 : i32
    %2 = vector.broadcast %c126_i32 : i32 to vector<1x128xi32>
    %3 = arith.cmpi slt, %1, %2 : vector<1x128xi32>
    %4 = arith.extui %3 : vector<1x128xi1> to vector<1x128xi32>
    %5 = arith.sitofp %4 : vector<1x128xi32> to vector<1x128xf32>
    %cst = arith.constant dense<0.000000e+00> : vector<256xf32>
    %6 = vector.multi_reduction <add>, %0, %cst [1] : vector<256x128xf32> to vector<256xf32>
    %7 = vector.shape_cast %6 : vector<256xf32> to vector<256x1xf32>
    %cst_1 = arith.constant 0.00793650839 : f32
    %8 = vector.broadcast %cst_1 : f32 to vector<256x1xf32>
    %9 = arith.mulf %7, %8 : vector<256x1xf32>
    %10 = vector.broadcast %9 : vector<256x1xf32> to vector<256x128xf32>
    %11 = arith.subf %0, %10 : vector<256x128xf32>
    %12 = vector.broadcast %5 : vector<1x128xf32> to vector<256x128xf32>
    %13 = arith.mulf %11, %12 : vector<256x128xf32>
    %14 = arith.mulf %13, %13 : vector<256x128xf32>
    %cst_2 = arith.constant dense<0.000000e+00> : vector<256xf32>
    %15 = vector.multi_reduction <add>, %14, %cst_2 [1] : vector<256x128xf32> to vector<256xf32>
    %16 = vector.shape_cast %15 : vector<256xf32> to vector<256x1xf32>
    %cst_3 = arith.constant 0.00793650839 : f32
    %17 = vector.broadcast %cst_3 : f32 to vector<256x1xf32>
    %18 = arith.mulf %16, %17 : vector<256x1xf32>
    %cst_4 = arith.constant 9.99999974E-6 : f32
    %19 = vector.broadcast %cst_4 : f32 to vector<256x1xf32>
    %20 = arith.addf %18, %19 : vector<256x1xf32>
    %21 = math.rsqrt %20 : vector<256x1xf32>
    %22 = vector.broadcast %21 : vector<256x1xf32> to vector<256x128xf32>
    %23 = arith.mulf %13, %22 : vector<256x128xf32>
    %24 = arith.truncf %23 : vector<256x128xf32> to vector<256x128xbf16>
    %c0_5 = arith.constant 0 : index
    %c0_6 = arith.constant 0 : index
    %25 = vector.load %arg2[%c0_5, %c0_6] : memref<128x384xbf16, #tpu.memory_space<vmem>>, vector<128x384xbf16>
    %cst_7 = arith.constant dense<0.000000e+00> : vector<256x384xf32>
    %26 = tpu.matmul %24, %25, %cst_7 {dimension_numbers = #tpu.dot_dimension_numbers<[1], [0], [0], [1], [0, 0, 1, 1], [], []>} : vector<256x128xbf16>, vector<128x384xbf16>, vector<256x384xf32> -> vector<256x384xf32>
    %c0_8 = arith.constant 0 : index
    %c0_9 = arith.constant 0 : index
    %27 = vector.load %arg3[%c0_8, %c0_9] : memref<1x384xf32, #tpu.memory_space<vmem>>, vector<1x384xf32>
    %28 = vector.broadcast %27 : vector<1x384xf32> to vector<256x384xf32>
    %29 = arith.addf %26, %28 : vector<256x384xf32>
    %30 = vector.extract_strided_slice %29 {offsets = [0, 0], sizes = [256, 128], strides = [1, 1]} : vector<256x384xf32> to vector<256x128xf32>
    %31 = vector.extract_strided_slice %29 {offsets = [0, 128], sizes = [256, 128], strides = [1, 1]} : vector<256x384xf32> to vector<256x128xf32>
    %32 = arith.truncf %31 : vector<256x128xf32> to vector<256x128xbf16>
    %33 = vector.extract_strided_slice %29 {offsets = [0, 256], sizes = [256, 128], strides = [1, 1]} : vector<256x384xf32> to vector<256x128xf32>
    %34 = arith.truncf %33 : vector<256x128xf32> to vector<256x128xbf16>
    %c0_10 = arith.constant 0 : index
    %c0_11 = arith.constant 0 : index
    %35 = vector.load %arg4[%c0_10, %c0_11] : memref<128x384xbf16, #tpu.memory_space<vmem>>, vector<128x384xbf16>
    %cst_12 = arith.constant dense<0.000000e+00> : vector<256x384xf32>
    %36 = tpu.matmul %32, %35, %cst_12 {dimension_numbers = #tpu.dot_dimension_numbers<[1], [0], [0], [1], [0, 0, 1, 1], [], []>} : vector<256x128xbf16>, vector<128x384xbf16>, vector<256x384xf32> -> vector<256x384xf32>
    %c0_13 = arith.constant 0 : index
    %c0_14 = arith.constant 0 : index
    %37 = vector.load %arg5[%c0_13, %c0_14] : memref<128x384xbf16, #tpu.memory_space<vmem>>, vector<128x384xbf16>
    %cst_15 = arith.constant dense<0.000000e+00> : vector<256x384xf32>
    %38 = tpu.matmul %34, %37, %cst_15 {dimension_numbers = #tpu.dot_dimension_numbers<[1], [0], [0], [1], [0, 0, 1, 1], [], []>} : vector<256x128xbf16>, vector<128x384xbf16>, vector<256x384xf32> -> vector<256x384xf32>
    %39 = vector.extract_strided_slice %36 {offsets = [0, 0], sizes = [256, 128], strides = [1, 1]} : vector<256x384xf32> to vector<256x128xf32>
    %40 = arith.mulf %30, %39 : vector<256x128xf32>
    %41 = vector.extract_strided_slice %36 {offsets = [0, 128], sizes = [256, 128], strides = [1, 1]} : vector<256x384xf32> to vector<256x128xf32>
    %42 = arith.mulf %30, %41 : vector<256x128xf32>
    %43 = vector.extract_strided_slice %36 {offsets = [0, 256], sizes = [256, 128], strides = [1, 1]} : vector<256x384xf32> to vector<256x128xf32>
    %44 = arith.mulf %30, %43 : vector<256x128xf32>
    %45 = tpu.concatenate %40, %42, %44 in 1 : vector<256x128xf32>, vector<256x128xf32>, vector<256x128xf32> -> vector<256x384xf32>
    %46 = arith.truncf %45 : vector<256x384xf32> to vector<256x384xbf16>
    %c0_16 = arith.constant 0 : index
    %c0_17 = arith.constant 0 : index
    %47 = vector.load %arg6[%c0_16, %c0_17] : memref<384x128xbf16, #tpu.memory_space<vmem>>, vector<384x128xbf16>
    %cst_18 = arith.constant dense<0.000000e+00> : vector<256x128xf32>
    %48 = tpu.matmul %46, %47, %cst_18 {dimension_numbers = #tpu.dot_dimension_numbers<[1], [0], [0], [1], [0, 0, 1, 1], [], []>} : vector<256x384xbf16>, vector<384x128xbf16>, vector<256x128xf32> -> vector<256x128xf32>
    %49 = arith.truncf %48 : vector<256x128xf32> to vector<256x128xbf16>
    %c0_19 = arith.constant 0 : index
    %c0_20 = arith.constant 0 : index
    %50 = vector.load %arg7[%c0_19, %c0_20] : memref<128x384xbf16, #tpu.memory_space<vmem>>, vector<128x384xbf16>
    %cst_21 = arith.constant dense<0.000000e+00> : vector<256x384xf32>
    %51 = tpu.matmul %49, %50, %cst_21 {dimension_numbers = #tpu.dot_dimension_numbers<[1], [0], [0], [1], [0, 0, 1, 1], [], []>} : vector<256x128xbf16>, vector<128x384xbf16>, vector<256x384xf32> -> vector<256x384xf32>
    %52 = vector.extract_strided_slice %51 {offsets = [0, 0], sizes = [256, 128], strides = [1, 1]} : vector<256x384xf32> to vector<256x128xf32>
    %53 = vector.extract_strided_slice %51 {offsets = [0, 128], sizes = [256, 128], strides = [1, 1]} : vector<256x384xf32> to vector<256x128xf32>
    %54 = vector.extract_strided_slice %51 {offsets = [0, 256], sizes = [256, 128], strides = [1, 1]} : vector<256x384xf32> to vector<256x128xf32>
    %55 = arith.maximumf %52, %53 : vector<256x128xf32>
    %56 = arith.maximumf %55, %54 : vector<256x128xf32>
    %57 = arith.subf %52, %56 : vector<256x128xf32>
    %58 = math.exp %57 : vector<256x128xf32>
    %59 = arith.subf %53, %56 : vector<256x128xf32>
    %60 = math.exp %59 : vector<256x128xf32>
    %61 = arith.subf %54, %56 : vector<256x128xf32>
    %62 = math.exp %61 : vector<256x128xf32>
    %63 = arith.addf %58, %60 : vector<256x128xf32>
    %64 = arith.addf %63, %62 : vector<256x128xf32>
    %65 = tpu.reciprocal %64 : vector<256x128xf32> -> vector<256x128xf32>
    %66 = arith.mulf %58, %65 : vector<256x128xf32>
    %67 = vector.extract_strided_slice %38 {offsets = [0, 0], sizes = [256, 128], strides = [1, 1]} : vector<256x384xf32> to vector<256x128xf32>
    %68 = arith.mulf %66, %67 : vector<256x128xf32>
    %69 = arith.mulf %60, %65 : vector<256x128xf32>
    %70 = vector.extract_strided_slice %38 {offsets = [0, 128], sizes = [256, 128], strides = [1, 1]} : vector<256x384xf32> to vector<256x128xf32>
    %71 = arith.mulf %69, %70 : vector<256x128xf32>
    %72 = arith.addf %68, %71 : vector<256x128xf32>
    %73 = arith.mulf %62, %65 : vector<256x128xf32>
    %74 = vector.extract_strided_slice %38 {offsets = [0, 256], sizes = [256, 128], strides = [1, 1]} : vector<256x384xf32> to vector<256x128xf32>
    %75 = arith.mulf %73, %74 : vector<256x128xf32>
    %76 = arith.addf %72, %75 : vector<256x128xf32>
    %77 = arith.addf %0, %76 : vector<256x128xf32>
    %cst_22 = arith.constant dense<0.000000e+00> : vector<256xf32>
    %78 = vector.multi_reduction <add>, %77, %cst_22 [1] : vector<256x128xf32> to vector<256xf32>
    %79 = vector.shape_cast %78 : vector<256xf32> to vector<256x1xf32>
    %cst_23 = arith.constant 0.00793650839 : f32
    %80 = vector.broadcast %cst_23 : f32 to vector<256x1xf32>
    %81 = arith.mulf %79, %80 : vector<256x1xf32>
    %82 = vector.broadcast %81 : vector<256x1xf32> to vector<256x128xf32>
    %83 = arith.subf %77, %82 : vector<256x128xf32>
    %84 = vector.broadcast %5 : vector<1x128xf32> to vector<256x128xf32>
    %85 = arith.mulf %83, %84 : vector<256x128xf32>
    %86 = arith.mulf %85, %85 : vector<256x128xf32>
    %cst_24 = arith.constant dense<0.000000e+00> : vector<256xf32>
    %87 = vector.multi_reduction <add>, %86, %cst_24 [1] : vector<256x128xf32> to vector<256xf32>
    %88 = vector.shape_cast %87 : vector<256xf32> to vector<256x1xf32>
    %cst_25 = arith.constant 0.00793650839 : f32
    %89 = vector.broadcast %cst_25 : f32 to vector<256x1xf32>
    %90 = arith.mulf %88, %89 : vector<256x1xf32>
    %cst_26 = arith.constant 9.99999974E-6 : f32
    %91 = vector.broadcast %cst_26 : f32 to vector<256x1xf32>
    %92 = arith.addf %90, %91 : vector<256x1xf32>
    %93 = math.rsqrt %92 : vector<256x1xf32>
    %94 = vector.broadcast %93 : vector<256x1xf32> to vector<256x128xf32>
    %95 = arith.mulf %85, %94 : vector<256x128xf32>
    %96 = arith.truncf %95 : vector<256x128xf32> to vector<256x128xbf16>
    %c0_27 = arith.constant 0 : index
    %c0_28 = arith.constant 0 : index
    %97 = vector.load %arg8[%c0_27, %c0_28] : memref<128x512xbf16, #tpu.memory_space<vmem>>, vector<128x512xbf16>
    %cst_29 = arith.constant dense<0.000000e+00> : vector<256x512xf32>
    %98 = tpu.matmul %96, %97, %cst_29 {dimension_numbers = #tpu.dot_dimension_numbers<[1], [0], [0], [1], [0, 0, 1, 1], [], []>} : vector<256x128xbf16>, vector<128x512xbf16>, vector<256x512xf32> -> vector<256x512xf32>
    %c0_30 = arith.constant 0 : index
    %c0_31 = arith.constant 0 : index
    %99 = vector.load %arg9[%c0_30, %c0_31] : memref<1x512xf32, #tpu.memory_space<vmem>>, vector<1x512xf32>
    %100 = vector.broadcast %99 : vector<1x512xf32> to vector<256x512xf32>
    %101 = arith.addf %98, %100 : vector<256x512xf32>
    %102 = arith.mulf %101, %101 : vector<256x512xf32>
    %103 = arith.mulf %101, %102 : vector<256x512xf32>
    %cst_32 = arith.constant 4.471500e-02 : f32
    %104 = vector.broadcast %cst_32 : f32 to vector<256x512xf32>
    %105 = arith.mulf %104, %103 : vector<256x512xf32>
    %106 = arith.addf %101, %105 : vector<256x512xf32>
    %cst_33 = arith.constant 0.797884583 : f32
    %107 = vector.broadcast %cst_33 : f32 to vector<256x512xf32>
    %108 = arith.mulf %107, %106 : vector<256x512xf32>
    %109 = math.tanh %108 : vector<256x512xf32>
    %cst_34 = arith.constant 1.000000e+00 : f32
    %110 = vector.broadcast %cst_34 : f32 to vector<256x512xf32>
    %111 = arith.addf %110, %109 : vector<256x512xf32>
    %cst_35 = arith.constant 5.000000e-01 : f32
    %112 = vector.broadcast %cst_35 : f32 to vector<256x512xf32>
    %113 = arith.mulf %112, %111 : vector<256x512xf32>
    %114 = arith.mulf %101, %113 : vector<256x512xf32>
    %115 = arith.truncf %114 : vector<256x512xf32> to vector<256x512xbf16>
    %c0_36 = arith.constant 0 : index
    %c0_37 = arith.constant 0 : index
    %116 = vector.load %arg10[%c0_36, %c0_37] : memref<512x128xbf16, #tpu.memory_space<vmem>>, vector<512x128xbf16>
    %cst_38 = arith.constant dense<0.000000e+00> : vector<256x128xf32>
    %117 = tpu.matmul %115, %116, %cst_38 {dimension_numbers = #tpu.dot_dimension_numbers<[1], [0], [0], [1], [0, 0, 1, 1], [], []>} : vector<256x512xbf16>, vector<512x128xbf16>, vector<256x128xf32> -> vector<256x128xf32>
    %c0_39 = arith.constant 0 : index
    %c0_40 = arith.constant 0 : index
    %118 = vector.load %arg11[%c0_39, %c0_40] : memref<1x128xf32, #tpu.memory_space<vmem>>, vector<1x128xf32>
    %119 = vector.broadcast %118 : vector<1x128xf32> to vector<256x128xf32>
    %120 = arith.addf %117, %119 : vector<256x128xf32>
    %121 = arith.addf %77, %120 : vector<256x128xf32>
    %c0_41 = arith.constant 0 : index
    %c0_42 = arith.constant 0 : index
    %122 = vector.load %arg12[%c0_41, %c0_42] : memref<256x128xf32, #tpu.memory_space<vmem>>, vector<256x128xf32>
    tpu.vector_store %arg12[%c0_41, %c0_42], %121 {strides = array<i32>} : memref<256x128xf32, #tpu.memory_space<vmem>>, vector<256x128xf32>,
    return
  }
  func.func @transform_0(%arg0: i32) -> (i32, i32) {
    %c0_i32 = arith.constant 0 : i32
    %c0_i32_0 = arith.constant 0 : i32
    return %arg0, %c0_i32 : i32, i32
  }
  func.func @transform_1(%arg0: i32) -> (i32, i32) {
    %c0_i32 = arith.constant 0 : i32
    %c0_i32_0 = arith.constant 0 : i32
    %c0_i32_1 = arith.constant 0 : i32
    return %c0_i32, %c0_i32_0 : i32, i32
  }
  func.func @transform_2(%arg0: i32) -> (i32, i32) {
    %c0_i32 = arith.constant 0 : i32
    %c0_i32_0 = arith.constant 0 : i32
    %c0_i32_1 = arith.constant 0 : i32
    return %c0_i32, %c0_i32_0 : i32, i32
  }
  func.func @transform_3(%arg0: i32) -> (i32, i32) {
    %c0_i32 = arith.constant 0 : i32
    %c0_i32_0 = arith.constant 0 : i32
    %c0_i32_1 = arith.constant 0 : i32
    return %c0_i32, %c0_i32_0 : i32, i32
  }
  func.func @transform_4(%arg0: i32) -> (i32, i32) {
    %c0_i32 = arith.constant 0 : i32
    %c0_i32_0 = arith.constant 0 : i32
    %c0_i32_1 = arith.constant 0 : i32
    return %c0_i32, %c0_i32_0 : i32, i32
  }
  func.func @transform_5(%arg0: i32) -> (i32, i32) {
    %c0_i32 = arith.constant 0 : i32
    %c0_i32_0 = arith.constant 0 : i32
    %c0_i32_1 = arith.constant 0 : i32
    return %c0_i32, %c0_i32_0 : i32, i32
  }
  func.func @transform_6(%arg0: i32) -> (i32, i32) {
    %c0_i32 = arith.constant 0 : i32
    %c0_i32_0 = arith.constant 0 : i32
    %c0_i32_1 = arith.constant 0 : i32
    return %c0_i32, %c0_i32_0 : i32, i32
  }
  func.func @transform_7(%arg0: i32) -> (i32, i32) {
    %c0_i32 = arith.constant 0 : i32
    %c0_i32_0 = arith.constant 0 : i32
    %c0_i32_1 = arith.constant 0 : i32
    return %c0_i32, %c0_i32_0 : i32, i32
  }
  func.func @transform_8(%arg0: i32) -> (i32, i32) {
    %c0_i32 = arith.constant 0 : i32
    %c0_i32_0 = arith.constant 0 : i32
    %c0_i32_1 = arith.constant 0 : i32
    return %c0_i32, %c0_i32_0 : i32, i32
  }
  func.func @transform_9(%arg0: i32) -> (i32, i32) {
    %c0_i32 = arith.constant 0 : i32
    %c0_i32_0 = arith.constant 0 : i32
    %c0_i32_1 = arith.constant 0 : i32
    return %c0_i32, %c0_i32_0 : i32, i32
  }
  func.func @transform_10(%arg0: i32) -> (i32, i32) {
    %c0_i32 = arith.constant 0 : i32
    %c0_i32_0 = arith.constant 0 : i32
    %c0_i32_1 = arith.constant 0 : i32
    return %c0_i32, %c0_i32_0 : i32, i32
  }
  func.func @transform_11(%arg0: i32) -> (i32, i32) {
    %c0_i32 = arith.constant 0 : i32
    %c0_i32_0 = arith.constant 0 : i32
    return %arg0, %c0_i32 : i32, i32
  }
}

</mosaic_0001>

<bundles_post_ra>
// kernel: _lambda_.1
= control target key start
LH: loop header
LB: loop body
LE: loop exit
PB: predicated region body
PF: predicated region fallthrough
CT: control target
= control target key end

     0   :  { %s9157_s17 = smov 0   ;;  %s14137_s0 = inlined_call_operand.vmem [shape: f32[1024,128], index: 0, kind: input, shape index: {}]   ;;  %s14138_s1 = inlined_call_operand.vmem [shape: bf16[128,384], index: 1, kind: input, shape index: {}]   ;;  %s14139_s2 = inlined_call_operand.vmem [shape: f32[1,384], index: 2, kind: input, shape index: {}]   ;;  %s14140_s3 = inlined_call_operand.vmem [shape: bf16[128,384], index: 3, kind: input, shape index: {}]   ;;  %s14141_s4 = inlined_call_operand.vmem [shape: bf16[128,384], index: 4, kind: input, shape index: {}]   ;;  %s14142_s5 = inlined_call_operand.vmem [shape: bf16[384,128], index: 5, kind: input, shape index: {}]   ;;  %s14143_s6 = inlined_call_operand.vmem [shape: bf16[128,384], index: 6, kind: input, shape index: {}]   ;;  %s14144_s7 = inlined_call_operand.vmem [shape: bf16[128,512], index: 7, kind: input, shape index: {}]   ;;  %s14145_s8 = inlined_call_operand.vmem [shape: f32[1,512], index: 8, kind: input, shape index: {}]   ;;  %s14146_s9 = inlined_call_operand.vmem [shape: bf16[512,128], index: 9, kind: input, shape index: {}]   ;;  %s14147_s10 = inlined_call_operand.vmem [shape: f32[1,128], index: 10, kind: input, shape index: {}]   ;;  %s14148_s11 = inlined_call_operand.vmem [shape: f32[1024,128], index: 11, kind: output, shape index: {}]  }
   0x1 LB: > { %s7264_s18 = sadd.s32 4294967295, %s9093_s17   ;;  %p7268_p0 = scmp.ge.s32.totalorder %s9093_s17, 1  ;;  %s9093_s17 = sphi %s9157_s17, %s21_s17  }
   0x2   : > { %p338_p1 = scmp.lt.s32.totalorder %s9093_s17, 5 }
   0x4   : > { %p339_p2 = pnand %p7268_p0, %p338_p1 }
   0x6   : > { %342 = sbr.rel (%p339_p2) target bundleno = 2464 (0x9a0), region = 64 }
   0xd   : > { %s7269_s19 = sshll.u32 %s7264_s18, 5  ;;  %v8183_v26 = vld [vmem:[%s14138_s1 + $0x4] ss:$12 sps:$4 sm:$0xff]   ;;  %v8185_v27 = vld [vmem:[%s14138_s1] ss:$12 sps:$4 sm:$0xff]   ;;  %v423_v31 = vlaneseq  ;;  %v9095_v37 = vmov 0.0  }
   0xe   : > { %p379_p3 = scmp.lt.s32.totalorder %s7269_s19, 127  ;;  %v8186_v28 = vld [vmem:[%s14138_s1 + $0x1c] ss:$12 sps:$4 sm:$0xff]   ;;  %v8188_v29 = vld [vmem:[%s14138_s1 + $0x18] ss:$12 sps:$4 sm:$0xff]   ;;  %1005 = vmatprep.subr.bf16.mxu0 %v8183_v26  ;;  %8157 = vmatprep.subr.bf16.mxu1 %v8183_v26 }
   0xf   : > { %v8189_v30 = vld [vmem:[%s14138_s1 + $0x34] ss:$12 sps:$4 sm:$0xff]   ;;  %1006 = vmatpush1.bf16.msra.mxu0 %v8185_v27  ;;  %8165 = vmatpush1.bf16.msra.mxu1 %v8185_v27  ;;  %v424_v32 = vand.u32 127, %v423_v31 }
  0x10   : > { %s14863_s19 = smov (!%p379_p3, %s7269_s19), 127  ;;  %1007 = vmatprep.subr.bf16.mxu0 %v8186_v28  ;;  %8158 = vmatprep.subr.bf16.mxu1 %v8186_v28 }
  0x11   : > { %s7270_s20 = sshll.u32 %s14863_s19, 3  ;;  %vm425_vm0 = vcmp.lt.s32.totalorder %v424_v32, 126 }
  0x12   : > { %s9173_s23 = scalar_lea.vmem %s14137_s0, %s7270_s20  ;;  %v9295_v38 = vsel %vm425_vm0, 1.0, %v9095_v37  ;;  %s14024_s16 = scalar_lea.vmem %s14148_s11, %s7270_s20 }
  0x13   : > { %v9176_v0 = vld [vmem:[%s9173_s23] sm:$0xff]  ;;  %v9179_v1 = vld [vmem:[%s9173_s23 + $0x10] sm:$0xff]  ;;  %v9184_v2 = vld [vmem:[%s9173_s23 + $0x8] sm:$0xff]  ;;  %1008 = vmatpush1.bf16.msra.mxu0 %v8188_v29  ;;  %8166 = vmatpush1.bf16.msra.mxu1 %v8188_v29  ;;  %14284 = vst [vmem:[#allocation2_spill] sm:$0xff] %v9295_v38 }
  0x14   : > { %428 = vadd.xlane.f32.xlu0 %v9176_v0  ;;  %432 = vadd.xlane.f32.xlu1 %v9179_v1  ;;  %v9187_v3 = vld [vmem:[%s9173_s23 + $0x18] sm:$0xff]  ;;  %v9192_v4 = vld [vmem:[%s9173_s23 + $0x20] sm:$0xff]  ;;  %v9195_v5 = vld [vmem:[%s9173_s23 + $0x28] sm:$0xff] }
  0x15   : > { %v9198_v6 = vld [vmem:[%s9173_s23 + $0x30] sm:$0xff]  ;;  %v9201_v7 = vld [vmem:[%s9173_s23 + $0x38] sm:$0xff]  ;;  %v9206_v8 = vld [vmem:[%s9173_s23 + $0x40] sm:$0xff]  ;;  %1009 = vmatprep.subr.bf16.mxu0 %v8189_v30  ;;  %8159 = vmatprep.subr.bf16.mxu1 %v8189_v30 }
  0x16   : > { %v9209_v9 = vld [vmem:[%s9173_s23 + $0x48] sm:$0xff]  ;;  %v9214_v10 = vld [vmem:[%s9173_s23 + $0x50] sm:$0xff]  ;;  %v9219_v11 = vld [vmem:[%s9173_s23 + $0x58] sm:$0xff] }
  0x17   : > { %v9222_v12 = vld [vmem:[%s9173_s23 + $0x60] sm:$0xff]  ;;  %v9225_v13 = vld [vmem:[%s9173_s23 + $0x68] sm:$0xff]  ;;  %v9230_v14 = vld [vmem:[%s9173_s23 + $0x70] sm:$0xff] }
  0x18   : > { %430 = vadd.xlane.f32.xlu0 %v9184_v2  ;;  %434 = vadd.xlane.f32.xlu1 %v9187_v3  ;;  %v9233_v15 = vld [vmem:[%s9173_s23 + $0x78] sm:$0xff]  ;;  %v9238_v16 = vld [vmem:[%s9173_s23 + $0x80] sm:$0xff]  ;;  %v9243_v17 = vld [vmem:[%s9173_s23 + $0x88] sm:$0xff] }
  0x19   : > { %v9246_v18 = vld [vmem:[%s9173_s23 + $0x90] sm:$0xff]  ;;  %v9249_v19 = vld [vmem:[%s9173_s23 + $0x98] sm:$0xff]  ;;  %v9254_v20 = vld [vmem:[%s9173_s23 + $0xa0] sm:$0xff] }
  0x1a   : > { %v9257_v21 = vld [vmem:[%s9173_s23 + $0xa8] sm:$0xff]  ;;  %v9262_v22 = vld [vmem:[%s9173_s23 + $0xc0] sm:$0xff]  ;;  %v9270_v24 = vld [vmem:[%s9173_s23 + $0xb0] sm:$0xff] }
  0x1b   : > { %v9267_v23 = vld [vmem:[%s9173_s23 + $0xc8] sm:$0xff]  ;;  %v9273_v25 = vld [vmem:[%s9173_s23 + $0xb8] sm:$0xff]  ;;  %v9313_v54 = vld [vmem:[%s9173_s23 + $0xd0] sm:$0xff] }
  0x1c   : > { %436 = vadd.xlane.f32.xlu0 %v9192_v4  ;;  %438 = vadd.xlane.f32.xlu1 %v9195_v5  ;;  %v9325_v62 = vld [vmem:[%s9173_s23 + $0xd8] sm:$0xff]  ;;  %v9335_v26 = vld [vmem:[%s9173_s23 + $0xe0] sm:$0xff] }
  0x20   : > { %440 = vadd.xlane.f32.xlu0 %v9198_v6  ;;  %442 = vadd.xlane.f32.xlu1 %v9201_v7 }
  0x24   : > { %444 = vadd.xlane.f32.xlu0 %v9206_v8  ;;  %446 = vadd.xlane.f32.xlu1 %v9209_v9 }
  0x28   : > { %448 = vadd.xlane.f32.xlu0 %v9214_v10  ;;  %450 = vadd.xlane.f32.xlu1 %v9219_v11 }
  0x2c   : > { %452 = vadd.xlane.f32.xlu0 %v9222_v12  ;;  %454 = vadd.xlane.f32.xlu1 %v9225_v13 }
  0x30   : > { %456 = vadd.xlane.f32.xlu0 %v9230_v14  ;;  %458 = vadd.xlane.f32.xlu1 %v9233_v15 }
  0x34   : > { %460 = vadd.xlane.f32.xlu0 %v9238_v16  ;;  %462 = vadd.xlane.f32.xlu1 %v9243_v17 }
  0x38   : > { %464 = vadd.xlane.f32.xlu0 %v9246_v18  ;;  %466 = vadd.xlane.f32.xlu1 %v9249_v19 }
  0x3c   : > { %468 = vadd.xlane.f32.xlu0 %v9254_v20  ;;  %470 = vadd.xlane.f32.xlu1 %v9257_v21 }
  0x40   : > { %476 = vadd.xlane.f32.xlu0 %v9262_v22  ;;  %478 = vadd.xlane.f32.xlu1 %v9267_v23 }
  0x44   : > { %472 = vadd.xlane.f32.xlu0 %v9270_v24  ;;  %474 = vadd.xlane.f32.xlu1 %v9273_v25 }
  0xa1   : > { %v429_v33 = vpop.xlane.xlu0 %428  ;;  %v433_v34 = vpop.xlane.xlu1 %432 }
  0xa2   : > { %v492_v35 = vmul.f32 0.007936508, %v429_v33  ;;  %v494_v36 = vmul.f32 0.007936508, %v433_v34  ;;  %v8191_v34 = vld [vmem:[%s14138_s1 + $0x30] ss:$12 sps:$4 sm:$0xff]  }
  0xa3   : > { %1010 = vmatpush1.bf16.msra.mxu0 %v8191_v34  ;;  %8167 = vmatpush1.bf16.msra.mxu1 %v8191_v34 }
  0xa4   : > { %v524_v39 = vsub.f32 %v9176_v0, %v492_v35  ;;  %v526_v43 = vsub.f32 %v9179_v1, %v494_v36  ;;  %v9348_v35 = vld [vmem:[%s9173_s23 + $0xe8] sm:$0xff] }
  0xa5   : > { %v431_v40 = vpop.xlane.xlu0 %430  ;;  %v435_v41 = vpop.xlane.xlu1 %434 }
  0xa6   : > { %v493_v42 = vmul.f32 0.007936508, %v431_v40  ;;  %v9300_v44 = vmul.f32 %v9295_v38, %v524_v39  ;;  %v495_v45 = vmul.f32 0.007936508, %v435_v41  ;;  %v9310_v53 = vmul.f32 %v9295_v38, %v526_v43  ;;  %v8192_v40 = vld [vmem:[%s14138_s1 + $0x4c] ss:$12 sps:$4 sm:$0xff]  }
  0xa7   : > { %1011 = vmatprep.subr.bf16.mxu0 %v8192_v40  ;;  %8160 = vmatprep.subr.bf16.mxu1 %v8192_v40 }
  0xa8   : > { %v525_v46 = vsub.f32 %v9184_v2, %v493_v42  ;;  %v588_v47 = vmul.f32 %v9300_v44, %v9300_v44  ;;  %v527_v50 = vsub.f32 %v9187_v3, %v495_v45  ;;  %v590_v59 = vmul.f32 %v9310_v53, %v9310_v53 }
  0xa9   : > { %v437_v48 = vpop.xlane.xlu0 %436  ;;  %v439_v49 = vpop.xlane.xlu1 %438 }
  0xaa   : > { %620 = vadd.xlane.f32.xlu0 %v588_v47  ;;  %v9307_v51 = vmul.f32 %v9295_v38, %v525_v46  ;;  %v496_v52 = vmul.f32 0.007936508, %v437_v48  ;;  %v497_v60 = vmul.f32 0.007936508, %v439_v49  ;;  %v9322_v61 = vmul.f32 %v9295_v38, %v527_v50  ;;  %v9365_v46 = vld [vmem:[%s9173_s23 + $0xf0] sm:$0xff] }
  0xac   : > { %v589_v55 = vmul.f32 %v9307_v51, %v9307_v51  ;;  %v528_v58 = vsub.f32 %v9192_v4, %v496_v52  ;;  %v529_v1 = vsub.f32 %v9195_v5, %v497_v60  ;;  %v591_v2 = vmul.f32 %v9322_v61, %v9322_v61  ;;  %v8195_v52 = vld [vmem:[%s14138_s1 + $0x64] ss:$12 sps:$4 sm:$0xff]  }
  0xad   : > { %v441_v56 = vpop.xlane.xlu0 %440  ;;  %v443_v57 = vpop.xlane.xlu1 %442 }
  0xae   : > { %480 = vadd.xlane.f32.xlu0 %v9313_v54  ;;  %622 = vadd.xlane.f32.xlu1 %v589_v55  ;;  %v498_v3 = vmul.f32 0.007936508, %v441_v56  ;;  %v9332_v4 = vmul.f32 %v9295_v38, %v528_v58  ;;  %v499_v27 = vmul.f32 0.007936508, %v443_v57  ;;  %v9342_v33 = vmul.f32 %v9295_v38, %v529_v1  ;;  %v8197_v58 = vld [vmem:[%s14138_s1 + $0x60] ss:$12 sps:$4 sm:$0xff]  }
  0xb0   : > { %v530_v30 = vsub.f32 %v9198_v6, %v498_v3  ;;  %v592_v5 = vmul.f32 %v9332_v4, %v9332_v4  ;;  %v531_v36 = vsub.f32 %v9201_v7, %v499_v27  ;;  %v593_v42 = vmul.f32 %v9342_v33, %v9342_v33  ;;  %v8194_v7 = vld [vmem:[%s14138_s1 + $0x48] ss:$12 sps:$4 sm:$0xff]  }
  0xb1   : > { %v445_v63 = vpop.xlane.xlu0 %444  ;;  %v447_v0 = vpop.xlane.xlu1 %446  ;;  %1012 = vmatpush1.bf16.msra.mxu0 %v8194_v7  ;;  %8168 = vmatpush1.bf16.msra.mxu1 %v8194_v7  ;;  %v8198_v3 = vld [vmem:[%s14138_s1 + $0x7c] ss:$12 sps:$4 sm:$0xff]  }
  0xb2   : > { %624 = vadd.xlane.f32.xlu0 %v590_v59  ;;  %482 = vadd.xlane.f32.xlu1 %v9325_v62  ;;  %v500_v32 = vmul.f32 0.007936508, %v445_v63  ;;  %v501_v37 = vmul.f32 0.007936508, %v447_v0  ;;  %v9359_v45 = vmul.f32 %v9295_v38, %v530_v30  ;;  %v9369_v48 = vmul.f32 %v9295_v38, %v531_v36  ;;  %v9385_v59 = vld [vmem:[%s9173_s23 + $0xf8] sm:$0xff] }
  0xb3   : > { %1013 = vmatprep.subr.bf16.mxu0 %v8195_v52  ;;  %8161 = vmatprep.subr.bf16.mxu1 %v8195_v52  ;;  %v8200_v30 = vld [vmem:[%s14138_s1 + $0x78] ss:$12 sps:$4 sm:$0xff]  }
  0xb4   : > { %v532_v41 = vsub.f32 %v9206_v8, %v500_v32  ;;  %v533_v47 = vsub.f32 %v9209_v9, %v501_v37  ;;  %v594_v56 = vmul.f32 %v9359_v45, %v9359_v45 }
  0xb5   : > { %v449_v28 = vpop.xlane.xlu0 %448  ;;  %v451_v29 = vpop.xlane.xlu1 %450  ;;  %1014 = vmatpush1.bf16.msra.mxu0 %v8197_v58  ;;  %8169 = vmatpush1.bf16.msra.mxu1 %v8197_v58 }
  0xb6   : > { %484 = vadd.xlane.f32.xlu0 %v9335_v26  ;;  %626 = vadd.xlane.f32.xlu1 %v591_v2  ;;  %v502_v43 = vmul.f32 0.007936508, %v449_v28  ;;  %v503_v8 = vmul.f32 0.007936508, %v451_v29  ;;  %v9379_v57 = vmul.f32 %v9295_v38, %v532_v41  ;;  %v9391_v0 = vmul.f32 %v9295_v38, %v533_v47 }
  0xb7   : > { %1015 = vmatprep.subr.bf16.mxu0 %v8198_v3  ;;  %8162 = vmatprep.subr.bf16.mxu1 %v8198_v3 }
  0xb8   : > { %v534_v55 = vsub.f32 %v9214_v10, %v502_v43  ;;  %v535_v63 = vsub.f32 %v9219_v11, %v503_v8  ;;  %v595_v10 = vmul.f32 %v9369_v48, %v9369_v48  ;;  %v596_v11 = vmul.f32 %v9379_v57, %v9379_v57 }
  0xb9   : > { %v453_v39 = vpop.xlane.xlu0 %452  ;;  %v455_v6 = vpop.xlane.xlu1 %454  ;;  %1016 = vmatpush1.bf16.msra.mxu0 %v8200_v30  ;;  %v597_v32 = vmul.f32 %v9391_v0, %v9391_v0  ;;  %8170 = vmatpush1.bf16.msra.mxu1 %v8200_v30 }
  0xba   : > { %486 = vadd.xlane.f32.xlu1 %v9348_v35  ;;  %628 = vadd.xlane.f32.xlu0 %v592_v5  ;;  %v504_v9 = vmul.f32 0.007936508, %v453_v39  ;;  %v505_v60 = vmul.f32 0.007936508, %v455_v6  ;;  %v9401_v29 = vmul.f32 %v9295_v38, %v534_v55  ;;  %v9410_v34 = vmul.f32 %v9295_v38, %v535_v63  ;;  %v8201_v39 = vld [vmem:[%s14138_s1 + $0x94] ss:$12 sps:$4 sm:$0xff]  }
  0xbb   : > { %1017 = vmatprep.subr.bf16.mxu0 %v8201_v39  ;;  %8163 = vmatprep.subr.bf16.mxu1 %v8201_v39 }
  0xbc   : > { %v536_v27 = vsub.f32 %v9222_v12, %v504_v9  ;;  %v537_v5 = vsub.f32 %v9225_v13, %v505_v60  ;;  %v598_v13 = vmul.f32 %v9401_v29, %v9401_v29 }
  0xbd   : > { %v457_v49 = vpop.xlane.xlu0 %456  ;;  %v459_v50 = vpop.xlane.xlu1 %458 }
  0xbe   : > { %630 = vadd.xlane.f32.xlu1 %v593_v42  ;;  %488 = vadd.xlane.f32.xlu0 %v9365_v46  ;;  %v506_v28 = vmul.f32 0.007936508, %v457_v49  ;;  %v507_v12 = vmul.f32 0.007936508, %v459_v50  ;;  %v9419_v41 = vmul.f32 %v9295_v38, %v536_v27  ;;  %v8203_v42 = vld [vmem:[%s14138_s1 + $0x90] ss:$12 sps:$4 sm:$0xff]   ;;  %v9425_v43 = vmul.f32 %v9295_v38, %v537_v5 }
  0xbf   : > { %1018 = vmatpush1.bf16.msra.mxu0 %v8203_v42  ;;  %v8204_v49 = vld [vmem:[%s14138_s1 + $0xac] ss:$12 sps:$4 sm:$0xff]   ;;  %8171 = vmatpush1.bf16.msra.mxu1 %v8203_v42 }
  0xc0   : > { %v538_v6 = vsub.f32 %v9230_v14, %v506_v28  ;;  %v539_v7 = vsub.f32 %v9233_v15, %v507_v12  ;;  %v599_v14 = vmul.f32 %v9410_v34, %v9410_v34  ;;  %v600_v52 = vmul.f32 %v9419_v41, %v9419_v41  ;;  %1019 = vmatprep.subr.bf16.mxu0 %v8204_v49 }
  0xc1   : > { %v461_v1 = vpop.xlane.xlu0 %460  ;;  %v463_v2 = vpop.xlane.xlu1 %462  ;;  %8164 = vmatprep.subr.bf16.mxu1 %v8204_v49  ;;  %v601_v58 = vmul.f32 %v9425_v43, %v9425_v43 }
  0xc2   : > { %490 = vadd.xlane.f32.xlu1 %v9385_v59  ;;  %632 = vadd.xlane.f32.xlu0 %v594_v56  ;;  %v508_v40 = vmul.f32 0.007936508, %v461_v1  ;;  %v509_v47 = vmul.f32 0.007936508, %v463_v2  ;;  %v9437_v15 = vmul.f32 %v9295_v38, %v538_v6  ;;  %v8206_v56 = vld [vmem:[%s14138_s1 + $0xa8] ss:$12 sps:$4 sm:$0xff]   ;;  %v9446_v63 = vmul.f32 %v9295_v38, %v539_v7 }
  0xc3   : > { %1020 = vmatpush1.bf16.msra.mxu0 %v8206_v56  ;;  %8172 = vmatpush1.bf16.msra.mxu1 %v8206_v56 }
  0xc4   : > { %v540_v50 = vsub.f32 %v9238_v16, %v508_v40  ;;  %v541_v16 = vsub.f32 %v9243_v17, %v509_v47  ;;  %v602_v2 = vmul.f32 %v9437_v15, %v9437_v15  ;;  %v603_v28 = vmul.f32 %v9446_v63, %v9446_v63 }
  0xc5   : > { %v465_v36 = vpop.xlane.xlu0 %464  ;;  %v467_v37 = vpop.xlane.xlu1 %466 }
  0xc6   : > { %634 = vadd.xlane.f32.xlu1 %v595_v10  ;;  %636 = vadd.xlane.f32.xlu0 %v596_v11  ;;  %v510_v55 = vmul.f32 0.007936508, %v465_v36  ;;  %v511_v60 = vmul.f32 0.007936508, %v467_v37  ;;  %v9452_v27 = vmul.f32 %v9295_v38, %v540_v50  ;;  %v14152_v11 = vmov 0  }
  0xc7   : > { %1037 = vmatprep.mubr.bf16.mxu0 %v14152_v11  ;;  %1157 = vmatprep.mubr.bf16.mxu1 %v14152_v11 }
  0xc8   : > { %v542_v1 = vsub.f32 %v9246_v18, %v510_v55  ;;  %v543_v17 = vsub.f32 %v9249_v19, %v511_v60  ;;  %v9460_v18 = vmul.f32 %v9295_v38, %v541_v16  ;;  %v604_v12 = vmul.f32 %v9452_v27, %v9452_v27 }
  0xc9   : > { %v469_v8 = vpop.xlane.xlu0 %468  ;;  %v471_v9 = vpop.xlane.xlu1 %470 }
  0xca   : > { %638 = vadd.xlane.f32.xlu1 %v597_v32  ;;  %640 = vadd.xlane.f32.xlu0 %v598_v13  ;;  %v512_v3 = vmul.f32 0.007936508, %v469_v8  ;;  %v513_v30 = vmul.f32 0.007936508, %v471_v9  ;;  %v9466_v37 = vmul.f32 %v9295_v38, %v542_v1  ;;  %v605_v6 = vmul.f32 %v9460_v18, %v9460_v18 }
  0xcb   : > { %v9472_v40 = vmul.f32 %v9295_v38, %v543_v17 }
  0xcc   : > { %v544_v32 = vsub.f32 %v9254_v20, %v512_v3  ;;  %v545_v39 = vsub.f32 %v9257_v21, %v513_v30  ;;  %v606_v42 = vmul.f32 %v9466_v37, %v9466_v37 }
  0xcd   : > { %v477_v10 = vpop.xlane.xlu0 %476  ;;  %v479_v5 = vpop.xlane.xlu1 %478  ;;  %v607_v8 = vmul.f32 %v9472_v40, %v9472_v40 }
  0xce   : > { %642 = vadd.xlane.f32.xlu1 %v599_v14  ;;  %644 = vadd.xlane.f32.xlu0 %v600_v52  ;;  %v516_v36 = vmul.f32 0.007936508, %v477_v10  ;;  %v517_v13 = vmul.f32 0.007936508, %v479_v5  ;;  %v9478_v14 = vmul.f32 %v9295_v38, %v544_v32  ;;  %v9484_v49 = vmul.f32 %v9295_v38, %v545_v39 }
  0xd0   : > { %v548_v20 = vsub.f32 %v9262_v22, %v516_v36  ;;  %v549_v21 = vsub.f32 %v9267_v23, %v517_v13  ;;  %v608_v50 = vmul.f32 %v9478_v14, %v9478_v14  ;;  %v609_v23 = vmul.f32 %v9484_v49, %v9484_v49 }
  0xd1   : > { %v473_v19 = vpop.xlane.xlu0 %472  ;;  %v475_v47 = vpop.xlane.xlu1 %474 }
  0xd2   : > { %646 = vadd.xlane.f32.xlu1 %v601_v58  ;;  %648 = vadd.xlane.f32.xlu0 %v602_v2  ;;  %v514_v7 = vmul.f32 0.007936508, %v473_v19  ;;  %v515_v52 = vmul.f32 0.007936508, %v475_v47  ;;  %v9490_v55 = vmul.f32 %v9295_v38, %v548_v20  ;;  %v9495_v56 = vmul.f32 %v9295_v38, %v549_v21 }
  0xd4   : > { %v546_v22 = vsub.f32 %v9270_v24, %v514_v7  ;;  %v547_v9 = vsub.f32 %v9273_v25, %v515_v52  ;;  %v612_v24 = vmul.f32 %v9490_v55, %v9490_v55  ;;  %v613_v16 = vmul.f32 %v9495_v56, %v9495_v56 }
  0xd6   : > { %650 = vadd.xlane.f32.xlu1 %v603_v28  ;;  %652 = vadd.xlane.f32.xlu0 %v604_v12  ;;  %v9501_v58 = vmul.f32 %v9295_v38, %v546_v22  ;;  %v9508_v10 = vmul.f32 %v9295_v38, %v547_v9 }
  0xd8   : > { %v610_v60 = vmul.f32 %v9501_v58, %v9501_v58  ;;  %v611_v25 = vmul.f32 %v9508_v10, %v9508_v10 }
  0xda   : > { %654 = vadd.xlane.f32.xlu1 %v605_v6  ;;  %656 = vadd.xlane.f32.xlu0 %v606_v42 }
  0xde   : > { %658 = vadd.xlane.f32.xlu1 %v607_v8  ;;  %660 = vadd.xlane.f32.xlu0 %v608_v50 }
  0xe2   : > { %662 = vadd.xlane.f32.xlu1 %v609_v23  ;;  %668 = vadd.xlane.f32.xlu0 %v612_v24 }
  0xe6   : > { %670 = vadd.xlane.f32.xlu1 %v613_v16  ;;  %664 = vadd.xlane.f32.xlu0 %v610_v60 }
  0xea   : > { %666 = vadd.xlane.f32.xlu1 %v611_v25 }
 0x137   : > { %v621_v1 = vpop.xlane.xlu0 %620 }
 0x138   : > { %v684_v2 = vmul.f32 0.007936508, %v621_v1 }
 0x13a   : > { %v716_v3 = vadd.f32 1e-05, %v684_v2 }
 0x13b   : > { %v623_v17 = vpop.xlane.xlu1 %622  ;;  %v481_v28 = vpop.xlane.xlu0 %480 }
 0x13c   : > { %v685_v30 = vmul.f32 0.007936508, %v623_v17  ;;  %v518_v5 = vmul.f32 0.007936508, %v481_v28  ;;  %8415 = vrsqrt.f32 %v716_v3 }
 0x13e   : > { %v717_v32 = vadd.f32 1e-05, %v685_v30  ;;  %v550_v12 = vsub.f32 %v9313_v54, %v518_v5 }
 0x13f   : > { %v483_v36 = vpop.xlane.xlu1 %482  ;;  %v625_v19 = vpop.xlane.xlu0 %624 }
 0x140   : > { %8417 = vrsqrt.f32 %v717_v32  ;;  %v519_v39 = vmul.f32 0.007936508, %v483_v36  ;;  %v686_v6 = vmul.f32 0.007936508, %v625_v19  ;;  %v9514_v13 = vmul.f32 %v9295_v38, %v550_v12 }
 0x142   : > { %v551_v20 = vsub.f32 %v9325_v62, %v519_v39  ;;  %v718_v42 = vadd.f32 1e-05, %v686_v6  ;;  %v614_v7 = vmul.f32 %v9514_v13, %v9514_v13 }
 0x143   : > { %v627_v47 = vpop.xlane.xlu1 %626  ;;  %v485_v21 = vpop.xlane.xlu0 %484 }
 0x144   : > { %v687_v8 = vmul.f32 0.007936508, %v627_v47  ;;  %v520_v22 = vmul.f32 0.007936508, %v485_v21  ;;  %672 = vadd.xlane.f32.xlu0 %v614_v7  ;;  %v9520_v54 = vmul.f32 %v9295_v38, %v551_v20  ;;  %8419 = vrsqrt.f32 %v718_v42 }
 0x146   : > { %v719_v50 = vadd.f32 1e-05, %v687_v8  ;;  %v552_v52 = vsub.f32 %v9335_v26, %v520_v22  ;;  %v615_v23 = vmul.f32 %v9520_v54, %v9520_v54  ;;  %v8416_v24 = vpop.eup %8415 }
 0x147   : > { %v487_v62 = vpop.xlane.xlu1 %486  ;;  %v629_v9 = vpop.xlane.xlu0 %628  ;;  %v780_v30 = vmul.f32 %v8416_v24, %v9300_v44 }
 0x148   : > { %8421 = vrsqrt.f32 %v719_v50  ;;  %v521_v16 = vmul.f32 0.007936508, %v487_v62  ;;  %v688_v60 = vmul.f32 0.007936508, %v629_v9  ;;  %674 = vadd.xlane.f32.xlu1 %v615_v23  ;;  %v9526_v25 = vmul.f32 %v9295_v38, %v552_v52 }
 0x14a   : > { %v8418_v1 = vpop.eup %8417  ;;  %v553_v2 = vsub.f32 %v9348_v35, %v521_v16  ;;  %v720_v3 = vadd.f32 1e-05, %v688_v60  ;;  %v616_v26 = vmul.f32 %v9526_v25, %v9526_v25 }
 0x14b   : > { %v631_v17 = vpop.xlane.xlu1 %630  ;;  %v489_v28 = vpop.xlane.xlu0 %488  ;;  %v781_v5 = vmul.f32 %v8418_v1, %v9307_v51 }
 0x14c   : > { %v689_v32 = vmul.f32 0.007936508, %v631_v17  ;;  %v522_v12 = vmul.f32 0.007936508, %v489_v28  ;;  %676 = vadd.xlane.f32.xlu0 %v616_v26  ;;  %v9534_v36 = vmul.f32 %v9295_v38, %v553_v2  ;;  %8423 = vrsqrt.f32 %v720_v3 }
 0x14d   : > { %v9536_v19 = vpack.c.bf16 %v781_v5, %v780_v30 }
 0x14e   : > { %v721_v35 = vadd.f32 1e-05, %v689_v32  ;;  %v554_v39 = vsub.f32 %v9365_v46, %v522_v12  ;;  %v617_v6 = vmul.f32 %v9534_v36, %v9534_v36  ;;  %v8420_v51 = vpop.eup %8419 }
 0x14f   : > { %v491_v20 = vpop.xlane.xlu1 %490  ;;  %1038 = vmatmul.mubr.bf16.vlgmr.msra.gmra.mrb[0].mxu0 %v9536_v19  ;;  %v633_v44 = vpop.xlane.xlu0 %632  ;;  %v782_v23 = vmul.f32 %v8420_v51, %v9310_v53 }
 0x150   : > { %8425 = vrsqrt.f32 %v721_v35  ;;  %v523_v42 = vmul.f32 0.007936508, %v491_v20  ;;  %v690_v7 = vmul.f32 0.007936508, %v633_v44  ;;  %678 = vadd.xlane.f32.xlu1 %v617_v6  ;;  %v9543_v47 = vmul.f32 %v9295_v38, %v554_v39  ;;  %1047 = vmatprep.mubr.bf16.mxu0 %v14152_v11 }
 0x152   : > { %v8422_v21 = vpop.eup %8421  ;;  %v555_v46 = vsub.f32 %v9385_v59, %v523_v42  ;;  %v722_v8 = vadd.f32 1e-05, %v690_v7  ;;  %v618_v22 = vmul.f32 %v9543_v47, %v9543_v47 }
 0x153   : > { %v635_v50 = vpop.xlane.xlu1 %634  ;;  %v637_v52 = vpop.xlane.xlu0 %636  ;;  %v783_v62 = vmul.f32 %v8422_v21, %v9322_v61 }
 0x154   : > { %v691_v9 = vmul.f32 0.007936508, %v635_v50  ;;  %680 = vadd.xlane.f32.xlu0 %v618_v22  ;;  %v9552_v24 = vmul.f32 %v9295_v38, %v555_v46  ;;  %8427 = vrsqrt.f32 %v722_v8  ;;  %v692_v59 = vmul.f32 0.007936508, %v637_v52 }
 0x155   : > { %v9554_v16 = vpack.c.bf16 %v783_v62, %v782_v23 }
 0x156   : > { %v723_v60 = vadd.f32 1e-05, %v691_v9  ;;  %v619_v1 = vmul.f32 %v9552_v24, %v9552_v24  ;;  %v8424_v53 = vpop.eup %8423  ;;  %v724_v17 = vadd.f32 1e-05, %v692_v59 }
 0x157   : > { %v639_v2 = vpop.xlane.xlu1 %638  ;;  %1048 = vmatmul.mubr.bf16.gmra.mrb[4].mxu0 %v9554_v16  ;;  %v641_v3 = vpop.xlane.xlu0 %640  ;;  %v784_v32 = vmul.f32 %v8424_v53, %v9332_v4  ;;  %v9569_v4 = vld [vmem:[%s14138_s1 + $0x8] ss:$12 sps:$4 sm:$0xff]  }
 0x158   : > { %8429 = vrsqrt.f32 %v723_v60  ;;  %v693_v61 = vmul.f32 0.007936508, %v639_v2  ;;  %682 = vadd.xlane.f32.xlu1 %v619_v1  ;;  %1057 = vmatprep.mubr.bf16.mxu0 %v14152_v11  ;;  %v694_v6 = vmul.f32 0.007936508, %v641_v3 }
 0x159   : > { %7917 = vmatprep.subr.bf16.mxu1 %v9569_v4 }
 0x15a   : > { %v8426_v26 = vpop.eup %8425  ;;  %v725_v28 = vadd.f32 1e-05, %v693_v61  ;;  %v726_v7 = vadd.f32 1e-05, %v694_v6 }
 0x15b   : > { %v643_v30 = vpop.xlane.xlu1 %642  ;;  %v645_v5 = vpop.xlane.xlu0 %644  ;;  %v785_v12 = vmul.f32 %v8426_v26, %v9342_v33 }
 0x15c   : > { %8431 = vrsqrt.f32 %v725_v28  ;;  %v695_v35 = vmul.f32 0.007936508, %v643_v30  ;;  %v696_v62 = vmul.f32 0.007936508, %v645_v5 }
 0x15d   : > { %v9562_v39 = vpack.c.bf16 %v785_v12, %v784_v32  ;;  %8433 = vrsqrt.f32 %v724_v17 }
 0x15e   : > { %v8428_v51 = vpop.eup %8427  ;;  %v727_v42 = vadd.f32 1e-05, %v695_v35 }
 0x15f   : > { %v647_v20 = vpop.xlane.xlu1 %646  ;;  %1058 = vmatmul.mubr.bf16.gmra.mrb[8].mxu0 %v9562_v39  ;;  %v649_v44 = vpop.xlane.xlu0 %648  ;;  %v786_v8 = vmul.f32 %v8428_v51, %v9359_v45  ;;  %v728_v45 = vadd.f32 1e-05, %v696_v62 }
 0x160   : > { %1067 = vmatprep.mubr.bf16.mxu0 %v14152_v11  ;;  %8435 = vrsqrt.f32 %v727_v42  ;;  %v697_v50 = vmul.f32 0.007936508, %v647_v20  ;;  %v698_v26 = vmul.f32 0.007936508, %v649_v44 }
 0x161   : > { %8437 = vrsqrt.f32 %v726_v7 }
 0x162   : > { %v8430_v33 = vpop.eup %8429  ;;  %v729_v1 = vadd.f32 1e-05, %v697_v50 }
 0x163   : > { %v651_v21 = vpop.xlane.xlu1 %650  ;;  %v653_v46 = vpop.xlane.xlu0 %652  ;;  %v787_v22 = vmul.f32 %v8430_v33, %v9369_v48 }
 0x164   : > { %8439 = vrsqrt.f32 %v729_v1  ;;  %v699_v61 = vmul.f32 0.007936508, %v651_v21  ;;  %v700_v21 = vmul.f32 0.007936508, %v653_v46 }
 0x165   : > { %v9574_v52 = vpack.c.bf16 %v787_v22, %v786_v8  ;;  %8441 = vrsqrt.f32 %v728_v45 }
 0x166   : > { %v8432_v23 = vpop.eup %8431  ;;  %v731_v12 = vadd.f32 1e-05, %v699_v61 }
 0x167   : > { %v655_v9 = vpop.xlane.xlu1 %654  ;;  %1068 = vmatmul.mubr.bf16.gmra.mrb[12].mxu0 %v9574_v52  ;;  %v657_v60 = vpop.xlane.xlu0 %656  ;;  %v789_v2 = vmul.f32 %v8432_v23, %v9391_v0  ;;  %v730_v0 = vadd.f32 1e-05, %v698_v26 }
 0x168   : > { %v8434_v59 = vpop.eup %8433  ;;  %1077 = vmatprep.mubr.bf16.mxu0 %v14152_v11  ;;  %8443 = vrsqrt.f32 %v731_v12  ;;  %v701_v51 = vmul.f32 0.007936508, %v655_v9  ;;  %v702_v46 = vmul.f32 0.007936508, %v657_v60 }
 0x169   : > { %v788_v53 = vmul.f32 %v8434_v59, %v9379_v57  ;;  %8445 = vrsqrt.f32 %v730_v0 }
 0x16a   : > { %v8436_v28 = vpop.eup %8435  ;;  %v733_v50 = vadd.f32 1e-05, %v701_v51  ;;  %v734_v61 = vadd.f32 1e-05, %v702_v46  ;;  %v8218_v46 = vld [vmem:[%s14140_s3 + $0x50] ss:$12 sps:$4 sm:$0xff]  }
 0x16b   : > { %v659_v3 = vpop.xlane.xlu1 %658  ;;  %v661_v48 = vpop.xlane.xlu0 %660  ;;  %v9580_v17 = vpack.c.bf16 %v789_v2, %v788_v53  ;;  %v791_v6 = vmul.f32 %v8436_v28, %v9410_v34 }
 0x16c   : > { %v8438_v32 = vpop.eup %8437  ;;  %v703_v62 = vmul.f32 0.007936508, %v659_v3 }
 0x16d   : > { %v790_v44 = vmul.f32 %v8438_v32, %v9401_v29  ;;  %v732_v29 = vadd.f32 1e-05, %v700_v21  ;;  %v8208_v32 = vld [vmem:[%s14138_s1 + $0x20] ss:$12 sps:$4 sm:$0xff]   ;;  %v8215_v21 = vld [vmem:[%s14140_s3 + $0x8] ss:$12 sps:$4 sm:$0xff]  }
 0x16e   : > { %v8440_v7 = vpop.eup %8439  ;;  %v735_v45 = vadd.f32 1e-05, %v703_v62  ;;  %7965 = vmatprep.subr.bf16.mxu0 %v8215_v21  ;;  %v8213_v62 = vld [vmem:[%s14138_s1 + $0x98] ss:$12 sps:$4 sm:$0xff]  }
 0x16f   : > { %v663_v30 = vpop.xlane.xlu1 %662  ;;  %1078 = vmatmul.mubr.bf16.gmra.mrb[16].mxu0 %v9580_v17  ;;  %v669_v5 = vpop.xlane.xlu0 %668  ;;  %v9586_v33 = vpack.c.bf16 %v791_v6, %v790_v44  ;;  %v793_v34 = vmul.f32 %v8440_v7, %v9425_v43  ;;  %v8211_v7 = vld [vmem:[%s14138_s1 + $0x68] ss:$12 sps:$4 sm:$0xff]  }
 0x170   : > { %v708_v35 = vmul.f32 0.007936508, %v669_v5  ;;  %1087 = vmatprep.mubr.bf16.mxu0 %v14152_v11  ;;  %v8442_v22 = vpop.eup %8441  ;;  %v705_v28 = vmul.f32 0.007936508, %v663_v30  ;;  %7966 = vmatpush3.bf16.msra.mxu0 %v8215_v21 }
 0x171   : > { %v792_v23 = vmul.f32 %v8442_v22, %v9419_v41  ;;  %v8216_v22 = vld [vmem:[%s14140_s3 + $0x20] ss:$12 sps:$4 sm:$0xff]  }
 0x172   : > { %v740_v57 = vadd.f32 1e-05, %v708_v35  ;;  %v8444_v59 = vpop.eup %8443  ;;  %7967 = vmatprep.subr.bf16.mxu0 %v8216_v22 }
 0x173   : > { %v671_v20 = vpop.xlane.xlu1 %670  ;;  %v9592_v9 = vpack.c.bf16 %v793_v34, %v792_v23  ;;  %v8446_v1 = vpop.eup %8445  ;;  %v795_v53 = vmul.f32 %v8444_v59, %v9446_v63  ;;  %v704_v63 = vmul.f32 0.007936508, %v661_v48  ;;  %v8209_v48 = vld [vmem:[%s14138_s1 + $0x38] ss:$12 sps:$4 sm:$0xff]   ;;  %v8212_v34 = vld [vmem:[%s14138_s1 + $0x80] ss:$12 sps:$4 sm:$0xff]  }
 0x174   : > { %v709_v42 = vmul.f32 0.007936508, %v671_v20  ;;  %8447 = vrsqrt.f32 %v740_v57  ;;  %v794_v41 = vmul.f32 %v8446_v1, %v9437_v15  ;;  %v665_v0 = vpop.xlane.xlu0 %664  ;;  %7968 = vmatpush3.bf16.msra.mxu0 %v8216_v22  ;;  %v8217_v59 = vld [vmem:[%s14140_s3 + $0x38] ss:$12 sps:$4 sm:$0xff]  }
 0x175   : > { %v736_v35 = vadd.f32 1e-05, %v704_v63  ;;  %v706_v44 = vmul.f32 0.007936508, %v665_v0  ;;  %7969 = vmatprep.subr.bf16.mxu0 %v8217_v59 }
 0x176   : > { %v741_v8 = vadd.f32 1e-05, %v709_v42  ;;  %v9600_v60 = vpack.c.bf16 %v795_v53, %v794_v41 }
 0x177   : > { %1088 = vmatmul.mubr.bf16.gmra.mrb[20].mxu0 %v9586_v33 }
 0x178   : > { %8449 = vrsqrt.f32 %v741_v8  ;;  %1097 = vmatprep.mubr.bf16.mxu0 %v14152_v11  ;;  %v738_v8 = vadd.f32 1e-05, %v706_v44  ;;  %7970 = vmatpush3.bf16.msra.mxu0 %v8217_v59 }
 0x179   : > { %8451 = vrsqrt.f32 %v733_v50  ;;  %7971 = vmatprep.subr.bf16.mxu0 %v8218_v46 }
 0x17a   : > { %8453 = vrsqrt.f32 %v732_v29 }
 0x17b   : > { %8455 = vrsqrt.f32 %v735_v45 }
 0x17c   : > { %8457 = vrsqrt.f32 %v734_v61  ;;  %7972 = vmatpush3.bf16.msra.mxu0 %v8218_v46  ;;  %v8222_v61 = vld [vmem:[%s14140_s3 + $0x68] ss:$12 sps:$4 sm:$0xff]  }
 0x17d   : > { %7973 = vmatprep.subr.bf16.mxu0 %v8222_v61 }
 0x17e   : > { %v8448_v2 = vpop.eup %8447 }
 0x17f   : > { %1098 = vmatmul.mubr.bf16.gmra.mrb[24].mxu0 %v9592_v9  ;;  %v804_v3 = vmul.f32 %v8448_v2, %v9490_v55  ;;  %v737_v55 = vadd.f32 1e-05, %v705_v28 }
 0x180   : > { %1107 = vmatprep.mubr.bf16.mxu0 %v14152_v11  ;;  %7974 = vmatpush3.bf16.msra.mxu0 %v8222_v61  ;;  %v9760_v61 = vld [vmem:[%s14141_s4 + $0x8] ss:$12 sps:$4 sm:$0xff]  }
 0x181   : > { %8459 = vrsqrt.f32 %v737_v55 }
 0x182   : > { %v8450_v43 = vpop.eup %8449  ;;  %8461 = vrsqrt.f32 %v736_v35 }
 0x183   : > { %v805_v26 = vmul.f32 %v8450_v43, %v9495_v56  ;;  %v8452_v12 = vpop.eup %8451  ;;  %v667_v56 = vpop.xlane.xlu1 %666  ;;  %v8221_v43 = vld [vmem:[%s14140_s3 + $0x4] ss:$12 sps:$4 sm:$0xff]  }
 0x184   : > { %v8454_v15 = vpop.eup %8453  ;;  %v797_v30 = vmul.f32 %v8452_v12, %v9460_v18  ;;  %v707_v57 = vmul.f32 0.007936508, %v667_v56  ;;  %v8210_v18 = vld [vmem:[%s14138_s1 + $0x50] ss:$12 sps:$4 sm:$0xff]  }
 0x185   : > { %v9602_v5 = vpack.c.bf16 %v805_v26, %v804_v3  ;;  %v796_v6 = vmul.f32 %v8454_v15, %v9452_v27  ;;  %v8230_v26 = vld [vmem:[%s14140_s3 + $0x98] ss:$12 sps:$4 sm:$0xff]  }
 0x186   : > { %v739_v42 = vadd.f32 1e-05, %v707_v57 }
 0x187   : > { %1108 = vmatmul.mubr.bf16.gmra.mrb[28].mxu0 %v9600_v60  ;;  %1158 = vmatmul.mubr.bf16.vlgmr.msra.gmra.mrb[0].mxu1 %v9602_v5  ;;  %v9617_v20 = vpack.c.bf16 %v797_v30, %v796_v6 }
 0x188   : > { %1117 = vmatprep.mubr.bf16.mxu0 %v14152_v11  ;;  %7918 = vmatpush3.bf16.msra.mxu1 %v9569_v4  ;;  %v8456_v4 = vpop.eup %8455  ;;  %8463 = vrsqrt.f32 %v739_v42 }
 0x189   : > { %7919 = vmatprep.subr.bf16.mxu1 %v8208_v32  ;;  %1167 = vmatprep.mubr.bf16.mxu1 %v14152_v11  ;;  %v8458_v51 = vpop.eup %8457  ;;  %v799_v27 = vmul.f32 %v8456_v4, %v9472_v40  ;;  %8465 = vrsqrt.f32 %v738_v8 }
 0x18a   : > { %v798_v50 = vmul.f32 %v8458_v51, %v9466_v37 }
 0x18b   : > { %v8460_v29 = vpop.eup %8459 }
 0x18c   : > { %7920 = vmatpush3.bf16.msra.mxu1 %v8208_v32  ;;  %v9635_v40 = vpack.c.bf16 %v799_v27, %v798_v50  ;;  %v8462_v23 = vpop.eup %8461  ;;  %v801_v37 = vmul.f32 %v8460_v29, %v9484_v49  ;;  %v8214_v49 = vld [vmem:[%s14138_s1 + $0xb0] ss:$12 sps:$4 sm:$0xff]  }
 0x18d   : > { %7921 = vmatprep.subr.bf16.mxu1 %v8209_v48  ;;  %v800_v1 = vmul.f32 %v8462_v23, %v9478_v14 }
 0x18f   : > { %1118 = vmatmul.mubr.bf16.gmra.mrb[32].mxu0 %v9617_v20  ;;  %v9653_v2 = vpack.c.bf16 %v801_v37, %v800_v1  ;;  %v8237_v1 = vld [vmem:[%s14140_s3 + $0x64] ss:$12 sps:$4 sm:$0xff]  }
 0x190   : > { %1127 = vmatprep.mubr.bf16.mxu0 %v14152_v11  ;;  %7922 = vmatpush3.bf16.msra.mxu1 %v8209_v48 }
 0x191   : > { %7923 = vmatprep.subr.bf16.mxu1 %v8210_v18 }
 0x192   : > { %v8464_v45 = vpop.eup %8463 }
 0x193   : > { %v8466_v53 = vpop.eup %8465  ;;  %v803_v14 = vmul.f32 %v8464_v45, %v9508_v10  ;;  %v8226_v10 = vld [vmem:[%s14140_s3 + $0x80] ss:$12 sps:$4 sm:$0xff]  }
 0x194   : > { %7924 = vmatpush3.bf16.msra.mxu1 %v8210_v18  ;;  %v802_v41 = vmul.f32 %v8466_v53, %v9501_v58  ;;  %7975 = vmatprep.subr.bf16.mxu0 %v8226_v10  ;;  %v8234_v58 = vld [vmem:[%s14140_s3 + $0xb0] ss:$12 sps:$4 sm:$0xff]   ;;  %v8243_v45 = vld [vmem:[%s14140_s3 + $0x94] ss:$12 sps:$4 sm:$0xff]  }
 0x195   : > { %7925 = vmatprep.subr.bf16.mxu1 %v8211_v7  ;;  %7976 = vmatpush3.bf16.msra.mxu0 %v8226_v10  ;;  %v8241_v53 = vld [vmem:[%s14140_s3 + $0x90] ss:$12 sps:$4 sm:$0xff]  }
 0x196   : > { %v9668_v3 = vpack.c.bf16 %v803_v14, %v802_v41  ;;  %7977 = vmatprep.subr.bf16.mxu0 %v8230_v26  ;;  %v9752_v14 = vshrl.u32 %v423_v31, 7  ;;  %v9766_v31 = vld [vmem:[%s14139_s2] sm:$0x7] }
 0x197   : > { %1128 = vmatmul.mubr.bf16.gmra.mrb[36].mxu0 %v9635_v40 }
 0x198   : > { %1137 = vmatprep.mubr.bf16.mxu0 %v14152_v11  ;;  %7926 = vmatpush3.bf16.msra.mxu1 %v8211_v7  ;;  %14285 = vst [vmem:[#allocation3_spill] sm:$0xff] %v9752_v14 }
 0x199   : > { %7927 = vmatprep.subr.bf16.mxu1 %v8212_v34  ;;  %7978 = vmatpush3.bf16.msra.mxu0 %v8230_v26 }
 0x19a   : > { %7979 = vmatprep.subr.bf16.mxu0 %v8234_v58 }
 0x19c   : > { %7928 = vmatpush3.bf16.msra.mxu1 %v8212_v34 }
 0x19d   : > { %7929 = vmatprep.subr.bf16.mxu1 %v8213_v62  ;;  %7980 = vmatpush3.bf16.msra.mxu0 %v8234_v58 }
 0x19f   : > { %1138 = vmatmul.mubr.bf16.gmra.mrb[40].mxu0 %v9653_v2 }
 0x1a0   : > { %1147 = vmatprep.mubr.bf16.mxu0 %v14152_v11  ;;  %7930 = vmatpush3.bf16.msra.mxu1 %v8213_v62 }
 0x1a1   : > { %7931 = vmatprep.subr.bf16.mxu1 %v8214_v49 }
 0x1a4   : > { %7932 = vmatpush3.bf16.msra.mxu1 %v8214_v49  ;;  %v8235_v49 = vld [vmem:[%s14140_s3 + $0x60] ss:$12 sps:$4 sm:$0xff]  }
 0x1a5   : > { %1551 = vmatprep.subr.bf16.mxu1 %v8221_v43  ;;  %v8244_v43 = vld [vmem:[%s14140_s3 + $0xa8] ss:$12 sps:$4 sm:$0xff]  }
 0x1a7   : > { %1148 = vmatmul.mubr.bf16.gmra.mrb[44].mxu0 %v9668_v3 }
 0x1d1   : > { %v673_v28 = vpop.xlane.xlu0 %672 }
 0x1d2   : > { %v710_v32 = vmul.f32 0.007936508, %v673_v28 }
 0x1d4   : > { %v742_v12 = vadd.f32 1e-05, %v710_v32 }
 0x1d5   : > { %v675_v63 = vpop.xlane.xlu1 %674 }
 0x1d6   : > { %v711_v15 = vmul.f32 0.007936508, %v675_v63  ;;  %8467 = vrsqrt.f32 %v742_v12 }
 0x1d8   : > { %v743_v55 = vadd.f32 1e-05, %v711_v15 }
 0x1d9   : > { %v677_v56 = vpop.xlane.xlu0 %676 }
 0x1da   : > { %8469 = vrsqrt.f32 %v743_v55  ;;  %v712_v30 = vmul.f32 0.007936508, %v677_v56 }
 0x1dc   : > { %v744_v48 = vadd.f32 1e-05, %v712_v30  ;;  %v8248_v30 = vld [vmem:[%s14141_s4] ss:$12 sps:$4 sm:$0xff]  }
 0x1dd   : > { %v679_v35 = vpop.xlane.xlu1 %678 }
 0x1de   : > { %v713_v0 = vmul.f32 0.007936508, %v679_v35  ;;  %8471 = vrsqrt.f32 %v744_v48 }
 0x1e0   : > { %v745_v6 = vadd.f32 1e-05, %v713_v0  ;;  %v8468_v18 = vpop.eup %8467  ;;  %v8251_v0 = vld [vmem:[%s14141_s4 + $0x18] ss:$12 sps:$4 sm:$0xff]  }
 0x1e1   : > { %v681_v57 = vpop.xlane.xlu0 %680  ;;  %v806_v27 = vmul.f32 %v8468_v18, %v9514_v13 }
 0x1e2   : > { %8473 = vrsqrt.f32 %v745_v6  ;;  %v714_v4 = vmul.f32 0.007936508, %v681_v57  ;;  %v8257_v57 = vld [vmem:[%s14141_s4 + $0x34] ss:$12 sps:$4 sm:$0xff]  }
 0x1e4   : > { %v8470_v44 = vpop.eup %8469  ;;  %v746_v51 = vadd.f32 1e-05, %v714_v4 }
 0x1e5   : > { %v683_v42 = vpop.xlane.xlu1 %682  ;;  %v807_v7 = vmul.f32 %v8470_v44, %v9520_v54 }
 0x1e6   : > { %v715_v21 = vmul.f32 0.007936508, %v683_v42  ;;  %8475 = vrsqrt.f32 %v746_v51  ;;  %v8255_v51 = vld [vmem:[%s14141_s4 + $0x30] ss:$12 sps:$4 sm:$0xff]  }
 0x1e7   : > { %v9682_v8 = vpack.c.bf16 %v807_v7, %v806_v27  ;;  %v8260_v27 = vld [vmem:[%s14141_s4 + $0x4c] ss:$12 sps:$4 sm:$0xff]  }
 0x1e8   : > { %v747_v22 = vadd.f32 1e-05, %v715_v21  ;;  %v8472_v50 = vpop.eup %8471 }
 0x1e9   : > { %1168 = vmatmul.mubr.bf16.gmra.mrb[4].mxu1 %v9682_v8  ;;  %v808_v29 = vmul.f32 %v8472_v50, %v9526_v25  ;;  %v8219_v25 = vld [vmem:[%s14140_s3] ss:$12 sps:$4 sm:$0xff]   ;;  %v8264_v50 = vld [vmem:[%s14141_s4 + $0x64] ss:$12 sps:$4 sm:$0xff]  }
 0x1ea   : > { %8477 = vrsqrt.f32 %v747_v22  ;;  %1177 = vmatprep.mubr.bf16.mxu1 %v14152_v11 }
 0x1ec   : > { %v8474_v34 = vpop.eup %8473 }
 0x1ed   : > { %v809_v23 = vmul.f32 %v8474_v34, %v9534_v36  ;;  %v8225_v36 = vld [vmem:[%s14140_s3 + $0x1c] ss:$12 sps:$4 sm:$0xff]  }
 0x1ef   : > { %v9688_v37 = vpack.c.bf16 %v809_v23, %v808_v29 }
 0x1f0   : > { %v8476_v13 = vpop.eup %8475 }
 0x1f1   : > { %1178 = vmatmul.mubr.bf16.gmra.mrb[8].mxu1 %v9688_v37  ;;  %v810_v62 = vmul.f32 %v8476_v13, %v9543_v47  ;;  %v8223_v47 = vld [vmem:[%s14140_s3 + $0x18] ss:$12 sps:$4 sm:$0xff]  }
 0x1f2   : > { %1187 = vmatprep.mubr.bf16.mxu1 %v14152_v11 }
 0x1f4   : > { %v8478_v54 = vpop.eup %8477 }
 0x1f5   : > { %v811_v59 = vmul.f32 %v8478_v54, %v9552_v24  ;;  %v8227_v24 = vld [vmem:[%s14140_s3 + $0x30] ss:$12 sps:$4 sm:$0xff]   ;;  %v8254_v54 = vld [vmem:[%s14141_s4 + $0x20] ss:$12 sps:$4 sm:$0xff]  }
 0x1f7   : > { %v9694_v46 = vpack.c.bf16 %v811_v59, %v810_v62  ;;  %v8267_v62 = vld [vmem:[%s14141_s4 + $0x7c] ss:$12 sps:$4 sm:$0xff]  }
 0x1f9   : > { %1188 = vmatmul.mubr.bf16.gmra.mrb[12].mxu1 %v9694_v46 }
 0x1fa   : > { %7933 = vmatprep.mubr.bf16.mxu1 %v9536_v19  ;;  %v8229_v19 = vld [vmem:[%s14140_s3 + $0x34] ss:$12 sps:$4 sm:$0xff]  }
 0x201   : > { %7934 = vmatmul.mubr.bf16.vlgmr.msra.gmra.mrb[16].mxu1 %v9554_v16  ;;  %v8233_v16 = vld [vmem:[%s14140_s3 + $0x4c] ss:$12 sps:$4 sm:$0xff]  }
 0x202   : > { %7937 = vmatprep.mubr.bf16.mxu1 %v9562_v39  ;;  %1552 = vmatpush1.bf16.msra.mxu1 %v8219_v25  ;;  %v8231_v39 = vld [vmem:[%s14140_s3 + $0x48] ss:$12 sps:$4 sm:$0xff]   ;;  %v8265_v25 = vld [vmem:[%s14141_s4 + $0x78] ss:$12 sps:$4 sm:$0xff]  }
 0x203   : > { %1553 = vmatprep.subr.bf16.mxu1 %v8225_v36 }
 0x206   : > { %1554 = vmatpush1.bf16.msra.mxu1 %v8223_v47  ;;  %v8261_v47 = vld [vmem:[%s14141_s4 + $0x38] ss:$12 sps:$4 sm:$0xff]  }
 0x207   : > { %1555 = vmatprep.subr.bf16.mxu1 %v8229_v19 }
 0x209   : > { %7938 = vmatmul.mubr.bf16.gmra.mrb[20].mxu1 %v9574_v52  ;;  %v8240_v52 = vld [vmem:[%s14140_s3 + $0x7c] ss:$12 sps:$4 sm:$0xff]  }
 0x20a   : > { %7941 = vmatprep.mubr.bf16.mxu1 %v9580_v17  ;;  %1556 = vmatpush1.bf16.msra.mxu1 %v8227_v24  ;;  %v8238_v17 = vld [vmem:[%s14140_s3 + $0x78] ss:$12 sps:$4 sm:$0xff]  }
 0x20b   : > { %1557 = vmatprep.subr.bf16.mxu1 %v8233_v16 }
 0x20e   : > { %1558 = vmatpush1.bf16.msra.mxu1 %v8231_v39 }
 0x20f   : > { %1559 = vmatprep.subr.bf16.mxu1 %v8237_v1  ;;  %v8268_v1 = vld [vmem:[%s14141_s4 + $0x50] ss:$12 sps:$4 sm:$0xff]  }
 0x211   : > { %7942 = vmatmul.mubr.bf16.gmra.mrb[24].mxu1 %v9586_v33  ;;  %v8246_v33 = vld [vmem:[%s14140_s3 + $0xac] ss:$12 sps:$4 sm:$0xff]  }
 0x212   : > { %7945 = vmatprep.mubr.bf16.mxu1 %v9592_v9  ;;  %1560 = vmatpush1.bf16.msra.mxu1 %v8235_v49  ;;  %v8250_v9 = vld [vmem:[%s14141_s4 + $0x4] ss:$12 sps:$4 sm:$0xff]  }
 0x213   : > { %1561 = vmatprep.subr.bf16.mxu1 %v8240_v52  ;;  %2065 = vmatprep.subr.bf16.mxu0 %v8250_v9  ;;  %v8269_v49 = vld [vmem:[%s14141_s4 + $0x90] ss:$12 sps:$4 sm:$0xff]   ;;  %v8271_v52 = vld [vmem:[%s14141_s4 + $0x94] ss:$12 sps:$4 sm:$0xff]  }
 0x216   : > { %1562 = vmatpush1.bf16.msra.mxu1 %v8238_v17 }
 0x217   : > { %1563 = vmatprep.subr.bf16.mxu1 %v8243_v45 }
 0x219   : > { %7946 = vmatmul.mubr.bf16.gmra.mrb[28].mxu1 %v9600_v60  ;;  %v14149_v60 = vsub.s32 1, %v9752_v14 }
 0x21a   : > { %7949 = vmatprep.mubr.bf16.mxu1 %v9617_v20  ;;  %1564 = vmatpush1.bf16.msra.mxu1 %v8241_v53 }
 0x21b   : > { %1565 = vmatprep.subr.bf16.mxu1 %v8246_v33  ;;  %v9776_v41 = vrot.slane %v9766_v31, %v14149_v60  ;;  %v8272_v33 = vld [vmem:[%s14141_s4 + $0x68] ss:$12 sps:$4 sm:$0xff]  }
 0x21e   : > { %1566 = vmatpush1.bf16.msra.mxu1 %v8244_v43 }
 0x21f   : > { %8013 = vmatprep.subr.bf16.mxu1 %v9760_v61 }
 0x221   : > { %7950 = vmatmul.mubr.bf16.gmra.mrb[32].mxu1 %v9635_v40 }
 0x222   : > { %v9770_v20 = vpop.f32.mrb[0].mxu0  ;;  %7953 = vmatprep.mubr.bf16.mxu1 %v9653_v2 }
 0x223   : > { %v1041_v10 = vpop.f32.mrb[1].mxu0 }
 0x224   : > { %v9778_v26 = vpop.f32.mrb[2].mxu0  ;;  %v1042_v28 = vadd.f32 %v1041_v10, %v9776_v41 }
 0x225   : > { %v1045_v58 = vpop.f32.mrb[3].mxu0 }
 0x226   : > { %v1046_v32 = vadd.f32 %v1045_v58, %v9776_v41  ;;  %v8273_v58 = vld [vmem:[%s14141_s4 + $0x80] ss:$12 sps:$4 sm:$0xff]  }
 0x228   : > { %v1359_v12 = vpack.c.bf16 %v1046_v32, %v1042_v28  ;;  %v8274_v28 = vld [vmem:[%s14141_s4 + $0xa8] ss:$12 sps:$4 sm:$0xff]   ;;  %v8276_v32 = vld [vmem:[%s14141_s4 + $0xac] ss:$12 sps:$4 sm:$0xff]  }
 0x229   : > { %7954 = vmatmul.mubr.bf16.gmra.mrb[36].mxu1 %v9668_v3  ;;  %v8253_v3 = vld [vmem:[%s14141_s4 + $0x1c] ss:$12 sps:$4 sm:$0xff]  }
 0x22a   : > { %v9783_v40 = vpop.f32.mrb[4].mxu0  ;;  %7957 = vmatprep.mubr.bf16.mxu1 %v9602_v5  ;;  %7981 = vmatprep.mubr.bf16.mxu0 %v1359_v12 }
 0x22b   : > { %v1051_v2 = vpop.f32.mrb[5].mxu0 }
 0x22c   : > { %v9786_v63 = vpop.f32.mrb[6].mxu0  ;;  %v1052_v55 = vadd.f32 %v1051_v2, %v9776_v41 }
 0x22d   : > { %v1055_v15 = vpop.f32.mrb[7].mxu0 }
 0x22e   : > { %v1056_v56 = vadd.f32 %v1055_v15, %v9776_v41 }
 0x230   : > { %v1360_v48 = vpack.c.bf16 %v1056_v56, %v1052_v55  ;;  %v8277_v55 = vld [vmem:[%s14141_s4 + $0x98] ss:$12 sps:$4 sm:$0xff]  }
 0x231   : > { %7958 = vmatmul.mubr.bf16.gmra.mrb[40].mxu1 %v9682_v8  ;;  %v8258_v8 = vld [vmem:[%s14141_s4 + $0x48] ss:$12 sps:$4 sm:$0xff]  }
 0x232   : > { %v9797_v5 = vpop.f32.mrb[8].mxu0  ;;  %7961 = vmatprep.mubr.bf16.mxu1 %v9688_v37  ;;  %7982 = vmatmul.mubr.bf16.vlgmr.msra.gmra.mrb[48].mxu0 %v1360_v48  ;;  %v8262_v37 = vld [vmem:[%s14141_s4 + $0x60] ss:$12 sps:$4 sm:$0xff]  }
 0x233   : > { %v1061_v35 = vpop.f32.mrb[9].mxu0  ;;  %2066 = vmatpush1.bf16.msra.mxu0 %v8248_v30 }
 0x234   : > { %v9803_v6 = vpop.f32.mrb[10].mxu0  ;;  %2067 = vmatprep.subr.bf16.mxu0 %v8253_v3  ;;  %v1062_v4 = vadd.f32 %v1061_v35, %v9776_v41  ;;  %v8278_v35 = vld [vmem:[%s14141_s4 + $0xb0] ss:$12 sps:$4 sm:$0xff]  }
 0x235   : > { %v1065_v18 = vpop.f32.mrb[11].mxu0 }
 0x236   : > { %v1066_v44 = vadd.f32 %v1065_v18, %v9776_v41  ;;  %v9913_v18 = vld [vmem:[%s14142_s5 + $0x80] sm:$0xff]  }
 0x237   : > { %2068 = vmatpush1.bf16.msra.mxu0 %v8251_v0 }
 0x238   : > { %v9813_v42 = vpack.c.bf16 %v1066_v44, %v1062_v4  ;;  %2069 = vmatprep.subr.bf16.mxu0 %v8257_v57 }
 0x239   : > { %7962 = vmatmul.mubr.bf16.gmra.mrb[44].mxu1 %v9694_v46 }
 0x23a   : > { %v9819_v7 = vpop.f32.mrb[12].mxu0  ;;  %7985 = vmatprep.mubr.bf16.mxu0 %v9813_v42  ;;  %1583 = vmatprep.mubr.bf16.mxu1 %v14152_v11 }
 0x23b   : > { %v1071_v21 = vpop.f32.mrb[13].mxu0  ;;  %2070 = vmatpush1.bf16.msra.mxu0 %v8255_v51 }
 0x23c   : > { %v9826_v22 = vpop.f32.mrb[14].mxu0  ;;  %2071 = vmatprep.subr.bf16.mxu0 %v8260_v27  ;;  %v1072_v29 = vadd.f32 %v1071_v21, %v9776_v41 }
 0x23d   : > { %v1075_v34 = vpop.f32.mrb[15].mxu0 }
 0x23e   : > { %v1076_v23 = vadd.f32 %v1075_v34, %v9776_v41 }
 0x23f   : > { %2072 = vmatpush1.bf16.msra.mxu0 %v8258_v8 }
 0x240   : > { %v9836_v13 = vpack.c.bf16 %v1076_v23, %v1072_v29  ;;  %2073 = vmatprep.subr.bf16.mxu0 %v8264_v50 }
 0x241   : > { %1584 = vmatmul.mubr.bf16.vlgmr.msra.gmra.mrb[48].mxu1 %v1359_v12 }
 0x242   : > { %v9844_v59 = vpop.f32.mrb[16].mxu0  ;;  %7986 = vmatmul.mubr.bf16.gmra.mrb[52].mxu0 %v9836_v13  ;;  %1593 = vmatprep.mubr.bf16.mxu1 %v14152_v11 }
 0x243   : > { %v1081_v46 = vpop.f32.mrb[17].mxu0  ;;  %8014 = vmatpush3.bf16.msra.mxu1 %v9760_v61  ;;  %2074 = vmatpush1.bf16.msra.mxu0 %v8262_v37 }
 0x244   : > { %v9852_v36 = vpop.f32.mrb[18].mxu0  ;;  %8015 = vmatprep.subr.bf16.mxu1 %v8254_v54  ;;  %2075 = vmatprep.subr.bf16.mxu0 %v8267_v62  ;;  %v1082_v24 = vadd.f32 %v1081_v46, %v9776_v41 }
 0x245   : > { %v1085_v19 = vpop.f32.mrb[19].mxu0 }
 0x246   : > { %v1086_v16 = vadd.f32 %v1085_v19, %v9776_v41 }
 0x247   : > { %8016 = vmatpush3.bf16.msra.mxu1 %v8254_v54  ;;  %2076 = vmatpush1.bf16.msra.mxu0 %v8265_v25 }
 0x248   : > { %v9859_v39 = vpack.c.bf16 %v1086_v16, %v1082_v24  ;;  %8017 = vmatprep.subr.bf16.mxu1 %v8261_v47  ;;  %2077 = vmatprep.subr.bf16.mxu0 %v8271_v52 }
 0x249   : > { %1594 = vmatmul.mubr.bf16.gmra.mrb[52].mxu1 %v1360_v48 }
 0x24a   : > { %v9870_v17 = vpop.f32.mrb[20].mxu0  ;;  %7989 = vmatprep.mubr.bf16.mxu0 %v9859_v39  ;;  %1603 = vmatprep.mubr.bf16.mxu1 %v14152_v11 }
 0x24b   : > { %v1091_v45 = vpop.f32.mrb[21].mxu0  ;;  %8018 = vmatpush3.bf16.msra.mxu1 %v8261_v47  ;;  %2078 = vmatpush1.bf16.msra.mxu0 %v8269_v49 }
 0x24c   : > { %v9874_v53 = vpop.f32.mrb[22].mxu0  ;;  %8019 = vmatprep.subr.bf16.mxu1 %v8268_v1  ;;  %v1092_v43 = vadd.f32 %v1091_v45, %v9776_v41  ;;  %2079 = vmatprep.subr.bf16.mxu0 %v8276_v32 }
 0x24d   : > { %v1095_v9 = vpop.f32.mrb[23].mxu0 }
 0x24e   : > { %v1096_v61 = vadd.f32 %v1095_v9, %v9776_v41 }
 0x24f   : > { %8020 = vmatpush3.bf16.msra.mxu1 %v8268_v1  ;;  %2080 = vmatpush1.bf16.msra.mxu0 %v8274_v28 }
 0x250   : > { %v1364_v10 = vpack.c.bf16 %v1096_v61, %v1092_v43  ;;  %8021 = vmatprep.subr.bf16.mxu1 %v8272_v33  ;;  %8061 = vmatprep.subr.bf16.mxu0 %v9913_v18 }
 0x251   : > { %1604 = vmatmul.mubr.bf16.gmra.mrb[56].mxu1 %v9813_v42 }
 0x252   : > { %v9891_v12 = vpop.f32.mrb[24].mxu0  ;;  %7990 = vmatmul.mubr.bf16.gmra.mrb[56].mxu0 %v1364_v10  ;;  %1613 = vmatprep.mubr.bf16.mxu1 %v14152_v11 }
 0x253   : > { %v1101_v2 = vpop.f32.mrb[25].mxu0  ;;  %8022 = vmatpush3.bf16.msra.mxu1 %v8272_v33 }
 0x254   : > { %v9894_v15 = vpop.f32.mrb[26].mxu0  ;;  %8023 = vmatprep.subr.bf16.mxu1 %v8273_v58  ;;  %v1102_v30 = vadd.f32 %v1101_v2, %v9776_v41 }
 0x255   : > { %v1105_v56 = vpop.f32.mrb[27].mxu0 }
 0x256   : > { %v1106_v48 = vadd.f32 %v1105_v56, %v9776_v41  ;;  %v8282_v56 = vld [vmem:[%s14142_s5 + $0x40] sm:$0xff]  }
 0x257   : > { %8024 = vmatpush3.bf16.msra.mxu1 %v8273_v58 }
 0x258   : > { %v1365_v3 = vpack.c.bf16 %v1106_v48, %v1102_v30  ;;  %8025 = vmatprep.subr.bf16.mxu1 %v8277_v55 }
 0x259   : > { %1614 = vmatmul.mubr.bf16.gmra.mrb[60].mxu1 %v9836_v13 }
 0x25a   : > { %v9905_v0 = vpop.f32.mrb[28].mxu0  ;;  %v9907_v57 = vpop.f32.mrb[0].mxu1  ;;  %7993 = vmatprep.mubr.bf16.mxu0 %v1365_v3  ;;  %1623 = vmatprep.mubr.bf16.mxu1 %v14152_v11 }
 0x25b   : > { %v1111_v4 = vpop.f32.mrb[29].mxu0  ;;  %v1161_v44 = vpop.f32.mrb[1].mxu1  ;;  %8026 = vmatpush3.bf16.msra.mxu1 %v8277_v55 }
 0x25c   : > { %v9915_v51 = vpop.f32.mrb[30].mxu0  ;;  %v9917_v42 = vpop.f32.mrb[2].mxu1  ;;  %8027 = vmatprep.subr.bf16.mxu1 %v8278_v35  ;;  %v1112_v8 = vadd.f32 %v1111_v4, %v9776_v41  ;;  %v1162_v50 = vadd.f32 %v1161_v44, %v9776_v41 }
 0x25d   : > { %v1115_v27 = vpop.f32.mrb[31].mxu0  ;;  %v1165_v21 = vpop.f32.mrb[3].mxu1 }
 0x25e   : > { %v1116_v34 = vadd.f32 %v1115_v27, %v9776_v41  ;;  %v1166_v29 = vadd.f32 %v1165_v21, %v9776_v41 }
 0x25f   : > { %8028 = vmatpush3.bf16.msra.mxu1 %v8278_v35 }
 0x260   : > { %v1366_v23 = vpack.c.bf16 %v1116_v34, %v1112_v8  ;;  %v1371_v37 = vpack.c.bf16 %v1166_v29, %v1162_v50  ;;  %7533 = vmatprep.subr.bf16.mxu1 %v8282_v56 }
 0x261   : > { %1624 = vmatmul.mubr.bf16.gmra.mrb[64].mxu1 %v9859_v39 }
 0x262   : > { %v9925_v13 = vpop.f32.mrb[32].mxu0  ;;  %7994 = vmatmul.mubr.bf16.gmra.mrb[60].mxu0 %v1366_v23  ;;  %1633 = vmatprep.mubr.bf16.mxu1 %v14152_v11 }
 0x263   : > { %v1121_v54 = vpop.f32.mrb[33].mxu0 }
 0x264   : > { %v9928_v62 = vpop.f32.mrb[34].mxu0  ;;  %v1122_v25 = vadd.f32 %v1121_v54, %v9776_v41 }
 0x265   : > { %v1125_v46 = vpop.f32.mrb[35].mxu0 }
 0x266   : > { %v1126_v47 = vadd.f32 %v1125_v46, %v9776_v41 }
 0x268   : > { %v1367_v19 = vpack.c.bf16 %v1126_v47, %v1122_v25 }
 0x269   : > { %1634 = vmatmul.mubr.bf16.gmra.mrb[68].mxu1 %v1364_v10 }
 0x26a   : > { %v9932_v24 = vpop.f32.mrb[36].mxu0  ;;  %7997 = vmatprep.mubr.bf16.mxu0 %v1367_v19  ;;  %1643 = vmatprep.mubr.bf16.mxu1 %v14152_v11 }
 0x26b   : > { %v1131_v16 = vpop.f32.mrb[37].mxu0 }
 0x26c   : > { %v9935_v39 = vpop.f32.mrb[38].mxu0  ;;  %v1132_v49 = vadd.f32 %v1131_v16, %v9776_v41 }
 0x26d   : > { %v1135_v1 = vpop.f32.mrb[39].mxu0 }
 0x26e   : > { %v1136_v52 = vadd.f32 %v1135_v1, %v9776_v41 }
 0x270   : > { %v1368_v45 = vpack.c.bf16 %v1136_v52, %v1132_v49  ;;  %v14150_v52 = vsub.s32 2, %v9752_v14 }
 0x271   : > { %1644 = vmatmul.mubr.bf16.gmra.mrb[72].mxu1 %v1365_v3 }
 0x272   : > { %v9939_v33 = vpop.f32.mrb[40].mxu0  ;;  %7998 = vmatmul.mubr.bf16.gmra.mrb[64].mxu0 %v1368_v45  ;;  %1653 = vmatprep.mubr.bf16.mxu1 %v14152_v11 }
 0x273   : > { %v1141_v9 = vpop.f32.mrb[41].mxu0 }
 0x274   : > { %v9942_v43 = vpop.f32.mrb[42].mxu0  ;;  %v1142_v10 = vadd.f32 %v1141_v9, %v9776_v41 }
 0x275   : > { %v1145_v61 = vpop.f32.mrb[43].mxu0 }
 0x276   : > { %v1146_v58 = vadd.f32 %v1145_v61, %v9776_v41 }
 0x278   : > { %v1369_v28 = vpack.c.bf16 %v1146_v58, %v1142_v10  ;;  %v9985_v10 = vrot.slane %v9766_v31, %v14150_v52 }
 0x279   : > { %1654 = vmatmul.mubr.bf16.gmra.mrb[76].mxu1 %v1366_v23 }
 0x27a   : > { %v9946_v32 = vpop.f32.mrb[44].mxu0  ;;  %8001 = vmatprep.mubr.bf16.mxu0 %v1369_v28  ;;  %1663 = vmatprep.mubr.bf16.mxu1 %v14152_v11 }
 0x27b   : > { %v1151_v2 = vpop.f32.mrb[45].mxu0 }
 0x27c   : > { %v9949_v55 = vpop.f32.mrb[46].mxu0  ;;  %v1152_v48 = vadd.f32 %v1151_v2, %v9776_v41 }
 0x27d   : > { %v1155_v30 = vpop.f32.mrb[47].mxu0 }
 0x27e   : > { %v1156_v3 = vadd.f32 %v1155_v30, %v9776_v41 }
 0x280   : > { %v1370_v35 = vpack.c.bf16 %v1156_v3, %v1152_v48 }
 0x281   : > { %1664 = vmatmul.mubr.bf16.gmra.mrb[80].mxu1 %v1367_v19 }
 0x282   : > { %8002 = vmatmul.mubr.bf16.gmra.mrb[68].mxu0 %v1370_v35  ;;  %1673 = vmatprep.mubr.bf16.mxu1 %v14152_v11 }
 0x283   : > { %8005 = vmatprep.mubr.bf16.mxu0 %v1371_v37 }
 0x289   : > { %1674 = vmatmul.mubr.bf16.gmra.mrb[84].mxu1 %v1368_v45 }
 0x28a   : > { %1683 = vmatprep.mubr.bf16.mxu1 %v14152_v11 }
 0x291   : > { %1684 = vmatmul.mubr.bf16.gmra.mrb[88].mxu1 %v1369_v28 }
 0x292   : > { %1693 = vmatprep.mubr.bf16.mxu1 %v14152_v11 }
 0x299   : > { %1694 = vmatmul.mubr.bf16.gmra.mrb[92].mxu1 %v1370_v35 }
 0x29a   : > { %1703 = vmatprep.mubr.bf16.mxu1 %v14152_v11 }
 0x2a1   : > { %1704 = vmatmul.mubr.bf16.gmra.mrb[96].mxu1 %v1371_v37 }
 0x2a2   : > { %1713 = vmatprep.mubr.bf16.mxu1 %v14152_v11 }
 0x2bc   : > { %v9961_v4 = vpop.f32.mrb[4].mxu1 }
 0x2bd   : > { %v1171_v44 = vpop.f32.mrb[5].mxu1 }
 0x2be   : > { %v9963_v27 = vpop.f32.mrb[6].mxu1  ;;  %v1172_v8 = vadd.f32 %v1171_v44, %v9776_v41 }
 0x2bf   : > { %v1175_v21 = vpop.f32.mrb[7].mxu1 }
 0x2c0   : > { %v1176_v50 = vadd.f32 %v1175_v21, %v9776_v41  ;;  %v8280_v21 = vld [vmem:[%s14142_s5 + $0x88] sm:$0xff]  }
 0x2c2   : > { %v1372_v34 = vpack.c.bf16 %v1176_v50, %v1172_v8  ;;  %v8283_v8 = vld [vmem:[%s14142_s5] sm:$0xff]  }
 0x2c4   : > { %v9967_v29 = vpop.f32.mrb[8].mxu1  ;;  %1714 = vmatmul.mubr.bf16.gmra.mrb[100].mxu1 %v1372_v34  ;;  %8006 = vmatmul.mubr.bf16.gmra.mrb[72].mxu0 %v1372_v34  ;;  %v8284_v34 = vld [vmem:[%s14142_s5 + $0x48] sm:$0xff]  }
 0x2c5   : > { %v1181_v23 = vpop.f32.mrb[9].mxu1  ;;  %1723 = vmatprep.mubr.bf16.mxu1 %v14152_v11 }
 0x2c6   : > { %v9970_v37 = vpop.f32.mrb[10].mxu1  ;;  %v1182_v46 = vadd.f32 %v1181_v23, %v9776_v41 }
 0x2c7   : > { %v1185_v54 = vpop.f32.mrb[11].mxu1 }
 0x2c8   : > { %v1186_v25 = vadd.f32 %v1185_v54, %v9776_v41 }
 0x2ca   : > { %v1373_v47 = vpack.c.bf16 %v1186_v25, %v1182_v46  ;;  %v8281_v46 = vld [vmem:[%s14142_s5 + $0x90] sm:$0xff]  }
 0x2cc   : > { %v9974_v19 = vpop.f32.mrb[12].mxu1  ;;  %1724 = vmatmul.mubr.bf16.gmra.mrb[104].mxu1 %v1373_v47  ;;  %8009 = vmatprep.mubr.bf16.mxu0 %v1373_v47 }
 0x2cd   : > { %v1191_v16 = vpop.f32.mrb[13].mxu1  ;;  %1733 = vmatprep.mubr.bf16.mxu1 %v14152_v11 }
 0x2ce   : > { %v9977_v1 = vpop.f32.mrb[14].mxu1  ;;  %v1192_v45 = vadd.f32 %v1191_v16, %v9776_v41 }
 0x2cf   : > { %v1195_v49 = vpop.f32.mrb[15].mxu1 }
 0x2d0   : > { %v1196_v9 = vadd.f32 %v1195_v49, %v9776_v41 }
 0x2d2   : > { %v1374_v61 = vpack.c.bf16 %v1196_v9, %v1192_v45 }
 0x2d4   : > { %v7935_v58 = vpop.f32.mrb[16].mxu1  ;;  %1734 = vmatmul.mubr.bf16.gmra.mrb[108].mxu1 %v1374_v61  ;;  %8010 = vmatmul.mubr.bf16.gmra.mrb[76].mxu0 %v1374_v61 }
 0x2d5   : > { %v1232_v28 = vpop.f32.mrb[17].mxu1  ;;  %2097 = vmatprep.mubr.bf16.mxu0 %v14152_v11  ;;  %v1241_v56 = vadd.f32 %v7935_v58, %v9985_v10  ;;  %v8286_v58 = vld [vmem:[%s14142_s5 + $0x50] sm:$0xff]  }
 0x2d6   : > { %v7936_v2 = vpop.f32.mrb[18].mxu1  ;;  %v1233_v41 = vadd.f32 %v1232_v28, %v9985_v10  ;;  %v8287_v28 = vld [vmem:[%s14142_s5 + $0x10] sm:$0xff]  }
 0x2d7   : > { %v1244_v30 = vadd.f32 %v7936_v2, %v9985_v10  ;;  %v1235_v48 = vpop.f32.mrb[19].mxu1  ;;  %v8290_v2 = vld [vmem:[%s14142_s5 + $0x98] sm:$0xff]  }
 0x2d8   : > { %v1236_v3 = vadd.f32 %v1235_v48, %v9985_v10 }
 0x2d9   : > { %v1376_v35 = vpack.c.bf16 %v1244_v30, %v1241_v56  ;;  %v8288_v30 = vld [vmem:[%s14142_s5 + $0x58] sm:$0xff]  }
 0x2da   : > { %v1375_v44 = vpack.c.bf16 %v1236_v3, %v1233_v41 }
 0x2dc   : > { %v7939_v50 = vpop.f32.mrb[20].mxu1  ;;  %2098 = vmatmul.mubr.bf16.vlgmr.msra.gmra.mrb[80].mxu0 %v1375_v44  ;;  %8029 = vmatprep.mubr.bf16.mxu1 %v1375_v44 }
 0x2dd   : > { %8062 = vmatpush3.bf16.msra.mxu0 %v9913_v18  ;;  %v1248_v23 = vpop.f32.mrb[21].mxu1  ;;  %8030 = vmatmul.mubr.bf16.vlgmr.msra.gmra.mrb[112].mxu1 %v1376_v35  ;;  %v1257_v25 = vadd.f32 %v7939_v50, %v9985_v10  ;;  %v8285_v18 = vld [vmem:[%s14142_s5 + $0x8] sm:$0xff]  }
 0x2de   : > { %v7940_v54 = vpop.f32.mrb[22].mxu1  ;;  %2107 = vmatprep.mubr.bf16.mxu0 %v14152_v11  ;;  %8063 = vmatprep.subr.bf16.mxu0 %v8280_v21  ;;  %v1249_v49 = vadd.f32 %v1248_v23, %v9985_v10 }
 0x2df   : > { %v1260_v47 = vadd.f32 %v7940_v54, %v9985_v10  ;;  %v1251_v16 = vpop.f32.mrb[23].mxu1  ;;  %7534 = vmatpush3.bf16.msra.mxu1 %v8283_v8  ;;  %v8299_v8 = vld [vmem:[%s14142_s5 + $0xa0] sm:$0xff]  }
 0x2e0   : > { %v1252_v45 = vadd.f32 %v1251_v16, %v9985_v10  ;;  %7535 = vmatprep.subr.bf16.mxu1 %v8284_v34 }
 0x2e1   : > { %v10013_v9 = vpack.c.bf16 %v1260_v47, %v1257_v25  ;;  %8064 = vmatpush3.bf16.msra.mxu0 %v8280_v21  ;;  %v8292_v25 = vld [vmem:[%s14142_s5 + $0x20] sm:$0xff]   ;;  %v8300_v47 = vld [vmem:[%s14142_s5 + $0xa8] sm:$0xff]  }
 0x2e2   : > { %v1377_v61 = vpack.c.bf16 %v1252_v45, %v1249_v49  ;;  %8065 = vmatprep.subr.bf16.mxu0 %v8281_v46 }
 0x2e3   : > { %7536 = vmatpush3.bf16.msra.mxu1 %v8285_v18  ;;  %v8293_v18 = vld [vmem:[%s14142_s5 + $0x68] sm:$0xff]  }
 0x2e4   : > { %v7943_v56 = vpop.f32.mrb[24].mxu1  ;;  %2108 = vmatmul.mubr.bf16.gmra.mrb[84].mxu0 %v1376_v35  ;;  %8033 = vmatprep.mubr.bf16.mxu1 %v1377_v61  ;;  %v8289_v35 = vld [vmem:[%s14142_s5 + $0x18] sm:$0xff]  }
 0x2e5   : > { %v1264_v48 = vpop.f32.mrb[25].mxu1  ;;  %8034 = vmatmul.mubr.bf16.gmra.mrb[116].mxu1 %v10013_v9  ;;  %2117 = vmatprep.mubr.bf16.mxu0 %v14152_v11  ;;  %v1273_v3 = vadd.f32 %v7943_v56, %v9985_v10  ;;  %v8301_v56 = vld [vmem:[%s14142_s5 + $0xb0] sm:$0xff]  }
 0x2e6   : > { %v7944_v41 = vpop.f32.mrb[26].mxu1  ;;  %8066 = vmatpush3.bf16.msra.mxu0 %v8281_v46  ;;  %7537 = vmatprep.subr.bf16.mxu1 %v8286_v58  ;;  %v1265_v50 = vadd.f32 %v1264_v48, %v9985_v10  ;;  %v8291_v46 = vld [vmem:[%s14142_s5 + $0x60] sm:$0xff]  }
 0x2e7   : > { %v1276_v44 = vadd.f32 %v7944_v41, %v9985_v10  ;;  %v1267_v21 = vpop.f32.mrb[27].mxu1  ;;  %7538 = vmatpush3.bf16.msra.mxu1 %v8287_v28  ;;  %8067 = vmatprep.subr.bf16.mxu0 %v8290_v2 }
 0x2e8   : > { %v1268_v34 = vadd.f32 %v1267_v21, %v9985_v10  ;;  %7539 = vmatprep.subr.bf16.mxu1 %v8288_v30  ;;  %v8296_v21 = vld [vmem:[%s14142_s5 + $0x30] sm:$0xff]  }
 0x2e9   : > { %v10039_v23 = vpack.c.bf16 %v1276_v44, %v1273_v3  ;;  %v8295_v44 = vld [vmem:[%s14142_s5 + $0x70] sm:$0xff]  }
 0x2ea   : > { %v1379_v54 = vpack.c.bf16 %v1268_v34, %v1265_v50  ;;  %8068 = vmatpush3.bf16.msra.mxu0 %v8290_v2  ;;  %v8297_v50 = vld [vmem:[%s14142_s5 + $0x78] sm:$0xff]  }
 0x2eb   : > { %7540 = vmatpush3.bf16.msra.mxu1 %v8289_v35  ;;  %8069 = vmatprep.subr.bf16.mxu0 %v8299_v8  ;;  %v8302_v35 = vld [vmem:[%s14142_s5 + $0xb8] sm:$0xff]  }
 0x2ec   : > { %v7947_v16 = vpop.f32.mrb[28].mxu1  ;;  %2118 = vmatmul.mubr.bf16.gmra.mrb[88].mxu0 %v1377_v61  ;;  %8037 = vmatprep.mubr.bf16.mxu1 %v1379_v54  ;;  %v8294_v61 = vld [vmem:[%s14142_s5 + $0x28] sm:$0xff]  }
 0x2ed   : > { %v1280_v49 = vpop.f32.mrb[29].mxu1  ;;  %8038 = vmatmul.mubr.bf16.gmra.mrb[120].mxu1 %v10039_v23  ;;  %2127 = vmatprep.mubr.bf16.mxu0 %v14152_v11  ;;  %v1289_v58 = vadd.f32 %v7947_v16, %v9985_v10 }
 0x2ee   : > { %v7948_v45 = vpop.f32.mrb[30].mxu1  ;;  %7541 = vmatprep.subr.bf16.mxu1 %v8291_v46  ;;  %8070 = vmatpush3.bf16.msra.mxu0 %v8299_v8  ;;  %v1281_v30 = vadd.f32 %v1280_v49, %v9985_v10 }
 0x2ef   : > { %v1292_v28 = vadd.f32 %v7948_v45, %v9985_v10  ;;  %v1283_v2 = vpop.f32.mrb[31].mxu1  ;;  %7542 = vmatpush3.bf16.msra.mxu1 %v8292_v25  ;;  %8071 = vmatprep.subr.bf16.mxu0 %v8300_v47 }
 0x2f0   : > { %v1284_v48 = vadd.f32 %v1283_v2, %v9985_v10  ;;  %7543 = vmatprep.subr.bf16.mxu1 %v8293_v18  ;;  %v14151_v2 = vsub.s32 0, %v9752_v14 }
 0x2f1   : > { %v10065_v41 = vpack.c.bf16 %v1292_v28, %v1289_v58 }
 0x2f2   : > { %v10067_v3 = vpack.c.bf16 %v1284_v48, %v1281_v30  ;;  %8072 = vmatpush3.bf16.msra.mxu0 %v8300_v47 }
 0x2f3   : > { %7544 = vmatpush3.bf16.msra.mxu1 %v8294_v61  ;;  %8073 = vmatprep.subr.bf16.mxu0 %v8301_v56 }
 0x2f4   : > { %v7951_v8 = vpop.f32.mrb[32].mxu1  ;;  %2128 = vmatmul.mubr.bf16.gmra.mrb[92].mxu0 %v10013_v9  ;;  %8041 = vmatprep.mubr.bf16.mxu1 %v10067_v3  ;;  %v8298_v9 = vld [vmem:[%s14142_s5 + $0x38] sm:$0xff]  }
 0x2f5   : > { %v1296_v34 = vpop.f32.mrb[33].mxu1  ;;  %8042 = vmatmul.mubr.bf16.gmra.mrb[124].mxu1 %v10065_v41  ;;  %2137 = vmatprep.mubr.bf16.mxu0 %v14152_v11  ;;  %v1305_v25 = vadd.f32 %v7951_v8, %v9985_v10 }
 0x2f6   : > { %v7952_v46 = vpop.f32.mrb[34].mxu1  ;;  %7545 = vmatprep.subr.bf16.mxu1 %v8295_v44  ;;  %8074 = vmatpush3.bf16.msra.mxu0 %v8301_v56  ;;  %v1297_v18 = vadd.f32 %v1296_v34, %v9985_v10 }
 0x2f7   : > { %v1308_v47 = vadd.f32 %v7952_v46, %v9985_v10  ;;  %v1299_v16 = vpop.f32.mrb[35].mxu1  ;;  %7546 = vmatpush3.bf16.msra.mxu1 %v8296_v21  ;;  %8075 = vmatprep.subr.bf16.mxu0 %v8302_v35 }
 0x2f8   : > { %v1300_v49 = vadd.f32 %v1299_v16, %v9985_v10  ;;  %7547 = vmatprep.subr.bf16.mxu1 %v8297_v50 }
 0x2f9   : > { %v10092_v45 = vpack.c.bf16 %v1308_v47, %v1305_v25 }
 0x2fa   : > { %v10094_v58 = vpack.c.bf16 %v1300_v49, %v1297_v18  ;;  %8076 = vmatpush3.bf16.msra.mxu0 %v8302_v35 }
 0x2fb   : > { %7548 = vmatpush3.bf16.msra.mxu1 %v8298_v9 }
 0x2fc   : > { %v7955_v28 = vpop.f32.mrb[36].mxu1  ;;  %2138 = vmatmul.mubr.bf16.gmra.mrb[96].mxu0 %v1379_v54  ;;  %8045 = vmatprep.mubr.bf16.mxu1 %v10094_v58  ;;  %v10107_v54 = vrot.slane %v9766_v31, %v14151_v2 }
 0x2fd   : > { %v1312_v61 = vpop.f32.mrb[37].mxu1  ;;  %8046 = vmatmul.mubr.bf16.gmra.mrb[128].mxu1 %v10092_v45  ;;  %2147 = vmatprep.mubr.bf16.mxu0 %v14152_v11  ;;  %v1321_v30 = vadd.f32 %v7955_v28, %v9985_v10 }
 0x2fe   : > { %v7956_v56 = vpop.f32.mrb[38].mxu1  ;;  %v1313_v21 = vadd.f32 %v1312_v61, %v9985_v10  ;;  %v10115_v34 = vadd.f32 %v9783_v40, %v10107_v54  ;;  %v1040_v25 = vadd.f32 %v9770_v20, %v10107_v54  ;;  %v10125_v31 = vadd.f32 %v9786_v63, %v10107_v54 }
 0x2ff   : > { %v1324_v48 = vadd.f32 %v7956_v56, %v9985_v10  ;;  %v1315_v44 = vpop.f32.mrb[39].mxu1  ;;  %v1044_v18 = vadd.f32 %v9778_v26, %v10107_v54 }
 0x300   : > { %v1316_v35 = vadd.f32 %v1315_v44, %v9985_v10 }
 0x301   : > { %v10109_v8 = vpack.c.bf16 %v1324_v48, %v1321_v30 }
 0x302   : > { %v10111_v50 = vpack.c.bf16 %v1316_v35, %v1313_v21 }
 0x304   : > { %v7959_v46 = vpop.f32.mrb[40].mxu1  ;;  %2148 = vmatmul.mubr.bf16.gmra.mrb[100].mxu0 %v10039_v23  ;;  %8049 = vmatprep.mubr.bf16.mxu1 %v10111_v50 }
 0x305   : > { %v1328_v47 = vpop.f32.mrb[41].mxu1  ;;  %v7983_v16 = vpop.f32.mrb[48].mxu0  ;;  %8050 = vmatmul.mubr.bf16.gmra.mrb[132].mxu1 %v10109_v8  ;;  %2157 = vmatprep.mubr.bf16.mxu0 %v14152_v11  ;;  %v1337_v20 = vadd.f32 %v7959_v46, %v9985_v10 }
 0x306   : > { %v10128_v40 = vmul.f32 %v7983_v16, %v10115_v34  ;;  %v7960_v9 = vpop.f32.mrb[42].mxu1  ;;  %v1778_v23 = vpop.f32.mrb[49].mxu0  ;;  %v1329_v30 = vadd.f32 %v1328_v47, %v9985_v10 }
 0x307   : > { %v1340_v49 = vadd.f32 %v7960_v9, %v9985_v10  ;;  %v10134_v28 = vmul.f32 %v1778_v23, %v1040_v25  ;;  %v1331_v61 = vpop.f32.mrb[43].mxu1  ;;  %v7984_v56 = vpop.f32.mrb[50].mxu0 }
 0x308   : > { %v1332_v63 = vadd.f32 %v1331_v61, %v9985_v10  ;;  %v10139_v48 = vmul.f32 %v7984_v56, %v10125_v31  ;;  %v1781_v44 = vpop.f32.mrb[51].mxu0 }
 0x309   : > { %v10141_v21 = vmul.f32 %v1781_v44, %v1044_v18  ;;  %v10143_v35 = vpack.c.bf16 %v1340_v49, %v1337_v20  ;;  %v10165_v44 = vadd.f32 %v9819_v7, %v10107_v54 }
 0x30a   : > { %v10147_v46 = vpack.c.bf16 %v1332_v63, %v1329_v30 }
 0x30c   : > { %v7963_v9 = vpop.f32.mrb[44].mxu1  ;;  %2158 = vmatmul.mubr.bf16.gmra.mrb[104].mxu0 %v10067_v3  ;;  %8053 = vmatprep.mubr.bf16.mxu1 %v10147_v46 }
 0x30d   : > { %v1344_v47 = vpop.f32.mrb[45].mxu1  ;;  %8054 = vmatmul.mubr.bf16.gmra.mrb[136].mxu1 %v10143_v35  ;;  %2167 = vmatprep.mubr.bf16.mxu0 %v14152_v11  ;;  %v1353_v20 = vadd.f32 %v7963_v9, %v9985_v10  ;;  %v1060_v9 = vadd.f32 %v9797_v5, %v10107_v54  ;;  %v1064_v5 = vadd.f32 %v9803_v6, %v10107_v54 }
 0x30e   : > { %v7964_v23 = vpop.f32.mrb[46].mxu1  ;;  %v1345_v56 = vadd.f32 %v1344_v47, %v9985_v10 }
 0x30f   : > { %v1356_v49 = vadd.f32 %v7964_v23, %v9985_v10  ;;  %v1347_v61 = vpop.f32.mrb[47].mxu1 }
 0x310   : > { %v1348_v30 = vadd.f32 %v1347_v61, %v9985_v10  ;;  %v10175_v10 = vadd.f32 %v9826_v22, %v10107_v54 }
 0x311   : > { %v10159_v63 = vpack.c.bf16 %v1356_v49, %v1353_v20 }
 0x312   : > { %v10161_v3 = vpack.c.bf16 %v1348_v30, %v1345_v56 }
 0x314   : > { %v1585_v60 = vpop.f32.mrb[48].mxu1  ;;  %2168 = vmatmul.mubr.bf16.gmra.mrb[108].mxu0 %v10065_v41  ;;  %8057 = vmatprep.mubr.bf16.mxu1 %v10161_v3 }
 0x315   : > { %v2419_v23 = vmul.f32 %v1585_v60, %v1040_v25  ;;  %v1587_v47 = vpop.f32.mrb[49].mxu1  ;;  %v7987_v52 = vpop.f32.mrb[52].mxu0  ;;  %8058 = vmatmul.mubr.bf16.gmra.mrb[140].mxu1 %v10159_v63  ;;  %2177 = vmatprep.mubr.bf16.mxu0 %v14152_v11 }
 0x316   : > { %v2451_v7 = vmul.f32 %v1587_v47, %v1040_v25  ;;  %v10178_v20 = vmul.f32 %v7987_v52, %v10165_v44  ;;  %v1589_v41 = vpop.f32.mrb[50].mxu1  ;;  %v1794_v49 = vpop.f32.mrb[53].mxu0 }
 0x317   : > { %v2420_v60 = vmul.f32 %v1589_v41, %v1044_v18  ;;  %v10182_v61 = vmul.f32 %v1794_v49, %v1060_v9  ;;  %v1591_v56 = vpop.f32.mrb[51].mxu1  ;;  %v7988_v30 = vpop.f32.mrb[54].mxu0 }
 0x318   : > { %v2452_v2 = vmul.f32 %v1591_v56, %v1044_v18  ;;  %v10185_v26 = vmul.f32 %v7988_v30, %v10175_v10  ;;  %v1797_v22 = vpop.f32.mrb[55].mxu0 }
 0x319   : > { %v2515_v16 = vpack.c.bf16 %v2420_v60, %v2419_v23  ;;  %v10187_v25 = vmul.f32 %v1797_v22, %v1064_v5 }
 0x31a   : > { %v2516_v52 = vpack.c.bf16 %v2452_v2, %v2451_v7  ;;  %v2526_v47 = vpack.c.bf16 %v10185_v26, %v10178_v20 }
 0x31b   : > { %v2523_v6 = vpack.c.bf16 %v10187_v25, %v10182_v61 }
 0x31c   : > { %v1595_v41 = vpop.f32.mrb[52].mxu1  ;;  %2178 = vmatmul.mubr.bf16.gmra.mrb[112].mxu0 %v10094_v58  ;;  %2787 = vmatprep.mubr.bf16.mxu1 %v2516_v52  ;;  %v10201_v58 = vadd.f32 %v9870_v17, %v10107_v54 }
 0x31d   : > { %v2421_v18 = vmul.f32 %v1595_v41, %v10115_v34  ;;  %v1597_v49 = vpop.f32.mrb[53].mxu1  ;;  %2788 = vmatmul.mubr.bf16.vlgmr.msra.gmra.mrb[144].mxu1 %v2515_v16  ;;  %2187 = vmatprep.mubr.bf16.mxu0 %v14152_v11  ;;  %v1080_v16 = vadd.f32 %v9844_v59, %v10107_v54 }
 0x31e   : > { %v2453_v23 = vmul.f32 %v1597_v49, %v10115_v34  ;;  %v1599_v60 = vpop.f32.mrb[54].mxu1 }
 0x31f   : > { %v2422_v2 = vmul.f32 %v1599_v60, %v10125_v31  ;;  %v1601_v7 = vpop.f32.mrb[55].mxu1  ;;  %v1084_v60 = vadd.f32 %v9852_v36, %v10107_v54 }
 0x320   : > { %v2454_v56 = vmul.f32 %v1601_v7, %v10125_v31  ;;  %v10209_v31 = vadd.f32 %v9874_v53, %v10107_v54 }
 0x321   : > { %v2518_v30 = vpack.c.bf16 %v2422_v2, %v2421_v18 }
 0x322   : > { %v2519_v22 = vpack.c.bf16 %v2454_v56, %v2453_v23 }
 0x324   : > { %v1605_v52 = vpop.f32.mrb[56].mxu1  ;;  %2188 = vmatmul.mubr.bf16.gmra.mrb[116].mxu0 %v10092_v45  ;;  %2795 = vmatprep.mubr.bf16.mxu1 %v2519_v22 }
 0x325   : > { %v2423_v34 = vmul.f32 %v1605_v52, %v1060_v9  ;;  %v1607_v41 = vpop.f32.mrb[57].mxu1  ;;  %v7991_v49 = vpop.f32.mrb[56].mxu0  ;;  %2796 = vmatmul.mubr.bf16.gmra.mrb[148].mxu1 %v2518_v30  ;;  %2197 = vmatprep.mubr.bf16.mxu0 %v14152_v11 }
 0x326   : > { %v2455_v18 = vmul.f32 %v1607_v41, %v1060_v9  ;;  %v10212_v17 = vmul.f32 %v7991_v49, %v10201_v58  ;;  %v1609_v23 = vpop.f32.mrb[58].mxu1  ;;  %v1810_v45 = vpop.f32.mrb[57].mxu0 }
 0x327   : > { %v2424_v59 = vmul.f32 %v1609_v23, %v1064_v5  ;;  %v10216_v2 = vmul.f32 %v1810_v45, %v1080_v16  ;;  %v1611_v7 = vpop.f32.mrb[59].mxu1  ;;  %v7992_v56 = vpop.f32.mrb[58].mxu0 }
 0x328   : > { %v2456_v30 = vmul.f32 %v1611_v7, %v1064_v5  ;;  %v10219_v22 = vmul.f32 %v7992_v56, %v10209_v31  ;;  %v1813_v53 = vpop.f32.mrb[59].mxu0 }
 0x329   : > { %v10221_v52 = vmul.f32 %v1813_v53, %v1084_v60  ;;  %v2521_v9 = vpack.c.bf16 %v2424_v59, %v2423_v34 }
 0x32a   : > { %v2522_v41 = vpack.c.bf16 %v2456_v30, %v2455_v18  ;;  %v2532_v49 = vpack.c.bf16 %v10219_v22, %v10212_v17  ;;  %v1160_v17 = vadd.f32 %v9907_v57, %v10107_v54 }
 0x32b   : > { %v2529_v36 = vpack.c.bf16 %v10221_v52, %v10216_v2 }
 0x32c   : > { %v1615_v23 = vpop.f32.mrb[60].mxu1  ;;  %2198 = vmatmul.mubr.bf16.gmra.mrb[120].mxu0 %v10111_v50  ;;  %2803 = vmatprep.mubr.bf16.mxu1 %v2522_v41  ;;  %v10235_v50 = vadd.f32 %v9905_v0, %v10107_v54 }
 0x32d   : > { %v2425_v5 = vmul.f32 %v1615_v23, %v10165_v44  ;;  %v1617_v45 = vpop.f32.mrb[61].mxu1  ;;  %2804 = vmatmul.mubr.bf16.gmra.mrb[152].mxu1 %v2521_v9  ;;  %2207 = vmatprep.mubr.bf16.mxu0 %v14152_v11  ;;  %v1100_v9 = vadd.f32 %v9891_v12, %v10107_v54 }
 0x32e   : > { %v2457_v7 = vmul.f32 %v1617_v45, %v10165_v44  ;;  %v1619_v34 = vpop.f32.mrb[62].mxu1 }
 0x32f   : > { %v2426_v18 = vmul.f32 %v1619_v34, %v10175_v10  ;;  %v1621_v59 = vpop.f32.mrb[63].mxu1  ;;  %v1104_v34 = vadd.f32 %v9894_v15, %v10107_v54 }
 0x330   : > { %v2458_v56 = vmul.f32 %v1621_v59, %v10175_v10  ;;  %v10243_v10 = vadd.f32 %v9915_v51, %v10107_v54 }
 0x331   : > { %v2524_v30 = vpack.c.bf16 %v2426_v18, %v2425_v5 }
 0x332   : > { %v2525_v53 = vpack.c.bf16 %v2458_v56, %v2457_v7 }
 0x334   : > { %v1625_v41 = vpop.f32.mrb[64].mxu1  ;;  %2208 = vmatmul.mubr.bf16.gmra.mrb[124].mxu0 %v10109_v8  ;;  %2811 = vmatprep.mubr.bf16.mxu1 %v2525_v53 }
 0x335   : > { %v2427_v44 = vmul.f32 %v1625_v41, %v1080_v16  ;;  %v1627_v23 = vpop.f32.mrb[65].mxu1  ;;  %v7995_v45 = vpop.f32.mrb[60].mxu0  ;;  %2812 = vmatmul.mubr.bf16.gmra.mrb[156].mxu1 %v2524_v30  ;;  %2217 = vmatprep.mubr.bf16.mxu0 %v14152_v11 }
 0x336   : > { %v2459_v5 = vmul.f32 %v1627_v23, %v1080_v16  ;;  %v10246_v0 = vmul.f32 %v7995_v45, %v10235_v50  ;;  %v1629_v7 = vpop.f32.mrb[66].mxu1  ;;  %v1826_v8 = vpop.f32.mrb[61].mxu0  ;;  %v8303_v16 = vld [vmem:[%s14143_s6 + $0x8] ss:$12 sps:$4 sm:$0xff]  }
 0x337   : > { %v2428_v12 = vmul.f32 %v1629_v7, %v1084_v60  ;;  %v10250_v18 = vmul.f32 %v1826_v8, %v1100_v9  ;;  %v1631_v59 = vpop.f32.mrb[67].mxu1  ;;  %v7996_v56 = vpop.f32.mrb[62].mxu0  ;;  %8109 = vmatprep.subr.bf16.mxu1 %v8303_v16 }
 0x338   : > { %v2460_v30 = vmul.f32 %v1631_v59, %v1084_v60  ;;  %v10253_v53 = vmul.f32 %v7996_v56, %v10243_v10  ;;  %v1829_v51 = vpop.f32.mrb[63].mxu0  ;;  %8110 = vmatpush3.bf16.msra.mxu1 %v8303_v16 }
 0x339   : > { %v10258_v41 = vmul.f32 %v1829_v51, %v1104_v34  ;;  %v2527_v23 = vpack.c.bf16 %v2428_v12, %v2427_v44 }
 0x33a   : > { %v2528_v45 = vpack.c.bf16 %v2460_v30, %v2459_v5  ;;  %v2538_v15 = vpack.c.bf16 %v10253_v53, %v10246_v0 }
 0x33b   : > { %v2535_v7 = vpack.c.bf16 %v10258_v41, %v10250_v18  ;;  %v8309_v18 = vld [vmem:[%s14143_s6 + $0x4] ss:$12 sps:$4 sm:$0xff]   ;;  %v1164_v41 = vadd.f32 %v9917_v42, %v10107_v54 }
 0x33c   : > { %v1635_v60 = vpop.f32.mrb[68].mxu1  ;;  %2218 = vmatmul.mubr.bf16.gmra.mrb[128].mxu0 %v10147_v46  ;;  %2819 = vmatprep.mubr.bf16.mxu1 %v2528_v45  ;;  %v10272_v46 = vadd.f32 %v9932_v24, %v10107_v54 }
 0x33d   : > { %v2429_v8 = vmul.f32 %v1635_v60, %v10201_v58  ;;  %v1637_v59 = vpop.f32.mrb[69].mxu1  ;;  %2820 = vmatmul.mubr.bf16.gmra.mrb[160].mxu1 %v2527_v23  ;;  %2227 = vmatprep.mubr.bf16.mxu0 %v14152_v11  ;;  %v1120_v23 = vadd.f32 %v9925_v13, %v10107_v54 }
 0x33e   : > { %v2461_v44 = vmul.f32 %v1637_v59, %v10201_v58  ;;  %v1639_v5 = vpop.f32.mrb[70].mxu1  ;;  %3253 = vmatprep.subr.bf16.mxu0 %v8309_v18 }
 0x33f   : > { %v2430_v12 = vmul.f32 %v1639_v5, %v10209_v31  ;;  %v1641_v56 = vpop.f32.mrb[71].mxu1  ;;  %v1124_v5 = vadd.f32 %v9928_v62, %v10107_v54 }
 0x340   : > { %v2462_v30 = vmul.f32 %v1641_v56, %v10209_v31  ;;  %v10280_v31 = vadd.f32 %v9935_v39, %v10107_v54 }
 0x341   : > { %v2530_v51 = vpack.c.bf16 %v2430_v12, %v2429_v8 }
 0x342   : > { %v2531_v16 = vpack.c.bf16 %v2462_v30, %v2461_v44 }
 0x344   : > { %v1645_v45 = vpop.f32.mrb[72].mxu1  ;;  %2228 = vmatmul.mubr.bf16.gmra.mrb[132].mxu0 %v10143_v35  ;;  %2827 = vmatprep.mubr.bf16.mxu1 %v2531_v16 }
 0x345   : > { %v2431_v58 = vmul.f32 %v1645_v45, %v1100_v9  ;;  %v1647_v60 = vpop.f32.mrb[73].mxu1  ;;  %v7999_v59 = vpop.f32.mrb[64].mxu0  ;;  %2828 = vmatmul.mubr.bf16.gmra.mrb[164].mxu1 %v2530_v51  ;;  %2237 = vmatprep.mubr.bf16.mxu0 %v14152_v11 }
 0x346   : > { %v2463_v8 = vmul.f32 %v1647_v60, %v1100_v9  ;;  %v10283_v24 = vmul.f32 %v7999_v59, %v10272_v46  ;;  %v1649_v44 = vpop.f32.mrb[74].mxu1  ;;  %v1842_v35 = vpop.f32.mrb[65].mxu0  ;;  %v8304_v9 = vld [vmem:[%s14143_s6 + $0x20] ss:$12 sps:$4 sm:$0xff]  }
 0x347   : > { %v2432_v13 = vmul.f32 %v1649_v44, %v1104_v34  ;;  %v10287_v12 = vmul.f32 %v1842_v35, %v1120_v23  ;;  %v1651_v56 = vpop.f32.mrb[75].mxu1  ;;  %v8000_v30 = vpop.f32.mrb[66].mxu0  ;;  %8111 = vmatprep.subr.bf16.mxu1 %v8304_v9 }
 0x348   : > { %v2464_v51 = vmul.f32 %v1651_v56, %v1104_v34  ;;  %v10290_v16 = vmul.f32 %v8000_v30, %v10280_v31  ;;  %v1845_v39 = vpop.f32.mrb[67].mxu0  ;;  %8112 = vmatpush3.bf16.msra.mxu1 %v8304_v9 }
 0x349   : > { %v10295_v45 = vmul.f32 %v1845_v39, %v1124_v5  ;;  %v2533_v60 = vpack.c.bf16 %v2432_v13, %v2431_v58 }
 0x34a   : > { %v2534_v59 = vpack.c.bf16 %v2464_v51, %v2463_v8  ;;  %v2544_v62 = vpack.c.bf16 %v10290_v16, %v10283_v24  ;;  %v8314_v24 = vld [vmem:[%s14143_s6 + $0x30] ss:$12 sps:$4 sm:$0xff]   ;;  %v8316_v16 = vld [vmem:[%s14143_s6 + $0x34] ss:$12 sps:$4 sm:$0xff]  }
 0x34b   : > { %v2541_v44 = vpack.c.bf16 %v10295_v45, %v10287_v12  ;;  %v8311_v12 = vld [vmem:[%s14143_s6 + $0x18] ss:$12 sps:$4 sm:$0xff]   ;;  %v8313_v45 = vld [vmem:[%s14143_s6 + $0x1c] ss:$12 sps:$4 sm:$0xff]  }
 0x34c   : > { %v1655_v34 = vpop.f32.mrb[76].mxu1  ;;  %2238 = vmatmul.mubr.bf16.gmra.mrb[136].mxu0 %v10161_v3  ;;  %2835 = vmatprep.mubr.bf16.mxu1 %v2534_v59  ;;  %v10309_v3 = vadd.f32 %v9946_v32, %v10107_v54 }
 0x34d   : > { %v2433_v35 = vmul.f32 %v1655_v34, %v10235_v50  ;;  %v1657_v56 = vpop.f32.mrb[77].mxu1  ;;  %2836 = vmatmul.mubr.bf16.gmra.mrb[168].mxu1 %v2533_v60  ;;  %2247 = vmatprep.mubr.bf16.mxu0 %v14152_v11  ;;  %v1140_v60 = vadd.f32 %v9939_v33, %v10107_v54  ;;  %v1144_v33 = vadd.f32 %v9942_v43, %v10107_v54 }
 0x34e   : > { %v2465_v58 = vmul.f32 %v1657_v56, %v10235_v50  ;;  %v1659_v8 = vpop.f32.mrb[78].mxu1 }
 0x34f   : > { %v2434_v13 = vmul.f32 %v1659_v8, %v10243_v10  ;;  %v1661_v30 = vpop.f32.mrb[79].mxu1 }
 0x350   : > { %v2466_v51 = vmul.f32 %v1661_v30, %v10243_v10  ;;  %v14286_v10 = vpack.c.bf16 %v10141_v21, %v10134_v28 }
 0x351   : > { %v2536_v39 = vpack.c.bf16 %v2434_v13, %v2433_v35  ;;  %v10319_v35 = vadd.f32 %v9949_v55, %v10107_v54 }
 0x352   : > { %v2537_v9 = vpack.c.bf16 %v2466_v51, %v2465_v58 }
 0x354   : > { %v1665_v59 = vpop.f32.mrb[80].mxu1  ;;  %2248 = vmatmul.mubr.bf16.gmra.mrb[140].mxu0 %v10159_v63  ;;  %2843 = vmatprep.mubr.bf16.mxu1 %v2537_v9 }
 0x355   : > { %v2435_v50 = vmul.f32 %v1665_v59, %v1120_v23  ;;  %v1667_v34 = vpop.f32.mrb[81].mxu1  ;;  %v8003_v56 = vpop.f32.mrb[68].mxu0  ;;  %2844 = vmatmul.mubr.bf16.gmra.mrb[172].mxu1 %v2536_v39  ;;  %8077 = vmatprep.mubr.bf16.mxu0 %v14286_v10  ;;  %v14287_v10 = vpack.c.bf16 %v10139_v48, %v10128_v40 }
 0x356   : > { %v2467_v32 = vmul.f32 %v1667_v34, %v1120_v23  ;;  %v10322_v58 = vmul.f32 %v8003_v56, %v10309_v3  ;;  %v1669_v63 = vpop.f32.mrb[82].mxu1  ;;  %v1858_v8 = vpop.f32.mrb[69].mxu0  ;;  %v8305_v23 = vld [vmem:[%s14143_s6 + $0x38] ss:$12 sps:$4 sm:$0xff]  }
 0x357   : > { %v2436_v13 = vmul.f32 %v1669_v63, %v1124_v5  ;;  %v10326_v30 = vmul.f32 %v1858_v8, %v1140_v60  ;;  %v1671_v51 = vpop.f32.mrb[83].mxu1  ;;  %v8004_v39 = vpop.f32.mrb[70].mxu0  ;;  %8113 = vmatprep.subr.bf16.mxu1 %v8305_v23 }
 0x358   : > { %v2468_v28 = vmul.f32 %v1671_v51, %v1124_v5  ;;  %v10329_v21 = vmul.f32 %v8004_v39, %v10319_v35  ;;  %v1861_v55 = vpop.f32.mrb[71].mxu0  ;;  %8114 = vmatpush3.bf16.msra.mxu1 %v8305_v23 }
 0x359   : > { %v10334_v9 = vmul.f32 %v1861_v55, %v1144_v33  ;;  %v2539_v59 = vpack.c.bf16 %v2436_v13, %v2435_v50 }
 0x35a   : > { %v2540_v34 = vpack.c.bf16 %v2468_v28, %v2467_v32  ;;  %v2550_v43 = vpack.c.bf16 %v10329_v21, %v10322_v58  ;;  %v8320_v58 = vld [vmem:[%s14143_s6 + $0x4c] ss:$12 sps:$4 sm:$0xff]   ;;  %v8323_v21 = vld [vmem:[%s14143_s6 + $0x64] ss:$12 sps:$4 sm:$0xff]  }
 0x35b   : > { %v2547_v56 = vpack.c.bf16 %v10334_v9, %v10326_v30  ;;  %v8321_v30 = vld [vmem:[%s14143_s6 + $0x60] ss:$12 sps:$4 sm:$0xff]   ;;  %v1170_v9 = vadd.f32 %v9961_v4, %v10107_v54 }
 0x35c   : > { %v1675_v5 = vpop.f32.mrb[84].mxu1  ;;  %2851 = vmatprep.mubr.bf16.mxu1 %v2540_v34  ;;  %8078 = vmatmul.mubr.bf16.vlgmr.msra.gmra.mrb[144].mxu0 %v14287_v10 }
 0x35d   : > { %v2437_v63 = vmul.f32 %v1675_v5, %v10272_v46  ;;  %v1677_v8 = vpop.f32.mrb[85].mxu1  ;;  %2852 = vmatmul.mubr.bf16.gmra.mrb[176].mxu1 %v2539_v59  ;;  %8081 = vmatprep.mubr.bf16.mxu0 %v2523_v6  ;;  %v8306_v59 = vld [vmem:[%s14143_s6 + $0x50] ss:$12 sps:$4 sm:$0xff]  }
 0x35e   : > { %v2469_v50 = vmul.f32 %v1677_v8, %v10272_v46  ;;  %v1679_v32 = vpop.f32.mrb[86].mxu1  ;;  %8115 = vmatprep.subr.bf16.mxu1 %v8306_v59  ;;  %v8310_v8 = vld [vmem:[%s14143_s6 + $0x68] ss:$12 sps:$4 sm:$0xff]  }
 0x35f   : > { %v2438_v13 = vmul.f32 %v1679_v32, %v10280_v31  ;;  %v1681_v51 = vpop.f32.mrb[87].mxu1  ;;  %8116 = vmatpush3.bf16.msra.mxu1 %v8306_v59  ;;  %v1174_v32 = vadd.f32 %v9963_v27, %v10107_v54 }
 0x360   : > { %v2470_v39 = vmul.f32 %v1681_v51, %v10280_v31  ;;  %8117 = vmatprep.subr.bf16.mxu1 %v8310_v8 }
 0x361   : > { %v2542_v28 = vpack.c.bf16 %v2438_v13, %v2437_v63 }
 0x362   : > { %v2543_v55 = vpack.c.bf16 %v2470_v39, %v2469_v50 }
 0x363   : > { %8118 = vmatpush3.bf16.msra.mxu1 %v8310_v8 }
 0x364   : > { %v1685_v40 = vpop.f32.mrb[88].mxu1  ;;  %2859 = vmatprep.mubr.bf16.mxu1 %v2543_v55  ;;  %8082 = vmatmul.mubr.bf16.gmra.mrb[148].mxu0 %v2526_v47  ;;  %v8324_v55 = vld [vmem:[%s14143_s6 + $0x98] ss:$12 sps:$4 sm:$0xff]  }
 0x365   : > { %v2439_v48 = vmul.f32 %v1685_v40, %v1140_v60  ;;  %v1687_v23 = vpop.f32.mrb[89].mxu1  ;;  %2860 = vmatmul.mubr.bf16.gmra.mrb[180].mxu1 %v2542_v28  ;;  %8085 = vmatprep.mubr.bf16.mxu0 %v2529_v36 }
 0x366   : > { %v2471_v61 = vmul.f32 %v1687_v23, %v1140_v60  ;;  %v1689_v25 = vpop.f32.mrb[90].mxu1 }
 0x367   : > { %v2440_v6 = vmul.f32 %v1689_v25, %v1144_v33  ;;  %v1691_v46 = vpop.f32.mrb[91].mxu1 }
 0x368   : > { %v2472_v31 = vmul.f32 %v1691_v46, %v1144_v33 }
 0x369   : > { %v2545_v34 = vpack.c.bf16 %v2440_v6, %v2439_v48 }
 0x36a   : > { %v2546_v5 = vpack.c.bf16 %v2472_v31, %v2471_v61 }
 0x36c   : > { %v1695_v26 = vpop.f32.mrb[92].mxu1  ;;  %2867 = vmatprep.mubr.bf16.mxu1 %v2546_v5  ;;  %8086 = vmatmul.mubr.bf16.gmra.mrb[152].mxu0 %v2532_v49  ;;  %v8307_v49 = vld [vmem:[%s14143_s6] ss:$12 sps:$4 sm:$0xff]   ;;  %v8327_v5 = vld [vmem:[%s14143_s6 + $0x7c] ss:$12 sps:$4 sm:$0xff]  }
 0x36d   : > { %v2441_v20 = vmul.f32 %v1695_v26, %v10309_v3  ;;  %v1697_v47 = vpop.f32.mrb[93].mxu1  ;;  %2868 = vmatmul.mubr.bf16.gmra.mrb[184].mxu1 %v2545_v34  ;;  %8089 = vmatprep.mubr.bf16.mxu0 %v2535_v7 }
 0x36e   : > { %v2473_v2 = vmul.f32 %v1697_v47, %v10309_v3  ;;  %v1699_v52 = vpop.f32.mrb[94].mxu1  ;;  %3254 = vmatpush1.bf16.msra.mxu0 %v8307_v49  ;;  %v8325_v47 = vld [vmem:[%s14143_s6 + $0x78] ss:$12 sps:$4 sm:$0xff]  }
 0x36f   : > { %v2442_v36 = vmul.f32 %v1699_v52, %v10319_v35  ;;  %v1701_v60 = vpop.f32.mrb[95].mxu1  ;;  %3255 = vmatprep.subr.bf16.mxu0 %v8313_v45 }
 0x370   : > { %v2474_v33 = vmul.f32 %v1701_v60, %v10319_v35 }
 0x371   : > { %v2548_v10 = vpack.c.bf16 %v2442_v36, %v2441_v20  ;;  %v1184_v36 = vadd.f32 %v9970_v37, %v10107_v54 }
 0x372   : > { %v2549_v63 = vpack.c.bf16 %v2474_v33, %v2473_v2  ;;  %3256 = vmatpush1.bf16.msra.mxu0 %v8311_v12  ;;  %v1180_v2 = vadd.f32 %v9967_v29, %v10107_v54  ;;  %v8328_v29 = vld [vmem:[%s14143_s6 + $0x90] ss:$12 sps:$4 sm:$0xff]  }
 0x373   : > { %3257 = vmatprep.subr.bf16.mxu0 %v8316_v16 }
 0x374   : > { %v1705_v22 = vpop.f32.mrb[96].mxu1  ;;  %2875 = vmatprep.mubr.bf16.mxu1 %v2549_v63  ;;  %8090 = vmatmul.mubr.bf16.gmra.mrb[156].mxu0 %v2538_v15 }
 0x375   : > { %v2443_v7 = vmul.f32 %v1705_v22, %v1160_v17  ;;  %v1707_v3 = vpop.f32.mrb[97].mxu1  ;;  %2876 = vmatmul.mubr.bf16.gmra.mrb[188].mxu1 %v2548_v10  ;;  %8093 = vmatprep.mubr.bf16.mxu0 %v2541_v44  ;;  %v8318_v44 = vld [vmem:[%s14143_s6 + $0x48] ss:$12 sps:$4 sm:$0xff]  }
 0x376   : > { %v2475_v57 = vmul.f32 %v1707_v3, %v1160_v17  ;;  %v1709_v0 = vpop.f32.mrb[98].mxu1  ;;  %3258 = vmatpush1.bf16.msra.mxu0 %v8314_v24 }
 0x377   : > { %v2444_v53 = vmul.f32 %v1709_v0, %v1164_v41  ;;  %v1711_v15 = vpop.f32.mrb[99].mxu1  ;;  %3259 = vmatprep.subr.bf16.mxu0 %v8320_v58  ;;  %v1194_v0 = vadd.f32 %v9977_v1, %v10107_v54 }
 0x378   : > { %v2476_v35 = vmul.f32 %v1711_v15, %v1164_v41 }
 0x379   : > { %v2551_v50 = vpack.c.bf16 %v2444_v53, %v2443_v7  ;;  %v1190_v7 = vadd.f32 %v9974_v19, %v10107_v54 }
 0x37a   : > { %v2552_v42 = vpack.c.bf16 %v2476_v35, %v2475_v57  ;;  %3260 = vmatpush1.bf16.msra.mxu0 %v8318_v44 }
 0x37b   : > { %3261 = vmatprep.subr.bf16.mxu0 %v8323_v21  ;;  %v8334_v21 = vld [vmem:[%s14143_s6 + $0xac] ss:$12 sps:$4 sm:$0xff]  }
 0x37c   : > { %2883 = vmatprep.mubr.bf16.mxu1 %v2552_v42  ;;  %8094 = vmatmul.mubr.bf16.gmra.mrb[160].mxu0 %v2544_v62  ;;  %v8317_v62 = vld [vmem:[%s14143_s6 + $0x80] ss:$12 sps:$4 sm:$0xff]  }
 0x37d   : > { %2884 = vmatmul.mubr.bf16.gmra.mrb[192].mxu1 %v2551_v50  ;;  %8097 = vmatprep.mubr.bf16.mxu0 %v2547_v56  ;;  %v8331_v50 = vld [vmem:[%s14143_s6 + $0xb0] ss:$12 sps:$4 sm:$0xff]  }
 0x37e   : > { %8119 = vmatprep.subr.bf16.mxu1 %v8317_v62  ;;  %3262 = vmatpush1.bf16.msra.mxu0 %v8321_v30 }
 0x37f   : > { %8120 = vmatpush3.bf16.msra.mxu1 %v8317_v62  ;;  %3263 = vmatprep.subr.bf16.mxu0 %v8327_v5 }
 0x380   : > { %8121 = vmatprep.subr.bf16.mxu1 %v8324_v55 }
 0x382   : > { %3264 = vmatpush1.bf16.msra.mxu0 %v8325_v47 }
 0x383   : > { %8122 = vmatpush3.bf16.msra.mxu1 %v8324_v55 }
 0x384   : > { %8098 = vmatmul.mubr.bf16.gmra.mrb[164].mxu0 %v2550_v43  ;;  %8123 = vmatprep.subr.bf16.mxu1 %v8331_v50 }
 0x387   : > { %8124 = vmatpush3.bf16.msra.mxu1 %v8331_v50 }
 0x397   : > { %v1715_v43 = vpop.f32.mrb[100].mxu1  ;;  %v8007_v56 = vpop.f32.mrb[72].mxu0 }
 0x398   : > { %v2445_v13 = vmul.f32 %v1715_v43, %v1170_v9  ;;  %v2509_v51 = vmul.f32 %v8007_v56, %v1170_v9  ;;  %v1717_v39 = vpop.f32.mrb[101].mxu1  ;;  %v1874_v28 = vpop.f32.mrb[73].mxu0  ;;  %v8332_v56 = vld [vmem:[%s14143_s6 + $0xa8] ss:$12 sps:$4 sm:$0xff]  }
 0x399   : > { %v2477_v40 = vmul.f32 %v1717_v39, %v1170_v9  ;;  %v2507_v48 = vmul.f32 %v1874_v28, %v1160_v17  ;;  %v1719_v23 = vpop.f32.mrb[102].mxu1  ;;  %v8008_v61 = vpop.f32.mrb[74].mxu0 }
 0x39a   : > { %v2446_v4 = vmul.f32 %v1719_v23, %v1174_v32  ;;  %v2510_v25 = vmul.f32 %v8008_v61, %v1174_v32  ;;  %v1721_v6 = vpop.f32.mrb[103].mxu1  ;;  %v1877_v46 = vpop.f32.mrb[75].mxu0 }
 0x39b   : > { %v2478_v31 = vmul.f32 %v1721_v6, %v1174_v32  ;;  %v2508_v59 = vmul.f32 %v1877_v46, %v1164_v41  ;;  %v8330_v41 = vld [vmem:[%s14143_s6 + $0x94] ss:$12 sps:$4 sm:$0xff]  }
 0x39c   : > { %v2554_v27 = vpack.c.bf16 %v2446_v4, %v2445_v13  ;;  %v2556_v34 = vpack.c.bf16 %v2510_v25, %v2509_v51  ;;  %3265 = vmatprep.subr.bf16.mxu0 %v8330_v41 }
 0x39d   : > { %v2555_v26 = vpack.c.bf16 %v2478_v31, %v2477_v40  ;;  %v2553_v20 = vpack.c.bf16 %v2508_v59, %v2507_v48  ;;  %3266 = vmatpush1.bf16.msra.mxu0 %v8328_v29 }
 0x39e   : > { %3267 = vmatprep.subr.bf16.mxu0 %v8334_v21 }
 0x39f   : > { %v1725_v52 = vpop.f32.mrb[104].mxu1  ;;  %2891 = vmatprep.mubr.bf16.mxu1 %v2555_v26  ;;  %8101 = vmatprep.mubr.bf16.mxu0 %v2553_v20 }
 0x3a0   : > { %v2447_v60 = vmul.f32 %v1725_v52, %v1180_v2  ;;  %v1727_v33 = vpop.f32.mrb[105].mxu1  ;;  %2892 = vmatmul.mubr.bf16.gmra.mrb[196].mxu1 %v2554_v27  ;;  %8102 = vmatmul.mubr.bf16.gmra.mrb[168].mxu0 %v2556_v34 }
 0x3a1   : > { %v2479_v10 = vmul.f32 %v1727_v33, %v1180_v2  ;;  %v1729_v63 = vpop.f32.mrb[106].mxu1  ;;  %3268 = vmatpush1.bf16.msra.mxu0 %v8332_v56 }
 0x3a2   : > { %v2448_v17 = vmul.f32 %v1729_v63, %v1184_v36  ;;  %v1731_v22 = vpop.f32.mrb[107].mxu1 }
 0x3a3   : > { %v2480_v49 = vmul.f32 %v1731_v22, %v1184_v36 }
 0x3a4   : > { %v2557_v18 = vpack.c.bf16 %v2448_v17, %v2447_v60 }
 0x3a5   : > { %v2558_v37 = vpack.c.bf16 %v2480_v49, %v2479_v10 }
 0x3a7   : > { %v1735_v3 = vpop.f32.mrb[108].mxu1  ;;  %v8011_v57 = vpop.f32.mrb[76].mxu0  ;;  %2899 = vmatprep.mubr.bf16.mxu1 %v2558_v37 }
 0x3a8   : > { %v2449_v53 = vmul.f32 %v1735_v3, %v1190_v7  ;;  %v2513_v15 = vmul.f32 %v8011_v57, %v1190_v7  ;;  %v1737_v35 = vpop.f32.mrb[109].mxu1  ;;  %v1890_v8 = vpop.f32.mrb[77].mxu0  ;;  %2900 = vmatmul.mubr.bf16.gmra.mrb[200].mxu1 %v2557_v18 }
 0x3a9   : > { %v2481_v42 = vmul.f32 %v1737_v35, %v1190_v7  ;;  %v2511_v12 = vmul.f32 %v1890_v8, %v1180_v2  ;;  %v1739_v19 = vpop.f32.mrb[110].mxu1  ;;  %v8012_v45 = vpop.f32.mrb[78].mxu0 }
 0x3aa   : > { %v2450_v24 = vmul.f32 %v1739_v19, %v1194_v0  ;;  %v2514_v16 = vmul.f32 %v8012_v45, %v1194_v0  ;;  %v1741_v62 = vpop.f32.mrb[111].mxu1  ;;  %v1893_v44 = vpop.f32.mrb[79].mxu0 }
 0x3ab   : > { %v2482_v58 = vmul.f32 %v1741_v62, %v1194_v0  ;;  %v2512_v1 = vmul.f32 %v1893_v44, %v1184_v36 }
 0x3ac   : > { %v2560_v54 = vpack.c.bf16 %v2450_v24, %v2449_v53  ;;  %v2562_v30 = vpack.c.bf16 %v2514_v16, %v2513_v15 }
 0x3ad   : > { %v2561_v9 = vpack.c.bf16 %v2482_v58, %v2481_v42  ;;  %v2559_v43 = vpack.c.bf16 %v2512_v1, %v2511_v12 }
 0x3af   : > { %v10460_v32 = vpop.f32.mrb[80].mxu0  ;;  %2907 = vmatprep.mubr.bf16.mxu1 %v2561_v9  ;;  %8105 = vmatprep.mubr.bf16.mxu0 %v2559_v43 }
 0x3b0   : > { %v10462_v13 = vpop.f32.mrb[81].mxu0  ;;  %v10464_v51 = vpop.f32.mrb[112].mxu1  ;;  %2908 = vmatmul.mubr.bf16.gmra.mrb[204].mxu1 %v2560_v54  ;;  %8106 = vmatmul.mubr.bf16.gmra.mrb[172].mxu0 %v2562_v30 }
 0x3b1   : > { %v10466_v39 = vpop.f32.mrb[82].mxu0  ;;  %v10468_v28 = vpop.f32.mrb[113].mxu1  ;;  %3285 = vmatprep.mubr.bf16.mxu0 %v14152_v11 }
 0x3b2   : > { %v10471_v55 = vpop.f32.mrb[83].mxu0  ;;  %v10473_v40 = vpop.f32.mrb[114].mxu1 }
 0x3b3   : > { %v10475_v48 = vpop.f32.mrb[115].mxu1 }
 0x3b7   : > { %v10477_v23 = vpop.f32.mrb[84].mxu0 }
 0x3b8   : > { %v10479_v61 = vpop.f32.mrb[85].mxu0  ;;  %v10481_v4 = vpop.f32.mrb[116].mxu1 }
 0x3b9   : > { %14288 = vst [vmem:[#allocation4_spill] sm:$0xff] %v10481_v4  ;;  %v10483_v25 = vpop.f32.mrb[86].mxu0  ;;  %v10485_v6 = vpop.f32.mrb[117].mxu1 }
 0x3ba   : > { %v10487_v46 = vpop.f32.mrb[87].mxu0  ;;  %v10489_v31 = vpop.f32.mrb[118].mxu1 }
 0x3bb   : > { %14289 = vst [vmem:[#allocation5_spill] sm:$0xff] %v10489_v31  ;;  %v10491_v59 = vpop.f32.mrb[119].mxu1 }
 0x3bc   : > { %14290 = vst [vmem:[#allocation6_spill] sm:$0xff] %v10491_v59 }
 0x3bf   : > { %v10493_v27 = vpop.f32.mrb[88].mxu0 }
 0x3c0   : > { %v10495_v34 = vpop.f32.mrb[89].mxu0  ;;  %v10497_v5 = vpop.f32.mrb[120].mxu1 }
 0x3c1   : > { %14291 = vst [vmem:[#allocation7_spill] sm:$0xff] %v10497_v5  ;;  %v10499_v26 = vpop.f32.mrb[90].mxu0  ;;  %v10501_v20 = vpop.f32.mrb[121].mxu1 }
 0x3c2   : > { %14292 = vst [vmem:[#allocation8_spill] sm:$0xff] %v10501_v20  ;;  %v10503_v47 = vpop.f32.mrb[91].mxu0  ;;  %v10505_v2 = vpop.f32.mrb[122].mxu1 }
 0x3c3   : > { %14293 = vst [vmem:[#allocation9_spill] sm:$0xff] %v10505_v2  ;;  %v10507_v52 = vpop.f32.mrb[123].mxu1 }
 0x3c4   : > { %14294 = vst [vmem:[#allocation10_spill] sm:$0xff] %v10507_v52 }
 0x3c7   : > { %v10509_v36 = vpop.f32.mrb[92].mxu0 }
 0x3c8   : > { %14295 = vst [vmem:[#allocation11_spill] sm:$0xff] %v10509_v36  ;;  %v10511_v60 = vpop.f32.mrb[93].mxu0  ;;  %v10513_v33 = vpop.f32.mrb[124].mxu1 }
 0x3c9   : > { %14296 = vst [vmem:[#allocation12_spill] sm:$0xff] %v10511_v60  ;;  %14297 = vst [vmem:[#allocation13_spill] sm:$0xff] %v10513_v33  ;;  %v10515_v10 = vpop.f32.mrb[94].mxu0  ;;  %v10517_v63 = vpop.f32.mrb[125].mxu1 }
 0x3ca   : > { %14298 = vst [vmem:[#allocation14_spill] sm:$0xff] %v10515_v10  ;;  %14299 = vst [vmem:[#allocation15_spill] sm:$0xff] %v10517_v63  ;;  %v10519_v17 = vpop.f32.mrb[95].mxu0  ;;  %v10521_v22 = vpop.f32.mrb[126].mxu1 }
 0x3cb   : > { %14300 = vst [vmem:[#allocation16_spill] sm:$0xff] %v10519_v17  ;;  %14301 = vst [vmem:[#allocation17_spill] sm:$0xff] %v10521_v22  ;;  %v10523_v49 = vpop.f32.mrb[127].mxu1 }
 0x3cc   : > { %14302 = vst [vmem:[#allocation18_spill] sm:$0xff] %v10523_v49 }
 0x3cf   : > { %v10525_v18 = vpop.f32.mrb[96].mxu0 }
 0x3d0   : > { %14303 = vst [vmem:[#allocation19_spill] sm:$0xff] %v10525_v18  ;;  %v10527_v29 = vpop.f32.mrb[97].mxu0  ;;  %v10529_v41 = vpop.f32.mrb[128].mxu1 }
 0x3d1   : > { %14304 = vst [vmem:[#allocation20_spill] sm:$0xff] %v10527_v29  ;;  %14305 = vst [vmem:[#allocation21_spill] sm:$0xff] %v10529_v41  ;;  %v10531_v37 = vpop.f32.mrb[98].mxu0  ;;  %v10533_v7 = vpop.f32.mrb[129].mxu1 }
 0x3d2   : > { %14306 = vst [vmem:[#allocation22_spill] sm:$0xff] %v10531_v37  ;;  %14307 = vst [vmem:[#allocation23_spill] sm:$0xff] %v10533_v7  ;;  %v10535_v3 = vpop.f32.mrb[99].mxu0  ;;  %v10537_v57 = vpop.f32.mrb[130].mxu1 }
 0x3d3   : > { %14308 = vst [vmem:[#allocation24_spill] sm:$0xff] %v10535_v3  ;;  %14309 = vst [vmem:[#allocation25_spill] sm:$0xff] %v10537_v57  ;;  %v10539_v0 = vpop.f32.mrb[131].mxu1 }
 0x3d4   : > { %14310 = vst [vmem:[#allocation26_spill] sm:$0xff] %v10539_v0 }
 0x3d7   : > { %v10541_v53 = vpop.f32.mrb[100].mxu0 }
 0x3d8   : > { %14311 = vst [vmem:[#allocation27_spill] sm:$0xff] %v10541_v53  ;;  %v10543_v15 = vpop.f32.mrb[101].mxu0  ;;  %v10545_v35 = vpop.f32.mrb[132].mxu1 }
 0x3d9   : > { %14312 = vst [vmem:[#allocation28_spill] sm:$0xff] %v10543_v15  ;;  %14313 = vst [vmem:[#allocation29_spill] sm:$0xff] %v10545_v35  ;;  %v10547_v8 = vpop.f32.mrb[102].mxu0  ;;  %v10549_v50 = vpop.f32.mrb[133].mxu1 }
 0x3da   : > { %14314 = vst [vmem:[#allocation30_spill] sm:$0xff] %v10547_v8  ;;  %14315 = vst [vmem:[#allocation31_spill] sm:$0xff] %v10549_v50  ;;  %v10551_v42 = vpop.f32.mrb[103].mxu0  ;;  %v10553_v12 = vpop.f32.mrb[134].mxu1 }
 0x3db   : > { %14316 = vst [vmem:[#allocation32_spill] sm:$0xff] %v10551_v42  ;;  %14317 = vst [vmem:[#allocation33_spill] sm:$0xff] %v10553_v12  ;;  %v10555_v19 = vpop.f32.mrb[135].mxu1 }
 0x3dc   : > { %14318 = vst [vmem:[#allocation34_spill] sm:$0xff] %v10555_v19 }
 0x3df   : > { %v10557_v45 = vpop.f32.mrb[104].mxu0 }
 0x3e0   : > { %14319 = vst [vmem:[#allocation35_spill] sm:$0xff] %v10557_v45  ;;  %v10559_v24 = vpop.f32.mrb[105].mxu0  ;;  %v10561_v16 = vpop.f32.mrb[136].mxu1 }
 0x3e1   : > { %14320 = vst [vmem:[#allocation36_spill] sm:$0xff] %v10559_v24  ;;  %14321 = vst [vmem:[#allocation37_spill] sm:$0xff] %v10561_v16  ;;  %v10563_v62 = vpop.f32.mrb[106].mxu0  ;;  %v10565_v44 = vpop.f32.mrb[137].mxu1 }
 0x3e2   : > { %14322 = vst [vmem:[#allocation38_spill] sm:$0xff] %v10563_v62  ;;  %14323 = vst [vmem:[#allocation39_spill] sm:$0xff] %v10565_v44  ;;  %v10567_v58 = vpop.f32.mrb[107].mxu0  ;;  %v10569_v1 = vpop.f32.mrb[138].mxu1 }
 0x3e3   : > { %14324 = vst [vmem:[#allocation40_spill] sm:$0xff] %v10567_v58  ;;  %14325 = vst [vmem:[#allocation41_spill] sm:$0xff] %v10569_v1  ;;  %v10571_v54 = vpop.f32.mrb[139].mxu1 }
 0x3e4   : > { %14326 = vst [vmem:[#allocation42_spill] sm:$0xff] %v10571_v54 }
 0x3e7   : > { %v10573_v30 = vpop.f32.mrb[108].mxu0 }
 0x3e8   : > { %14327 = vst [vmem:[#allocation43_spill] sm:$0xff] %v10573_v30  ;;  %v10575_v21 = vpop.f32.mrb[109].mxu0  ;;  %v10577_v9 = vpop.f32.mrb[140].mxu1 }
 0x3e9   : > { %14328 = vst [vmem:[#allocation44_spill] sm:$0xff] %v10575_v21  ;;  %14329 = vst [vmem:[#allocation45_spill] sm:$0xff] %v10577_v9  ;;  %v10579_v43 = vpop.f32.mrb[110].mxu0  ;;  %v10581_v56 = vpop.f32.mrb[141].mxu1 }
 0x3ea   : > { %14330 = vst [vmem:[#allocation46_spill] sm:$0xff] %v10579_v43  ;;  %14331 = vst [vmem:[#allocation47_spill] sm:$0xff] %v10581_v56  ;;  %v10583_v11 = vpop.f32.mrb[111].mxu0  ;;  %v10585_v14 = vpop.f32.mrb[142].mxu1 }
 0x3eb   : > { %14332 = vst [vmem:[#allocation48_spill] sm:$0xff] %v10583_v11  ;;  %14333 = vst [vmem:[#allocation49_spill] sm:$0xff] %v10585_v14  ;;  %v10587_v38 = vpop.f32.mrb[143].mxu1 }
 0x3ec   : > { %14334 = vst [vmem:[#allocation50_spill] sm:$0xff] %v10587_v38 }
 0x3ef   : > { %v10589_v16 = vpop.f32.mrb[112].mxu0 }
 0x3f0   : > { %14335 = vst [vmem:[#allocation51_spill] sm:$0xff] %v10589_v16  ;;  %v10591_v1 = vpop.f32.mrb[113].mxu0  ;;  %v7549_v54 = vpop.f32.mrb[144].mxu1 }
 0x3f1   : > { %14336 = vst [vmem:[#allocation52_spill] sm:$0xff] %v10591_v1  ;;  %v10593_v44 = vpop.f32.mrb[114].mxu0  ;;  %v7550_v12 = vpop.f32.mrb[145].mxu1 }
 0x3f2   : > { %14337 = vst [vmem:[#allocation53_spill] sm:$0xff] %v10593_v44  ;;  %v10595_v35 = vadd.f32 %v7550_v12, %v7549_v54  ;;  %v10597_v9 = vpop.f32.mrb[115].mxu0  ;;  %v7552_v19 = vpop.f32.mrb[146].mxu1 }
 0x3f3   : > { %14338 = vst [vmem:[#allocation54_spill] sm:$0xff] %v10597_v9  ;;  %v7553_v56 = vpop.f32.mrb[147].mxu1 }
 0x3f4   : > { %v10599_v50 = vadd.f32 %v7553_v56, %v7552_v19 }
 0x3f7   : > { %v10601_v57 = vpop.f32.mrb[116].mxu0 }
 0x3f8   : > { %14339 = vst [vmem:[#allocation55_spill] sm:$0xff] %v10601_v57  ;;  %v10603_v14 = vpop.f32.mrb[117].mxu0  ;;  %v7555_v38 = vpop.f32.mrb[148].mxu1 }
 0x3f9   : > { %14340 = vst [vmem:[#allocation56_spill] sm:$0xff] %v10603_v14  ;;  %v10605_v41 = vpop.f32.mrb[118].mxu0  ;;  %v7556_v0 = vpop.f32.mrb[149].mxu1 }
 0x3fa   : > { %14341 = vst [vmem:[#allocation57_spill] sm:$0xff] %v10605_v41  ;;  %v10607_v7 = vadd.f32 %v7556_v0, %v7555_v38  ;;  %v10609_v44 = vpop.f32.mrb[119].mxu0  ;;  %v7558_v12 = vpop.f32.mrb[150].mxu1 }
 0x3fb   : > { %14342 = vst [vmem:[#allocation58_spill] sm:$0xff] %v10609_v44  ;;  %v7559_v54 = vpop.f32.mrb[151].mxu1 }
 0x3fc   : > { %v10611_v1 = vadd.f32 %v7559_v54, %v7558_v12 }
 0x3ff   : > { %v10613_v9 = vpop.f32.mrb[120].mxu0 }
 0x400   : > { %14343 = vst [vmem:[#allocation59_spill] sm:$0xff] %v10613_v9  ;;  %v10615_v19 = vpop.f32.mrb[121].mxu0  ;;  %v7561_v56 = vpop.f32.mrb[152].mxu1 }
 0x401   : > { %14344 = vst [vmem:[#allocation60_spill] sm:$0xff] %v10615_v19  ;;  %v10617_v57 = vpop.f32.mrb[122].mxu0  ;;  %v7562_v14 = vpop.f32.mrb[153].mxu1 }
 0x402   : > { %14345 = vst [vmem:[#allocation61_spill] sm:$0xff] %v10617_v57  ;;  %v10619_v16 = vadd.f32 %v7562_v14, %v7561_v56  ;;  %v10621_v41 = vpop.f32.mrb[123].mxu0  ;;  %v7564_v38 = vpop.f32.mrb[154].mxu1 }
 0x403   : > { %14346 = vst [vmem:[#allocation62_spill] sm:$0xff] %v10621_v41  ;;  %v7565_v0 = vpop.f32.mrb[155].mxu1 }
 0x404   : > { %v10623_v22 = vadd.f32 %v7565_v0, %v7564_v38 }
 0x407   : > { %v10625_v44 = vpop.f32.mrb[124].mxu0 }
 0x408   : > { %14347 = vst [vmem:[#allocation63_spill] sm:$0xff] %v10625_v44  ;;  %v10627_v12 = vpop.f32.mrb[125].mxu0  ;;  %v7567_v54 = vpop.f32.mrb[156].mxu1 }
 0x409   : > { %14348 = vst [vmem:[#allocation64_spill] sm:$0xff] %v10627_v12  ;;  %v10629_v9 = vpop.f32.mrb[126].mxu0  ;;  %v7568_v19 = vpop.f32.mrb[157].mxu1 }
 0x40a   : > { %14349 = vst [vmem:[#allocation65_spill] sm:$0xff] %v10629_v9  ;;  %v10631_v11 = vadd.f32 %v7568_v19, %v7567_v54  ;;  %v10633_v57 = vpop.f32.mrb[127].mxu0  ;;  %v7570_v14 = vpop.f32.mrb[158].mxu1 }
 0x40b   : > { %14350 = vst [vmem:[#allocation66_spill] sm:$0xff] %v10633_v57  ;;  %v7571_v56 = vpop.f32.mrb[159].mxu1 }
 0x40c   : > { %v10635_v43 = vadd.f32 %v7571_v56, %v7570_v14 }
 0x40f   : > { %v10637_v41 = vpop.f32.mrb[128].mxu0 }
 0x410   : > { %14351 = vst [vmem:[#allocation67_spill] sm:$0xff] %v10637_v41  ;;  %v10639_v38 = vpop.f32.mrb[129].mxu0  ;;  %v7573_v0 = vpop.f32.mrb[160].mxu1 }
 0x411   : > { %14352 = vst [vmem:[#allocation68_spill] sm:$0xff] %v10639_v38  ;;  %v10641_v44 = vpop.f32.mrb[130].mxu0  ;;  %v7574_v12 = vpop.f32.mrb[161].mxu1 }
 0x412   : > { %14353 = vst [vmem:[#allocation69_spill] sm:$0xff] %v10641_v44  ;;  %v10643_v33 = vadd.f32 %v7574_v12, %v7573_v0  ;;  %v10645_v9 = vpop.f32.mrb[131].mxu0  ;;  %v7576_v19 = vpop.f32.mrb[162].mxu1 }
 0x413   : > { %14354 = vst [vmem:[#allocation70_spill] sm:$0xff] %v10645_v9  ;;  %v7577_v54 = vpop.f32.mrb[163].mxu1 }
 0x414   : > { %v10647_v21 = vadd.f32 %v7577_v54, %v7576_v19 }
 0x417   : > { %v10649_v57 = vpop.f32.mrb[132].mxu0 }
 0x418   : > { %14355 = vst [vmem:[#allocation71_spill] sm:$0xff] %v10649_v57  ;;  %v10651_v14 = vpop.f32.mrb[133].mxu0  ;;  %v7579_v56 = vpop.f32.mrb[164].mxu1 }
 0x419   : > { %14356 = vst [vmem:[#allocation72_spill] sm:$0xff] %v10651_v14  ;;  %v10653_v41 = vpop.f32.mrb[134].mxu0  ;;  %v7580_v38 = vpop.f32.mrb[165].mxu1 }
 0x41a   : > { %14357 = vst [vmem:[#allocation73_spill] sm:$0xff] %v10653_v41  ;;  %v10655_v30 = vadd.f32 %v7580_v38, %v7579_v56  ;;  %v10657_v44 = vpop.f32.mrb[135].mxu0  ;;  %v7582_v12 = vpop.f32.mrb[166].mxu1 }
 0x41b   : > { %14358 = vst [vmem:[#allocation74_spill] sm:$0xff] %v10657_v44  ;;  %v7583_v0 = vpop.f32.mrb[167].mxu1 }
 0x41c   : > { %v10659_v49 = vadd.f32 %v7583_v0, %v7582_v12 }
 0x41f   : > { %v10661_v9 = vpop.f32.mrb[136].mxu0 }
 0x420   : > { %14359 = vst [vmem:[#allocation75_spill] sm:$0xff] %v10661_v9  ;;  %v10663_v19 = vpop.f32.mrb[137].mxu0  ;;  %v7585_v54 = vpop.f32.mrb[168].mxu1 }
 0x421   : > { %14360 = vst [vmem:[#allocation76_spill] sm:$0xff] %v10663_v19  ;;  %v10665_v57 = vpop.f32.mrb[138].mxu0  ;;  %v7586_v14 = vpop.f32.mrb[169].mxu1 }
 0x422   : > { %14361 = vst [vmem:[#allocation77_spill] sm:$0xff] %v10665_v57  ;;  %v10667_v58 = vadd.f32 %v7586_v14, %v7585_v54  ;;  %v10669_v41 = vpop.f32.mrb[139].mxu0  ;;  %v7588_v38 = vpop.f32.mrb[170].mxu1 }
 0x423   : > { %14362 = vst [vmem:[#allocation78_spill] sm:$0xff] %v10669_v41  ;;  %v7589_v56 = vpop.f32.mrb[171].mxu1 }
 0x424   : > { %v10671_v62 = vadd.f32 %v7589_v56, %v7588_v38 }
 0x427   : > { %v10673_v44 = vpop.f32.mrb[140].mxu0 }
 0x428   : > { %14363 = vst [vmem:[#allocation79_spill] sm:$0xff] %v10673_v44  ;;  %v10675_v12 = vpop.f32.mrb[141].mxu0  ;;  %v7591_v0 = vpop.f32.mrb[172].mxu1 }
 0x429   : > { %14364 = vst [vmem:[#allocation80_spill] sm:$0xff] %v10675_v12  ;;  %v10677_v9 = vpop.f32.mrb[142].mxu0  ;;  %v7592_v19 = vpop.f32.mrb[173].mxu1 }
 0x42a   : > { %14365 = vst [vmem:[#allocation81_spill] sm:$0xff] %v10677_v9  ;;  %v10679_v63 = vadd.f32 %v7592_v19, %v7591_v0  ;;  %v10681_v57 = vpop.f32.mrb[143].mxu0  ;;  %v7594_v14 = vpop.f32.mrb[174].mxu1 }
 0x42b   : > { %14366 = vst [vmem:[#allocation82_spill] sm:$0xff] %v10681_v57  ;;  %v7595_v54 = vpop.f32.mrb[175].mxu1 }
 0x42c   : > { %v10683_v24 = vadd.f32 %v7595_v54, %v7594_v14 }
 0x42f   : > { %v8079_v41 = vpop.f32.mrb[144].mxu0 }
 0x430   : > { %v2959_v38 = vadd.f32 %v8079_v41, %v10607_v7  ;;  %v7597_v56 = vpop.f32.mrb[176].mxu1  ;;  %v2950_v45 = vpop.f32.mrb[145].mxu0 }
 0x431   : > { %v2951_v44 = vadd.f32 %v10595_v35, %v2950_v45  ;;  %v7598_v12 = vpop.f32.mrb[177].mxu1  ;;  %v8080_v2 = vpop.f32.mrb[146].mxu0 }
 0x432   : > { %v10687_v42 = vadd.f32 %v7598_v12, %v7597_v56  ;;  %v2962_v19 = vadd.f32 %v8080_v2, %v10611_v1  ;;  %v7600_v0 = vpop.f32.mrb[178].mxu1  ;;  %v2953_v9 = vpop.f32.mrb[147].mxu0  ;;  %v14367_v12 = vmov 0  }
 0x433   : > { %v2954_v57 = vadd.f32 %v10599_v50, %v2953_v9  ;;  %v7601_v8 = vpop.f32.mrb[179].mxu1 }
 0x434   : > { %v3078_v14 = vpack.c.bf16 %v2962_v19, %v2959_v38  ;;  %v10691_v54 = vadd.f32 %v7601_v8, %v7600_v0 }
 0x435   : > { %v3077_v5 = vpack.c.bf16 %v2954_v57, %v2951_v44 }
 0x437   : > { %v8083_v41 = vpop.f32.mrb[148].mxu0  ;;  %3286 = vmatmul.mubr.bf16.vlgmr.msra.gmra.mrb[176].mxu0 %v3077_v5  ;;  %8125 = vmatprep.mubr.bf16.mxu1 %v3077_v5 }
 0x438   : > { %v2975_v7 = vadd.f32 %v8083_v41, %v10631_v11  ;;  %v7603_v35 = vpop.f32.mrb[180].mxu1  ;;  %v2966_v45 = vpop.f32.mrb[149].mxu0  ;;  %8126 = vmatmul.mubr.bf16.vlgmr.msra.gmra.mrb[208].mxu1 %v3078_v14  ;;  %3295 = vmatprep.mubr.bf16.mxu0 %v14367_v12 }
 0x439   : > { %v2967_v2 = vadd.f32 %v10619_v16, %v2966_v45  ;;  %v7604_v1 = vpop.f32.mrb[181].mxu1  ;;  %v8084_v56 = vpop.f32.mrb[150].mxu0 }
 0x43a   : > { %v7605_v50 = vadd.f32 %v7604_v1, %v7603_v35  ;;  %v2978_v9 = vadd.f32 %v8084_v56, %v10635_v43  ;;  %v7606_v8 = vpop.f32.mrb[182].mxu1  ;;  %v2969_v38 = vpop.f32.mrb[151].mxu0 }
 0x43b   : > { %v2970_v57 = vadd.f32 %v10623_v22, %v2969_v38  ;;  %v7607_v44 = vpop.f32.mrb[183].mxu1 }
 0x43c   : > { %v3080_v5 = vpack.c.bf16 %v2978_v9, %v2975_v7  ;;  %v7608_v19 = vadd.f32 %v7607_v44, %v7606_v8 }
 0x43d   : > { %v3079_v11 = vpack.c.bf16 %v2970_v57, %v2967_v2 }
 0x43f   : > { %v8087_v0 = vpop.f32.mrb[152].mxu0  ;;  %3296 = vmatmul.mubr.bf16.gmra.mrb[180].mxu0 %v3078_v14  ;;  %8129 = vmatprep.mubr.bf16.mxu1 %v3079_v11 }
 0x440   : > { %v2991_v41 = vadd.f32 %v8087_v0, %v10655_v30  ;;  %v7609_v15 = vpop.f32.mrb[184].mxu1  ;;  %v2982_v16 = vpop.f32.mrb[153].mxu0  ;;  %8130 = vmatmul.mubr.bf16.gmra.mrb[212].mxu1 %v3080_v5  ;;  %3305 = vmatprep.mubr.bf16.mxu0 %v14367_v12 }
 0x441   : > { %v2983_v43 = vadd.f32 %v10643_v33, %v2982_v16  ;;  %v7610_v35 = vpop.f32.mrb[185].mxu1  ;;  %v8088_v45 = vpop.f32.mrb[154].mxu0 }
 0x442   : > { %v7611_v1 = vadd.f32 %v7610_v35, %v7609_v15  ;;  %v2994_v22 = vadd.f32 %v8088_v45, %v10659_v49  ;;  %v7612_v7 = vpop.f32.mrb[186].mxu1  ;;  %v2985_v56 = vpop.f32.mrb[155].mxu0 }
 0x443   : > { %v2986_v2 = vadd.f32 %v10647_v21, %v2985_v56  ;;  %v7613_v14 = vpop.f32.mrb[187].mxu1 }
 0x444   : > { %v3082_v9 = vpack.c.bf16 %v2994_v22, %v2991_v41  ;;  %v7614_v8 = vadd.f32 %v7613_v14, %v7612_v7 }
 0x445   : > { %v3081_v30 = vpack.c.bf16 %v2986_v2, %v2983_v43 }
 0x447   : > { %v8091_v38 = vpop.f32.mrb[156].mxu0  ;;  %3306 = vmatmul.mubr.bf16.gmra.mrb[184].mxu0 %v3079_v11  ;;  %8133 = vmatprep.mubr.bf16.mxu1 %v3081_v30 }
 0x448   : > { %v3007_v57 = vadd.f32 %v8091_v38, %v10679_v63  ;;  %v7615_v44 = vpop.f32.mrb[188].mxu1  ;;  %v2998_v33 = vpop.f32.mrb[157].mxu0  ;;  %8134 = vmatmul.mubr.bf16.gmra.mrb[216].mxu1 %v3082_v9  ;;  %3315 = vmatprep.mubr.bf16.mxu0 %v14367_v12 }
 0x449   : > { %v2999_v49 = vadd.f32 %v10667_v58, %v2998_v33  ;;  %v7616_v15 = vpop.f32.mrb[189].mxu1  ;;  %v8092_v0 = vpop.f32.mrb[158].mxu0 }
 0x44a   : > { %v7617_v16 = vadd.f32 %v7616_v15, %v7615_v44  ;;  %v3010_v21 = vadd.f32 %v8092_v0, %v10683_v24  ;;  %v7618_v41 = vpop.f32.mrb[190].mxu1  ;;  %v3001_v35 = vpop.f32.mrb[159].mxu0 }
 0x44b   : > { %v3002_v43 = vadd.f32 %v10671_v62, %v3001_v35  ;;  %v7619_v11 = vpop.f32.mrb[191].mxu1 }
 0x44c   : > { %v3084_v45 = vpack.c.bf16 %v3010_v21, %v3007_v57  ;;  %v7620_v22 = vadd.f32 %v7619_v11, %v7618_v41 }
 0x44d   : > { %v3083_v63 = vpack.c.bf16 %v3002_v43, %v2999_v49 }
 0x44f   : > { %v8095_v7 = vpop.f32.mrb[160].mxu0  ;;  %3316 = vmatmul.mubr.bf16.gmra.mrb[188].mxu0 %v3080_v5  ;;  %8137 = vmatprep.mubr.bf16.mxu1 %v3083_v63 }
 0x450   : > { %v3023_v56 = vadd.f32 %v8095_v7, %v7605_v50  ;;  %v7621_v2 = vpop.f32.mrb[192].mxu1  ;;  %v3014_v14 = vpop.f32.mrb[161].mxu0  ;;  %8138 = vmatmul.mubr.bf16.gmra.mrb[220].mxu1 %v3084_v45  ;;  %3325 = vmatprep.mubr.bf16.mxu0 %v14367_v12 }
 0x451   : > { %v3015_v58 = vadd.f32 %v10687_v42, %v3014_v14  ;;  %v7622_v24 = vpop.f32.mrb[193].mxu1  ;;  %v8096_v38 = vpop.f32.mrb[162].mxu0 }
 0x452   : > { %v7623_v44 = vadd.f32 %v7622_v24, %v7621_v2  ;;  %v3026_v33 = vadd.f32 %v8096_v38, %v7608_v19  ;;  %v7624_v62 = vpop.f32.mrb[194].mxu1  ;;  %v3017_v15 = vpop.f32.mrb[163].mxu0 }
 0x453   : > { %v3018_v57 = vadd.f32 %v10691_v54, %v3017_v15  ;;  %v7625_v49 = vpop.f32.mrb[195].mxu1 }
 0x454   : > { %v3086_v0 = vpack.c.bf16 %v3026_v33, %v3023_v56  ;;  %v7626_v5 = vadd.f32 %v7625_v49, %v7624_v62 }
 0x455   : > { %v3085_v21 = vpack.c.bf16 %v3018_v57, %v3015_v58 }
 0x457   : > { %v8099_v50 = vpop.f32.mrb[164].mxu0  ;;  %3326 = vmatmul.mubr.bf16.gmra.mrb[192].mxu0 %v3081_v30  ;;  %8141 = vmatprep.mubr.bf16.mxu1 %v3085_v21 }
 0x458   : > { %v3039_v41 = vadd.f32 %v8099_v50, %v7617_v16  ;;  %v3030_v35 = vpop.f32.mrb[165].mxu0  ;;  %8142 = vmatmul.mubr.bf16.gmra.mrb[224].mxu1 %v3086_v0  ;;  %3335 = vmatprep.mubr.bf16.mxu0 %v14367_v12 }
 0x459   : > { %v3031_v42 = vadd.f32 %v7611_v1, %v3030_v35  ;;  %v8100_v43 = vpop.f32.mrb[166].mxu0 }
 0x45a   : > { %v3042_v11 = vadd.f32 %v8100_v43, %v7620_v22  ;;  %v3033_v19 = vpop.f32.mrb[167].mxu0 }
 0x45b   : > { %v3034_v7 = vadd.f32 %v7614_v8, %v3033_v19 }
 0x45c   : > { %v3088_v2 = vpack.c.bf16 %v3042_v11, %v3039_v41 }
 0x45d   : > { %v3087_v14 = vpack.c.bf16 %v3034_v7, %v3031_v42 }
 0x45f   : > { %3336 = vmatmul.mubr.bf16.gmra.mrb[196].mxu0 %v3082_v9  ;;  %8145 = vmatprep.mubr.bf16.mxu1 %v3087_v14 }
 0x460   : > { %8146 = vmatmul.mubr.bf16.gmra.mrb[228].mxu1 %v3088_v2  ;;  %3345 = vmatprep.mubr.bf16.mxu0 %v14367_v12 }
 0x467   : > { %3346 = vmatmul.mubr.bf16.gmra.mrb[200].mxu0 %v3083_v63 }
 0x468   : > { %3355 = vmatprep.mubr.bf16.mxu0 %v14367_v12 }
 0x46f   : > { %3356 = vmatmul.mubr.bf16.gmra.mrb[204].mxu0 %v3084_v45 }
 0x470   : > { %3365 = vmatprep.mubr.bf16.mxu0 %v14367_v12 }
 0x473   : > { %v7627_v54 = vpop.f32.mrb[196].mxu1  ;;  %v8103_v30 = vpop.f32.mrb[168].mxu0 }
 0x474   : > { %v7628_v1 = vpop.f32.mrb[197].mxu1  ;;  %v3046_v16 = vpop.f32.mrb[169].mxu0 }
 0x475   : > { %v7629_v22 = vadd.f32 %v7628_v1, %v7627_v54  ;;  %v3047_v56 = vadd.f32 %v7623_v44, %v3046_v16  ;;  %v7630_v8 = vpop.f32.mrb[198].mxu1  ;;  %v8104_v58 = vpop.f32.mrb[170].mxu0 }
 0x476   : > { %v7631_v24 = vpop.f32.mrb[199].mxu1  ;;  %v3049_v9 = vpop.f32.mrb[171].mxu0 }
 0x477   : > { %v3055_v38 = vadd.f32 %v8103_v30, %v7629_v22  ;;  %v7632_v33 = vadd.f32 %v7631_v24, %v7630_v8  ;;  %v3050_v62 = vadd.f32 %v7626_v5, %v3049_v9  ;;  %3366 = vmatmul.mubr.bf16.gmra.mrb[208].mxu0 %v3085_v21 }
 0x478   : > { %3375 = vmatprep.mubr.bf16.mxu0 %v14367_v12 }
 0x479   : > { %v3058_v63 = vadd.f32 %v8104_v58, %v7632_v33  ;;  %v3089_v45 = vpack.c.bf16 %v3050_v62, %v3047_v56 }
 0x47b   : > { %v7633_v15 = vpop.f32.mrb[200].mxu1  ;;  %8149 = vmatprep.mubr.bf16.mxu1 %v3089_v45  ;;  %v3090_v57 = vpack.c.bf16 %v3058_v63, %v3055_v38 }
 0x47c   : > { %v7634_v49 = vpop.f32.mrb[201].mxu1 }
 0x47d   : > { %v7635_v50 = vadd.f32 %v7634_v49, %v7633_v15  ;;  %v7636_v41 = vpop.f32.mrb[202].mxu1  ;;  %8150 = vmatmul.mubr.bf16.gmra.mrb[232].mxu1 %v3090_v57 }
 0x47e   : > { %v7637_v44 = vpop.f32.mrb[203].mxu1 }
 0x47f   : > { %v7638_v35 = vadd.f32 %v7637_v44, %v7636_v41  ;;  %3376 = vmatmul.mubr.bf16.gmra.mrb[212].mxu0 %v3086_v0 }
 0x480   : > { %3385 = vmatprep.mubr.bf16.mxu0 %v14367_v12 }
 0x483   : > { %v7639_v42 = vpop.f32.mrb[204].mxu1  ;;  %v8107_v43 = vpop.f32.mrb[172].mxu0 }
 0x484   : > { %v7640_v5 = vpop.f32.mrb[205].mxu1  ;;  %v3062_v21 = vpop.f32.mrb[173].mxu0 }
 0x485   : > { %v7641_v11 = vadd.f32 %v7640_v5, %v7639_v42  ;;  %v3063_v19 = vadd.f32 %v7635_v50, %v3062_v21  ;;  %v7642_v7 = vpop.f32.mrb[206].mxu1  ;;  %v8108_v54 = vpop.f32.mrb[174].mxu0 }
 0x486   : > { %v7643_v30 = vpop.f32.mrb[207].mxu1  ;;  %v3065_v1 = vpop.f32.mrb[175].mxu0 }
 0x487   : > { %v3071_v16 = vadd.f32 %v8107_v43, %v7641_v11  ;;  %v7644_v22 = vadd.f32 %v7643_v30, %v7642_v7  ;;  %v3066_v56 = vadd.f32 %v7638_v35, %v3065_v1  ;;  %3386 = vmatmul.mubr.bf16.gmra.mrb[216].mxu0 %v3087_v14 }
 0x488   : > { %3395 = vmatprep.mubr.bf16.mxu0 %v14367_v12 }
 0x489   : > { %v3074_v8 = vadd.f32 %v8108_v54, %v7644_v22  ;;  %v3091_v0 = vpack.c.bf16 %v3066_v56, %v3063_v19 }
 0x48b   : > { %8153 = vmatprep.mubr.bf16.mxu1 %v3091_v0  ;;  %v3092_v58 = vpack.c.bf16 %v3074_v8, %v3071_v16 }
 0x48d   : > { %8154 = vmatmul.mubr.bf16.gmra.mrb[236].mxu1 %v3092_v58 }
 0x48e   : > { %4989 = vmatprep.mubr.bf16.mxu1 %v14367_v12 }
 0x48f   : > { %3396 = vmatmul.mubr.bf16.gmra.mrb[220].mxu0 %v3088_v2 }
 0x490   : > { %3405 = vmatprep.mubr.bf16.mxu0 %v14367_v12 }
 0x497   : > { %3406 = vmatmul.mubr.bf16.gmra.mrb[224].mxu0 %v3089_v45 }
 0x498   : > { %3415 = vmatprep.mubr.bf16.mxu0 %v14367_v12 }
 0x49f   : > { %3416 = vmatmul.mubr.bf16.gmra.mrb[228].mxu0 %v3090_v57 }
 0x4a0   : > { %3425 = vmatprep.mubr.bf16.mxu0 %v14367_v12 }
 0x4a7   : > { %3426 = vmatmul.mubr.bf16.gmra.mrb[232].mxu0 %v3091_v0 }
 0x4a8   : > { %3435 = vmatprep.mubr.bf16.mxu0 %v14367_v12 }
 0x4af   : > { %3436 = vmatmul.mubr.bf16.gmra.mrb[236].mxu0 %v3092_v58 }
 0x4b0   : > { %5182 = vmatprep.mubr.bf16.mxu0 %v14367_v12 }
 0x50a   : > { %v3287_v14 = vpop.f32.mrb[176].mxu0 }
 0x50b   : > { %v3289_v24 = vpop.f32.mrb[177].mxu0  ;;  %v8127_v9 = vpop.f32.mrb[208].mxu1 }
 0x50c   : > { %v3607_v38 = vmax.f32 %v3287_v14, %v3289_v24  ;;  %v3291_v33 = vpop.f32.mrb[178].mxu0  ;;  %v3480_v2 = vpop.f32.mrb[209].mxu1 }
 0x50d   : > { %v3293_v62 = vpop.f32.mrb[179].mxu0  ;;  %v8128_v63 = vpop.f32.mrb[210].mxu1 }
 0x50e   : > { %v3639_v45 = vmax.f32 %v3607_v38, %v3480_v2  ;;  %v3608_v15 = vmax.f32 %v3291_v33, %v3293_v62  ;;  %v3483_v49 = vpop.f32.mrb[211].mxu1 }
 0x510   : > { %v3671_v57 = vsub.f32 %v3287_v14, %v3639_v45  ;;  %v3767_v50 = vsub.f32 %v3289_v24, %v3639_v45  ;;  %v3863_v41 = vsub.f32 %v3480_v2, %v3639_v45  ;;  %v3640_v44 = vmax.f32 %v3608_v15, %v3483_v49 }
 0x512   : > { %v3703_v35 = vmul.f32 1.442695, %v3671_v57  ;;  %v3799_v42 = vmul.f32 1.442695, %v3767_v50  ;;  %v3895_v43 = vmul.f32 1.442695, %v3863_v41  ;;  %v3672_v5 = vsub.f32 %v3291_v33, %v3640_v44 }
 0x513   : > { %v3768_v21 = vsub.f32 %v3293_v62, %v3640_v44  ;;  %v3864_v11 = vsub.f32 %v3483_v49, %v3640_v44  ;;  %v3297_v19 = vpop.f32.mrb[180].mxu0  ;;  %v10724_v7 = vpop.f32.mrb[212].mxu1 }
 0x514   : > { %8479 = vpow2.f32 %v3703_v35  ;;  %v3705_v54 = vmul.f32 1.442695, %v3672_v5  ;;  %v3299_v30 = vpop.f32.mrb[181].mxu0  ;;  %v3496_v1 = vpop.f32.mrb[213].mxu1 }
 0x515   : > { %8481 = vpow2.f32 %v3799_v42  ;;  %v3801_v16 = vmul.f32 1.442695, %v3768_v21  ;;  %v3609_v22 = vmax.f32 %v3297_v19, %v3299_v30  ;;  %v3301_v56 = vpop.f32.mrb[182].mxu0  ;;  %v10726_v8 = vpop.f32.mrb[214].mxu1  ;;  %v3897_v0 = vmul.f32 1.442695, %v3864_v11 }
 0x516   : > { %8483 = vpow2.f32 %v3895_v43  ;;  %v3303_v58 = vpop.f32.mrb[183].mxu0  ;;  %v10728_v14 = vpop.f32.mrb[215].mxu1 }
 0x517   : > { %8485 = vpow2.f32 %v3705_v54  ;;  %v3641_v24 = vmax.f32 %v3609_v22, %v8127_v9  ;;  %v3610_v38 = vmax.f32 %v3301_v56, %v3303_v58 }
 0x518   : > { %8487 = vpow2.f32 %v3801_v16 }
 0x519   : > { %v3673_v33 = vsub.f32 %v3297_v19, %v3641_v24  ;;  %v3769_v2 = vsub.f32 %v3299_v30, %v3641_v24  ;;  %v3865_v62 = vsub.f32 %v8127_v9, %v3641_v24  ;;  %8489 = vpow2.f32 %v3897_v0 }
 0x51a   : > { %v3642_v45 = vmax.f32 %v3610_v38, %v8128_v63  ;;  %v3307_v15 = vpop.f32.mrb[184].mxu0 }
 0x51b   : > { %v3707_v49 = vmul.f32 1.442695, %v3673_v33  ;;  %v3803_v57 = vmul.f32 1.442695, %v3769_v2  ;;  %v3899_v50 = vmul.f32 1.442695, %v3865_v62 }
 0x51c   : > { %v3674_v41 = vsub.f32 %v3301_v56, %v3642_v45  ;;  %v3770_v44 = vsub.f32 %v3303_v58, %v3642_v45  ;;  %v3866_v35 = vsub.f32 %v8128_v63, %v3642_v45  ;;  %v3309_v42 = vpop.f32.mrb[185].mxu0  ;;  %v10730_v43 = vpop.f32.mrb[216].mxu1 }
 0x51d   : > { %8491 = vpow2.f32 %v3707_v49  ;;  %v3611_v5 = vmax.f32 %v3307_v15, %v3309_v42  ;;  %v3311_v21 = vpop.f32.mrb[186].mxu0  ;;  %v10732_v11 = vpop.f32.mrb[217].mxu1 }
 0x51e   : > { %v10734_v19 = vpop.eup %8479  ;;  %8493 = vpow2.f32 %v3803_v57  ;;  %v3709_v9 = vmul.f32 1.442695, %v3674_v41  ;;  %v3805_v54 = vmul.f32 1.442695, %v3770_v44  ;;  %v3901_v30 = vmul.f32 1.442695, %v3866_v35 }
 0x51f   : > { %v10736_v16 = vpop.eup %8481  ;;  %8495 = vpow2.f32 %v3899_v50  ;;  %v3643_v22 = vmax.f32 %v3611_v5, %v3496_v1  ;;  %v3313_v56 = vpop.f32.mrb[187].mxu0 }
 0x520   : > { %v10738_v63 = vpop.f32.mrb[218].mxu1  ;;  %v10740_v0 = vpop.eup %8483  ;;  %v3959_v58 = vadd.f32 %v10736_v16, %v10734_v19  ;;  %8497 = vpow2.f32 %v3709_v9  ;;  %v3612_v24 = vmax.f32 %v3311_v21, %v3313_v56 }
 0x521   : > { %v10744_v38 = vpop.f32.mrb[219].mxu1  ;;  %v10746_v33 = vpop.eup %8485  ;;  %8499 = vpow2.f32 %v3805_v54  ;;  %v3675_v2 = vsub.f32 %v3307_v15, %v3643_v22  ;;  %v3771_v62 = vsub.f32 %v3309_v42, %v3643_v22  ;;  %v3867_v45 = vsub.f32 %v3496_v1, %v3643_v22 }
 0x522   : > { %v10748_v49 = vpop.eup %8487  ;;  %v3991_v57 = vadd.f32 %v10740_v0, %v3959_v58  ;;  %8501 = vpow2.f32 %v3901_v30  ;;  %v3644_v50 = vmax.f32 %v3612_v24, %v10728_v14  ;;  %v3317_v41 = vpop.f32.mrb[188].mxu0 }
 0x523   : > { %v3960_v44 = vadd.f32 %v10748_v49, %v10746_v33  ;;  %v3711_v35 = vmul.f32 1.442695, %v3675_v2  ;;  %v3807_v5 = vmul.f32 1.442695, %v3771_v62  ;;  %v3903_v9 = vmul.f32 1.442695, %v3867_v45  ;;  %v10754_v12 = vpop.eup %8489 }
 0x524   : > { %8503 = vrcp.f32 %v3991_v57  ;;  %v3676_v15 = vsub.f32 %v3311_v21, %v3644_v50  ;;  %v3772_v42 = vsub.f32 %v3313_v56, %v3644_v50  ;;  %v3868_v1 = vsub.f32 %v10728_v14, %v3644_v50  ;;  %v3319_v54 = vpop.f32.mrb[189].mxu0  ;;  %v10757_v22 = vpop.f32.mrb[220].mxu1 }
 0x525   : > { %v3992_v30 = vadd.f32 %v10754_v12, %v3960_v44  ;;  %8505 = vpow2.f32 %v3711_v35  ;;  %v3613_v58 = vmax.f32 %v3317_v41, %v3319_v54  ;;  %v3321_v24 = vpop.f32.mrb[190].mxu0  ;;  %v10760_v53 = vpop.f32.mrb[221].mxu1 }
 0x526   : > { %8507 = vpow2.f32 %v3807_v5  ;;  %v3713_v2 = vmul.f32 1.442695, %v3676_v15  ;;  %v3809_v62 = vmul.f32 1.442695, %v3772_v42  ;;  %v3323_v56 = vpop.f32.mrb[191].mxu0  ;;  %v10765_v57 = vpop.f32.mrb[222].mxu1 }
 0x527   : > { %v10762_v45 = vpop.eup %8491  ;;  %v3645_v21 = vmax.f32 %v3613_v58, %v10724_v7  ;;  %8509 = vpow2.f32 %v3903_v9  ;;  %v3905_v50 = vmul.f32 1.442695, %v3868_v1  ;;  %v3614_v44 = vmax.f32 %v3321_v24, %v3323_v56  ;;  %v10769_v35 = vpop.f32.mrb[223].mxu1 }
 0x528   : > { %v10767_v14 = vpop.eup %8493  ;;  %8511 = vpow2.f32 %v3713_v2 }
 0x529   : > { %v10771_v52 = vpop.eup %8495  ;;  %v3961_v5 = vadd.f32 %v10767_v14, %v10762_v45  ;;  %v3677_v15 = vsub.f32 %v3317_v41, %v3645_v21  ;;  %v3773_v42 = vsub.f32 %v3319_v54, %v3645_v21  ;;  %8513 = vpow2.f32 %v3809_v62 }
 0x52a   : > { %v10775_v3 = vpop.eup %8497  ;;  %v3869_v58 = vsub.f32 %v10724_v7, %v3645_v21  ;;  %v3646_v37 = vmax.f32 %v3614_v44, %v10726_v8  ;;  %v3327_v9 = vpop.f32.mrb[192].mxu0  ;;  %8515 = vrcp.f32 %v3992_v30 }
 0x52b   : > { %v10779_v1 = vpop.eup %8499  ;;  %v3993_v20 = vadd.f32 %v10771_v52, %v3961_v5  ;;  %v3715_v29 = vmul.f32 1.442695, %v3677_v15  ;;  %v3811_v18 = vmul.f32 1.442695, %v3773_v42  ;;  %v3329_v31 = vpop.f32.mrb[193].mxu0  ;;  %8517 = vpow2.f32 %v3905_v50 }
 0x52c   : > { %v10782_v17 = vpop.f32.mrb[224].mxu1  ;;  %v10784_v41 = vpop.eup %8501  ;;  %v3962_v54 = vadd.f32 %v10779_v1, %v10775_v3  ;;  %v3678_v7 = vsub.f32 %v3321_v24, %v3646_v37  ;;  %v3774_v2 = vsub.f32 %v3323_v56, %v3646_v37  ;;  %v3907_v30 = vmul.f32 1.442695, %v3869_v58 }
 0x52d   : > { %14368 = vst [vmem:[#allocation83_spill] sm:$0xff] %v10782_v17  ;;  %v3331_v62 = vpop.f32.mrb[194].mxu0  ;;  %v10788_v21 = vpop.f32.mrb[225].mxu1  ;;  %8519 = vrcp.f32 %v3993_v20  ;;  %v3870_v44 = vsub.f32 %v10726_v8, %v3646_v37  ;;  %v3615_v5 = vmax.f32 %v3327_v9, %v3329_v31 }
 0x52e   : > { %14369 = vst [vmem:[#allocation84_spill] sm:$0xff] %v10788_v21  ;;  %v3333_v15 = vpop.f32.mrb[195].mxu0  ;;  %v10791_v42 = vpop.f32.mrb[226].mxu1  ;;  %v3994_v10 = vadd.f32 %v10784_v41, %v3962_v54  ;;  %8521 = vpow2.f32 %v3715_v29  ;;  %v3717_v4 = vmul.f32 1.442695, %v3678_v7 }
 0x52f   : > { %14370 = vst [vmem:[#allocation85_spill] sm:$0xff] %v10791_v42  ;;  %v8504_v17 = vpop.eup %8503  ;;  %v3813_v60 = vmul.f32 1.442695, %v3774_v2  ;;  %v10794_v50 = vpop.f32.mrb[227].mxu1  ;;  %8523 = vpow2.f32 %v3811_v18  ;;  %v3909_v56 = vmul.f32 1.442695, %v3870_v44  ;;  %v3647_v20 = vmax.f32 %v3615_v5, %v10732_v11 }
 0x530   : > { %14371 = vst [vmem:[#allocation86_spill] sm:$0xff] %v10794_v50  ;;  %v10796_v24 = vpop.eup %8505  ;;  %v3616_v58 = vmax.f32 %v3331_v62, %v3333_v15  ;;  %8525 = vrcp.f32 %v3994_v10  ;;  %v4055_v8 = vmul.f32 %v8504_v17, %v10734_v19  ;;  %v4119_v42 = vmul.f32 %v8504_v17, %v10736_v16 }
 0x531   : > { %v10799_v37 = vpop.eup %8507  ;;  %v4215_v29 = vmul.f32 %v8504_v17, %v10740_v0  ;;  %8527 = vpow2.f32 %v3907_v30  ;;  %v3679_v7 = vsub.f32 %v3327_v9, %v3647_v20  ;;  %v3775_v2 = vsub.f32 %v3329_v31, %v3647_v20 }
 0x532   : > { %v3963_v54 = vadd.f32 %v10799_v37, %v10796_v24  ;;  %v10806_v18 = vpop.eup %8509  ;;  %8529 = vpow2.f32 %v3717_v4  ;;  %v3871_v44 = vsub.f32 %v10732_v11, %v3647_v20  ;;  %v3648_v5 = vmax.f32 %v3616_v58, %v10744_v38  ;;  %v3337_v10 = vpop.f32.mrb[196].mxu0 }
 0x533   : > { %v10811_v19 = vmul.f32 %v4055_v8, %v10460_v32  ;;  %v10813_v16 = vpop.eup %8511  ;;  %8531 = vpow2.f32 %v3813_v60  ;;  %v3719_v0 = vmul.f32 1.442695, %v3679_v7  ;;  %v3815_v30 = vmul.f32 1.442695, %v3775_v2  ;;  %v3339_v9 = vpop.f32.mrb[197].mxu0 }
 0x534   : > { %v3995_v17 = vadd.f32 %v10806_v18, %v3963_v54  ;;  %v10816_v31 = vpop.f32.mrb[228].mxu1  ;;  %v10818_v36 = vpop.eup %8513  ;;  %8533 = vpow2.f32 %v3909_v56  ;;  %v3911_v4 = vmul.f32 1.442695, %v3871_v44  ;;  %v3680_v11 = vsub.f32 %v3331_v62, %v3648_v5 }
 0x535   : > { %14372 = vst [vmem:[#allocation87_spill] sm:$0xff] %v10816_v31  ;;  %v3776_v20 = vsub.f32 %v3333_v15, %v3648_v5  ;;  %v3341_v58 = vpop.f32.mrb[198].mxu0  ;;  %v10820_v50 = vpop.f32.mrb[229].mxu1  ;;  %v3964_v8 = vadd.f32 %v10818_v36, %v10813_v16  ;;  %v3872_v60 = vsub.f32 %v10744_v38, %v3648_v5  ;;  %v3617_v54 = vmax.f32 %v3337_v10, %v3339_v9 }
 0x536   : > { %14373 = vst [vmem:[#allocation88_spill] sm:$0xff] %v10820_v50  ;;  %v8516_v32 = vpop.eup %8515  ;;  %8535 = vrcp.f32 %v3995_v17  ;;  %v3343_v7 = vpop.f32.mrb[199].mxu0  ;;  %v3721_v56 = vmul.f32 1.442695, %v3680_v11  ;;  %v4247_v11 = vmul.f32 %v4215_v29, %v10468_v28 }
 0x537   : > { %v10825_v2 = vpop.f32.mrb[230].mxu1  ;;  %v10827_v31 = vpop.eup %8517  ;;  %8537 = vpow2.f32 %v3719_v0  ;;  %v3817_v62 = vmul.f32 1.442695, %v3776_v20  ;;  %v3618_v15 = vmax.f32 %v3341_v58, %v3343_v7  ;;  %v3913_v21 = vmul.f32 1.442695, %v3872_v60 }
 0x538   : > { %14374 = vst [vmem:[#allocation89_spill] sm:$0xff] %v10825_v2  ;;  %v10829_v44 = vpop.f32.mrb[231].mxu1  ;;  %v10831_v50 = vpop.eup %8519  ;;  %v3996_v17 = vadd.f32 %v10827_v31, %v3964_v8  ;;  %8539 = vpow2.f32 %v3815_v30  ;;  %v3649_v38 = vmax.f32 %v3617_v54, %v10730_v43  ;;  %v4151_v0 = vmul.f32 %v4119_v42, %v10462_v13 }
 0x539   : > { %14375 = vst [vmem:[#allocation90_spill] sm:$0xff] %v10829_v44  ;;  %v10835_v5 = vpop.eup %8521  ;;  %8541 = vpow2.f32 %v3911_v4  ;;  %v3650_v2 = vmax.f32 %v3618_v15, %v10738_v63 }
 0x53a   : > { %v10840_v20 = vpop.eup %8523  ;;  %8543 = vrcp.f32 %v3996_v17  ;;  %v3681_v44 = vsub.f32 %v3337_v10, %v3649_v38  ;;  %v3777_v59 = vsub.f32 %v3339_v9, %v3649_v38  ;;  %v3873_v8 = vsub.f32 %v10730_v43, %v3649_v38  ;;  %v10847_v15 = vpop.f32.mrb[200].mxu0 }
 0x53b   : > { %14376 = vst [vmem:[#allocation91_spill] sm:$0xff] %v10840_v20  ;;  %v10843_v30 = vpop.eup %8525  ;;  %v3965_v60 = vadd.f32 %v10840_v20, %v10835_v5  ;;  %8545 = vpow2.f32 %v3721_v56  ;;  %v3682_v4 = vsub.f32 %v3341_v58, %v3650_v2  ;;  %v3778_v54 = vsub.f32 %v3343_v7, %v3650_v2  ;;  %v3349_v38 = vpop.f32.mrb[201].mxu0 }
 0x53c   : > { %v10849_v13 = vpop.eup %8527  ;;  %8547 = vpow2.f32 %v3817_v62  ;;  %v3723_v28 = vmul.f32 1.442695, %v3681_v44  ;;  %v3819_v42 = vmul.f32 1.442695, %v3777_v59  ;;  %v3915_v29 = vmul.f32 1.442695, %v3873_v8 }
 0x53d   : > { %v10851_v10 = vpop.eup %8529  ;;  %v3997_v43 = vadd.f32 %v10849_v13, %v3965_v60  ;;  %8549 = vpow2.f32 %v3913_v21  ;;  %v3725_v9 = vmul.f32 1.442695, %v3682_v4  ;;  %v3821_v17 = vmul.f32 1.442695, %v3778_v54  ;;  %v3351_v62 = vpop.f32.mrb[202].mxu0 }
 0x53e   : > { %v10854_v20 = vpop.eup %8531  ;;  %8551 = vpow2.f32 %v3723_v28  ;;  %v3874_v58 = vsub.f32 %v10738_v63, %v3650_v2  ;;  %v4183_v7 = vadd.f32 %v4151_v0, %v10811_v19  ;;  %v4056_v56 = vmul.f32 %v8516_v32, %v10746_v33  ;;  %v3353_v60 = vpop.f32.mrb[203].mxu0 }
 0x53f   : > { %v10859_v59 = vpop.eup %8533  ;;  %8553 = vrcp.f32 %v3997_v43  ;;  %v3966_v44 = vadd.f32 %v10854_v20, %v10851_v10  ;;  %v4120_v21 = vmul.f32 %v8516_v32, %v10748_v49  ;;  %v4216_v8 = vmul.f32 %v8516_v32, %v10754_v12  ;;  %v9055_v12 = vld [vmem:[%s9173_s23] sm:$0xff] }
 0x540   : > { %v10865_v4 = vpop.eup %8535  ;;  %8555 = vpow2.f32 %v3819_v42  ;;  %v3917_v63 = vmul.f32 1.442695, %v3874_v58  ;;  %v4279_v19 = vadd.f32 %v4247_v11, %v4183_v7  ;;  %v4088_v33 = vmul.f32 %v4056_v56, %v10466_v39 }
 0x541   : > { %v10868_v2 = vpop.eup %8537  ;;  %v3998_v0 = vadd.f32 %v10859_v59, %v3966_v44  ;;  %8557 = vpow2.f32 %v3915_v29  ;;  %v4152_v54 = vmul.f32 %v4120_v21, %v10471_v55  ;;  %v4248_v28 = vmul.f32 %v4216_v8, %v10475_v48 }
 0x542   : > { %v10873_v49 = vpop.eup %8539  ;;  %8559 = vpow2.f32 %v3725_v9  ;;  %v10876_v32 = vadd.f32 %v9055_v12, %v4279_v19  ;;  %v3619_v42 = vmax.f32 %v10847_v15, %v3349_v38  ;;  %v3620_v11 = vmax.f32 %v3351_v62, %v3353_v60  ;;  %v10885_v48 = vpop.f32.mrb[204].mxu0 }
 0x543   : > { %v10879_v43 = vpop.eup %8541  ;;  %8561 = vrcp.f32 %v3998_v0  ;;  %v3967_v39 = vadd.f32 %v10873_v49, %v10868_v2  ;;  %v4184_v29 = vadd.f32 %v4152_v54, %v4088_v33  ;;  %v4057_v55 = vmul.f32 %v10831_v50, %v10762_v45  ;;  %v10894_v44 = vpop.f32.mrb[205].mxu0 }
 0x544   : > { %14377 = vst [vmem:[#allocation92_spill] sm:$0xff] %v10876_v32  ;;  %v10887_v58 = vpop.eup %8543  ;;  %8563 = vpow2.f32 %v3821_v17  ;;  %4343 = vadd.xlane.f32.xlu0 %v10876_v32  ;;  %v3651_v9 = vmax.f32 %v3619_v42, %v10760_v53  ;;  %v3652_v7 = vmax.f32 %v3620_v11, %v10769_v35  ;;  %v4121_v56 = vmul.f32 %v10831_v50, %v10767_v14  ;;  %v10900_v19 = vpop.f32.mrb[206].mxu0 }
 0x545   : > { %v10896_v21 = vpop.eup %8545  ;;  %v3999_v45 = vadd.f32 %v10879_v43, %v3967_v39  ;;  %8565 = vpow2.f32 %v3917_v63  ;;  %v4280_v8 = vadd.f32 %v4248_v28, %v4184_v29  ;;  %v4089_v17 = vmul.f32 %v4057_v55, %v10477_v23  ;;  %v10906_v42 = vpop.f32.mrb[207].mxu0  ;;  %v9056_v28 = vld [vmem:[%s9173_s23 + $0x8] sm:$0xff] }
 0x546   : > { %v10902_v33 = vpop.eup %8547  ;;  %v3683_v0 = vsub.f32 %v10847_v15, %v3651_v9  ;;  %v3779_v54 = vsub.f32 %v3349_v38, %v3651_v9  ;;  %v3875_v14 = vsub.f32 %v10760_v53, %v3651_v9  ;;  %v3684_v12 = vsub.f32 %v3351_v62, %v3652_v7 }
 0x547   : > { %14378 = vst [vmem:[#allocation93_spill] sm:$0xff] %v10902_v33  ;;  %v10908_v11 = vpop.eup %8549  ;;  %8567 = vrcp.f32 %v3999_v45  ;;  %v3968_v63 = vadd.f32 %v10902_v33, %v10896_v21  ;;  %v10913_v23 = vadd.f32 %v9056_v28, %v4280_v8  ;;  %v3780_v39 = vsub.f32 %v3353_v60, %v3652_v7 }
 0x548   : > { %v10915_v29 = vpop.eup %8551  ;;  %v3727_v55 = vmul.f32 1.442695, %v3683_v0  ;;  %v3823_v15 = vmul.f32 1.442695, %v3779_v54  ;;  %v3919_v38 = vmul.f32 1.442695, %v3875_v14  ;;  %v3876_v53 = vsub.f32 %v10769_v35, %v3652_v7 }
 0x549   : > { %14379 = vst [vmem:[#allocation94_spill] sm:$0xff] %v10913_v23  ;;  %v10918_v62 = vpop.eup %8553  ;;  %v4000_v9 = vadd.f32 %v10908_v11, %v3968_v63  ;;  %4345 = vadd.xlane.f32.xlu1 %v10913_v23  ;;  %v3729_v45 = vmul.f32 1.442695, %v3684_v12  ;;  %v3825_v32 = vmul.f32 1.442695, %v3780_v39  ;;  %v4153_v33 = vmul.f32 %v4121_v56, %v10479_v61 }
 0x54a   : > { %v10923_v8 = vpop.eup %8555  ;;  %8569 = vpow2.f32 %v3727_v55  ;;  %v3921_v60 = vmul.f32 1.442695, %v3876_v53  ;;  %v4217_v0 = vmul.f32 %v10831_v50, %v10771_v52  ;;  %v4058_v35 = vmul.f32 %v10843_v30, %v10775_v3  ;;  %v10935_v56 = vpop.f32.mrb[208].mxu0 }
 0x54b   : > { %v10929_v7 = vpop.eup %8557  ;;  %8571 = vrcp.f32 %v4000_v9  ;;  %v3969_v54 = vadd.f32 %v10923_v8, %v10915_v29  ;;  %v4185_v14 = vadd.f32 %v4153_v33, %v4089_v17  ;;  %v4122_v61 = vmul.f32 %v10843_v30, %v10779_v1  ;;  %v10943_v63 = vpop.f32.mrb[209].mxu0  ;;  %v9057_v9 = vld [vmem:[%s9173_s23 + $0x10] sm:$0xff] }
 0x54c   : > { %v10937_v12 = vpop.eup %8559  ;;  %8573 = vpow2.f32 %v3823_v15  ;;  %v4249_v52 = vmul.f32 %v10464_v51, %v4217_v0  ;;  %v4090_v50 = vmul.f32 %v4058_v35, %v10483_v25  ;;  %v4218_v3 = vmul.f32 %v10843_v30, %v10784_v41  ;;  %v10951_v39 = vpop.f32.mrb[210].mxu0 }
 0x54d   : > { %v10945_v28 = vpop.eup %8561  ;;  %v4001_v17 = vadd.f32 %v10929_v7, %v3969_v54  ;;  %8575 = vpow2.f32 %v3919_v38  ;;  %v4154_v1 = vmul.f32 %v4122_v61, %v10487_v46  ;;  %v3621_v33 = vmax.f32 %v10885_v48, %v10894_v44  ;;  %v10958_v55 = vpop.f32.mrb[211].mxu0 }
 0x54e   : > { %v10953_v51 = vpop.eup %8563  ;;  %8577 = vpow2.f32 %v3729_v45  ;;  %v4281_v25 = vadd.f32 %v4249_v52, %v4185_v14  ;;  %v4250_v41 = vmul.f32 %v10473_v40, %v4218_v3  ;;  %v3622_v30 = vmax.f32 %v10900_v19, %v10906_v42 }
 0x54f   : > { %v10960_v15 = vpop.eup %8565  ;;  %8579 = vrcp.f32 %v4001_v17  ;;  %v3970_v46 = vadd.f32 %v10953_v51, %v10937_v12  ;;  %v4186_v38 = vadd.f32 %v4154_v1, %v4090_v50  ;;  %v3653_v53 = vmax.f32 %v3621_v33, %v10757_v22  ;;  %v9058_v1 = vld [vmem:[%s9173_s23 + $0x18] sm:$0xff] }
 0x550   : > { %8581 = vpow2.f32 %v3825_v32  ;;  %v10966_v45 = vadd.f32 %v9057_v9, %v4281_v25  ;;  %v3654_v40 = vmax.f32 %v3622_v30, %v10765_v57  ;;  %v4059_v0 = vmul.f32 %v10865_v4, %v10796_v24  ;;  %v10975_v52 = vpop.f32.mrb[232].mxu1 }
 0x551   : > { %v10971_v35 = vpop.eup %8567  ;;  %v4002_v54 = vadd.f32 %v10960_v15, %v3970_v46  ;;  %8583 = vpow2.f32 %v3921_v60  ;;  %v4282_v14 = vadd.f32 %v4250_v41, %v4186_v38  ;;  %v3685_v61 = vsub.f32 %v10885_v48, %v3653_v53  ;;  %v10982_v17 = vpop.f32.mrb[233].mxu1 }
 0x552   : > { %14380 = vst [vmem:[#allocation95_spill] sm:$0xff] %v10966_v45  ;;  %4347 = vadd.xlane.f32.xlu0 %v10966_v45  ;;  %v3781_v32 = vsub.f32 %v10894_v44, %v3653_v53  ;;  %v3877_v50 = vsub.f32 %v10757_v22, %v3653_v53  ;;  %v3686_v3 = vsub.f32 %v10900_v19, %v3654_v40  ;;  %v10988_v25 = vpop.f32.mrb[212].mxu0  ;;  %v10990_v41 = vpop.f32.mrb[234].mxu1 }
 0x553   : > { %v3782_v24 = vsub.f32 %v10906_v42, %v3654_v40  ;;  %8585 = vrcp.f32 %v4002_v54  ;;  %v10985_v60 = vadd.f32 %v9058_v1, %v4282_v14  ;;  %v3731_v33 = vmul.f32 1.442695, %v3685_v61  ;;  %v11000_v9 = vpop.f32.mrb[213].mxu0 }
 0x554   : > { %v3878_v48 = vsub.f32 %v10765_v57, %v3654_v40  ;;  %v10992_v44 = vpop.eup %8569  ;;  %v3827_v22 = vmul.f32 1.442695, %v3781_v32  ;;  %v3923_v30 = vmul.f32 1.442695, %v3877_v50  ;;  %v3733_v19 = vmul.f32 1.442695, %v3686_v3 }
 0x555   : > { %14381 = vst [vmem:[#allocation96_spill] sm:$0xff] %v10985_v60  ;;  %v4091_v42 = vmul.f32 %v4059_v0, %v10493_v27  ;;  %v10995_v46 = vpop.eup %8571  ;;  %4349 = vadd.xlane.f32.xlu1 %v10985_v60  ;;  %8587 = vpow2.f32 %v3731_v33  ;;  %v3829_v38 = vmul.f32 1.442695, %v3782_v24  ;;  %v4123_v57 = vmul.f32 %v10865_v4, %v10799_v37  ;;  %v11002_v40 = vpop.f32.mrb[235].mxu1 }
 0x556   : > { %v3925_v53 = vmul.f32 1.442695, %v3878_v48  ;;  %v11004_v54 = vpop.eup %8573  ;;  %8589 = vpow2.f32 %v3827_v22  ;;  %v4219_v27 = vmul.f32 %v10865_v4, %v10806_v18  ;;  %v4060_v0 = vmul.f32 %v10887_v58, %v10813_v16  ;;  %v11012_v61 = vpop.f32.mrb[214].mxu0  ;;  %v14382_v48 = vld [vmem:[#allocation6_spill] sm:$0xff] }
 0x557   : > { %v4124_v14 = vmul.f32 %v10887_v58, %v10818_v36  ;;  %v11014_v32 = vpop.eup %8575  ;;  %v3971_v37 = vadd.f32 %v11004_v54, %v10992_v44  ;;  %8591 = vpow2.f32 %v3923_v30  ;;  %v4155_v50 = vmul.f32 %v4123_v57, %v10495_v34  ;;  %v11021_v18 = vpop.f32.mrb[215].mxu0  ;;  %v14383_v57 = vld [vmem:[#allocation84_spill] sm:$0xff] }
 0x558   : > { %v4220_v3 = vmul.f32 %v10887_v58, %v10827_v31  ;;  %v11023_v4 = vpop.eup %8577  ;;  %8593 = vpow2.f32 %v3733_v19  ;;  %v4251_v36 = vmul.f32 %v4219_v27, %v10485_v6  ;;  %v4092_v16 = vmul.f32 %v4060_v0, %v10499_v26  ;;  %v14384_v0 = vld [vmem:[#allocation86_spill] sm:$0xff] }
 0x559   : > { %v4156_v24 = vmul.f32 %v4124_v14, %v10503_v47  ;;  %v11028_v1 = vpop.eup %8579  ;;  %v4003_v33 = vadd.f32 %v11014_v32, %v3971_v37  ;;  %8595 = vpow2.f32 %v3829_v38  ;;  %v4187_v34 = vadd.f32 %v4155_v50, %v4091_v42  ;;  %v14385_v37 = vld [vmem:[#allocation91_spill] sm:$0xff] }
 0x55a   : > { %v4252_v22 = vmul.f32 %v4220_v3, %v14382_v48  ;;  %v11032_v31 = vpop.eup %8581  ;;  %8597 = vpow2.f32 %v3925_v53  ;;  %v3623_v6 = vmax.f32 %v10935_v56, %v10943_v63  ;;  %v3624_v26 = vmax.f32 %v10951_v39, %v10958_v55  ;;  %v11044_v38 = vpop.f32.mrb[216].mxu0 }
 0x55b   : > { %v4188_v58 = vadd.f32 %v4156_v24, %v4092_v16  ;;  %v11038_v47 = vpop.eup %8583  ;;  %8599 = vrcp.f32 %v4003_v33  ;;  %v3972_v30 = vadd.f32 %v11032_v31, %v11023_v4  ;;  %v4283_v19 = vadd.f32 %v4251_v36, %v4187_v34  ;;  %v11050_v3 = vpop.f32.mrb[217].mxu0  ;;  %v9059_v36 = vld [vmem:[%s9173_s23 + $0x20] sm:$0xff] }
 0x55c   : > { %v4061_v42 = vmul.f32 %v10918_v62, %v10835_v5  ;;  %v3655_v27 = vmax.f32 %v3623_v6, %v14383_v57  ;;  %v3656_v14 = vmax.f32 %v3624_v26, %v14384_v0  ;;  %v4125_v50 = vmul.f32 %v10918_v62, %v14385_v37  ;;  %v14387_v5 = vld [vmem:[#allocation11_spill] sm:$0xff] }
 0x55d   : > { %v4284_v53 = vadd.f32 %v4252_v22, %v4188_v58  ;;  %v11052_v16 = vpop.eup %8585  ;;  %v4004_v24 = vadd.f32 %v11038_v47, %v3972_v30  ;;  %v11056_v33 = vadd.f32 %v9059_v36, %v4283_v19  ;;  %v4221_v48 = vmul.f32 %v10918_v62, %v10849_v13  ;;  %v11061_v22 = vpop.f32.mrb[218].mxu0  ;;  %v9060_v58 = vld [vmem:[%s9173_s23 + $0x28] sm:$0xff] }
 0x55e   : > { %v4093_v34 = vmul.f32 %v4061_v42, %v14387_v5  ;;  %v3687_v26 = vsub.f32 %v10935_v56, %v3655_v27  ;;  %v3783_v37 = vsub.f32 %v10943_v63, %v3655_v27  ;;  %v3879_v60 = vsub.f32 %v14383_v57, %v3655_v27  ;;  %v11069_v30 = vpop.f32.mrb[219].mxu0  ;;  %v14389_v27 = vld [vmem:[#allocation12_spill] sm:$0xff] }
 0x55f   : > { %14386 = vst [vmem:[#allocation6_spill] sm:$0xff] %v11056_v33  ;;  %v11064_v6 = vadd.f32 %v9060_v58, %v4284_v53  ;;  %v11071_v19 = vpop.eup %8587  ;;  %8601 = vrcp.f32 %v4004_v24  ;;  %4351 = vadd.xlane.f32.xlu0 %v11056_v33  ;;  %v3688_v13 = vsub.f32 %v10951_v39, %v3656_v14  ;;  %v3784_v62 = vsub.f32 %v10958_v55, %v3656_v14 }
 0x560   : > { %v3880_v42 = vsub.f32 %v14384_v0, %v3656_v14  ;;  %v11077_v53 = vpop.eup %8589  ;;  %v3735_v56 = vmul.f32 1.442695, %v3687_v26  ;;  %v3831_v63 = vmul.f32 1.442695, %v3783_v37  ;;  %v3927_v57 = vmul.f32 1.442695, %v3879_v60 }
 0x561   : > { %14388 = vst [vmem:[#allocation84_spill] sm:$0xff] %v11064_v6  ;;  %4353 = vadd.xlane.f32.xlu1 %v11064_v6  ;;  %v4157_v36 = vmul.f32 %v4125_v50, %v14389_v27  ;;  %v11081_v5 = vpop.eup %8591  ;;  %v3973_v24 = vadd.f32 %v11077_v53, %v11071_v19  ;;  %v3737_v58 = vmul.f32 1.442695, %v3688_v13  ;;  %v3833_v39 = vmul.f32 1.442695, %v3784_v62  ;;  %v14390_v14 = vld [vmem:[#allocation4_spill] sm:$0xff] }
 0x562   : > { %v3929_v33 = vmul.f32 1.442695, %v3880_v42  ;;  %v11085_v55 = vpop.eup %8593  ;;  %8603 = vpow2.f32 %v3735_v56  ;;  %v4253_v45 = vmul.f32 %v14390_v14, %v4221_v48  ;;  %v4062_v26 = vmul.f32 %v10945_v28, %v10851_v10  ;;  %v11090_v60 = vpop.f32.mrb[236].mxu1  ;;  %v14393_v27 = vld [vmem:[#allocation14_spill] sm:$0xff]  ;;  %v14396_v14 = vld [vmem:[#allocation5_spill] sm:$0xff] }
 0x563   : > { %v4189_v0 = vadd.f32 %v4157_v36, %v4093_v34  ;;  %14391 = vst [vmem:[#allocation86_spill] sm:$0xff] %v11090_v60  ;;  %v11092_v50 = vpop.eup %8595  ;;  %v4005_v37 = vadd.f32 %v11081_v5, %v3973_v24  ;;  %8605 = vpow2.f32 %v3831_v63  ;;  %v4126_v13 = vmul.f32 %v10945_v28, %v10854_v20  ;;  %v11099_v42 = vpop.f32.mrb[237].mxu1 }
 0x564   : > { %v4222_v62 = vmul.f32 %v10945_v28, %v10859_v59  ;;  %14392 = vst [vmem:[#allocation91_spill] sm:$0xff] %v11099_v42  ;;  %v11101_v34 = vpop.f32.mrb[220].mxu0  ;;  %v11103_v48 = vpop.eup %8597  ;;  %v3974_v10 = vadd.f32 %v11092_v50, %v11085_v55  ;;  %8607 = vpow2.f32 %v3927_v57  ;;  %v4094_v63 = vmul.f32 %v4062_v26, %v14393_v27  ;;  %v14395_v59 = vld [vmem:[#allocation16_spill] sm:$0xff] }
 0x565   : > { %v4285_v56 = vadd.f32 %v4253_v45, %v4189_v0  ;;  %v11108_v36 = vpop.f32.mrb[238].mxu1  ;;  %v11110_v20 = vpop.f32.mrb[221].mxu0  ;;  %8609 = vrcp.f32 %v4005_v37  ;;  %v4158_v28 = vmul.f32 %v4126_v13, %v14395_v59  ;;  %v3625_v23 = vmax.f32 %v10988_v25, %v11000_v9  ;;  %v9061_v0 = vld [vmem:[%s9173_s23 + $0x30] sm:$0xff] }
 0x566   : > { %14394 = vst [vmem:[#allocation11_spill] sm:$0xff] %v11108_v36  ;;  %v11112_v24 = vpop.eup %8599  ;;  %v4254_v6 = vmul.f32 %v14396_v14, %v4222_v62  ;;  %v11118_v60 = vpop.f32.mrb[239].mxu1  ;;  %v4006_v45 = vadd.f32 %v11103_v48, %v3974_v10  ;;  %8611 = vpow2.f32 %v3737_v58  ;;  %v3626_v37 = vmax.f32 %v11012_v61, %v11021_v18  ;;  %v14399_v62 = vld [vmem:[#allocation83_spill] sm:$0xff]  ;;  %v14400_v58 = vld [vmem:[#allocation85_spill] sm:$0xff] }
 0x567   : > { %14397 = vst [vmem:[#allocation12_spill] sm:$0xff] %v11118_v60  ;;  %v11120_v57 = vpop.f32.mrb[222].mxu0  ;;  %v11124_v26 = vadd.f32 %v9061_v0, %v4285_v56  ;;  %8613 = vpow2.f32 %v3833_v39  ;;  %v4190_v13 = vadd.f32 %v4158_v28, %v4094_v63  ;;  %v3657_v59 = vmax.f32 %v3625_v23, %v14399_v62  ;;  %v14402_v60 = vld [vmem:[#allocation19_spill] sm:$0xff] }
 0x568   : > { %v11128_v27 = vpop.f32.mrb[223].mxu0  ;;  %v4063_v14 = vmul.f32 %v10971_v35, %v10868_v2  ;;  %8615 = vrcp.f32 %v4006_v45  ;;  %v3658_v10 = vmax.f32 %v3626_v37, %v14400_v58  ;;  %v4127_v56 = vmul.f32 %v10971_v35, %v10873_v49  ;;  %v9062_v49 = vld [vmem:[%s9173_s23 + $0x38] sm:$0xff] }
 0x569   : > { %14398 = vst [vmem:[#allocation4_spill] sm:$0xff] %v11124_v26  ;;  %4355 = vadd.xlane.f32.xlu0 %v11124_v26  ;;  %v4223_v0 = vmul.f32 %v10971_v35, %v10879_v43  ;;  %v11139_v36 = vpop.eup %8601  ;;  %8617 = vpow2.f32 %v3929_v33  ;;  %v4286_v39 = vadd.f32 %v4254_v6, %v4190_v13  ;;  %v3689_v23 = vsub.f32 %v10988_v25, %v3657_v59 }
 0x56a   : > { %v3785_v63 = vsub.f32 %v11000_v9, %v3657_v59  ;;  %v3881_v2 = vsub.f32 %v14399_v62, %v3657_v59  ;;  %v3690_v28 = vsub.f32 %v11012_v61, %v3658_v10  ;;  %v3786_v45 = vsub.f32 %v11021_v18, %v3658_v10  ;;  %v11151_v6 = vpop.f32.mrb[224].mxu0  ;;  %v14403_v59 = vld [vmem:[#allocation20_spill] sm:$0xff] }
 0x56b   : > { %v3882_v37 = vsub.f32 %v14400_v58, %v3658_v10  ;;  %v11148_v26 = vadd.f32 %v9062_v49, %v4286_v39  ;;  %v3739_v43 = vmul.f32 1.442695, %v3689_v23  ;;  %v4095_v33 = vmul.f32 %v4063_v14, %v14402_v60  ;;  %v14404_v58 = vld [vmem:[#allocation8_spill] sm:$0xff]  ;;  %v11162_v14 = vpop.f32.mrb[225].mxu0 }
 0x56c   : > { %v3835_v35 = vmul.f32 1.442695, %v3785_v63  ;;  %v11153_v25 = vpop.eup %8603  ;;  %v3931_v9 = vmul.f32 1.442695, %v3881_v2  ;;  %v3741_v13 = vmul.f32 1.442695, %v3690_v28  ;;  %v4159_v61 = vmul.f32 %v4127_v56, %v14403_v59 }
 0x56d   : > { %14401 = vst [vmem:[#allocation14_spill] sm:$0xff] %v11148_v26  ;;  %v3837_v62 = vmul.f32 1.442695, %v3786_v45  ;;  %v11156_v42 = vpop.eup %8605  ;;  %4357 = vadd.xlane.f32.xlu1 %v11148_v26  ;;  %8619 = vpow2.f32 %v3739_v43  ;;  %v3933_v18 = vmul.f32 1.442695, %v3882_v37  ;;  %v4255_v10 = vmul.f32 %v4223_v0, %v14404_v58  ;;  %v14405_v63 = vld [vmem:[#allocation93_spill] sm:$0xff] }
 0x56e   : > { %v4064_v60 = vmul.f32 %v10995_v46, %v10896_v21  ;;  %v11164_v39 = vpop.eup %8607  ;;  %v3975_v23 = vadd.f32 %v11156_v42, %v11153_v25  ;;  %8621 = vpow2.f32 %v3835_v35  ;;  %v4191_v56 = vadd.f32 %v4159_v61, %v4095_v33  ;;  %v11170_v28 = vpop.f32.mrb[226].mxu0  ;;  %v14406_v0 = vld [vmem:[#allocation22_spill] sm:$0xff]  ;;  %v14407_v61 = vld [vmem:[#allocation24_spill] sm:$0xff] }
 0x56f   : > { %v4128_v2 = vmul.f32 %v10995_v46, %v14405_v63  ;;  %v11172_v45 = vpop.eup %8609  ;;  %8623 = vpow2.f32 %v3931_v9  ;;  %v4224_v21 = vmul.f32 %v10995_v46, %v10908_v11  ;;  %v3627_v49 = vmax.f32 %v11044_v38, %v11050_v3  ;;  %v11179_v43 = vpop.f32.mrb[227].mxu0  ;;  %v14410_v11 = vld [vmem:[#allocation88_spill] sm:$0xff] }
 0x570   : > { %v4096_v37 = vmul.f32 %v4064_v60, %v14406_v0  ;;  %v11181_v35 = vpop.eup %8611  ;;  %v4007_v33 = vadd.f32 %v11164_v39, %v3975_v23  ;;  %8625 = vpow2.f32 %v3741_v13  ;;  %v4287_v59 = vadd.f32 %v4255_v10, %v4191_v56  ;;  %v14409_v60 = vld [vmem:[#allocation10_spill] sm:$0xff] }
 0x571   : > { %v4160_v58 = vmul.f32 %v4128_v2, %v14407_v61  ;;  %v11185_v9 = vpop.eup %8613  ;;  %8627 = vpow2.f32 %v3837_v62  ;;  %v4256_v63 = vmul.f32 %v4224_v21, %v14409_v60  ;;  %v3659_v46 = vmax.f32 %v3627_v49, %v14410_v11  ;;  %v9063_v13 = vld [vmem:[%s9173_s23 + $0x40] sm:$0xff] }
 0x572   : > { %14408 = vst [vmem:[#allocation16_spill] sm:$0xff] %v11185_v9  ;;  %v3628_v0 = vmax.f32 %v11061_v22, %v11069_v30  ;;  %v11191_v26 = vpop.eup %8615  ;;  %8629 = vrcp.f32 %v4007_v33  ;;  %v3976_v23 = vadd.f32 %v11185_v9, %v11181_v35  ;;  %v11196_v10 = vadd.f32 %v9063_v13, %v4287_v59  ;;  %v11203_v61 = vpop.f32.mrb[228].mxu0  ;;  %v14412_v59 = vld [vmem:[#allocation90_spill] sm:$0xff] }
 0x573   : > { %v4192_v56 = vadd.f32 %v4160_v58, %v4096_v37  ;;  %v11198_v2 = vpop.eup %8617  ;;  %8631 = vpow2.f32 %v3933_v18  ;;  %v3691_v62 = vsub.f32 %v11044_v38, %v3659_v46  ;;  %v3787_v21 = vsub.f32 %v11050_v3, %v3659_v46  ;;  %v11210_v18 = vpop.f32.mrb[229].mxu0 }
 0x574   : > { %14411 = vst [vmem:[#allocation5_spill] sm:$0xff] %v11196_v10  ;;  %v3883_v49 = vsub.f32 %v14410_v11, %v3659_v46  ;;  %v4008_v33 = vadd.f32 %v11198_v2, %v3976_v23  ;;  %4359 = vadd.xlane.f32.xlu0 %v11196_v10  ;;  %v3660_v13 = vmax.f32 %v3628_v0, %v14412_v59  ;;  %v9064_v11 = vld [vmem:[%s9173_s23 + $0x48] sm:$0xff]  ;;  %v11219_v0 = vpop.f32.mrb[230].mxu0 }
 0x575   : > { %v4288_v60 = vadd.f32 %v4256_v63, %v4192_v56  ;;  %v4065_v37 = vmul.f32 %v11028_v1, %v10915_v29  ;;  %v3743_v58 = vmul.f32 1.442695, %v3691_v62  ;;  %v3839_v38 = vmul.f32 1.442695, %v3787_v21  ;;  %v14414_v62 = vld [vmem:[#allocation27_spill] sm:$0xff] }
 0x576   : > { %v3935_v9 = vmul.f32 1.442695, %v3883_v49  ;;  %v4129_v3 = vmul.f32 %v11028_v1, %v10923_v8  ;;  %8633 = vrcp.f32 %v4008_v33  ;;  %v3692_v23 = vsub.f32 %v11061_v22, %v3660_v13  ;;  %v14415_v49 = vld [vmem:[#allocation28_spill] sm:$0xff]  ;;  %v11226_v8 = vpop.f32.mrb[231].mxu0 }
 0x577   : > { %v11215_v46 = vadd.f32 %v9064_v11, %v4288_v60  ;;  %v3788_v63 = vsub.f32 %v11069_v30, %v3660_v13  ;;  %v11221_v56 = vpop.eup %8619  ;;  %8635 = vpow2.f32 %v3743_v58  ;;  %v3884_v29 = vsub.f32 %v14412_v59, %v3660_v13 }
 0x578   : > { %v4097_v21 = vmul.f32 %v4065_v37, %v14414_v62  ;;  %v4161_v10 = vmul.f32 %v4129_v3, %v14415_v49  ;;  %v11228_v33 = vpop.eup %8621  ;;  %8637 = vpow2.f32 %v3839_v38  ;;  %v3745_v22 = vmul.f32 1.442695, %v3692_v23  ;;  %v14418_v3 = vld [vmem:[#allocation7_spill] sm:$0xff] }
 0x579   : > { %14413 = vst [vmem:[#allocation83_spill] sm:$0xff] %v11215_v46  ;;  %14416 = vst [vmem:[#allocation85_spill] sm:$0xff] %v11228_v33  ;;  %4361 = vadd.xlane.f32.xlu1 %v11215_v46  ;;  %v3841_v30 = vmul.f32 1.442695, %v3788_v63  ;;  %v4225_v60 = vmul.f32 %v11028_v1, %v10929_v7  ;;  %v11233_v11 = vpop.eup %8623  ;;  %v3977_v59 = vadd.f32 %v11228_v33, %v11221_v56  ;;  %8639 = vpow2.f32 %v3935_v9 }
 0x57a   : > { %14417 = vst [vmem:[#allocation19_spill] sm:$0xff] %v11233_v11  ;;  %v3937_v13 = vmul.f32 1.442695, %v3884_v29  ;;  %v4193_v37 = vadd.f32 %v4161_v10, %v4097_v21  ;;  %v11237_v58 = vpop.eup %8625  ;;  %8641 = vpow2.f32 %v3745_v22  ;;  %v4066_v38 = vmul.f32 %v11052_v16, %v10937_v12  ;;  %v11251_v63 = vpop.f32.mrb[232].mxu0  ;;  %v14420_v21 = vld [vmem:[#allocation30_spill] sm:$0xff] }
 0x57b   : > { %v4257_v62 = vmul.f32 %v14418_v3, %v4225_v60  ;;  %v4130_v23 = vmul.f32 %v11052_v16, %v10953_v51  ;;  %v11244_v7 = vpop.eup %8627  ;;  %v4009_v1 = vadd.f32 %v11233_v11, %v3977_v59  ;;  %8643 = vpow2.f32 %v3841_v30  ;;  %v11258_v22 = vpop.f32.mrb[233].mxu0  ;;  %v14423_v60 = vld [vmem:[#allocation9_spill] sm:$0xff]  ;;  %v14424_v3 = vld [vmem:[#allocation87_spill] sm:$0xff] }
 0x57c   : > { %14419 = vst [vmem:[#allocation20_spill] sm:$0xff] %v11244_v7  ;;  %v4226_v9 = vmul.f32 %v11052_v16, %v10960_v15  ;;  %v3629_v10 = vmax.f32 %v11101_v34, %v11110_v20  ;;  %v11253_v29 = vpop.eup %8629  ;;  %v3978_v12 = vadd.f32 %v11244_v7, %v11237_v58  ;;  %8645 = vpow2.f32 %v3937_v13  ;;  %v14422_v15 = vld [vmem:[#allocation32_spill] sm:$0xff]  ;;  %v11265_v11 = vpop.f32.mrb[234].mxu0 }
 0x57d   : > { %v4289_v51 = vadd.f32 %v4257_v62, %v4193_v37  ;;  %v4098_v49 = vmul.f32 %v4066_v38, %v14420_v21  ;;  %v11260_v30 = vpop.eup %8631  ;;  %8647 = vrcp.f32 %v4009_v1  ;;  %v4162_v16 = vmul.f32 %v4130_v23, %v14422_v15  ;;  %v9065_v7 = vld [vmem:[%s9173_s23 + $0x50] sm:$0xff]  ;;  %v11275_v38 = vpop.f32.mrb[235].mxu0 }
 0x57e   : > { %14421 = vst [vmem:[#allocation8_spill] sm:$0xff] %v11260_v30  ;;  %v4258_v59 = vmul.f32 %v14423_v60, %v4226_v9  ;;  %v3661_v46 = vmax.f32 %v3629_v10, %v14424_v3  ;;  %v4010_v33 = vadd.f32 %v11260_v30, %v3978_v12  ;;  %v3630_v37 = vmax.f32 %v11120_v57, %v11128_v27 }
 0x57f   : > { %v11269_v13 = vadd.f32 %v9065_v7, %v4289_v51  ;;  %v4067_v62 = vmul.f32 %v11112_v24, %v10992_v44  ;;  %v4194_v23 = vadd.f32 %v4162_v16, %v4098_v49  ;;  %v14426_v7 = vld [vmem:[#allocation89_spill] sm:$0xff]  ;;  %v14427_v51 = vld [vmem:[#allocation35_spill] sm:$0xff]  ;;  %v4131_v44 = vmul.f32 %v11112_v24, %v11004_v54 }
 0x580   : > { %v3693_v1 = vsub.f32 %v11101_v34, %v3661_v46  ;;  %v3789_v9 = vsub.f32 %v11110_v20, %v3661_v46  ;;  %v3885_v10 = vsub.f32 %v14424_v3, %v3661_v46  ;;  %v11280_v21 = vpop.eup %8633  ;;  %8649 = vrcp.f32 %v4010_v33 }
 0x581   : > { %14425 = vst [vmem:[#allocation93_spill] sm:$0xff] %v11269_v13  ;;  %4363 = vadd.xlane.f32.xlu0 %v11269_v13  ;;  %v3662_v12 = vmax.f32 %v3630_v37, %v14426_v7  ;;  %v4099_v15 = vmul.f32 %v4067_v62, %v14427_v51  ;;  %v11287_v49 = vpop.eup %8635  ;;  %v4290_v34 = vadd.f32 %v4258_v59, %v4194_v23  ;;  %v14428_v37 = vld [vmem:[#allocation36_spill] sm:$0xff]  ;;  %v9066_v51 = vld [vmem:[%s9173_s23 + $0x58] sm:$0xff] }
 0x582   : > { %v3747_v16 = vmul.f32 1.442695, %v3693_v1  ;;  %v3843_v20 = vmul.f32 1.442695, %v3789_v9  ;;  %v3939_v60 = vmul.f32 1.442695, %v3885_v10  ;;  %v11289_v46 = vpop.eup %8637  ;;  %v4163_v30 = vmul.f32 %v4131_v44, %v14428_v37 }
 0x583   : > { %v3694_v33 = vsub.f32 %v11120_v57, %v3662_v12  ;;  %v3790_v3 = vsub.f32 %v11128_v27, %v3662_v12  ;;  %v3886_v13 = vsub.f32 %v14426_v7, %v3662_v12  ;;  %v11295_v62 = vpop.eup %8639  ;;  %v3979_v54 = vadd.f32 %v11289_v46, %v11287_v49  ;;  %v11304_v1 = vpop.f32.mrb[236].mxu0 }
 0x584   : > { %v11300_v59 = vadd.f32 %v9066_v51, %v4290_v34  ;;  %8651 = vpow2.f32 %v3747_v16  ;;  %v4227_v23 = vmul.f32 %v11112_v24, %v11014_v32  ;;  %v11306_v57 = vpop.eup %8641  ;;  %v4195_v44 = vadd.f32 %v4163_v30, %v4099_v15  ;;  %v14430_v34 = vld [vmem:[#allocation15_spill] sm:$0xff]  ;;  %v11313_v37 = vpop.f32.mrb[237].mxu0 }
 0x585   : > { %8653 = vpow2.f32 %v3843_v20  ;;  %v3749_v27 = vmul.f32 1.442695, %v3694_v33  ;;  %v3845_v9 = vmul.f32 1.442695, %v3790_v3  ;;  %v3941_v10 = vmul.f32 1.442695, %v3886_v13  ;;  %v11308_v7 = vpop.eup %8643 }
 0x586   : > { %14429 = vst [vmem:[#allocation22_spill] sm:$0xff] %v11300_v59  ;;  %v4011_v12 = vadd.f32 %v11295_v62, %v3979_v54  ;;  %4365 = vadd.xlane.f32.xlu1 %v11300_v59  ;;  %8655 = vpow2.f32 %v3939_v60  ;;  %v4259_v16 = vmul.f32 %v4227_v23, %v14430_v34  ;;  %v11315_v32 = vpop.eup %8645  ;;  %v3980_v24 = vadd.f32 %v11308_v7, %v11306_v57  ;;  %v11323_v33 = vpop.f32.mrb[238].mxu0  ;;  %v9067_v34 = vld [vmem:[%s9173_s23 + $0x60] sm:$0xff] }
 0x587   : > { %8657 = vpow2.f32 %v3749_v27  ;;  %v4068_v13 = vmul.f32 %v11139_v36, %v11023_v4  ;;  %v4132_v20 = vmul.f32 %v11139_v36, %v11032_v31  ;;  %v11325_v30 = vpop.eup %8647  ;;  %v4228_v60 = vmul.f32 %v11139_v36, %v11038_v47  ;;  %v11331_v54 = vpop.f32.mrb[239].mxu0  ;;  %v14431_v4 = vld [vmem:[#allocation38_spill] sm:$0xff]  ;;  %v14432_v31 = vld [vmem:[#allocation40_spill] sm:$0xff] }
 0x588   : > { %8659 = vrcp.f32 %v4011_v12  ;;  %v4291_v15 = vadd.f32 %v4259_v16, %v4195_v44  ;;  %v3631_v3 = vmax.f32 %v11151_v6, %v11162_v14  ;;  %v4012_v51 = vadd.f32 %v11315_v32, %v3980_v24  ;;  %v14434_v12 = vld [vmem:[#allocation18_spill] sm:$0xff] }
 0x589   : > { %8661 = vpow2.f32 %v3845_v9  ;;  %v4100_v23 = vmul.f32 %v4068_v13, %v14431_v4  ;;  %v4164_v27 = vmul.f32 %v4132_v20, %v14432_v31  ;;  %v4260_v44 = vmul.f32 %v4228_v60, %v14434_v12 }
 0x58a   : > { %8663 = vpow2.f32 %v3941_v10  ;;  %v11337_v59 = vadd.f32 %v9067_v34, %v4291_v15  ;;  %v3663_v47 = vmax.f32 %v3631_v3, %v10982_v17  ;;  %v11341_v36 = vpop.eup %8649  ;;  %v3632_v24 = vmax.f32 %v11170_v28, %v11179_v43  ;;  %v14436_v34 = vld [vmem:[#allocation44_spill] sm:$0xff] }
 0x58b   : > { %8665 = vrcp.f32 %v4012_v51  ;;  %v4196_v16 = vadd.f32 %v4164_v27, %v4100_v23  ;;  %v4069_v9 = vmul.f32 %v11172_v45, %v11071_v19  ;;  %v4133_v15 = vmul.f32 %v11172_v45, %v11077_v53  ;;  %v14435_v51 = vld [vmem:[#allocation43_spill] sm:$0xff] }
 0x58c   : > { %14433 = vst [vmem:[#allocation24_spill] sm:$0xff] %v11337_v59  ;;  %4367 = vadd.xlane.f32.xlu0 %v11337_v59  ;;  %v3695_v10 = vsub.f32 %v11151_v6, %v3663_v47  ;;  %v3791_v13 = vsub.f32 %v11162_v14, %v3663_v47  ;;  %v3887_v20 = vsub.f32 %v10982_v17, %v3663_v47  ;;  %v9068_v17 = vld [vmem:[%s9173_s23 + $0x68] sm:$0xff] }
 0x58d   : > { %v4292_v60 = vadd.f32 %v4260_v44, %v4196_v16  ;;  %v3664_v3 = vmax.f32 %v3632_v24, %v11002_v40  ;;  %v4101_v4 = vmul.f32 %v4069_v9, %v14435_v51  ;;  %v4229_v19 = vmul.f32 %v11172_v45, %v11081_v5  ;;  %v14438_v9 = vld [vmem:[#allocation13_spill] sm:$0xff] }
 0x58e   : > { %v11357_v23 = vpop.eup %8651  ;;  %v3751_v31 = vmul.f32 1.442695, %v3695_v10  ;;  %v3847_v27 = vmul.f32 1.442695, %v3791_v13  ;;  %v3943_v6 = vmul.f32 1.442695, %v3887_v20  ;;  %v4165_v14 = vmul.f32 %v4133_v15, %v14436_v34 }
 0x58f   : > { %v11360_v12 = vpop.eup %8653  ;;  %v11363_v47 = vadd.f32 %v9068_v17, %v4292_v60  ;;  %v3696_v53 = vsub.f32 %v11170_v28, %v3664_v3  ;;  %v3792_v44 = vsub.f32 %v11179_v43, %v3664_v3  ;;  %v3888_v16 = vsub.f32 %v11002_v40, %v3664_v3  ;;  %v9069_v34 = vld [vmem:[%s9173_s23 + $0x70] sm:$0xff] }
 0x590   : > { %v11368_v24 = vpop.eup %8655  ;;  %v3981_v5 = vadd.f32 %v11360_v12, %v11357_v23  ;;  %8667 = vpow2.f32 %v3751_v31  ;;  %v4197_v45 = vadd.f32 %v4165_v14, %v4101_v4  ;;  %v4261_v10 = vmul.f32 %v14438_v9, %v4229_v19  ;;  %v14440_v14 = vld [vmem:[#allocation46_spill] sm:$0xff] }
 0x591   : > { %14437 = vst [vmem:[#allocation10_spill] sm:$0xff] %v11363_v47  ;;  %v11373_v13 = vpop.eup %8657  ;;  %4369 = vadd.xlane.f32.xlu1 %v11363_v47  ;;  %8669 = vpow2.f32 %v3847_v27  ;;  %v3753_v20 = vmul.f32 1.442695, %v3696_v53  ;;  %v3849_v28 = vmul.f32 1.442695, %v3792_v44  ;;  %v4070_v3 = vmul.f32 %v11191_v26, %v11085_v55 }
 0x592   : > { %v3945_v43 = vmul.f32 1.442695, %v3888_v16  ;;  %v11376_v15 = vpop.eup %8659  ;;  %v4013_v40 = vadd.f32 %v11368_v24, %v3981_v5  ;;  %8671 = vpow2.f32 %v3943_v6  ;;  %v4293_v60 = vadd.f32 %v4261_v10, %v4197_v45 }
 0x593   : > { %v11381_v51 = vpop.eup %8661  ;;  %8673 = vpow2.f32 %v3753_v20  ;;  %v4134_v4 = vmul.f32 %v11191_v26, %v11092_v50  ;;  %v4230_v19 = vmul.f32 %v11191_v26, %v11103_v48  ;;  %v3633_v31 = vmax.f32 %v11203_v61, %v11210_v18  ;;  %v14441_v50 = vld [vmem:[#allocation48_spill] sm:$0xff]  ;;  %v14442_v48 = vld [vmem:[#allocation17_spill] sm:$0xff] }
 0x594   : > { %v11389_v27 = vpop.eup %8663  ;;  %8675 = vrcp.f32 %v4013_v40  ;;  %v3982_v6 = vadd.f32 %v11381_v51, %v11373_v13  ;;  %v11394_v55 = vadd.f32 %v9069_v34, %v4293_v60  ;;  %v4102_v17 = vmul.f32 %v4070_v3, %v14440_v14  ;;  %v14444_v14 = vld [vmem:[#allocation52_spill] sm:$0xff] }
 0x595   : > { %v11397_v53 = vpop.eup %8665  ;;  %8677 = vpow2.f32 %v3849_v28  ;;  %v4166_v44 = vmul.f32 %v4134_v4, %v14441_v50  ;;  %v4262_v26 = vmul.f32 %v14442_v48, %v4230_v19  ;;  %v3665_v16 = vmax.f32 %v3633_v31, %v10975_v52 }
 0x596   : > { %14439 = vst [vmem:[#allocation88_spill] sm:$0xff] %v11394_v55  ;;  %v4014_v5 = vadd.f32 %v11389_v27, %v3982_v6  ;;  %8679 = vpow2.f32 %v3945_v43  ;;  %4371 = vadd.xlane.f32.xlu0 %v11394_v55  ;;  %v3634_v45 = vmax.f32 %v11219_v0, %v11226_v8  ;;  %v4071_v9 = vmul.f32 %v11253_v29, %v11153_v25  ;;  %v14443_v43 = vld [vmem:[#allocation51_spill] sm:$0xff] }
 0x597   : > { %v4198_v10 = vadd.f32 %v4166_v44, %v4102_v17  ;;  %v3697_v20 = vsub.f32 %v11203_v61, %v3665_v16  ;;  %v3793_v28 = vsub.f32 %v11210_v18, %v3665_v16  ;;  %v3889_v40 = vsub.f32 %v10975_v52, %v3665_v16  ;;  %v9070_v44 = vld [vmem:[%s9173_s23 + $0x78] sm:$0xff] }
 0x598   : > { %8681 = vrcp.f32 %v4014_v5  ;;  %v3666_v60 = vmax.f32 %v3634_v45, %v10990_v41  ;;  %v4103_v3 = vmul.f32 %v4071_v9, %v14443_v43  ;;  %v4135_v4 = vmul.f32 %v11253_v29, %v11156_v42 }
 0x599   : > { %v4294_v19 = vadd.f32 %v4262_v26, %v4198_v10  ;;  %v3755_v31 = vmul.f32 1.442695, %v3697_v20  ;;  %v3851_v6 = vmul.f32 1.442695, %v3793_v28  ;;  %v3947_v25 = vmul.f32 1.442695, %v3889_v40 }
 0x59a   : > { %v11415_v34 = vpop.eup %8667  ;;  %v3698_v61 = vsub.f32 %v11219_v0, %v3666_v60  ;;  %v3794_v18 = vsub.f32 %v11226_v8, %v3666_v60  ;;  %v3890_v52 = vsub.f32 %v10990_v41, %v3666_v60  ;;  %v4167_v17 = vmul.f32 %v4135_v4, %v14444_v14  ;;  %v14446_v10 = vld [vmem:[#allocation23_spill] sm:$0xff]  ;;  %v14447_v20 = vld [vmem:[#allocation53_spill] sm:$0xff]  ;;  %v14448_v40 = vld [vmem:[#allocation16_spill] sm:$0xff] }
 0x59b   : > { %v11421_v50 = vpop.eup %8669  ;;  %v11424_v48 = vadd.f32 %v9070_v44, %v4294_v19  ;;  %8683 = vpow2.f32 %v3755_v31  ;;  %v4231_v42 = vmul.f32 %v11253_v29, %v11164_v39  ;;  %v4072_v26 = vmul.f32 %v11280_v21, %v11181_v35 }
 0x59c   : > { %v11430_v16 = vpop.eup %8671  ;;  %v3983_v0 = vadd.f32 %v11421_v50, %v11415_v34  ;;  %8685 = vpow2.f32 %v3851_v6  ;;  %v3757_v41 = vmul.f32 1.442695, %v3698_v61  ;;  %v3853_v8 = vmul.f32 1.442695, %v3794_v18 }
 0x59d   : > { %14445 = vst [vmem:[#allocation90_spill] sm:$0xff] %v11424_v48  ;;  %v11434_v5 = vpop.eup %8673  ;;  %4373 = vadd.xlane.f32.xlu1 %v11424_v48  ;;  %8687 = vpow2.f32 %v3947_v25  ;;  %v3949_v45 = vmul.f32 1.442695, %v3890_v52  ;;  %v4199_v9 = vadd.f32 %v4167_v17, %v4103_v3  ;;  %v4263_v39 = vmul.f32 %v4231_v42, %v14446_v10  ;;  %v14449_v25 = vld [vmem:[#allocation54_spill] sm:$0xff] }
 0x59e   : > { %v11438_v29 = vpop.eup %8675  ;;  %v4015_v35 = vadd.f32 %v11430_v16, %v3983_v0  ;;  %8689 = vpow2.f32 %v3757_v41  ;;  %v4104_v28 = vmul.f32 %v4072_v26, %v14447_v20  ;;  %v4136_v60 = vmul.f32 %v11280_v21, %v14448_v40  ;;  %v9071_v52 = vld [vmem:[%s9173_s23 + $0x80] sm:$0xff]  ;;  %v14453_v41 = vld [vmem:[#allocation12_spill] sm:$0xff] }
 0x59f   : > { %v11444_v43 = vpop.eup %8677  ;;  %8691 = vpow2.f32 %v3853_v8  ;;  %v4295_v4 = vadd.f32 %v4263_v39, %v4199_v9  ;;  %v4232_v3 = vmul.f32 %v11280_v21, %v11198_v2  ;;  %v3635_v19 = vmax.f32 %v11251_v63, %v11258_v22  ;;  %v14451_v17 = vld [vmem:[#allocation26_spill] sm:$0xff]  ;;  %v14452_v21 = vld [vmem:[#allocation91_spill] sm:$0xff] }
 0x5a0   : > { %v11450_v31 = vpop.eup %8679  ;;  %8693 = vrcp.f32 %v4015_v35  ;;  %v3984_v6 = vadd.f32 %v11444_v43, %v11434_v5  ;;  %v4168_v61 = vmul.f32 %v4136_v60, %v14449_v25  ;;  %v3636_v18 = vmax.f32 %v11265_v11, %v11275_v38  ;;  %v14454_v35 = vld [vmem:[#allocation85_spill] sm:$0xff] }
 0x5a1   : > { %8695 = vpow2.f32 %v3949_v45  ;;  %v11458_v14 = vadd.f32 %v9071_v52, %v4295_v4  ;;  %v4264_v2 = vmul.f32 %v4232_v3, %v14451_v17  ;;  %v3667_v44 = vmax.f32 %v3635_v19, %v14452_v21  ;;  %v14456_v52 = vld [vmem:[#allocation55_spill] sm:$0xff] }
 0x5a2   : > { %v11462_v42 = vpop.eup %8681  ;;  %v4016_v26 = vadd.f32 %v11450_v31, %v3984_v6  ;;  %v4200_v0 = vadd.f32 %v4168_v61, %v4104_v28  ;;  %v3668_v8 = vmax.f32 %v3636_v18, %v14453_v41  ;;  %v4073_v9 = vmul.f32 %v11325_v30, %v11221_v56 }
 0x5a3   : > { %14450 = vst [vmem:[#allocation27_spill] sm:$0xff] %v11458_v14  ;;  %4375 = vadd.xlane.f32.xlu0 %v11458_v14  ;;  %v3699_v45 = vsub.f32 %v11251_v63, %v3667_v44  ;;  %v3795_v10 = vsub.f32 %v11258_v22, %v3667_v44  ;;  %v3891_v39 = vsub.f32 %v14452_v21, %v3667_v44  ;;  %v9072_v22 = vld [vmem:[%s9173_s23 + $0x88] sm:$0xff]  ;;  %v14457_v21 = vld [vmem:[#allocation56_spill] sm:$0xff] }
 0x5a4   : > { %v4137_v20 = vmul.f32 %v11325_v30, %v14454_v35  ;;  %8697 = vrcp.f32 %v4016_v26  ;;  %v4296_v40 = vadd.f32 %v4264_v2, %v4200_v0  ;;  %v3700_v28 = vsub.f32 %v11265_v11, %v3668_v8  ;;  %v14458_v0 = vld [vmem:[#allocation19_spill] sm:$0xff] }
 0x5a5   : > { %v3796_v60 = vsub.f32 %v11275_v38, %v3668_v8  ;;  %v11476_v4 = vpop.eup %8683  ;;  %v3759_v56 = vmul.f32 1.442695, %v3699_v45  ;;  %v3855_v3 = vmul.f32 1.442695, %v3795_v10  ;;  %v3951_v19 = vmul.f32 1.442695, %v3891_v39 }
 0x5a6   : > { %v3892_v63 = vsub.f32 %v14453_v41, %v3668_v8  ;;  %v11479_v6 = vpop.eup %8685  ;;  %v11482_v25 = vadd.f32 %v9072_v22, %v4296_v40  ;;  %v3761_v61 = vmul.f32 1.442695, %v3700_v28  ;;  %v4105_v17 = vmul.f32 %v4073_v9, %v14456_v52  ;;  %v14459_v9 = vld [vmem:[#allocation20_spill] sm:$0xff]  ;;  %v14463_v22 = vld [vmem:[#allocation58_spill] sm:$0xff]  ;;  %v14464_v52 = vld [vmem:[#allocation25_spill] sm:$0xff] }
 0x5a7   : > { %v3857_v18 = vmul.f32 1.442695, %v3796_v60  ;;  %v11485_v2 = vpop.eup %8687  ;;  %v3985_v11 = vadd.f32 %v11479_v6, %v11476_v4  ;;  %8699 = vpow2.f32 %v3759_v56  ;;  %v4169_v44 = vmul.f32 %v4137_v20, %v14457_v21  ;;  %v14460_v20 = vld [vmem:[#allocation8_spill] sm:$0xff]  ;;  %v14461_v60 = vld [vmem:[#allocation21_spill] sm:$0xff] }
 0x5a8   : > { %14455 = vst [vmem:[#allocation28_spill] sm:$0xff] %v11482_v25  ;;  %v3953_v38 = vmul.f32 1.442695, %v3892_v63  ;;  %v11490_v26 = vpop.eup %8689  ;;  %4377 = vadd.xlane.f32.xlu1 %v11482_v25  ;;  %8701 = vpow2.f32 %v3855_v3  ;;  %v4233_v41 = vmul.f32 %v11325_v30, %v14458_v0  ;;  %v4074_v8 = vmul.f32 %v11341_v36, %v11237_v58  ;;  %v14462_v56 = vld [vmem:[#allocation57_spill] sm:$0xff]  ;;  %v14465_v0 = vld [vmem:[#allocation86_spill] sm:$0xff] }
 0x5a9   : > { %v4138_v45 = vmul.f32 %v11341_v36, %v14459_v9  ;;  %v11499_v10 = vpop.eup %8691  ;;  %v4017_v39 = vadd.f32 %v11485_v2, %v3985_v11  ;;  %8703 = vpow2.f32 %v3951_v19  ;;  %v4201_v35 = vadd.f32 %v4169_v44, %v4105_v17 }
 0x5aa   : > { %v4234_v40 = vmul.f32 %v11341_v36, %v14460_v20  ;;  %v11504_v28 = vpop.eup %8693  ;;  %v3986_v30 = vadd.f32 %v11499_v10, %v11490_v26  ;;  %8705 = vpow2.f32 %v3761_v61  ;;  %v4265_v58 = vmul.f32 %v14461_v60, %v4233_v41  ;;  %v14467_v20 = vld [vmem:[#allocation11_spill] sm:$0xff] }
 0x5ab   : > { %v4106_v3 = vmul.f32 %v4074_v8, %v14462_v56  ;;  %v11510_v63 = vpop.eup %8695  ;;  %8707 = vrcp.f32 %v4017_v39  ;;  %v4170_v19 = vmul.f32 %v4138_v45, %v14463_v22  ;;  %v3637_v36 = vmax.f32 %v11304_v1, %v11313_v37  ;;  %v9073_v45 = vld [vmem:[%s9173_s23 + $0x90] sm:$0xff] }
 0x5ac   : > { %v4266_v17 = vmul.f32 %v14464_v52, %v4234_v40  ;;  %v4018_v11 = vadd.f32 %v11510_v63, %v3986_v30  ;;  %8709 = vpow2.f32 %v3857_v18  ;;  %v4297_v21 = vadd.f32 %v4265_v58, %v4201_v35 }
 0x5ad   : > { %v3638_v61 = vmax.f32 %v11323_v33, %v11331_v54  ;;  %8711 = vpow2.f32 %v3953_v38  ;;  %v4202_v44 = vadd.f32 %v4170_v19, %v4106_v3  ;;  %v3669_v41 = vmax.f32 %v3637_v36, %v14465_v0  ;;  %v14468_v3 = vld [vmem:[#allocation59_spill] sm:$0xff] }
 0x5ae   : > { %v4075_v8 = vmul.f32 %v11376_v15, %v11287_v49  ;;  %v11522_v9 = vpop.eup %8697  ;;  %8713 = vrcp.f32 %v4018_v11  ;;  %v11525_v39 = vadd.f32 %v9073_v45, %v4297_v21  ;;  %v4139_v35 = vmul.f32 %v11376_v15, %v11289_v46  ;;  %v9074_v46 = vld [vmem:[%s9173_s23 + $0x98] sm:$0xff] }
 0x5af   : > { %v3670_v18 = vmax.f32 %v3638_v61, %v14467_v20  ;;  %v4298_v40 = vadd.f32 %v4266_v17, %v4202_v44  ;;  %v3701_v38 = vsub.f32 %v11304_v1, %v3669_v41  ;;  %v3797_v30 = vsub.f32 %v11313_v37, %v3669_v41 }
 0x5b0   : > { %14466 = vst [vmem:[#allocation7_spill] sm:$0xff] %v11525_v39  ;;  %v3893_v60 = vsub.f32 %v14465_v0, %v3669_v41  ;;  %4379 = vadd.xlane.f32.xlu0 %v11525_v39  ;;  %v4107_v22 = vmul.f32 %v4075_v8, %v14468_v3  ;;  %v4235_v41 = vmul.f32 %v11376_v15, %v11295_v62  ;;  %v14472_v15 = vld [vmem:[#allocation61_spill] sm:$0xff] }
 0x5b1   : > { %v3702_v49 = vsub.f32 %v11323_v33, %v3670_v18  ;;  %v3798_v58 = vsub.f32 %v11331_v54, %v3670_v18  ;;  %v3894_v56 = vsub.f32 %v14467_v20, %v3670_v18  ;;  %v11538_v19 = vpop.eup %8699  ;;  %v11541_v52 = vadd.f32 %v9074_v46, %v4298_v40  ;;  %v14470_v33 = vld [vmem:[#allocation60_spill] sm:$0xff] }
 0x5b2   : > { %v3763_v1 = vmul.f32 1.442695, %v3701_v38  ;;  %v3859_v17 = vmul.f32 1.442695, %v3797_v30  ;;  %v3955_v37 = vmul.f32 1.442695, %v3893_v60  ;;  %v11543_v36 = vpop.eup %8701  ;;  %v4171_v44 = vmul.f32 %v4139_v35, %v14470_v33 }
 0x5b3   : > { %14469 = vst [vmem:[#allocation30_spill] sm:$0xff] %v11541_v52  ;;  %v3765_v11 = vmul.f32 1.442695, %v3702_v49  ;;  %v3861_v21 = vmul.f32 1.442695, %v3798_v58  ;;  %v11546_v54 = vpop.eup %8703  ;;  %v3987_v0 = vadd.f32 %v11543_v36, %v11538_v19  ;;  %4381 = vadd.xlane.f32.xlu1 %v11541_v52  ;;  %v4076_v8 = vmul.f32 %v11397_v53, %v11306_v57  ;;  %v14471_v30 = vld [vmem:[#allocation31_spill] sm:$0xff] }
 0x5b4   : > { %v3957_v61 = vmul.f32 1.442695, %v3894_v56  ;;  %8715 = vpow2.f32 %v3763_v1  ;;  %v11555_v45 = vpop.eup %8705  ;;  %v4203_v20 = vadd.f32 %v4171_v44, %v4107_v22  ;;  %v4140_v18 = vmul.f32 %v11397_v53, %v11308_v7  ;;  %v14473_v49 = vld [vmem:[#allocation62_spill] sm:$0xff] }
 0x5b5   : > { %8717 = vpow2.f32 %v3859_v17  ;;  %v4236_v35 = vmul.f32 %v11397_v53, %v11315_v32  ;;  %v11561_v40 = vpop.eup %8707  ;;  %v4019_v38 = vadd.f32 %v11546_v54, %v3987_v0  ;;  %v4267_v62 = vmul.f32 %v4235_v41, %v14471_v30  ;;  %v14474_v56 = vld [vmem:[#allocation34_spill] sm:$0xff]  ;;  %v14477_v41 = vld [vmem:[#allocation64_spill] sm:$0xff] }
 0x5b6   : > { %8719 = vpow2.f32 %v3955_v37  ;;  %v4108_v60 = vmul.f32 %v4076_v8, %v14472_v15  ;;  %v11566_v57 = vpop.eup %8709  ;;  %v4172_v58 = vmul.f32 %v4140_v18, %v14473_v49  ;;  %v4077_v32 = vmul.f32 %v11438_v29, %v11357_v23  ;;  %v14475_v37 = vld [vmem:[#allocation63_spill] sm:$0xff]  ;;  %v9075_v44 = vld [vmem:[%s9173_s23 + $0xa0] sm:$0xff] }
 0x5b7   : > { %8721 = vpow2.f32 %v3765_v11  ;;  %v4268_v7 = vmul.f32 %v4236_v35, %v14474_v56  ;;  %v11572_v53 = vpop.eup %8711  ;;  %v3988_v3 = vadd.f32 %v11566_v57, %v11555_v45  ;;  %v4299_v22 = vadd.f32 %v4267_v62, %v4203_v20  ;;  %v14480_v62 = vld [vmem:[#allocation65_spill] sm:$0xff] }
 0x5b8   : > { %8723 = vrcp.f32 %v4019_v38  ;;  %v4141_v46 = vmul.f32 %v11438_v29, %v11360_v12  ;;  %v11578_v1 = vpop.eup %8713  ;;  %v4204_v17 = vadd.f32 %v4172_v58, %v4108_v60  ;;  %v4109_v11 = vmul.f32 %v4077_v32, %v14475_v37  ;;  %v14478_v12 = vld [vmem:[#allocation29_spill] sm:$0xff]  ;;  %v9076_v38 = vld [vmem:[%s9173_s23 + $0xa8] sm:$0xff]  ;;  %v14481_v60 = vld [vmem:[#allocation66_spill] sm:$0xff] }
 0x5b9   : > { %8725 = vpow2.f32 %v3861_v21  ;;  %v4237_v23 = vmul.f32 %v11438_v29, %v11368_v24  ;;  %v4020_v33 = vadd.f32 %v11572_v53, %v3988_v3  ;;  %v11585_v0 = vadd.f32 %v9075_v44, %v4299_v22  ;;  %v14482_v56 = vld [vmem:[#allocation33_spill] sm:$0xff]  ;;  %v14484_v22 = vld [vmem:[#allocation68_spill] sm:$0xff] }
 0x5ba   : > { %8727 = vpow2.f32 %v3957_v61  ;;  %v4173_v8 = vmul.f32 %v4141_v46, %v14477_v41  ;;  %v4300_v20 = vadd.f32 %v4268_v7, %v4204_v17  ;;  %v4078_v21 = vmul.f32 %v11462_v42, %v11373_v13 }
 0x5bb   : > { %14476 = vst [vmem:[#allocation32_spill] sm:$0xff] %v11585_v0  ;;  %v4269_v18 = vmul.f32 %v14478_v12, %v4237_v23  ;;  %v4142_v35 = vmul.f32 %v11462_v42, %v11381_v51  ;;  %8729 = vrcp.f32 %v4020_v33  ;;  %4383 = vadd.xlane.f32.xlu0 %v11585_v0  ;;  %v4238_v29 = vmul.f32 %v11462_v42, %v11389_v27  ;;  %v14483_v27 = vld [vmem:[#allocation67_spill] sm:$0xff]  ;;  %v14487_v12 = vld [vmem:[#allocation70_spill] sm:$0xff] }
 0x5bc   : > { %v4205_v24 = vadd.f32 %v4173_v8, %v4109_v11  ;;  %v4079_v61 = vmul.f32 %v11504_v28, %v11415_v34  ;;  %v11599_v30 = vadd.f32 %v9076_v38, %v4300_v20  ;;  %v4110_v15 = vmul.f32 %v4078_v21, %v14480_v62  ;;  %v14485_v23 = vld [vmem:[#allocation39_spill] sm:$0xff]  ;;  %v14486_v8 = vld [vmem:[#allocation69_spill] sm:$0xff] }
 0x5bd   : > { %v4174_v13 = vmul.f32 %v4142_v35, %v14481_v60  ;;  %v4143_v51 = vmul.f32 %v11504_v28, %v11421_v50  ;;  %v4270_v7 = vmul.f32 %v14482_v56, %v4238_v29  ;;  %v4239_v34 = vmul.f32 %v11504_v28, %v11430_v16  ;;  %v14488_v35 = vld [vmem:[#allocation42_spill] sm:$0xff]  ;;  %v14489_v60 = vld [vmem:[#allocation71_spill] sm:$0xff] }
 0x5be   : > { %14479 = vst [vmem:[#allocation9_spill] sm:$0xff] %v11599_v30  ;;  %v11605_v49 = vpop.eup %8715  ;;  %v11607_v58 = vadd.f32 %v4269_v18, %v4205_v24  ;;  %v4111_v42 = vmul.f32 %v4079_v61, %v14483_v27  ;;  %4385 = vadd.xlane.f32.xlu1 %v11599_v30  ;;  %v4080_v50 = vmul.f32 %v11522_v9, %v11434_v5 }
 0x5bf   : > { %v8718_v32 = vpop.eup %8717  ;;  %v4206_v3 = vadd.f32 %v4174_v13, %v4110_v15  ;;  %v4175_v46 = vmul.f32 %v4143_v51, %v14484_v22  ;;  %v4144_v17 = vmul.f32 %v11522_v9, %v11444_v43  ;;  %v4271_v33 = vmul.f32 %v4239_v34, %v14485_v23  ;;  %v14490_v51 = vld [vmem:[#allocation72_spill] sm:$0xff]  ;;  %v14492_v22 = vld [vmem:[#allocation73_spill] sm:$0xff]  ;;  %v14493_v23 = vld [vmem:[#allocation74_spill] sm:$0xff] }
 0x5c0   : > { %v8720_v37 = vpop.eup %8719  ;;  %v3989_v11 = vadd.f32 %v8718_v32, %v11605_v49  ;;  %v4240_v16 = vmul.f32 %v11522_v9, %v11450_v31  ;;  %v4112_v20 = vmul.f32 %v4080_v50, %v14486_v8  ;;  %v4081_v24 = vmul.f32 %v11561_v40, %v11476_v4  ;;  %v14491_v4 = vld [vmem:[#allocation37_spill] sm:$0xff] }
 0x5c1   : > { %v8722_v28 = vpop.eup %8721  ;;  %v11623_v44 = vadd.f32 %v4270_v7, %v4206_v3  ;;  %v4207_v41 = vadd.f32 %v4175_v46, %v4111_v42  ;;  %v4176_v18 = vmul.f32 %v4144_v17, %v14487_v12  ;;  %v4145_v29 = vmul.f32 %v11561_v40, %v11479_v6 }
 0x5c2   : > { %v8724_v5 = vpop.eup %8723  ;;  %v4021_v21 = vadd.f32 %v8720_v37, %v3989_v11  ;;  %v4272_v43 = vmul.f32 %v4240_v16, %v14488_v35  ;;  %v4241_v38 = vmul.f32 %v11561_v40, %v11485_v2  ;;  %v4113_v13 = vmul.f32 %v4081_v24, %v14489_v60 }
 0x5c3   : > { %v8726_v61 = vpop.eup %8725  ;;  %v11632_v31 = vadd.f32 %v4271_v33, %v4207_v41  ;;  %v4208_v9 = vadd.f32 %v4176_v18, %v4112_v20  ;;  %v4177_v56 = vmul.f32 %v4145_v29, %v14490_v51  ;;  %v4082_v6 = vmul.f32 %v11578_v1, %v11490_v26  ;;  %v14494_v33 = vld [vmem:[#allocation41_spill] sm:$0xff]  ;;  %v14495_v41 = vld [vmem:[#allocation75_spill] sm:$0xff]  ;;  %v14496_v20 = vld [vmem:[#allocation76_spill] sm:$0xff] }
 0x5c4   : > { %v8728_v62 = vpop.eup %8727  ;;  %8731 = vrcp.f32 %v4021_v21  ;;  %v3990_v15 = vadd.f32 %v8726_v61, %v8722_v28  ;;  %v4273_v27 = vmul.f32 %v14491_v4, %v4241_v38  ;;  %v4146_v2 = vmul.f32 %v11578_v1, %v11499_v10  ;;  %v14497_v21 = vld [vmem:[#allocation47_spill] sm:$0xff] }
 0x5c5   : > { %v11638_v7 = vadd.f32 %v4272_v43, %v4208_v9  ;;  %v8730_v42 = vpop.eup %8729  ;;  %v4209_v3 = vadd.f32 %v4177_v56, %v4113_v13  ;;  %v4242_v40 = vmul.f32 %v11578_v1, %v11510_v63  ;;  %v4114_v46 = vmul.f32 %v4082_v6, %v14492_v22  ;;  %v14498_v43 = vld [vmem:[#allocation77_spill] sm:$0xff]  ;;  %v14499_v9 = vld [vmem:[#allocation78_spill] sm:$0xff]  ;;  %v14501_v56 = vld [vmem:[#allocation79_spill] sm:$0xff] }
 0x5c6   : > { %v4022_v34 = vadd.f32 %v8728_v62, %v3990_v15  ;;  %v4083_v50 = vmul.f32 %v8724_v5, %v11538_v19  ;;  %v4147_v17 = vmul.f32 %v8724_v5, %v11543_v36  ;;  %v4178_v26 = vmul.f32 %v4146_v2, %v14493_v23  ;;  %v14500_v15 = vld [vmem:[#allocation50_spill] sm:$0xff] }
 0x5c7   : > { %v11650_v11 = vadd.f32 %v4273_v27, %v4209_v3  ;;  %v4274_v16 = vmul.f32 %v14494_v33, %v4242_v40  ;;  %v4243_v12 = vmul.f32 %v8724_v5, %v11546_v54  ;;  %v4084_v63 = vmul.f32 %v8730_v42, %v11555_v45  ;;  %v14502_v27 = vld [vmem:[#allocation80_spill] sm:$0xff]  ;;  %v14506_v33 = vld [vmem:[#allocation49_spill] sm:$0xff] }
 0x5c8   : > { %8733 = vrcp.f32 %v4022_v34  ;;  %v4115_v8 = vmul.f32 %v4083_v50, %v14495_v41  ;;  %v4179_v10 = vmul.f32 %v4147_v17, %v14496_v20  ;;  %v4210_v1 = vadd.f32 %v4178_v26, %v4114_v46  ;;  %v8335_v41 = vld [vmem:[%s14144_s7 + $0x8] ss:$16 sps:$4 sm:$0xff]   ;;  %v8341_v20 = vld [vmem:[%s14144_s7] ss:$16 sps:$4 sm:$0xff]  }
 0x5c9   : > { %v4148_v19 = vmul.f32 %v8730_v42, %v11566_v57  ;;  %v4244_v36 = vmul.f32 %v8730_v42, %v11572_v53  ;;  %v4275_v35 = vmul.f32 %v4243_v12, %v14497_v21  ;;  %v4116_v24 = vmul.f32 %v4084_v63, %v14498_v43  ;;  %v14503_v42 = vld [vmem:[#allocation45_spill] sm:$0xff] }
 0x5ca   : > { %v4211_v18 = vadd.f32 %v4179_v10, %v4115_v8  ;;  %v11662_v29 = vadd.f32 %v4274_v16, %v4210_v1  ;;  %v8337_v8 = vld [vmem:[%s14144_s7 + $0xc] ss:$16 sps:$4 sm:$0xff]   ;;  %v8343_v10 = vld [vmem:[%s14144_s7 + $0x4] ss:$16 sps:$4 sm:$0xff]  }
 0x5cb   : > { %v4180_v38 = vmul.f32 %v4148_v19, %v14499_v9  ;;  %v4276_v60 = vmul.f32 %v4244_v36, %v14500_v15  ;;  %5150 = vmatprep.subr.bf16.mxu0 %v8337_v8  ;;  %v14508_v1 = vld [vmem:[#allocation2_spill] sm:$0xff]  ;;  %v8338_v36 = vld [vmem:[%s14144_s7 + $0x28] ss:$16 sps:$4 sm:$0xff]   ;;  %4957 = vmatprep.subr.bf16.mxu1 %v8343_v10  ;;  %v8346_v43 = vld [vmem:[%s14144_s7 + $0x4c] ss:$16 sps:$4 sm:$0xff]  }
 0x5cc   : > { %v11666_v13 = vadd.f32 %v4275_v35, %v4211_v18  ;;  %5151 = vmatpush1.bf16.msra.mxu0 %v8335_v41  ;;  %v8349_v18 = vld [vmem:[%s14144_s7 + $0x24] ss:$16 sps:$4 sm:$0xff]   ;;  %4958 = vmatpush1.bf16.msra.mxu1 %v8341_v20 }
 0x5cd   : > { %v4212_v45 = vadd.f32 %v4180_v38, %v4116_v24  ;;  %v8347_v24 = vld [vmem:[%s14144_s7 + $0x20] ss:$16 sps:$4 sm:$0xff]   ;;  %4959 = vmatprep.subr.bf16.mxu1 %v8349_v18  ;;  %v8352_v38 = vld [vmem:[%s14144_s7 + $0x44] ss:$16 sps:$4 sm:$0xff]  }
 0x5ce   : > { %v8732_v54 = vpop.eup %8731  ;;  %v14509_v15 = vld [vmem:[#allocation94_spill] sm:$0xff]  ;;  %v14517_v20 = vld [vmem:[#allocation84_spill] sm:$0xff] }
 0x5cf   : > { %v4085_v5 = vmul.f32 %v8732_v54, %v11605_v49  ;;  %v4149_v57 = vmul.f32 %v8732_v54, %v8718_v32  ;;  %v4245_v51 = vmul.f32 %v8732_v54, %v8720_v37  ;;  %v11669_v53 = vadd.f32 %v4276_v60, %v4212_v45  ;;  %v14504_v49 = vld [vmem:[#allocation81_spill] sm:$0xff]  ;;  %v14505_v37 = vld [vmem:[#allocation82_spill] sm:$0xff] }
 0x5d0   : > { %v8344_v54 = vld [vmem:[%s14144_s7 + $0x48] ss:$16 sps:$4 sm:$0xff]   ;;  %4960 = vmatpush1.bf16.msra.mxu1 %v8347_v24  ;;  %v8353_v24 = vld [vmem:[%s14144_s7 + $0x60] ss:$16 sps:$4 sm:$0xff]  }
 0x5d1   : > { %v4117_v4 = vmul.f32 %v4085_v5, %v14501_v56  ;;  %v4181_v6 = vmul.f32 %v4149_v57, %v14502_v27  ;;  %v4277_v34 = vmul.f32 %v14503_v42, %v4245_v51  ;;  %v4344_v2 = vpop.xlane.xlu0 %4343  ;;  %v8350_v5 = vld [vmem:[%s14144_s7 + $0x40] ss:$16 sps:$4 sm:$0xff]   ;;  %4961 = vmatprep.subr.bf16.mxu1 %v8352_v38  ;;  %v8356_v38 = vld [vmem:[%s14144_s7 + $0x68] ss:$16 sps:$4 sm:$0xff]  }
 0x5d2   : > { %v8734_v3 = vpop.eup %8733  ;;  %v4407_v17 = vmul.f32 0.007936508, %v4344_v2  ;;  %v9077_v57 = vld [vmem:[%s9173_s23 + $0xb0] sm:$0xff] }
 0x5d3   : > { %v4213_v40 = vadd.f32 %v4181_v6, %v4117_v4  ;;  %v4086_v22 = vmul.f32 %v8734_v3, %v8722_v28  ;;  %v4150_v46 = vmul.f32 %v8734_v3, %v8726_v61  ;;  %v4246_v50 = vmul.f32 %v8734_v3, %v8728_v62  ;;  %v14507_v28 = vld [vmem:[#allocation92_spill] sm:$0xff]  ;;  %v8340_v62 = vld [vmem:[%s14144_s7 + $0x2c] ss:$16 sps:$4 sm:$0xff]  }
 0x5d4   : > { %v4439_v61 = vsub.f32 %v14507_v28, %v4407_v17  ;;  %5152 = vmatprep.subr.bf16.mxu0 %v8340_v62  ;;  %v11729_v51 = vadd.f32 %v9077_v57, %v11607_v58  ;;  %4962 = vmatpush1.bf16.msra.mxu1 %v8350_v5  ;;  %v9078_v6 = vld [vmem:[%s9173_s23 + $0xb8] sm:$0xff] }
 0x5d5   : > { %v11674_v23 = vadd.f32 %v4277_v34, %v4213_v40  ;;  %v4118_v32 = vmul.f32 %v4086_v22, %v14504_v49  ;;  %v4182_v26 = vmul.f32 %v4150_v46, %v14505_v37  ;;  %v4278_v16 = vmul.f32 %v14506_v33, %v4246_v50  ;;  %5153 = vmatpush1.bf16.msra.mxu0 %v8338_v36  ;;  %v14512_v34 = vld [vmem:[#allocation95_spill] sm:$0xff]  ;;  %v14513_v22 = vld [vmem:[#allocation96_spill] sm:$0xff]  ;;  %v9079_v49 = vld [vmem:[%s9173_s23 + $0xc0] sm:$0xff] }
 0x5d6   : > { %v4346_v63 = vpop.xlane.xlu1 %4345  ;;  %v11696_v19 = vmul.f32 %v14508_v1, %v4439_v61  ;;  %5154 = vmatprep.subr.bf16.mxu0 %v8346_v43  ;;  %14510 = vst [vmem:[#allocation87_spill] sm:$0xff] %v11729_v51  ;;  %v11736_v42 = vadd.f32 %v9078_v6, %v11623_v44  ;;  %v14516_v61 = vld [vmem:[#allocation6_spill] sm:$0xff]  ;;  %v9082_v5 = vld [vmem:[%s9173_s23 + $0xd8] sm:$0xff] }
 0x5d7   : > { %v4214_v12 = vadd.f32 %v4182_v26, %v4118_v32  ;;  %v4408_v21 = vmul.f32 0.007936508, %v4346_v63  ;;  %v11753_v32 = vadd.f32 %v9079_v49, %v11632_v31  ;;  %v11789_v57 = vadd.f32 %v9082_v5, %v11662_v29  ;;  %v8359_v6 = vld [vmem:[%s14144_s7 + $0x80] ss:$16 sps:$4 sm:$0xff]   ;;  %v8370_v49 = vld [vmem:[%s14144_s7 + $0xac] ss:$16 sps:$4 sm:$0xff]  }
 0x5d8   : > { %v4503_v9 = vmul.f32 %v11696_v19, %v11696_v19  ;;  %14511 = vst [vmem:[#allocation89_spill] sm:$0xff] %v11736_v42 }
 0x5d9   : > { %v11704_v35 = vadd.f32 %v4278_v16, %v4214_v12  ;;  %v4440_v60 = vsub.f32 %v14509_v15, %v4408_v21  ;;  %5155 = vmatpush1.bf16.msra.mxu0 %v8344_v54  ;;  %14514 = vst [vmem:[#allocation35_spill] sm:$0xff] %v11753_v32  ;;  %v9080_v16 = vld [vmem:[%s9173_s23 + $0xc8] sm:$0xff]  ;;  %v9081_v21 = vld [vmem:[%s9173_s23 + $0xd0] sm:$0xff]  ;;  %14520 = vst [vmem:[#allocation38_spill] sm:$0xff] %v11789_v57 }
 0x5da   : > { %4535 = vadd.xlane.f32.xlu0 %v4503_v9  ;;  %v11758_v41 = vadd.f32 %v9080_v16, %v11638_v7  ;;  %v11775_v43 = vadd.f32 %v9081_v21, %v11650_v11  ;;  %v8355_v9 = vld [vmem:[%s14144_s7 + $0x64] ss:$16 sps:$4 sm:$0xff]   ;;  %v8358_v11 = vld [vmem:[%s14144_s7 + $0x6c] ss:$16 sps:$4 sm:$0xff]  }
 0x5db   : > { %v11722_v45 = vmul.f32 %v14508_v1, %v4440_v60  ;;  %v14519_v60 = vld [vmem:[#allocation4_spill] sm:$0xff]  ;;  %4963 = vmatprep.subr.bf16.mxu1 %v8355_v9  ;;  %5156 = vmatprep.subr.bf16.mxu0 %v8358_v11 }
 0x5dc   : > { %14515 = vst [vmem:[#allocation36_spill] sm:$0xff] %v11758_v41  ;;  %14518 = vst [vmem:[#allocation15_spill] sm:$0xff] %v11775_v43  ;;  %4964 = vmatpush1.bf16.msra.mxu1 %v8353_v24  ;;  %v8374_v24 = vld [vmem:[%s14144_s7 + $0xc8] ss:$16 sps:$4 sm:$0xff]  }
 0x5dd   : > { %v4504_v56 = vmul.f32 %v11722_v45, %v11722_v45  ;;  %5157 = vmatpush1.bf16.msra.mxu0 %v8356_v38  ;;  %v9084_v38 = vld [vmem:[%s9173_s23 + $0xe8] sm:$0xff] }
 0x5de   : > { %4387 = vadd.xlane.f32.xlu0 %v11729_v51 }
 0x5df   : > { %v4348_v4 = vpop.xlane.xlu0 %4347  ;;  %4537 = vadd.xlane.f32.xlu1 %v4504_v56 }
 0x5e0   : > { %v4409_v27 = vmul.f32 0.007936508, %v4348_v4 }
 0x5e2   : > { %v4441_v3 = vsub.f32 %v14512_v34, %v4409_v27  ;;  %v4350_v58 = vpop.xlane.xlu1 %4349 }
 0x5e3   : > { %v4410_v2 = vmul.f32 0.007936508, %v4350_v58  ;;  %4389 = vadd.xlane.f32.xlu1 %v11736_v42  ;;  %v8362_v58 = vld [vmem:[%s14144_s7 + $0x88] ss:$16 sps:$4 sm:$0xff]  }
 0x5e4   : > { %v11741_v40 = vmul.f32 %v14508_v1, %v4441_v3  ;;  %v8361_v3 = vld [vmem:[%s14144_s7 + $0x84] ss:$16 sps:$4 sm:$0xff]  }
 0x5e5   : > { %v4442_v46 = vsub.f32 %v14513_v22, %v4410_v2  ;;  %v14521_v2 = vld [vmem:[#allocation14_spill] sm:$0xff]  ;;  %4965 = vmatprep.subr.bf16.mxu1 %v8361_v3  ;;  %v8380_v3 = vld [vmem:[%s14144_s7 + $0xe8] ss:$16 sps:$4 sm:$0xff]  }
 0x5e6   : > { %v4505_v50 = vmul.f32 %v11741_v40, %v11741_v40  ;;  %4966 = vmatpush1.bf16.msra.mxu1 %v8359_v6 }
 0x5e7   : > { %v11747_v17 = vmul.f32 %v14508_v1, %v4442_v46 }
 0x5e8   : > { %4539 = vadd.xlane.f32.xlu0 %v4505_v50  ;;  %v8364_v50 = vld [vmem:[%s14144_s7 + $0x8c] ss:$16 sps:$4 sm:$0xff]  }
 0x5e9   : > { %v4506_v44 = vmul.f32 %v11747_v17, %v11747_v17  ;;  %5158 = vmatprep.subr.bf16.mxu0 %v8364_v50 }
 0x5ea   : > { %5159 = vmatpush1.bf16.msra.mxu0 %v8362_v58  ;;  %v8382_v58 = vld [vmem:[%s14144_s7 + $0xec] ss:$16 sps:$4 sm:$0xff]  }
 0x5eb   : > { %4541 = vadd.xlane.f32.xlu1 %v4506_v44  ;;  %v8367_v44 = vld [vmem:[%s14144_s7 + $0xa4] ss:$16 sps:$4 sm:$0xff]   ;;  %5160 = vmatprep.subr.bf16.mxu0 %v8370_v49 }
 0x5ec   : > { %v4352_v37 = vpop.xlane.xlu0 %4351  ;;  %4391 = vadd.xlane.f32.xlu0 %v11753_v32  ;;  %4967 = vmatprep.subr.bf16.mxu1 %v8367_v44  ;;  %v9085_v44 = vld [vmem:[%s9173_s23 + $0xf0] sm:$0xff] }
 0x5ed   : > { %v4411_v26 = vmul.f32 0.007936508, %v4352_v37  ;;  %v11879_v49 = vadd.f32 %v9085_v44, %v11674_v23 }
 0x5ee   : > { %v4354_v33 = vpop.xlane.xlu1 %4353 }
 0x5ef   : > { %v4412_v8 = vmul.f32 0.007936508, %v4354_v33  ;;  %v4443_v62 = vsub.f32 %v14516_v61, %v4411_v26  ;;  %4393 = vadd.xlane.f32.xlu1 %v11758_v41  ;;  %v8365_v26 = vld [vmem:[%s14144_s7 + $0xa0] ss:$16 sps:$4 sm:$0xff]   ;;  %14526 = vst [vmem:[#allocation43_spill] sm:$0xff] %v11879_v49 }
 0x5f0   : > { %v9083_v33 = vld [vmem:[%s9173_s23 + $0xe0] sm:$0xff]  ;;  %4968 = vmatpush1.bf16.msra.mxu1 %v8365_v26 }
 0x5f1   : > { %v4444_v31 = vsub.f32 %v14517_v20, %v4412_v8  ;;  %v11764_v10 = vmul.f32 %v14508_v1, %v4443_v62  ;;  %v11828_v16 = vadd.f32 %v9083_v33, %v11666_v13  ;;  %v8368_v8 = vld [vmem:[%s14144_s7 + $0xa8] ss:$16 sps:$4 sm:$0xff]   ;;  %v8373_v62 = vld [vmem:[%s14144_s7 + $0xc4] ss:$16 sps:$4 sm:$0xff]   ;;  %v8376_v13 = vld [vmem:[%s14144_s7 + $0xcc] ss:$16 sps:$4 sm:$0xff]  }
 0x5f2   : > { %5161 = vmatpush1.bf16.msra.mxu0 %v8368_v8  ;;  %4969 = vmatprep.subr.bf16.mxu1 %v8373_v62  ;;  %v14527_v8 = vld [vmem:[#allocation93_spill] sm:$0xff] }
 0x5f3   : > { %v11767_v12 = vmul.f32 %v14508_v1, %v4444_v31  ;;  %v4507_v63 = vmul.f32 %v11764_v10, %v11764_v10  ;;  %14522 = vst [vmem:[#allocation40_spill] sm:$0xff] %v11828_v16  ;;  %5162 = vmatprep.subr.bf16.mxu0 %v8376_v13 }
 0x5f5   : > { %v4508_v7 = vmul.f32 %v11767_v12, %v11767_v12  ;;  %4543 = vadd.xlane.f32.xlu0 %v4507_v63 }
 0x5f6   : > { %v4356_v36 = vpop.xlane.xlu0 %4355  ;;  %5163 = vmatpush1.bf16.msra.mxu0 %v8374_v24 }
 0x5f7   : > { %v4413_v18 = vmul.f32 0.007936508, %v4356_v36  ;;  %4545 = vadd.xlane.f32.xlu1 %v4508_v7  ;;  %v8371_v36 = vld [vmem:[%s14144_s7 + $0xc0] ss:$16 sps:$4 sm:$0xff]   ;;  %5164 = vmatprep.subr.bf16.mxu0 %v8382_v58 }
 0x5f8   : > { %4970 = vmatpush1.bf16.msra.mxu1 %v8371_v36 }
 0x5f9   : > { %v4445_v54 = vsub.f32 %v14519_v60, %v4413_v18  ;;  %4395 = vadd.xlane.f32.xlu0 %v11775_v43  ;;  %v14523_v18 = vld [vmem:[#allocation5_spill] sm:$0xff] }
 0x5fa   : > { %v4358_v4 = vpop.xlane.xlu1 %4357  ;;  %5165 = vmatpush1.bf16.msra.mxu0 %v8380_v3 }
 0x5fb   : > { %v11796_v56 = vmul.f32 %v14508_v1, %v4445_v54  ;;  %4397 = vadd.xlane.f32.xlu1 %v11789_v57  ;;  %v4414_v27 = vmul.f32 0.007936508, %v4358_v4  ;;  %v11851_v54 = vadd.f32 %v9084_v38, %v11669_v53  ;;  %v8377_v4 = vld [vmem:[%s14144_s7 + $0xe0] ss:$16 sps:$4 sm:$0xff]  }
 0x5fd   : > { %v4509_v29 = vmul.f32 %v11796_v56, %v11796_v56  ;;  %v4446_v46 = vsub.f32 %v14521_v2, %v4414_v27  ;;  %14524 = vst [vmem:[#allocation18_spill] sm:$0xff] %v11851_v54  ;;  %v8379_v27 = vld [vmem:[%s14144_s7 + $0xe4] ss:$16 sps:$4 sm:$0xff]  }
 0x5fe   : > { %4971 = vmatprep.subr.bf16.mxu1 %v8379_v27 }
 0x5ff   : > { %4547 = vadd.xlane.f32.xlu0 %v4509_v29  ;;  %v11821_v37 = vmul.f32 %v14508_v1, %v4446_v46  ;;  %v14525_v29 = vld [vmem:[#allocation83_spill] sm:$0xff]  ;;  %4972 = vmatpush1.bf16.msra.mxu1 %v8377_v4 }
 0x601   : > { %v4360_v31 = vpop.xlane.xlu0 %4359  ;;  %v4510_v63 = vmul.f32 %v11821_v37, %v11821_v37 }
 0x602   : > { %v4415_v7 = vmul.f32 0.007936508, %v4360_v31  ;;  %v9086_v31 = vld [vmem:[%s9173_s23 + $0xf8] sm:$0xff] }
 0x603   : > { %4399 = vadd.xlane.f32.xlu0 %v11828_v16  ;;  %4549 = vadd.xlane.f32.xlu1 %v4510_v63  ;;  %v11885_v63 = vadd.f32 %v9086_v31, %v11704_v35 }
 0x604   : > { %v4447_v21 = vsub.f32 %v14523_v18, %v4415_v7 }
 0x605   : > { %14528 = vst [vmem:[#allocation44_spill] sm:$0xff] %v11885_v63 }
 0x606   : > { %v4362_v9 = vpop.xlane.xlu1 %4361  ;;  %v11854_v5 = vmul.f32 %v14508_v1, %v4447_v21  ;;  %v14529_v21 = vld [vmem:[#allocation22_spill] sm:$0xff] }
 0x607   : > { %v4416_v11 = vmul.f32 0.007936508, %v4362_v9  ;;  %4401 = vadd.xlane.f32.xlu1 %v11851_v54 }
 0x608   : > { %v4511_v6 = vmul.f32 %v11854_v5, %v11854_v5 }
 0x609   : > { %v4448_v53 = vsub.f32 %v14525_v29, %v4416_v11 }
 0x60a   : > { %4551 = vadd.xlane.f32.xlu0 %v4511_v6 }
 0x60b   : > { %v11873_v46 = vmul.f32 %v14508_v1, %v4448_v53 }
 0x60d   : > { %v4512_v50 = vmul.f32 %v11873_v46, %v11873_v46 }
 0x60e   : > { %v4364_v26 = vpop.xlane.xlu0 %4363  ;;  %4403 = vadd.xlane.f32.xlu0 %v11879_v49 }
 0x60f   : > { %v4417_v33 = vmul.f32 0.007936508, %v4364_v26  ;;  %4553 = vadd.xlane.f32.xlu1 %v4512_v50 }
 0x611   : > { %v4449_v62 = vsub.f32 %v14527_v8, %v4417_v33 }
 0x613   : > { %v11888_v13 = vmul.f32 %v14508_v1, %v4449_v62  ;;  %v4366_v7 = vpop.xlane.xlu1 %4365  ;;  %4405 = vadd.xlane.f32.xlu1 %v11885_v63 }
 0x614   : > { %v4418_v23 = vmul.f32 0.007936508, %v4366_v7 }
 0x615   : > { %v4513_v36 = vmul.f32 %v11888_v13, %v11888_v13 }
 0x616   : > { %v4450_v24 = vsub.f32 %v14529_v21, %v4418_v23 }
 0x617   : > { %4555 = vadd.xlane.f32.xlu0 %v4513_v36 }
 0x618   : > { %v11895_v9 = vmul.f32 %v14508_v1, %v4450_v24 }
 0x619   : > { %v4368_v38 = vpop.xlane.xlu0 %4367 }
 0x61a   : > { %v4419_v11 = vmul.f32 0.007936508, %v4368_v38  ;;  %v4514_v35 = vmul.f32 %v11895_v9, %v11895_v9 }
 0x61c   : > { %v4451_v4 = vsub.f32 %v11337_v59, %v4419_v11  ;;  %4557 = vadd.xlane.f32.xlu1 %v4514_v35 }
 0x61e   : > { %v11901_v27 = vmul.f32 %v14508_v1, %v4451_v4  ;;  %v4370_v53 = vpop.xlane.xlu1 %4369 }
 0x61f   : > { %v4420_v6 = vmul.f32 0.007936508, %v4370_v53 }
 0x620   : > { %v4515_v3 = vmul.f32 %v11901_v27, %v11901_v27 }
 0x621   : > { %v4452_v58 = vsub.f32 %v11363_v47, %v4420_v6 }
 0x622   : > { %4559 = vadd.xlane.f32.xlu0 %v4515_v3 }
 0x623   : > { %v11907_v50 = vmul.f32 %v14508_v1, %v4452_v58  ;;  %v4372_v44 = vpop.xlane.xlu0 %4371 }
 0x624   : > { %v4421_v26 = vmul.f32 0.007936508, %v4372_v44 }
 0x625   : > { %v4516_v33 = vmul.f32 %v11907_v50, %v11907_v50 }
 0x626   : > { %v4453_v62 = vsub.f32 %v11394_v55, %v4421_v26 }
 0x627   : > { %4561 = vadd.xlane.f32.xlu1 %v4516_v33 }
 0x628   : > { %v11913_v31 = vmul.f32 %v14508_v1, %v4453_v62 }
 0x62a   : > { %v4374_v7 = vpop.xlane.xlu1 %4373  ;;  %v4517_v23 = vmul.f32 %v11913_v31, %v11913_v31 }
 0x62b   : > { %v4422_v36 = vmul.f32 0.007936508, %v4374_v7 }
 0x62c   : > { %4563 = vadd.xlane.f32.xlu0 %v4517_v23 }
 0x62d   : > { %v4454_v24 = vsub.f32 %v11424_v48, %v4422_v36 }
 0x62f   : > { %v11919_v38 = vmul.f32 %v14508_v1, %v4454_v24 }
 0x630   : > { %v4376_v11 = vpop.xlane.xlu0 %4375 }
 0x631   : > { %v4423_v35 = vmul.f32 0.007936508, %v4376_v11  ;;  %v4518_v4 = vmul.f32 %v11919_v38, %v11919_v38 }
 0x633   : > { %v4455_v53 = vsub.f32 %v11458_v14, %v4423_v35  ;;  %4565 = vadd.xlane.f32.xlu1 %v4518_v4 }
 0x635   : > { %v11925_v6 = vmul.f32 %v14508_v1, %v4455_v53  ;;  %v4378_v3 = vpop.xlane.xlu1 %4377 }
 0x636   : > { %v4424_v58 = vmul.f32 0.007936508, %v4378_v3 }
 0x637   : > { %v4519_v44 = vmul.f32 %v11925_v6, %v11925_v6 }
 0x638   : > { %v4456_v26 = vsub.f32 %v11482_v25, %v4424_v58 }
 0x639   : > { %4567 = vadd.xlane.f32.xlu0 %v4519_v44 }
 0x63a   : > { %v11931_v33 = vmul.f32 %v14508_v1, %v4456_v26 }
 0x63c   : > { %v4520_v62 = vmul.f32 %v11931_v33, %v11931_v33 }
 0x63d   : > { %v4380_v7 = vpop.xlane.xlu0 %4379 }
 0x63e   : > { %v4425_v23 = vmul.f32 0.007936508, %v4380_v7  ;;  %4569 = vadd.xlane.f32.xlu1 %v4520_v62 }
 0x640   : > { %v4457_v36 = vsub.f32 %v11525_v39, %v4425_v23  ;;  %v4382_v24 = vpop.xlane.xlu1 %4381 }
 0x641   : > { %v4426_v11 = vmul.f32 0.007936508, %v4382_v24 }
 0x642   : > { %v11937_v35 = vmul.f32 %v14508_v1, %v4457_v36 }
 0x643   : > { %v4458_v4 = vsub.f32 %v11541_v52, %v4426_v11 }
 0x644   : > { %v4521_v53 = vmul.f32 %v11937_v35, %v11937_v35 }
 0x645   : > { %v11943_v3 = vmul.f32 %v14508_v1, %v4458_v4 }
 0x646   : > { %4571 = vadd.xlane.f32.xlu0 %v4521_v53 }
 0x647   : > { %v4522_v58 = vmul.f32 %v11943_v3, %v11943_v3 }
 0x648   : > { %v4384_v44 = vpop.xlane.xlu0 %4383 }
 0x649   : > { %v4427_v26 = vmul.f32 0.007936508, %v4384_v44  ;;  %4573 = vadd.xlane.f32.xlu1 %v4522_v58 }
 0x64b   : > { %v4459_v62 = vsub.f32 %v11585_v0, %v4427_v26  ;;  %v4386_v7 = vpop.xlane.xlu1 %4385 }
 0x64c   : > { %v4428_v23 = vmul.f32 0.007936508, %v4386_v7 }
 0x64d   : > { %v11949_v36 = vmul.f32 %v14508_v1, %v4459_v62 }
 0x64e   : > { %v4460_v24 = vsub.f32 %v11599_v30, %v4428_v23 }
 0x64f   : > { %v4523_v11 = vmul.f32 %v11949_v36, %v11949_v36 }
 0x650   : > { %v11955_v4 = vmul.f32 %v14508_v1, %v4460_v24 }
 0x651   : > { %4575 = vadd.xlane.f32.xlu0 %v4523_v11 }
 0x652   : > { %v4524_v53 = vmul.f32 %v11955_v4, %v11955_v4 }
 0x654   : > { %4577 = vadd.xlane.f32.xlu1 %v4524_v53 }
 0x667   : > { %v4536_v58 = vpop.xlane.xlu0 %4535 }
 0x668   : > { %v4599_v44 = vmul.f32 0.007936508, %v4536_v58 }
 0x66a   : > { %v4631_v26 = vadd.f32 1e-05, %v4599_v44 }
 0x66b   : > { %v4388_v7 = vpop.xlane.xlu0 %4387 }
 0x66c   : > { %v4538_v0 = vpop.xlane.xlu1 %4537  ;;  %v4429_v62 = vmul.f32 0.007936508, %v4388_v7  ;;  %8735 = vrsqrt.f32 %v4631_v26 }
 0x66d   : > { %v4600_v52 = vmul.f32 0.007936508, %v4538_v0 }
 0x66e   : > { %v4461_v23 = vsub.f32 %v11729_v51, %v4429_v62 }
 0x66f   : > { %v4632_v30 = vadd.f32 1e-05, %v4600_v52 }
 0x670   : > { %v11961_v39 = vmul.f32 %v14508_v1, %v4461_v23  ;;  %v4390_v24 = vpop.xlane.xlu1 %4389 }
 0x671   : > { %8737 = vrsqrt.f32 %v4632_v30  ;;  %v4430_v11 = vmul.f32 0.007936508, %v4390_v24 }
 0x672   : > { %v4525_v53 = vmul.f32 %v11961_v39, %v11961_v39 }
 0x673   : > { %v4462_v58 = vsub.f32 %v11736_v42, %v4430_v11 }
 0x674   : > { %4579 = vadd.xlane.f32.xlu0 %v4525_v53 }
 0x675   : > { %v11967_v44 = vmul.f32 %v14508_v1, %v4462_v58  ;;  %v4540_v0 = vpop.xlane.xlu0 %4539 }
 0x676   : > { %v4601_v7 = vmul.f32 0.007936508, %v4540_v0  ;;  %v8736_v23 = vpop.eup %8735 }
 0x677   : > { %v4526_v52 = vmul.f32 %v11967_v44, %v11967_v44  ;;  %v4695_v11 = vmul.f32 %v8736_v23, %v11696_v19 }
 0x678   : > { %v4633_v26 = vadd.f32 1e-05, %v4601_v7  ;;  %v4542_v62 = vpop.xlane.xlu1 %4541 }
 0x679   : > { %v4602_v51 = vmul.f32 0.007936508, %v4542_v62  ;;  %v4392_v30 = vpop.xlane.xlu0 %4391  ;;  %4581 = vadd.xlane.f32.xlu1 %v4526_v52 }
 0x67a   : > { %v4431_v24 = vmul.f32 0.007936508, %v4392_v30  ;;  %8739 = vrsqrt.f32 %v4633_v26 }
 0x67b   : > { %v8738_v25 = vpop.eup %8737  ;;  %v4634_v14 = vadd.f32 1e-05, %v4602_v51 }
 0x67c   : > { %v4696_v53 = vmul.f32 %v8738_v25, %v11722_v45  ;;  %v4463_v58 = vsub.f32 %v11753_v32, %v4431_v24  ;;  %v4394_v0 = vpop.xlane.xlu1 %4393  ;;  %v14530_v25 = vmov 0  }
 0x67d   : > { %8741 = vrsqrt.f32 %v4634_v14  ;;  %v4432_v42 = vmul.f32 0.007936508, %v4394_v0 }
 0x67e   : > { %v11975_v7 = vmul.f32 %v14508_v1, %v4463_v58  ;;  %v4727_v48 = vpack.c.bf16 %v4696_v53, %v4695_v11 }
 0x67f   : > { %v4464_v62 = vsub.f32 %v11758_v41, %v4432_v42 }
 0x680   : > { %v4527_v52 = vmul.f32 %v11975_v7, %v11975_v7  ;;  %4990 = vmatmul.mubr.bf16.vlgmr.msra.gmra.mrb[240].mxu1 %v4727_v48  ;;  %5183 = vmatmul.mubr.bf16.vlgmr.msra.gmra.mrb[240].mxu0 %v4727_v48 }
 0x681   : > { %v11981_v19 = vmul.f32 %v14508_v1, %v4464_v62  ;;  %4999 = vmatprep.mubr.bf16.mxu1 %v14530_v25  ;;  %5192 = vmatprep.mubr.bf16.mxu0 %v14530_v25 }
 0x682   : > { %v4544_v14 = vpop.xlane.xlu0 %4543  ;;  %4583 = vadd.xlane.f32.xlu0 %v4527_v52 }
 0x683   : > { %v4603_v45 = vmul.f32 0.007936508, %v4544_v14  ;;  %v4528_v26 = vmul.f32 %v11981_v19, %v11981_v19 }
 0x684   : > { %v4546_v51 = vpop.xlane.xlu1 %4545  ;;  %v8740_v23 = vpop.eup %8739 }
 0x685   : > { %v4604_v42 = vmul.f32 0.007936508, %v4546_v51  ;;  %v4635_v30 = vadd.f32 1e-05, %v4603_v45  ;;  %4585 = vadd.xlane.f32.xlu1 %v4528_v26  ;;  %v4697_v62 = vmul.f32 %v8740_v23, %v11741_v40 }
 0x686   : > { %v4396_v48 = vpop.xlane.xlu0 %4395 }
 0x687   : > { %v4636_v24 = vadd.f32 1e-05, %v4604_v42  ;;  %v8742_v11 = vpop.eup %8741  ;;  %8743 = vrsqrt.f32 %v4635_v30  ;;  %v4433_v53 = vmul.f32 0.007936508, %v4396_v48 }
 0x688   : > { %v4398_v58 = vpop.xlane.xlu1 %4397  ;;  %v4698_v52 = vmul.f32 %v8742_v11, %v11747_v17 }
 0x689   : > { %8745 = vrsqrt.f32 %v4636_v24  ;;  %v4434_v0 = vmul.f32 0.007936508, %v4398_v58  ;;  %v4465_v14 = vsub.f32 %v11775_v43, %v4433_v53 }
 0x68a   : > { %v4728_v51 = vpack.c.bf16 %v4698_v52, %v4697_v62 }
 0x68b   : > { %v4466_v41 = vsub.f32 %v11789_v57, %v4434_v0  ;;  %v11992_v45 = vmul.f32 %v14508_v1, %v4465_v14 }
 0x68c   : > { %v4548_v26 = vpop.xlane.xlu0 %4547  ;;  %5000 = vmatmul.mubr.bf16.gmra.mrb[244].mxu1 %v4728_v51  ;;  %5193 = vmatmul.mubr.bf16.gmra.mrb[244].mxu0 %v4728_v51 }
 0x68d   : > { %v11995_v42 = vmul.f32 %v14508_v1, %v4466_v41  ;;  %v4605_v30 = vmul.f32 0.007936508, %v4548_v26  ;;  %v4529_v40 = vmul.f32 %v11992_v45, %v11992_v45  ;;  %5009 = vmatprep.mubr.bf16.mxu1 %v14530_v25  ;;  %5202 = vmatprep.mubr.bf16.mxu0 %v14530_v25 }
 0x68f   : > { %v4637_v17 = vadd.f32 1e-05, %v4605_v30  ;;  %v4530_v23 = vmul.f32 %v11995_v42, %v11995_v42  ;;  %4587 = vadd.xlane.f32.xlu0 %v4529_v40 }
 0x690   : > { %v4400_v24 = vpop.xlane.xlu0 %4399  ;;  %v4550_v48 = vpop.xlane.xlu1 %4549 }
 0x691   : > { %v4435_v11 = vmul.f32 0.007936508, %v4400_v24  ;;  %4589 = vadd.xlane.f32.xlu1 %v4530_v23  ;;  %v8744_v41 = vpop.eup %8743  ;;  %v4606_v53 = vmul.f32 0.007936508, %v4550_v48  ;;  %8747 = vrsqrt.f32 %v4637_v17 }
 0x692   : > { %v4699_v52 = vmul.f32 %v8744_v41, %v11764_v10 }
 0x693   : > { %v8746_v58 = vpop.eup %8745  ;;  %v4467_v0 = vsub.f32 %v11828_v16, %v4435_v11  ;;  %v4638_v62 = vadd.f32 1e-05, %v4606_v53 }
 0x694   : > { %v4700_v14 = vmul.f32 %v8746_v58, %v11767_v12  ;;  %v4402_v26 = vpop.xlane.xlu1 %4401 }
 0x695   : > { %v12007_v51 = vmul.f32 %v14508_v1, %v4467_v0  ;;  %8749 = vrsqrt.f32 %v4638_v62  ;;  %v4436_v30 = vmul.f32 0.007936508, %v4402_v26 }
 0x696   : > { %v4729_v40 = vpack.c.bf16 %v4700_v14, %v4699_v52 }
 0x697   : > { %v4531_v23 = vmul.f32 %v12007_v51, %v12007_v51  ;;  %v4468_v24 = vsub.f32 %v11851_v54, %v4436_v30  ;;  %v4552_v17 = vpop.xlane.xlu0 %4551 }
 0x698   : > { %5010 = vmatmul.mubr.bf16.gmra.mrb[248].mxu1 %v4729_v40  ;;  %5203 = vmatmul.mubr.bf16.gmra.mrb[248].mxu0 %v4729_v40  ;;  %v4607_v48 = vmul.f32 0.007936508, %v4552_v17 }
 0x699   : > { %4591 = vadd.xlane.f32.xlu0 %v4531_v23  ;;  %5019 = vmatprep.mubr.bf16.mxu1 %v14530_v25  ;;  %v12014_v10 = vmul.f32 %v14508_v1, %v4468_v24 }
 0x69a   : > { %5212 = vmatprep.mubr.bf16.mxu0 %v14530_v25  ;;  %v4639_v12 = vadd.f32 1e-05, %v4607_v48 }
 0x69b   : > { %v4404_v41 = vpop.xlane.xlu0 %4403  ;;  %v4532_v53 = vmul.f32 %v12014_v10, %v12014_v10  ;;  %v8748_v58 = vpop.eup %8747 }
 0x69c   : > { %v4554_v11 = vpop.xlane.xlu1 %4553  ;;  %v4437_v62 = vmul.f32 0.007936508, %v4404_v41  ;;  %8751 = vrsqrt.f32 %v4639_v12  ;;  %v4701_v40 = vmul.f32 %v8748_v58, %v11796_v56 }
 0x69d   : > { %v4608_v0 = vmul.f32 0.007936508, %v4554_v11  ;;  %4593 = vadd.xlane.f32.xlu1 %v4532_v53 }
 0x69e   : > { %v4469_v14 = vsub.f32 %v11879_v49, %v4437_v62 }
 0x69f   : > { %v4640_v52 = vadd.f32 1e-05, %v4608_v0  ;;  %v8750_v26 = vpop.eup %8749 }
 0x6a0   : > { %v4406_v30 = vpop.xlane.xlu1 %4405  ;;  %v12022_v23 = vmul.f32 %v14508_v1, %v4469_v14  ;;  %v4702_v17 = vmul.f32 %v8750_v26, %v11821_v37 }
 0x6a1   : > { %8753 = vrsqrt.f32 %v4640_v52  ;;  %v4438_v24 = vmul.f32 0.007936508, %v4406_v30 }
 0x6a2   : > { %v4533_v11 = vmul.f32 %v12022_v23, %v12022_v23  ;;  %v4730_v12 = vpack.c.bf16 %v4702_v17, %v4701_v40 }
 0x6a3   : > { %v4470_v48 = vsub.f32 %v11885_v63, %v4438_v24 }
 0x6a4   : > { %v4556_v41 = vpop.xlane.xlu0 %4555  ;;  %4595 = vadd.xlane.f32.xlu0 %v4533_v11  ;;  %5020 = vmatmul.mubr.bf16.gmra.mrb[252].mxu1 %v4730_v12 }
 0x6a5   : > { %v12029_v53 = vmul.f32 %v14508_v1, %v4470_v48  ;;  %v4609_v0 = vmul.f32 0.007936508, %v4556_v41  ;;  %5213 = vmatmul.mubr.bf16.gmra.mrb[252].mxu0 %v4730_v12  ;;  %5029 = vmatprep.mubr.bf16.mxu1 %v14530_v25 }
 0x6a6   : > { %5222 = vmatprep.mubr.bf16.mxu0 %v14530_v25  ;;  %v8752_v58 = vpop.eup %8751 }
 0x6a7   : > { %v4534_v56 = vmul.f32 %v12029_v53, %v12029_v53  ;;  %v4641_v37 = vadd.f32 1e-05, %v4609_v0  ;;  %v4703_v1 = vmul.f32 %v8752_v58, %v11854_v5 }
 0x6a9   : > { %v4558_v62 = vpop.xlane.xlu1 %4557  ;;  %4597 = vadd.xlane.f32.xlu1 %v4534_v56  ;;  %8755 = vrsqrt.f32 %v4641_v37 }
 0x6aa   : > { %v4610_v52 = vmul.f32 0.007936508, %v4558_v62 }
 0x6ab   : > { %v8754_v14 = vpop.eup %8753 }
 0x6ac   : > { %v4704_v26 = vmul.f32 %v8754_v14, %v11873_v46  ;;  %v4642_v30 = vadd.f32 1e-05, %v4610_v52 }
 0x6ae   : > { %v4731_v40 = vpack.c.bf16 %v4704_v26, %v4703_v1  ;;  %8757 = vrsqrt.f32 %v4642_v30 }
 0x6af   : > { %v4560_v24 = vpop.xlane.xlu0 %4559 }
 0x6b0   : > { %v4611_v17 = vmul.f32 0.007936508, %v4560_v24  ;;  %5030 = vmatmul.mubr.bf16.gmra.mrb[0].mxu1 %v4731_v40  ;;  %5223 = vmatmul.mubr.bf16.gmra.mrb[0].mxu0 %v4731_v40 }
 0x6b1   : > { %5039 = vmatprep.mubr.bf16.mxu1 %v14530_v25  ;;  %5232 = vmatprep.mubr.bf16.mxu0 %v14530_v25 }
 0x6b2   : > { %v4643_v48 = vadd.f32 1e-05, %v4611_v17 }
 0x6b3   : > { %v8756_v41 = vpop.eup %8755 }
 0x6b4   : > { %v4562_v11 = vpop.xlane.xlu1 %4561  ;;  %8759 = vrsqrt.f32 %v4643_v48  ;;  %v4705_v46 = vmul.f32 %v8756_v41, %v11888_v13  ;;  %v8386_v41 = vld [vmem:[%s14146_s9 + $0x80] sm:$0xff]  }
 0x6b5   : > { %v4612_v12 = vmul.f32 0.007936508, %v4562_v11  ;;  %v8383_v11 = vld [vmem:[%s14146_s9 + $0x40] sm:$0xff]  }
 0x6b6   : > { %7693 = vmatprep.subr.bf16.mxu1 %v8383_v11 }
 0x6b7   : > { %v4644_v5 = vadd.f32 1e-05, %v4612_v12  ;;  %v8384_v12 = vld [vmem:[%s14146_s9] sm:$0xff]  }
 0x6b8   : > { %v8758_v0 = vpop.eup %8757  ;;  %7694 = vmatpush3.bf16.msra.mxu1 %v8384_v12 }
 0x6b9   : > { %v4706_v56 = vmul.f32 %v8758_v0, %v11895_v9  ;;  %8761 = vrsqrt.f32 %v4644_v5  ;;  %v4564_v37 = vpop.xlane.xlu0 %4563  ;;  %v8387_v5 = vld [vmem:[%s14146_s9 + $0x48] sm:$0xff]  }
 0x6ba   : > { %v4613_v62 = vmul.f32 0.007936508, %v4564_v37  ;;  %7695 = vmatprep.subr.bf16.mxu1 %v8387_v5 }
 0x6bb   : > { %v4732_v58 = vpack.c.bf16 %v4706_v56, %v4705_v46  ;;  %v8388_v46 = vld [vmem:[%s14146_s9 + $0x8] sm:$0xff]  }
 0x6bc   : > { %v4645_v52 = vadd.f32 1e-05, %v4613_v62  ;;  %v8389_v56 = vld [vmem:[%s14146_s9 + $0xc8] sm:$0xff]   ;;  %7696 = vmatpush3.bf16.msra.mxu1 %v8388_v46 }
 0x6bd   : > { %5040 = vmatmul.mubr.bf16.gmra.mrb[4].mxu1 %v4732_v58  ;;  %5233 = vmatmul.mubr.bf16.gmra.mrb[4].mxu0 %v4732_v58  ;;  %v8390_v62 = vld [vmem:[%s14146_s9 + $0x88] sm:$0xff]  }
 0x6be   : > { %5049 = vmatprep.mubr.bf16.mxu1 %v14530_v25  ;;  %5242 = vmatprep.mubr.bf16.mxu0 %v14530_v25  ;;  %v8760_v1 = vpop.eup %8759  ;;  %8763 = vrsqrt.f32 %v4645_v52 }
 0x6bf   : > { %v4707_v13 = vmul.f32 %v8760_v1, %v11901_v27 }
 0x6c0   : > { %v4566_v14 = vpop.xlane.xlu1 %4565 }
 0x6c1   : > { %v4614_v26 = vmul.f32 0.007936508, %v4566_v14 }
 0x6c3   : > { %v8762_v30 = vpop.eup %8761  ;;  %v4646_v40 = vadd.f32 1e-05, %v4614_v26 }
 0x6c4   : > { %v4708_v9 = vmul.f32 %v8762_v30, %v11907_v50  ;;  %v8385_v50 = vld [vmem:[%s14146_s9 + $0xc0] sm:$0xff]  }
 0x6c5   : > { %8765 = vrsqrt.f32 %v4646_v40  ;;  %7805 = vmatprep.subr.bf16.mxu0 %v8385_v50 }
 0x6c6   : > { %v4733_v24 = vpack.c.bf16 %v4708_v9, %v4707_v13  ;;  %v4568_v17 = vpop.xlane.xlu0 %4567  ;;  %7806 = vmatpush3.bf16.msra.mxu0 %v8386_v41 }
 0x6c7   : > { %v4615_v48 = vmul.f32 0.007936508, %v4568_v17  ;;  %7807 = vmatprep.subr.bf16.mxu0 %v8389_v56 }
 0x6c8   : > { %5050 = vmatmul.mubr.bf16.gmra.mrb[8].mxu1 %v4733_v24  ;;  %5243 = vmatmul.mubr.bf16.gmra.mrb[8].mxu0 %v4733_v24  ;;  %v8764_v58 = vpop.eup %8763 }
 0x6c9   : > { %5059 = vmatprep.mubr.bf16.mxu1 %v14530_v25  ;;  %5252 = vmatprep.mubr.bf16.mxu0 %v14530_v25  ;;  %v4647_v27 = vadd.f32 1e-05, %v4615_v48  ;;  %v4709_v1 = vmul.f32 %v8764_v58, %v11913_v31 }
 0x6ca   : > { %7808 = vmatpush3.bf16.msra.mxu0 %v8390_v62 }
 0x6cb   : > { %v4570_v0 = vpop.xlane.xlu1 %4569  ;;  %8767 = vrsqrt.f32 %v4647_v27 }
 0x6cc   : > { %v4616_v37 = vmul.f32 0.007936508, %v4570_v0 }
 0x6ce   : > { %v4648_v52 = vadd.f32 1e-05, %v4616_v37 }
 0x6cf   : > { %v8766_v14 = vpop.eup %8765 }
 0x6d0   : > { %v4710_v26 = vmul.f32 %v8766_v14, %v11919_v38  ;;  %8769 = vrsqrt.f32 %v4648_v52 }
 0x6d2   : > { %v4734_v30 = vpack.c.bf16 %v4710_v26, %v4709_v1 }
 0x6d3   : > { %v4572_v40 = vpop.xlane.xlu0 %4571 }
 0x6d4   : > { %v4617_v13 = vmul.f32 0.007936508, %v4572_v40  ;;  %5060 = vmatmul.mubr.bf16.gmra.mrb[12].mxu1 %v4734_v30  ;;  %5253 = vmatmul.mubr.bf16.gmra.mrb[12].mxu0 %v4734_v30 }
 0x6d5   : > { %5069 = vmatprep.mubr.bf16.mxu1 %v14530_v25  ;;  %5262 = vmatprep.mubr.bf16.mxu0 %v14530_v25  ;;  %v8768_v48 = vpop.eup %8767 }
 0x6d6   : > { %v4649_v9 = vadd.f32 1e-05, %v4617_v13  ;;  %v4574_v24 = vpop.xlane.xlu1 %4573  ;;  %v4711_v38 = vmul.f32 %v8768_v48, %v11925_v6  ;;  %v8396_v48 = vld [vmem:[%s14146_s9 + $0xd8] sm:$0xff]  }
 0x6d7   : > { %v4618_v17 = vmul.f32 0.007936508, %v4574_v24 }
 0x6d8   : > { %8771 = vrsqrt.f32 %v4649_v9 }
 0x6d9   : > { %v4650_v11 = vadd.f32 1e-05, %v4618_v17  ;;  %v8395_v17 = vld [vmem:[%s14146_s9 + $0x58] sm:$0xff]  }
 0x6da   : > { %v8770_v31 = vpop.eup %8769 }
 0x6db   : > { %v4712_v12 = vmul.f32 %v8770_v31, %v11931_v33  ;;  %8773 = vrsqrt.f32 %v4650_v11  ;;  %v8397_v31 = vld [vmem:[%s14146_s9 + $0x18] sm:$0xff]  }
 0x6dd   : > { %v4735_v27 = vpack.c.bf16 %v4712_v12, %v4711_v38  ;;  %v8398_v38 = vld [vmem:[%s14146_s9 + $0x98] sm:$0xff]  }
 0x6de   : > { %v4576_v50 = vpop.xlane.xlu0 %4575 }
 0x6df   : > { %v4619_v41 = vmul.f32 0.007936508, %v4576_v50  ;;  %5070 = vmatmul.mubr.bf16.gmra.mrb[16].mxu1 %v4735_v27  ;;  %5263 = vmatmul.mubr.bf16.gmra.mrb[16].mxu0 %v4735_v27  ;;  %v8399_v27 = vld [vmem:[%s14146_s9 + $0x60] sm:$0xff]  }
 0x6e0   : > { %5079 = vmatprep.mubr.bf16.mxu1 %v14530_v25  ;;  %5272 = vmatprep.mubr.bf16.mxu0 %v14530_v25  ;;  %v8400_v50 = vld [vmem:[%s14146_s9 + $0xe0] sm:$0xff]  }
 0x6e1   : > { %v4651_v5 = vadd.f32 1e-05, %v4619_v41  ;;  %v4578_v0 = vpop.xlane.xlu1 %4577  ;;  %v8401_v41 = vld [vmem:[%s14146_s9 + $0x20] sm:$0xff]  }
 0x6e2   : > { %v4620_v46 = vmul.f32 0.007936508, %v4578_v0  ;;  %v8772_v56 = vpop.eup %8771  ;;  %v8403_v0 = vld [vmem:[%s14146_s9 + $0x68] sm:$0xff]  }
 0x6e3   : > { %8775 = vrsqrt.f32 %v4651_v5  ;;  %v4713_v6 = vmul.f32 %v8772_v56, %v11937_v35  ;;  %v8391_v35 = vld [vmem:[%s14146_s9 + $0x50] sm:$0xff]   ;;  %v8402_v5 = vld [vmem:[%s14146_s9 + $0xa0] sm:$0xff]  }
 0x6e4   : > { %v4652_v37 = vadd.f32 1e-05, %v4620_v46  ;;  %7697 = vmatprep.subr.bf16.mxu1 %v8391_v35  ;;  %v8404_v46 = vld [vmem:[%s14146_s9 + $0xe8] sm:$0xff]   ;;  %v8410_v35 = vld [vmem:[%s14146_s9 + $0xb0] sm:$0xff]  }
 0x6e5   : > { %v8774_v58 = vpop.eup %8773 }
 0x6e6   : > { %v4714_v33 = vmul.f32 %v8774_v58, %v11943_v3  ;;  %8777 = vrsqrt.f32 %v4652_v37  ;;  %v8392_v3 = vld [vmem:[%s14146_s9 + $0x10] sm:$0xff]   ;;  %v8405_v37 = vld [vmem:[%s14146_s9 + $0x28] sm:$0xff]  }
 0x6e7   : > { %7698 = vmatpush3.bf16.msra.mxu1 %v8392_v3  ;;  %v8406_v58 = vld [vmem:[%s14146_s9 + $0xa8] sm:$0xff]  }
 0x6e8   : > { %v4736_v62 = vpack.c.bf16 %v4714_v33, %v4713_v6  ;;  %7699 = vmatprep.subr.bf16.mxu1 %v8395_v17  ;;  %v8414_v17 = vld [vmem:[%s14146_s9 + $0xb8] sm:$0xff]  }
 0x6ea   : > { %5080 = vmatmul.mubr.bf16.gmra.mrb[20].mxu1 %v4736_v62  ;;  %5273 = vmatmul.mubr.bf16.gmra.mrb[20].mxu0 %v4736_v62 }
 0x6eb   : > { %5089 = vmatprep.mubr.bf16.mxu1 %v14530_v25  ;;  %5282 = vmatprep.mubr.bf16.mxu0 %v14530_v25 }
 0x6ec   : > { %7700 = vmatpush3.bf16.msra.mxu1 %v8397_v31 }
 0x6ed   : > { %v8776_v52 = vpop.eup %8775  ;;  %7701 = vmatprep.subr.bf16.mxu1 %v8399_v27 }
 0x6ee   : > { %v4715_v1 = vmul.f32 %v8776_v52, %v11949_v36  ;;  %v8393_v36 = vld [vmem:[%s14146_s9 + $0xd0] sm:$0xff]  }
 0x6ef   : > { %7809 = vmatprep.subr.bf16.mxu0 %v8393_v36  ;;  %v8407_v52 = vld [vmem:[%s14146_s9 + $0x70] sm:$0xff]  }
 0x6f0   : > { %v8778_v14 = vpop.eup %8777  ;;  %7702 = vmatpush3.bf16.msra.mxu1 %v8401_v41 }
 0x6f1   : > { %v4716_v26 = vmul.f32 %v8778_v14, %v11955_v4  ;;  %v8394_v4 = vld [vmem:[%s14146_s9 + $0x90] sm:$0xff]   ;;  %7703 = vmatprep.subr.bf16.mxu1 %v8403_v0 }
 0x6f2   : > { %7810 = vmatpush3.bf16.msra.mxu0 %v8394_v4  ;;  %v8408_v14 = vld [vmem:[%s14146_s9 + $0xf0] sm:$0xff]  }
 0x6f3   : > { %v4737_v30 = vpack.c.bf16 %v4716_v26, %v4715_v1  ;;  %7811 = vmatprep.subr.bf16.mxu0 %v8396_v48 }
 0x6f4   : > { %7704 = vmatpush3.bf16.msra.mxu1 %v8405_v37 }
 0x6f5   : > { %5090 = vmatmul.mubr.bf16.gmra.mrb[24].mxu1 %v4737_v30  ;;  %5283 = vmatmul.mubr.bf16.gmra.mrb[24].mxu0 %v4737_v30  ;;  %v8409_v30 = vld [vmem:[%s14146_s9 + $0x30] sm:$0xff]  }
 0x6f6   : > { %5099 = vmatprep.mubr.bf16.mxu1 %v14530_v25  ;;  %5292 = vmatprep.mubr.bf16.mxu0 %v14530_v25 }
 0x6f7   : > { %7812 = vmatpush3.bf16.msra.mxu0 %v8398_v38  ;;  %7705 = vmatprep.subr.bf16.mxu1 %v8407_v52 }
 0x6f8   : > { %7813 = vmatprep.subr.bf16.mxu0 %v8400_v50  ;;  %7706 = vmatpush3.bf16.msra.mxu1 %v8409_v30 }
 0x6fb   : > { %7814 = vmatpush3.bf16.msra.mxu0 %v8402_v5 }
 0x6fc   : > { %7815 = vmatprep.subr.bf16.mxu0 %v8404_v46 }
 0x6ff   : > { %7816 = vmatpush3.bf16.msra.mxu0 %v8406_v58 }
 0x700   : > { %7817 = vmatprep.subr.bf16.mxu0 %v8408_v14 }
 0x701   : > { %v4580_v40 = vpop.xlane.xlu0 %4579 }
 0x702   : > { %v4621_v13 = vmul.f32 0.007936508, %v4580_v40 }
 0x703   : > { %7818 = vmatpush3.bf16.msra.mxu0 %v8410_v35 }
 0x704   : > { %v4653_v9 = vadd.f32 1e-05, %v4621_v13  ;;  %v8411_v13 = vld [vmem:[%s14146_s9 + $0x78] sm:$0xff]  }
 0x705   : > { %7707 = vmatprep.subr.bf16.mxu1 %v8411_v13 }
 0x706   : > { %v4582_v24 = vpop.xlane.xlu1 %4581  ;;  %8779 = vrsqrt.f32 %v4653_v9  ;;  %v8412_v9 = vld [vmem:[%s14146_s9 + $0xf8] sm:$0xff]  }
 0x707   : > { %v4622_v11 = vmul.f32 0.007936508, %v4582_v24  ;;  %v8413_v24 = vld [vmem:[%s14146_s9 + $0x38] sm:$0xff]   ;;  %7819 = vmatprep.subr.bf16.mxu0 %v8412_v9 }
 0x708   : > { %7708 = vmatpush3.bf16.msra.mxu1 %v8413_v24  ;;  %7820 = vmatpush3.bf16.msra.mxu0 %v8414_v17 }
 0x709   : > { %v4654_v12 = vadd.f32 1e-05, %v4622_v11 }
 0x70b   : > { %8781 = vrsqrt.f32 %v4654_v12 }
 0x70f   : > { %v4584_v56 = vpop.xlane.xlu0 %4583 }
 0x710   : > { %v4623_v6 = vmul.f32 0.007936508, %v4584_v56  ;;  %v8780_v1 = vpop.eup %8779 }
 0x711   : > { %v4717_v4 = vmul.f32 %v8780_v1, %v11961_v39 }
 0x712   : > { %v4655_v33 = vadd.f32 1e-05, %v4623_v6  ;;  %v4586_v62 = vpop.xlane.xlu1 %4585 }
 0x713   : > { %v4624_v26 = vmul.f32 0.007936508, %v4586_v62 }
 0x714   : > { %8783 = vrsqrt.f32 %v4655_v33 }
 0x715   : > { %v8782_v3 = vpop.eup %8781  ;;  %v4656_v36 = vadd.f32 1e-05, %v4624_v26 }
 0x716   : > { %v4718_v40 = vmul.f32 %v8782_v3, %v11967_v44 }
 0x717   : > { %8785 = vrsqrt.f32 %v4656_v36 }
 0x718   : > { %v4738_v39 = vpack.c.bf16 %v4718_v40, %v4717_v4 }
 0x71a   : > { %5100 = vmatmul.mubr.bf16.gmra.mrb[28].mxu1 %v4738_v39  ;;  %5293 = vmatmul.mubr.bf16.gmra.mrb[28].mxu0 %v4738_v39 }
 0x71b   : > { %5109 = vmatprep.mubr.bf16.mxu1 %v14530_v25  ;;  %5302 = vmatprep.mubr.bf16.mxu0 %v14530_v25 }
 0x71c   : > { %v4588_v44 = vpop.xlane.xlu0 %4587 }
 0x71d   : > { %v4625_v48 = vmul.f32 0.007936508, %v4588_v44 }
 0x71e   : > { %v4590_v11 = vpop.xlane.xlu1 %4589  ;;  %v8784_v38 = vpop.eup %8783 }
 0x71f   : > { %v4626_v31 = vmul.f32 0.007936508, %v4590_v11  ;;  %v4657_v12 = vadd.f32 1e-05, %v4625_v48  ;;  %v4719_v41 = vmul.f32 %v8784_v38, %v11975_v7 }
 0x721   : > { %v4658_v27 = vadd.f32 1e-05, %v4626_v31  ;;  %v8786_v50 = vpop.eup %8785  ;;  %8787 = vrsqrt.f32 %v4657_v12 }
 0x722   : > { %v4720_v5 = vmul.f32 %v8786_v50, %v11981_v19 }
 0x723   : > { %8789 = vrsqrt.f32 %v4658_v27 }
 0x724   : > { %v4739_v0 = vpack.c.bf16 %v4720_v5, %v4719_v41 }
 0x726   : > { %v4592_v46 = vpop.xlane.xlu0 %4591  ;;  %5110 = vmatmul.mubr.bf16.gmra.mrb[32].mxu1 %v4739_v0  ;;  %5303 = vmatmul.mubr.bf16.gmra.mrb[32].mxu0 %v4739_v0 }
 0x727   : > { %v4627_v56 = vmul.f32 0.007936508, %v4592_v46  ;;  %5119 = vmatprep.mubr.bf16.mxu1 %v14530_v25  ;;  %5312 = vmatprep.mubr.bf16.mxu0 %v14530_v25 }
 0x729   : > { %v4659_v37 = vadd.f32 1e-05, %v4627_v56 }
 0x72a   : > { %v4594_v58 = vpop.xlane.xlu1 %4593 }
 0x72b   : > { %v8788_v6 = vpop.eup %8787  ;;  %v4628_v33 = vmul.f32 0.007936508, %v4594_v58  ;;  %8791 = vrsqrt.f32 %v4659_v37 }
 0x72c   : > { %v4721_v52 = vmul.f32 %v8788_v6, %v11992_v45 }
 0x72d   : > { %v8790_v62 = vpop.eup %8789  ;;  %v4660_v19 = vadd.f32 1e-05, %v4628_v33 }
 0x72e   : > { %v4722_v7 = vmul.f32 %v8790_v62, %v11995_v42 }
 0x72f   : > { %8793 = vrsqrt.f32 %v4660_v19 }
 0x730   : > { %v4740_v14 = vpack.c.bf16 %v4722_v7, %v4721_v52 }
 0x731   : > { %v4596_v1 = vpop.xlane.xlu0 %4595 }
 0x732   : > { %5120 = vmatmul.mubr.bf16.gmra.mrb[36].mxu1 %v4740_v14  ;;  %5313 = vmatmul.mubr.bf16.gmra.mrb[36].mxu0 %v4740_v14  ;;  %v4629_v26 = vmul.f32 0.007936508, %v4596_v1 }
 0x733   : > { %5129 = vmatprep.mubr.bf16.mxu1 %v14530_v25  ;;  %5322 = vmatprep.mubr.bf16.mxu0 %v14530_v25 }
 0x734   : > { %v4661_v30 = vadd.f32 1e-05, %v4629_v26 }
 0x735   : > { %v8792_v36 = vpop.eup %8791 }
 0x736   : > { %v4598_v35 = vpop.xlane.xlu1 %4597  ;;  %8795 = vrsqrt.f32 %v4661_v30  ;;  %v4723_v42 = vmul.f32 %v8792_v36, %v12007_v51  ;;  %v4775_v51 = vld [vmem:[%s14145_s8] sm:$0xf] }
 0x737   : > { %v4630_v3 = vmul.f32 0.007936508, %v4598_v35 }
 0x739   : > { %v4662_v45 = vadd.f32 1e-05, %v4630_v3  ;;  %v8794_v4 = vpop.eup %8793 }
 0x73a   : > { %v4724_v40 = vmul.f32 %v8794_v4, %v12014_v10  ;;  %v14531_v10 = vld [vmem:[#allocation3_spill] sm:$0xff] }
 0x73b   : > { %8797 = vrsqrt.f32 %v4662_v45  ;;  %v4791_v48 = vsub.s32 3, %v14531_v10  ;;  %v14532_v11 = vsub.s32 0, %v14531_v10 }
 0x73c   : > { %v4741_v13 = vpack.c.bf16 %v4724_v40, %v4723_v42 }
 0x73d   : > { %v12183_v31 = vrot.slane %v4775_v51, %v14532_v11  ;;  %v12193_v12 = vrot.slane %v4775_v51, %v4791_v48 }
 0x73e   : > { %5130 = vmatmul.mubr.bf16.gmra.mrb[40].mxu1 %v4741_v13  ;;  %5323 = vmatmul.mubr.bf16.gmra.mrb[40].mxu0 %v4741_v13 }
 0x73f   : > { %5139 = vmatprep.mubr.bf16.mxu1 %v14530_v25  ;;  %5332 = vmatprep.mubr.bf16.mxu0 %v14530_v25  ;;  %14533 = vst [vmem:[#allocation13_spill] sm:$0xff] %v12183_v31  ;;  %v14534_v25 = vsub.s32 2, %v14531_v10 }
 0x740   : > { %v8796_v9 = vpop.eup %8795 }
 0x741   : > { %v4725_v17 = vmul.f32 %v8796_v9, %v12022_v23  ;;  %v12187_v38 = vrot.slane %v4775_v51, %v14534_v25  ;;  %v14536_v23 = vsub.s32 1, %v14531_v10 }
 0x743   : > { %14535 = vst [vmem:[#allocation46_spill] sm:$0xff] %v12187_v38 }
 0x745   : > { %v8798_v24 = vpop.eup %8797 }
 0x746   : > { %v4726_v39 = vmul.f32 %v8798_v24, %v12029_v53  ;;  %v12191_v53 = vrot.slane %v4775_v51, %v14536_v23 }
 0x748   : > { %v4742_v44 = vpack.c.bf16 %v4726_v39, %v4725_v17 }
 0x74a   : > { %5140 = vmatmul.mubr.bf16.gmra.mrb[44].mxu1 %v4742_v44  ;;  %5333 = vmatmul.mubr.bf16.gmra.mrb[44].mxu0 %v4742_v44 }
 0x753   : > { %v4991_v27 = vpop.f32.mrb[240].mxu1  ;;  %v5184_v50 = vpop.f32.mrb[240].mxu0 }
 0x754   : > { %v12196_v41 = vadd.f32 %v4991_v27, %v12183_v31  ;;  %v12199_v5 = vadd.f32 %v5184_v50, %v12187_v38  ;;  %v4993_v0 = vpop.f32.mrb[241].mxu1  ;;  %v5186_v46 = vpop.f32.mrb[241].mxu0 }
 0x755   : > { %v12202_v56 = vadd.f32 %v4993_v0, %v12191_v53  ;;  %v12205_v37 = vadd.f32 %v5186_v46, %v12193_v12  ;;  %v4995_v58 = vpop.f32.mrb[242].mxu1  ;;  %v5188_v6 = vpop.f32.mrb[242].mxu0 }
 0x756   : > { %v5343_v33 = vmul.f32 %v12196_v41, %v12196_v41  ;;  %v5345_v62 = vmul.f32 %v12199_v5, %v12199_v5  ;;  %v12212_v52 = vadd.f32 %v4995_v58, %v12183_v31  ;;  %v12215_v7 = vadd.f32 %v5188_v6, %v12187_v38  ;;  %v4997_v19 = vpop.f32.mrb[243].mxu1  ;;  %v5190_v14 = vpop.f32.mrb[243].mxu0 }
 0x757   : > { %v5344_v1 = vmul.f32 %v12202_v56, %v12202_v56  ;;  %v5346_v26 = vmul.f32 %v12205_v37, %v12205_v37  ;;  %v12222_v30 = vadd.f32 %v4997_v19, %v12191_v53  ;;  %v12225_v35 = vadd.f32 %v5190_v14, %v12193_v12 }
 0x758   : > { %v5471_v3 = vmul.f32 %v5343_v33, %v12196_v41  ;;  %v5473_v36 = vmul.f32 %v5345_v62, %v12199_v5  ;;  %v5347_v45 = vmul.f32 %v12212_v52, %v12212_v52  ;;  %v5349_v4 = vmul.f32 %v12215_v7, %v12215_v7 }
 0x759   : > { %v5472_v42 = vmul.f32 %v5344_v1, %v12202_v56  ;;  %v5474_v40 = vmul.f32 %v5346_v26, %v12205_v37  ;;  %v5348_v13 = vmul.f32 %v12222_v30, %v12222_v30  ;;  %v5350_v9 = vmul.f32 %v12225_v35, %v12225_v35 }
 0x75a   : > { %v5599_v24 = vmul.f32 0.044715, %v5471_v3  ;;  %v5601_v17 = vmul.f32 0.044715, %v5473_v36  ;;  %v5475_v39 = vmul.f32 %v5347_v45, %v12212_v52  ;;  %v5477_v44 = vmul.f32 %v5349_v4, %v12215_v7 }
 0x75b   : > { %v5600_v51 = vmul.f32 0.044715, %v5472_v42  ;;  %v5602_v10 = vmul.f32 0.044715, %v5474_v40  ;;  %v5476_v48 = vmul.f32 %v5348_v13, %v12222_v30  ;;  %v5478_v11 = vmul.f32 %v5350_v9, %v12225_v35 }
 0x75c   : > { %v5727_v25 = vadd.f32 %v5599_v24, %v12196_v41  ;;  %v5729_v23 = vadd.f32 %v5601_v17, %v12199_v5  ;;  %v5603_v27 = vmul.f32 0.044715, %v5475_v39  ;;  %v5605_v50 = vmul.f32 0.044715, %v5477_v44 }
 0x75d   : > { %v5728_v0 = vadd.f32 %v5600_v51, %v12202_v56  ;;  %v5730_v46 = vadd.f32 %v5602_v10, %v12205_v37  ;;  %v5604_v58 = vmul.f32 0.044715, %v5476_v48  ;;  %v5606_v6 = vmul.f32 0.044715, %v5478_v11 }
 0x75e   : > { %v5855_v33 = vmul.f32 0.7978846, %v5727_v25  ;;  %v5857_v62 = vmul.f32 0.7978846, %v5729_v23  ;;  %v5731_v19 = vadd.f32 %v5603_v27, %v12212_v52  ;;  %v5733_v14 = vadd.f32 %v5605_v50, %v12215_v7 }
 0x75f   : > { %v5856_v1 = vmul.f32 0.7978846, %v5728_v0  ;;  %v5858_v26 = vmul.f32 0.7978846, %v5730_v46  ;;  %v5732_v3 = vadd.f32 %v5604_v58, %v12222_v30  ;;  %v5734_v36 = vadd.f32 %v5606_v6, %v12225_v35  ;;  %v5001_v45 = vpop.f32.mrb[244].mxu1  ;;  %v5194_v4 = vpop.f32.mrb[244].mxu0 }
 0x760   : > { %8799 = vtanh.f32 %v5855_v33  ;;  %v5859_v42 = vmul.f32 0.7978846, %v5731_v19  ;;  %v5861_v40 = vmul.f32 0.7978846, %v5733_v14  ;;  %v12252_v13 = vadd.f32 %v5001_v45, %v12183_v31  ;;  %v5003_v9 = vpop.f32.mrb[245].mxu1  ;;  %v5196_v24 = vpop.f32.mrb[245].mxu0 }
 0x761   : > { %8801 = vtanh.f32 %v5857_v62  ;;  %v5860_v17 = vmul.f32 0.7978846, %v5732_v3  ;;  %v5862_v39 = vmul.f32 0.7978846, %v5734_v36  ;;  %v12255_v44 = vadd.f32 %v5194_v4, %v12187_v38  ;;  %v5005_v51 = vpop.f32.mrb[246].mxu1  ;;  %v5198_v10 = vpop.f32.mrb[246].mxu0 }
 0x762   : > { %8803 = vtanh.f32 %v5856_v1  ;;  %v5351_v48 = vmul.f32 %v12252_v13, %v12252_v13  ;;  %v12260_v11 = vadd.f32 %v5003_v9, %v12191_v53  ;;  %v12263_v25 = vadd.f32 %v5196_v24, %v12193_v12  ;;  %v5007_v23 = vpop.f32.mrb[247].mxu1  ;;  %v5200_v27 = vpop.f32.mrb[247].mxu0 }
 0x763   : > { %8805 = vtanh.f32 %v5858_v26  ;;  %v5353_v50 = vmul.f32 %v12255_v44, %v12255_v44  ;;  %v12268_v0 = vadd.f32 %v5005_v51, %v12183_v31  ;;  %v12271_v46 = vadd.f32 %v5198_v10, %v12187_v38 }
 0x764   : > { %14537 = vst [vmem:[#allocation48_spill] sm:$0xff] %v12260_v11  ;;  %14538 = vst [vmem:[#allocation17_spill] sm:$0xff] %v12263_v25  ;;  %8807 = vtanh.f32 %v5859_v42  ;;  %v5479_v58 = vmul.f32 %v5351_v48, %v12252_v13  ;;  %v5352_v6 = vmul.f32 %v12260_v11, %v12260_v11  ;;  %v5354_v33 = vmul.f32 %v12263_v25, %v12263_v25 }
 0x765   : > { %8809 = vtanh.f32 %v5861_v40  ;;  %v5481_v62 = vmul.f32 %v5353_v50, %v12255_v44  ;;  %v5355_v19 = vmul.f32 %v12268_v0, %v12268_v0  ;;  %v5357_v14 = vmul.f32 %v12271_v46, %v12271_v46 }
 0x766   : > { %8811 = vtanh.f32 %v5860_v17  ;;  %v5607_v1 = vmul.f32 0.044715, %v5479_v58  ;;  %v5480_v26 = vmul.f32 %v5352_v6, %v12260_v11  ;;  %v5482_v3 = vmul.f32 %v5354_v33, %v12263_v25 }
 0x767   : > { %8813 = vtanh.f32 %v5862_v39  ;;  %v5609_v36 = vmul.f32 0.044715, %v5481_v62  ;;  %v5483_v45 = vmul.f32 %v5355_v19, %v12268_v0  ;;  %v5485_v4 = vmul.f32 %v5357_v14, %v12271_v46 }
 0x768   : > { %v5735_v42 = vadd.f32 %v5607_v1, %v12252_v13  ;;  %v5608_v40 = vmul.f32 0.044715, %v5480_v26  ;;  %v5610_v9 = vmul.f32 0.044715, %v5482_v3  ;;  %v12289_v24 = vadd.f32 %v5007_v23, %v12191_v53 }
 0x769   : > { %v5737_v17 = vadd.f32 %v5609_v36, %v12255_v44  ;;  %v5611_v51 = vmul.f32 0.044715, %v5483_v45  ;;  %v5613_v10 = vmul.f32 0.044715, %v5485_v4  ;;  %v12293_v48 = vadd.f32 %v5200_v27, %v12193_v12 }
 0x76a   : > { %14539 = vst [vmem:[#allocation51_spill] sm:$0xff] %v12289_v24  ;;  %v8800_v39 = vpop.eup %8799  ;;  %v5863_v50 = vmul.f32 0.7978846, %v5735_v42  ;;  %v5736_v58 = vadd.f32 %v5608_v40, %v12260_v11  ;;  %v5738_v6 = vadd.f32 %v5610_v9, %v12263_v25  ;;  %v5356_v33 = vmul.f32 %v12289_v24, %v12289_v24 }
 0x76b   : > { %14540 = vst [vmem:[#allocation52_spill] sm:$0xff] %v12293_v48  ;;  %v5011_v62 = vpop.f32.mrb[248].mxu1  ;;  %v5204_v19 = vpop.f32.mrb[248].mxu0  ;;  %v6111_v14 = vadd.f32 1.0, %v8800_v39  ;;  %v5865_v1 = vmul.f32 0.7978846, %v5737_v17  ;;  %v5739_v26 = vadd.f32 %v5611_v51, %v12268_v0  ;;  %v5741_v3 = vadd.f32 %v5613_v10, %v12271_v46 }
 0x76c   : > { %v8802_v23 = vpop.eup %8801  ;;  %v5013_v27 = vpop.f32.mrb[249].mxu1  ;;  %8815 = vtanh.f32 %v5863_v50  ;;  %v5864_v42 = vmul.f32 0.7978846, %v5736_v58  ;;  %v5866_v40 = vmul.f32 0.7978846, %v5738_v6  ;;  %v5484_v10 = vmul.f32 %v5356_v33, %v12289_v24 }
 0x76d   : > { %v5206_v36 = vpop.f32.mrb[249].mxu0  ;;  %v12301_v45 = vpop.eup %8803  ;;  %v6113_v4 = vadd.f32 1.0, %v8802_v23  ;;  %v6239_v49 = vmul.f32 0.5, %v6111_v14  ;;  %8817 = vtanh.f32 %v5865_v1  ;;  %v5867_v54 = vmul.f32 0.7978846, %v5739_v26 }
 0x76e   : > { %v5015_v9 = vpop.f32.mrb[250].mxu1  ;;  %v12303_v63 = vpop.eup %8805  ;;  %v5869_v39 = vmul.f32 0.7978846, %v5741_v3  ;;  %8819 = vtanh.f32 %v5864_v42  ;;  %v5358_v23 = vmul.f32 %v12293_v48, %v12293_v48  ;;  %v12318_v26 = vadd.f32 %v5011_v62, %v12183_v31 }
 0x76f   : > { %v12305_v17 = vpop.f32.mrb[250].mxu0  ;;  %v8808_v51 = vpop.eup %8807  ;;  %v6241_v16 = vmul.f32 0.5, %v6113_v4  ;;  %v12315_v14 = vmul.f32 %v6239_v49, %v12196_v41  ;;  %8821 = vtanh.f32 %v5866_v40  ;;  %v5612_v42 = vmul.f32 0.044715, %v5484_v10 }
 0x770   : > { %v12310_v50 = vpop.f32.mrb[251].mxu1  ;;  %v12312_v58 = vpop.f32.mrb[251].mxu0  ;;  %v6115_v1 = vadd.f32 1.0, %v8808_v51  ;;  %8823 = vtanh.f32 %v5867_v54  ;;  %v5486_v49 = vmul.f32 %v5358_v23, %v12293_v48  ;;  %v5359_v41 = vmul.f32 %v12318_v26, %v12318_v26 }
 0x771   : > { %v8810_v6 = vpop.eup %8809  ;;  %v12323_v33 = vmul.f32 %v6241_v16, %v12199_v5  ;;  %8825 = vtanh.f32 %v5869_v39  ;;  %v5740_v62 = vadd.f32 %v5612_v42, %v12289_v24  ;;  %v12332_v51 = vadd.f32 %v5204_v19, %v12187_v38 }
 0x772   : > { %v12320_v3 = vpop.eup %8811  ;;  %v6117_v4 = vadd.f32 1.0, %v8810_v6  ;;  %v6243_v43 = vmul.f32 0.5, %v6115_v1  ;;  %v12335_v16 = vadd.f32 %v5013_v27, %v12191_v53  ;;  %v5614_v5 = vmul.f32 0.044715, %v5486_v49 }
 0x773   : > { %v12325_v57 = vpop.eup %8813  ;;  %v5487_v39 = vmul.f32 %v5359_v41, %v12318_v26  ;;  %v12342_v10 = vadd.f32 %v5206_v36, %v12193_v12  ;;  %v5868_v6 = vmul.f32 0.7978846, %v5740_v62  ;;  %v5361_v19 = vmul.f32 %v12332_v51, %v12332_v51 }
 0x774   : > { %v6245_v40 = vmul.f32 0.5, %v6117_v4  ;;  %14541 = vst [vmem:[#allocation23_spill] sm:$0xff] %v12335_v16  ;;  %v12338_v54 = vmul.f32 %v6243_v43, %v12212_v52  ;;  %v5360_v27 = vmul.f32 %v12335_v16, %v12335_v16  ;;  %v5742_v52 = vadd.f32 %v5614_v5, %v12293_v48 }
 0x775   : > { %14542 = vst [vmem:[#allocation53_spill] sm:$0xff] %v12342_v10  ;;  %v5615_v1 = vmul.f32 0.044715, %v5487_v39  ;;  %v5362_v36 = vmul.f32 %v12342_v10, %v12342_v10  ;;  %8827 = vtanh.f32 %v5868_v6  ;;  %v5489_v42 = vmul.f32 %v5361_v19, %v12332_v51 }
 0x776   : > { %v12345_v23 = vmul.f32 %v6245_v40, %v12215_v7  ;;  %v8816_v4 = vpop.eup %8815  ;;  %v5488_v49 = vmul.f32 %v5360_v27, %v12335_v16  ;;  %v5870_v62 = vmul.f32 0.7978846, %v5742_v52  ;;  %v12365_v7 = vadd.f32 %v5015_v9, %v12183_v31 }
 0x777   : > { %v8818_v41 = vpop.eup %8817  ;;  %v6119_v40 = vadd.f32 1.0, %v8816_v4  ;;  %v5743_v43 = vadd.f32 %v5615_v1, %v12318_v26  ;;  %v5490_v5 = vmul.f32 %v5362_v36, %v12342_v10  ;;  %v5021_v39 = vpop.f32.mrb[252].mxu1  ;;  %v5617_v47 = vmul.f32 0.044715, %v5489_v42 }
 0x778   : > { %v12362_v32 = vpop.eup %8819  ;;  %v6121_v55 = vadd.f32 1.0, %v8818_v41  ;;  %v5616_v59 = vmul.f32 0.044715, %v5488_v49  ;;  %v5214_v6 = vpop.f32.mrb[252].mxu0  ;;  %8829 = vtanh.f32 %v5870_v62  ;;  %v5363_v42 = vmul.f32 %v12365_v7, %v12365_v7 }
 0x779   : > { %v12367_v19 = vpop.eup %8821  ;;  %v6247_v27 = vmul.f32 0.5, %v6119_v40  ;;  %v5871_v4 = vmul.f32 0.7978846, %v5743_v43  ;;  %v5618_v52 = vmul.f32 0.044715, %v5490_v5  ;;  %v5023_v21 = vpop.f32.mrb[253].mxu1  ;;  %v5745_v36 = vadd.f32 %v5617_v47, %v12332_v51 }
 0x77a   : > { %v8824_v1 = vpop.eup %8823  ;;  %v6249_v8 = vmul.f32 0.5, %v6121_v55  ;;  %v5744_v29 = vadd.f32 %v5616_v59, %v12335_v16  ;;  %v5216_v49 = vpop.f32.mrb[253].mxu0 }
 0x77b   : > { %v12373_v9 = vpop.f32.mrb[254].mxu1  ;;  %v8826_v41 = vpop.eup %8825  ;;  %v12376_v18 = vmul.f32 %v6247_v27, %v12252_v13  ;;  %v6123_v40 = vadd.f32 1.0, %v8824_v1  ;;  %8831 = vtanh.f32 %v5871_v4  ;;  %v5746_v43 = vadd.f32 %v5618_v52, %v12342_v10 }
 0x77c   : > { %v12379_v62 = vpop.f32.mrb[254].mxu0  ;;  %v12381_v55 = vpop.f32.mrb[255].mxu1  ;;  %v12384_v59 = vmul.f32 %v6249_v8, %v12255_v44  ;;  %v6125_v47 = vadd.f32 1.0, %v8826_v41  ;;  %v5873_v5 = vmul.f32 0.7978846, %v5745_v36  ;;  %v5491_v13 = vmul.f32 %v5363_v42, %v12365_v7 }
 0x77d   : > { %14543 = vst [vmem:[#allocation16_spill] sm:$0xff] %v12376_v18  ;;  %v5872_v2 = vmul.f32 0.7978846, %v5744_v29  ;;  %v12386_v60 = vpop.f32.mrb[255].mxu0  ;;  %v6251_v20 = vmul.f32 0.5, %v6123_v40  ;;  %v12391_v27 = vadd.f32 %v12305_v17, %v12187_v38  ;;  %v12395_v52 = vadd.f32 %v12310_v50, %v12191_v53 }
 0x77e   : > { %14544 = vst [vmem:[#allocation54_spill] sm:$0xff] %v12384_v59  ;;  %v5874_v61 = vmul.f32 0.7978846, %v5746_v43  ;;  %v6253_v4 = vmul.f32 0.5, %v6125_v47  ;;  %8833 = vtanh.f32 %v5873_v5  ;;  %v12399_v8 = vadd.f32 %v12312_v58, %v12193_v12 }
 0x77f   : > { %14545 = vst [vmem:[#allocation26_spill] sm:$0xff] %v12395_v52  ;;  %v12402_v29 = vmul.f32 %v6251_v20, %v12268_v0  ;;  %8835 = vtanh.f32 %v5872_v2  ;;  %v5619_v44 = vmul.f32 0.044715, %v5491_v13  ;;  %v5365_v1 = vmul.f32 %v12391_v27, %v12391_v27  ;;  %v12406_v17 = vpop.eup %8827 }
 0x780   : > { %14546 = vst [vmem:[#allocation91_spill] sm:$0xff] %v12399_v8  ;;  %v12409_v36 = vmul.f32 %v6253_v4, %v12271_v46  ;;  %8837 = vtanh.f32 %v5874_v61  ;;  %v5364_v50 = vmul.f32 %v12395_v52, %v12395_v52  ;;  %v5366_v58 = vmul.f32 %v12399_v8, %v12399_v8 }
 0x781   : > { %14547 = vst [vmem:[#allocation12_spill] sm:$0xff] %v12402_v29  ;;  %v5747_v2 = vadd.f32 %v5619_v44, %v12365_v7  ;;  %v5493_v0 = vmul.f32 %v5365_v1, %v12391_v27  ;;  %v12420_v42 = vadd.f32 %v5021_v39, %v12183_v31  ;;  %v12427_v40 = vadd.f32 %v5214_v6, %v12187_v38 }
 0x782   : > { %14548 = vst [vmem:[#allocation85_spill] sm:$0xff] %v12409_v36  ;;  %v5492_v61 = vmul.f32 %v5364_v50, %v12395_v52  ;;  %v5494_v41 = vmul.f32 %v5366_v58, %v12399_v8  ;;  %v12433_v5 = vpop.eup %8829  ;;  %v12438_v44 = vadd.f32 %v5023_v21, %v12191_v53  ;;  %v12447_v20 = vadd.f32 %v5216_v49, %v12193_v12 }
 0x783   : > { %v12429_v43 = vpop.f32.mrb[0].mxu1  ;;  %v12431_v47 = vpop.f32.mrb[0].mxu0  ;;  %14549 = vst [vmem:[#allocation55_spill] sm:$0xff] %v12433_v5  ;;  %v5875_v13 = vmul.f32 0.7978846, %v5747_v2  ;;  %v5367_v39 = vmul.f32 %v12420_v42, %v12420_v42  ;;  %v5369_v46 = vmul.f32 %v12427_v40, %v12427_v40 }
 0x784   : > { %v5621_v4 = vmul.f32 0.044715, %v5493_v0  ;;  %14550 = vst [vmem:[#allocation56_spill] sm:$0xff] %v12438_v44  ;;  %v12440_v1 = vpop.f32.mrb[1].mxu1  ;;  %v12442_v50 = vpop.f32.mrb[1].mxu0  ;;  %14551 = vst [vmem:[#allocation19_spill] sm:$0xff] %v12447_v20 }
 0x785   : > { %v5620_v6 = vmul.f32 0.044715, %v5492_v61  ;;  %v5622_v58 = vmul.f32 0.044715, %v5494_v41  ;;  %v12449_v2 = vpop.f32.mrb[2].mxu1  ;;  %v12451_v0 = vpop.f32.mrb[2].mxu0  ;;  %8839 = vtanh.f32 %v5875_v13  ;;  %v5495_v34 = vmul.f32 %v5367_v39, %v12420_v42 }
 0x786   : > { %v8832_v22 = vpop.eup %8831  ;;  %v5749_v21 = vadd.f32 %v5621_v4, %v12391_v27  ;;  %v5368_v61 = vmul.f32 %v12438_v44, %v12438_v44  ;;  %v12457_v41 = vpop.f32.mrb[3].mxu1  ;;  %v5497_v16 = vmul.f32 %v5369_v46, %v12427_v40  ;;  %v5370_v39 = vmul.f32 %v12447_v20, %v12447_v20 }
 0x787   : > { %v12459_v15 = vpop.f32.mrb[3].mxu0  ;;  %v6127_v28 = vadd.f32 1.0, %v8832_v22  ;;  %v5748_v49 = vadd.f32 %v5620_v6, %v12395_v52  ;;  %v5750_v10 = vadd.f32 %v5622_v58, %v12399_v8  ;;  %v5623_v13 = vmul.f32 0.044715, %v5495_v34 }
 0x788   : > { %v5877_v59 = vmul.f32 0.7978846, %v5749_v21  ;;  %v5496_v4 = vmul.f32 %v5368_v61, %v12438_v44  ;;  %v8834_v36 = vpop.eup %8833  ;;  %v12469_v22 = vadd.f32 %v12373_v9, %v12183_v31  ;;  %v5625_v34 = vmul.f32 0.044715, %v5497_v16 }
 0x789   : > { %v6255_v18 = vmul.f32 0.5, %v6127_v28  ;;  %v5876_v29 = vmul.f32 0.7978846, %v5748_v49  ;;  %v5878_v48 = vmul.f32 0.7978846, %v5750_v10  ;;  %v12471_v6 = vpop.eup %8835  ;;  %v6129_v58 = vadd.f32 1.0, %v8834_v36 }
 0x78a   : > { %14552 = vst [vmem:[#allocation20_spill] sm:$0xff] %v12471_v6  ;;  %8841 = vtanh.f32 %v5877_v59  ;;  %v5751_v46 = vadd.f32 %v5623_v13, %v12420_v42  ;;  %v12474_v21 = vpop.eup %8837  ;;  %v5624_v28 = vmul.f32 0.044715, %v5496_v4  ;;  %v5498_v10 = vmul.f32 %v5370_v39, %v12447_v20 }
 0x78b   : > { %14553 = vst [vmem:[#allocation8_spill] sm:$0xff] %v12474_v21  ;;  %v12477_v61 = vmul.f32 %v6255_v18, %v12318_v26  ;;  %8843 = vtanh.f32 %v5876_v29  ;;  %v6257_v49 = vmul.f32 0.5, %v6129_v58  ;;  %v5753_v8 = vadd.f32 %v5625_v34, %v12427_v40 }
 0x78c   : > { %8845 = vtanh.f32 %v5878_v48  ;;  %v5879_v9 = vmul.f32 0.7978846, %v5751_v46  ;;  %v5752_v36 = vadd.f32 %v5624_v28, %v12438_v44  ;;  %v5626_v59 = vmul.f32 0.044715, %v5498_v10 }
 0x78d   : > { %14554 = vst [vmem:[#allocation21_spill] sm:$0xff] %v12477_v61  ;;  %v5371_v16 = vmul.f32 %v12469_v22, %v12469_v22  ;;  %v12486_v13 = vadd.f32 %v12379_v62, %v12187_v38  ;;  %v12489_v18 = vmul.f32 %v6257_v49, %v12332_v51  ;;  %v5881_v26 = vmul.f32 0.7978846, %v5753_v8 }
 0x78e   : > { %8847 = vtanh.f32 %v5879_v9  ;;  %v12493_v48 = vadd.f32 %v12381_v55, %v12191_v53  ;;  %v5880_v29 = vmul.f32 0.7978846, %v5752_v36  ;;  %v5754_v4 = vadd.f32 %v5626_v59, %v12447_v20 }
 0x78f   : > { %14555 = vst [vmem:[#allocation57_spill] sm:$0xff] %v12489_v18  ;;  %v5499_v39 = vmul.f32 %v5371_v16, %v12469_v22  ;;  %v5373_v58 = vmul.f32 %v12486_v13, %v12486_v13  ;;  %v8840_v46 = vpop.eup %8839  ;;  %8849 = vtanh.f32 %v5881_v26  ;;  %v12503_v62 = vadd.f32 %v12386_v60, %v12193_v12 }
 0x790   : > { %14556 = vst [vmem:[#allocation58_spill] sm:$0xff] %v12493_v48  ;;  %v5372_v51 = vmul.f32 %v12493_v48, %v12493_v48  ;;  %v12507_v55 = vadd.f32 %v12429_v43, %v12183_v31  ;;  %v12509_v8 = vpop.f32.mrb[4].mxu1  ;;  %v12511_v34 = vpop.f32.mrb[4].mxu0  ;;  %v6131_v28 = vadd.f32 1.0, %v8840_v46  ;;  %8851 = vtanh.f32 %v5880_v29 }
 0x791   : > { %14557 = vst [vmem:[#allocation25_spill] sm:$0xff] %v12503_v62  ;;  %v5882_v10 = vmul.f32 0.7978846, %v5754_v4  ;;  %v5627_v49 = vmul.f32 0.044715, %v5499_v39  ;;  %v12513_v9 = vpop.f32.mrb[5].mxu1  ;;  %v5501_v36 = vmul.f32 %v5373_v58, %v12486_v13  ;;  %v5374_v60 = vmul.f32 %v12503_v62, %v12503_v62 }
 0x792   : > { %v5500_v59 = vmul.f32 %v5372_v51, %v12493_v48  ;;  %v5375_v43 = vmul.f32 %v12507_v55, %v12507_v55  ;;  %v12521_v16 = vpop.f32.mrb[5].mxu0  ;;  %v12523_v26 = vpop.f32.mrb[6].mxu1  ;;  %v6259_v46 = vmul.f32 0.5, %v6131_v28  ;;  %v12528_v4 = vadd.f32 %v12431_v47, %v12187_v38 }
 0x793   : > { %8853 = vtanh.f32 %v5882_v10  ;;  %v5755_v29 = vadd.f32 %v5627_v49, %v12469_v22  ;;  %v12530_v39 = vpop.f32.mrb[6].mxu0  ;;  %v12532_v58 = vpop.f32.mrb[7].mxu1  ;;  %v5629_v20 = vmul.f32 0.044715, %v5501_v36  ;;  %v5502_v52 = vmul.f32 %v5374_v60, %v12503_v62 }
 0x794   : > { %v8842_v51 = vpop.eup %8841  ;;  %v5628_v44 = vmul.f32 0.044715, %v5500_v59  ;;  %v5503_v21 = vmul.f32 %v5375_v43, %v12507_v55  ;;  %v12536_v6 = vpop.f32.mrb[7].mxu0  ;;  %v12541_v10 = vmul.f32 %v6259_v46, %v12365_v7  ;;  %v5377_v25 = vmul.f32 %v12528_v4, %v12528_v4 }
 0x795   : > { %v12538_v28 = vpop.eup %8843  ;;  %v6133_v47 = vadd.f32 1.0, %v8842_v51  ;;  %v5883_v49 = vmul.f32 0.7978846, %v5755_v29  ;;  %v5757_v36 = vadd.f32 %v5629_v20, %v12486_v13  ;;  %v5630_v60 = vmul.f32 0.044715, %v5502_v52 }
 0x796   : > { %14558 = vst [vmem:[#allocation86_spill] sm:$0xff] %v12538_v28  ;;  %14559 = vst [vmem:[#allocation11_spill] sm:$0xff] %v12541_v10  ;;  %v12545_v24 = vpop.eup %8845  ;;  %v5756_v59 = vadd.f32 %v5628_v44, %v12493_v48  ;;  %v5631_v43 = vmul.f32 0.044715, %v5503_v21  ;;  %v5505_v7 = vmul.f32 %v5377_v25, %v12528_v4  ;;  %v12559_v21 = vadd.f32 %v12440_v1, %v12191_v53 }
 0x797   : > { %14560 = vst [vmem:[#allocation59_spill] sm:$0xff] %v12545_v24  ;;  %v6261_v28 = vmul.f32 0.5, %v6133_v47  ;;  %8855 = vtanh.f32 %v5883_v49  ;;  %v5885_v29 = vmul.f32 0.7978846, %v5757_v36  ;;  %v5758_v5 = vadd.f32 %v5630_v60, %v12503_v62 }
 0x798   : > { %v8848_v46 = vpop.eup %8847  ;;  %v5884_v51 = vmul.f32 0.7978846, %v5756_v59  ;;  %v5759_v24 = vadd.f32 %v5631_v43, %v12507_v55  ;;  %v5633_v52 = vmul.f32 0.044715, %v5505_v7  ;;  %14562 = vst [vmem:[#allocation31_spill] sm:$0xff] %v12559_v21  ;;  %v12563_v36 = vadd.f32 %v12442_v50, %v12193_v12 }
 0x799   : > { %v12555_v20 = vmul.f32 %v6261_v28, %v12391_v27  ;;  %v6135_v44 = vadd.f32 1.0, %v8848_v46  ;;  %v8850_v47 = vpop.eup %8849  ;;  %8857 = vtanh.f32 %v5885_v29  ;;  %v5886_v49 = vmul.f32 0.7978846, %v5758_v5 }
 0x79a   : > { %v5887_v25 = vmul.f32 0.7978846, %v5759_v24  ;;  %14563 = vst [vmem:[#allocation61_spill] sm:$0xff] %v12563_v36  ;;  %v12565_v59 = vpop.eup %8851  ;;  %v6137_v60 = vadd.f32 1.0, %v8850_v47  ;;  %8859 = vtanh.f32 %v5884_v51  ;;  %v5761_v5 = vadd.f32 %v5633_v52, %v12528_v4 }
 0x79b   : > { %14561 = vst [vmem:[#allocation60_spill] sm:$0xff] %v12555_v20  ;;  %14564 = vst [vmem:[#allocation62_spill] sm:$0xff] %v12565_v59  ;;  %v6263_v28 = vmul.f32 0.5, %v6135_v44  ;;  %v12569_v43 = vpop.f32.mrb[8].mxu1  ;;  %v12571_v1 = vpop.f32.mrb[8].mxu0  ;;  %8861 = vtanh.f32 %v5886_v49  ;;  %v5376_v24 = vmul.f32 %v12559_v21, %v12559_v21  ;;  %v5378_v50 = vmul.f32 %v12563_v36, %v12563_v36 }
 0x79c   : > { %v12578_v7 = vpop.f32.mrb[9].mxu1  ;;  %v12580_v46 = vpop.f32.mrb[9].mxu0  ;;  %v6265_v44 = vmul.f32 0.5, %v6137_v60  ;;  %8863 = vtanh.f32 %v5887_v25  ;;  %v12589_v52 = vadd.f32 %v12449_v2, %v12183_v31  ;;  %v5889_v27 = vmul.f32 0.7978846, %v5761_v5 }
 0x79d   : > { %v12582_v29 = vpop.eup %8853  ;;  %v12585_v51 = vmul.f32 %v6263_v28, %v12420_v42  ;;  %v12591_v47 = vpop.f32.mrb[10].mxu1  ;;  %v5504_v11 = vmul.f32 %v5376_v24, %v12559_v21  ;;  %v5506_v62 = vmul.f32 %v5378_v50, %v12563_v36  ;;  %v12599_v48 = vadd.f32 %v12451_v0, %v12187_v38 }
 0x79e   : > { %14565 = vst [vmem:[#allocation34_spill] sm:$0xff] %v12582_v29  ;;  %14566 = vst [vmem:[#allocation63_spill] sm:$0xff] %v12591_v47  ;;  %v12593_v49 = vpop.f32.mrb[10].mxu0  ;;  %v12601_v42 = vpop.f32.mrb[11].mxu1  ;;  %v12606_v2 = vmul.f32 %v6265_v44, %v12427_v40  ;;  %v5379_v28 = vmul.f32 %v12589_v52, %v12589_v52  ;;  %v12612_v60 = vadd.f32 %v12457_v41, %v12191_v53  ;;  %8865 = vtanh.f32 %v5889_v27 }
 0x79f   : > { %14567 = vst [vmem:[#allocation64_spill] sm:$0xff] %v12593_v49  ;;  %14568 = vst [vmem:[#allocation29_spill] sm:$0xff] %v12601_v42  ;;  %v12603_v25 = vpop.f32.mrb[11].mxu0  ;;  %v12616_v5 = vadd.f32 %v12459_v15, %v12193_v12  ;;  %v5632_v0 = vmul.f32 0.044715, %v5504_v11  ;;  %v5381_v50 = vmul.f32 %v12599_v48, %v12599_v48  ;;  %v6112_v59 = vadd.f32 1.0, %v12301_v45 }
 0x7a0   : > { %14569 = vst [vmem:[#allocation65_spill] sm:$0xff] %v12603_v25  ;;  %14570 = vst [vmem:[#allocation66_spill] sm:$0xff] %v12606_v2  ;;  %v5634_v24 = vmul.f32 0.044715, %v5506_v62  ;;  %v5507_v40 = vmul.f32 %v5379_v28, %v12589_v52  ;;  %v5380_v44 = vmul.f32 %v12612_v60, %v12612_v60  ;;  %v6116_v61 = vadd.f32 1.0, %v12320_v3 }
 0x7a1   : > { %14571 = vst [vmem:[#allocation33_spill] sm:$0xff] %v12612_v60  ;;  %14572 = vst [vmem:[#allocation67_spill] sm:$0xff] %v12616_v5  ;;  %v8856_v29 = vpop.eup %8855  ;;  %v5382_v41 = vmul.f32 %v12616_v5, %v12616_v5  ;;  %v5760_v15 = vadd.f32 %v5632_v0, %v12559_v21  ;;  %v5509_v62 = vmul.f32 %v5381_v50, %v12599_v48  ;;  %v6240_v47 = vmul.f32 0.5, %v6112_v59 }
 0x7a2   : > { %v6139_v18 = vadd.f32 1.0, %v8856_v29  ;;  %v5762_v11 = vadd.f32 %v5634_v24, %v12563_v36  ;;  %v5635_v27 = vmul.f32 0.044715, %v5507_v40  ;;  %v5508_v20 = vmul.f32 %v5380_v44, %v12612_v60 }
 0x7a3   : > { %v5510_v28 = vmul.f32 %v5382_v41, %v12616_v5  ;;  %v8858_v10 = vpop.eup %8857  ;;  %v5888_v42 = vmul.f32 0.7978846, %v5760_v15  ;;  %v5637_v24 = vmul.f32 0.044715, %v5509_v62  ;;  %v6244_v3 = vmul.f32 0.5, %v6116_v61 }
 0x7a4   : > { %v6267_v25 = vmul.f32 0.5, %v6139_v18  ;;  %v5890_v49 = vmul.f32 0.7978846, %v5762_v11  ;;  %v12632_v45 = vpop.eup %8859  ;;  %v6141_v29 = vadd.f32 1.0, %v8858_v10  ;;  %v5763_v0 = vadd.f32 %v5635_v27, %v12589_v52 }
 0x7a5   : > { %v5636_v36 = vmul.f32 0.044715, %v5508_v20  ;;  %v12635_v50 = vpop.eup %8861  ;;  %8867 = vtanh.f32 %v5888_v42  ;;  %v5638_v44 = vmul.f32 0.044715, %v5510_v28  ;;  %v5765_v59 = vadd.f32 %v5637_v24, %v12599_v48 }
 0x7a6   : > { %v12638_v40 = vmul.f32 %v6267_v25, %v12469_v22  ;;  %v8864_v41 = vpop.eup %8863  ;;  %v6269_v18 = vmul.f32 0.5, %v6141_v29  ;;  %8869 = vtanh.f32 %v5890_v49  ;;  %v5891_v15 = vmul.f32 0.7978846, %v5763_v0 }
 0x7a7   : > { %v12641_v11 = vpop.f32.mrb[12].mxu1  ;;  %v12643_v10 = vpop.f32.mrb[12].mxu0  ;;  %v6143_v62 = vadd.f32 1.0, %v8864_v41  ;;  %v5764_v22 = vadd.f32 %v5636_v36, %v12612_v60  ;;  %v5766_v42 = vadd.f32 %v5638_v44, %v12616_v5  ;;  %v5893_v27 = vmul.f32 0.7978846, %v5765_v59 }
 0x7a8   : > { %v12649_v25 = vpop.f32.mrb[13].mxu1  ;;  %v12651_v61 = vpop.f32.mrb[13].mxu0  ;;  %v12654_v49 = vmul.f32 %v6269_v18, %v12486_v13  ;;  %8871 = vtanh.f32 %v5891_v15  ;;  %v6368_v28 = vmul.f32 %v6240_v47, %v12202_v56  ;;  %v6372_v44 = vmul.f32 %v6244_v3, %v12222_v30 }
 0x7a9   : > { %v12657_v29 = vpop.f32.mrb[14].mxu1  ;;  %v12659_v0 = vpop.f32.mrb[14].mxu0  ;;  %v6271_v41 = vmul.f32 0.5, %v6143_v62  ;;  %v5892_v36 = vmul.f32 0.7978846, %v5764_v22  ;;  %8873 = vtanh.f32 %v5893_v27  ;;  %v6114_v15 = vadd.f32 1.0, %v12303_v63 }
 0x7aa   : > { %v8866_v24 = vpop.eup %8865  ;;  %v5894_v20 = vmul.f32 0.7978846, %v5766_v42  ;;  %v12662_v5 = vpop.f32.mrb[15].mxu1  ;;  %v6496_v59 = vpack.c.bf16 %v6372_v44, %v6368_v28  ;;  %v6118_v62 = vadd.f32 1.0, %v12325_v57  ;;  %v12675_v3 = vadd.f32 %v12509_v8, %v12183_v31 }
 0x7ab   : > { %v6145_v18 = vadd.f32 1.0, %v8866_v24  ;;  %v12667_v56 = vpop.f32.mrb[15].mxu0  ;;  %v12670_v47 = vmul.f32 %v6271_v41, %v12507_v55  ;;  %8875 = vtanh.f32 %v5892_v36  ;;  %v6242_v30 = vmul.f32 0.5, %v6114_v15 }
 0x7ac   : > { %8877 = vtanh.f32 %v5894_v20  ;;  %6854 = vmatprep.mubr.bf16.mxu1 %v6496_v59  ;;  %v6246_v42 = vmul.f32 0.5, %v6118_v62  ;;  %v12679_v63 = vadd.f32 %v12511_v34, %v12187_v38  ;;  %v12683_v55 = vadd.f32 %v12513_v9, %v12191_v53 }
 0x7ad   : > { %v6273_v22 = vmul.f32 0.5, %v6145_v18  ;;  %v12687_v57 = vadd.f32 %v12521_v16, %v12193_v12  ;;  %v6370_v8 = vmul.f32 %v6242_v30, %v12205_v37  ;;  %v14576_v27 = vpack.c.bf16 %v12338_v54, %v12315_v14 }
 0x7ae   : > { %14573 = vst [vmem:[#allocation68_spill] sm:$0xff] %v12683_v55  ;;  %v5383_v34 = vmul.f32 %v12675_v3, %v12675_v3  ;;  %v12700_v9 = vadd.f32 %v12523_v26, %v12183_v31  ;;  %v6374_v16 = vmul.f32 %v6246_v42, %v12225_v35  ;;  %v5384_v37 = vmul.f32 %v12683_v55, %v12683_v55 }
 0x7af   : > { %14574 = vst [vmem:[#allocation39_spill] sm:$0xff] %v12687_v57  ;;  %v12690_v20 = vmul.f32 %v6273_v22, %v12528_v4  ;;  %6855 = vmatmul.mubr.bf16.vlgmr.msra.gmra.mrb[48].mxu1 %v14576_v27  ;;  %v12702_v28 = vpop.eup %8867  ;;  %v5385_v4 = vmul.f32 %v12679_v63, %v12679_v63  ;;  %v5386_v14 = vmul.f32 %v12687_v57, %v12687_v57 }
 0x7b0   : > { %14577 = vst [vmem:[#allocation70_spill] sm:$0xff] %v12702_v28  ;;  %v12711_v54 = vpop.eup %8869  ;;  %v5511_v24 = vmul.f32 %v5383_v34, %v12675_v3  ;;  %v5387_v26 = vmul.f32 %v12700_v9, %v12700_v9  ;;  %v12718_v41 = vadd.f32 %v12530_v39, %v12187_v38  ;;  %v12722_v35 = vadd.f32 %v12532_v58, %v12191_v53 }
 0x7b1   : > { %14575 = vst [vmem:[#allocation69_spill] sm:$0xff] %v12690_v20  ;;  %14578 = vst [vmem:[#allocation42_spill] sm:$0xff] %v12711_v54  ;;  %v6498_v36 = vpack.c.bf16 %v6374_v16, %v6370_v8  ;;  %v5513_v44 = vmul.f32 %v5385_v4, %v12679_v63  ;;  %v5512_v18 = vmul.f32 %v5384_v37, %v12683_v55 }
 0x7b2   : > { %14579 = vst [vmem:[#allocation71_spill] sm:$0xff] %v12722_v35  ;;  %v5514_v15 = vmul.f32 %v5386_v14, %v12687_v57  ;;  %v12727_v59 = vpop.f32.mrb[16].mxu1  ;;  %v12729_v62 = vpop.f32.mrb[16].mxu0  ;;  %v5639_v30 = vmul.f32 0.044715, %v5511_v24  ;;  %v5515_v39 = vmul.f32 %v5387_v26, %v12700_v9  ;;  %v5389_v42 = vmul.f32 %v12718_v41, %v12718_v41 }
 0x7b3   : > { %v8872_v22 = vpop.eup %8871  ;;  %v5388_v58 = vmul.f32 %v12722_v35, %v12722_v35  ;;  %v12736_v8 = vpop.f32.mrb[17].mxu1  ;;  %7015 = vmatprep.mubr.bf16.mxu0 %v6498_v36  ;;  %v5641_v16 = vmul.f32 0.044715, %v5513_v44  ;;  %v5640_v4 = vmul.f32 0.044715, %v5512_v18  ;;  %v12742_v37 = vadd.f32 %v12536_v6, %v12193_v12 }
 0x7b4   : > { %v12738_v27 = vpop.f32.mrb[17].mxu0  ;;  %v6147_v34 = vadd.f32 1.0, %v8872_v22  ;;  %v12744_v14 = vpop.f32.mrb[18].mxu1  ;;  %v14581_v26 = vpack.c.bf16 %v12345_v23, %v12323_v33  ;;  %v5767_v13 = vadd.f32 %v5639_v30, %v12675_v3  ;;  %v5642_v60 = vmul.f32 0.044715, %v5514_v15 }
 0x7b5   : > { %14580 = vst [vmem:[#allocation72_spill] sm:$0xff] %v12742_v37  ;;  %v8874_v24 = vpop.eup %8873  ;;  %v5643_v21 = vmul.f32 0.044715, %v5515_v39  ;;  %v5517_v22 = vmul.f32 %v5389_v42, %v12718_v41  ;;  %v12751_v36 = vpop.f32.mrb[18].mxu0  ;;  %v5769_v28 = vadd.f32 %v5641_v16, %v12679_v63  ;;  %v5768_v2 = vadd.f32 %v5640_v4, %v12683_v55 }
 0x7b6   : > { %7016 = vmatmul.mubr.bf16.vlgmr.msra.gmra.mrb[48].mxu0 %v14581_v26  ;;  %v12753_v44 = vpop.f32.mrb[19].mxu1  ;;  %v12755_v18 = vpop.eup %8875  ;;  %v6275_v6 = vmul.f32 0.5, %v6147_v34  ;;  %v6149_v54 = vadd.f32 1.0, %v8874_v24  ;;  %v5895_v15 = vmul.f32 0.7978846, %v5767_v13  ;;  %v5770_v30 = vadd.f32 %v5642_v60, %v12687_v57 }
 0x7b7   : > { %14582 = vst [vmem:[#allocation37_spill] sm:$0xff] %v12753_v44  ;;  %14583 = vst [vmem:[#allocation73_spill] sm:$0xff] %v12755_v18  ;;  %v12759_v33 = vpop.f32.mrb[19].mxu0  ;;  %v12761_v23 = vpop.eup %8877  ;;  %v5771_v39 = vadd.f32 %v5643_v21, %v12700_v9  ;;  %v5645_v42 = vmul.f32 0.044715, %v5517_v22  ;;  %v5516_v21 = vmul.f32 %v5388_v58, %v12722_v35  ;;  %v5390_v60 = vmul.f32 %v12742_v37, %v12742_v37 }
 0x7b8   : > { %v12766_v26 = vmul.f32 %v6275_v6, %v12589_v52  ;;  %v6277_v18 = vmul.f32 0.5, %v6149_v54  ;;  %v5897_v34 = vmul.f32 0.7978846, %v5769_v28  ;;  %v5896_v24 = vmul.f32 0.7978846, %v5768_v2 }
 0x7b9   : > { %8879 = vtanh.f32 %v5895_v15  ;;  %v5898_v16 = vmul.f32 0.7978846, %v5770_v30  ;;  %v5899_v44 = vmul.f32 0.7978846, %v5771_v39  ;;  %v5773_v4 = vadd.f32 %v5645_v42, %v12718_v41  ;;  %v14584_v39 = vld [vmem:[#allocation55_spill] sm:$0xff] }
 0x7ba   : > { %v12772_v13 = vmul.f32 %v6277_v18, %v12599_v48  ;;  %8881 = vtanh.f32 %v5897_v34  ;;  %v6120_v2 = vadd.f32 1.0, %v12362_v32  ;;  %v5644_v54 = vmul.f32 0.044715, %v5516_v21 }
 0x7bb   : > { %8883 = vtanh.f32 %v5896_v24  ;;  %v5901_v52 = vmul.f32 0.7978846, %v5773_v4  ;;  %v6124_v22 = vadd.f32 1.0, %v12406_v17  ;;  %v5518_v48 = vmul.f32 %v5390_v60, %v12742_v37 }
 0x7bc   : > { %8885 = vtanh.f32 %v5898_v16  ;;  %v6248_v18 = vmul.f32 0.5, %v6120_v2  ;;  %v6122_v58 = vadd.f32 1.0, %v12367_v19  ;;  %v5772_v32 = vadd.f32 %v5644_v54, %v12722_v35  ;;  %v14587_v2 = vld [vmem:[#allocation51_spill] sm:$0xff]  ;;  %v14597_v35 = vld [vmem:[#allocation16_spill] sm:$0xff] }
 0x7bd   : > { %8887 = vtanh.f32 %v5899_v44  ;;  %v12783_v6 = vpop.f32.mrb[20].mxu1  ;;  %v12785_v15 = vpop.f32.mrb[20].mxu0  ;;  %v6252_v30 = vmul.f32 0.5, %v6124_v22  ;;  %v6126_v42 = vadd.f32 1.0, %v14584_v39  ;;  %v5646_v17 = vmul.f32 0.044715, %v5518_v48 }
 0x7be   : > { %8889 = vtanh.f32 %v5901_v52  ;;  %v12789_v34 = vpop.f32.mrb[21].mxu1  ;;  %v12791_v24 = vpop.f32.mrb[21].mxu0  ;;  %v14585_v44 = vld [vmem:[#allocation48_spill] sm:$0xff]  ;;  %v6250_v4 = vmul.f32 0.5, %v6122_v58  ;;  %v12796_v19 = vadd.f32 %v12569_v43, %v12183_v31  ;;  %v5900_v60 = vmul.f32 0.7978846, %v5772_v32 }
 0x7bf   : > { %v6376_v16 = vmul.f32 %v6248_v18, %v14585_v44  ;;  %v12798_v21 = vpop.f32.mrb[22].mxu1  ;;  %v12800_v52 = vpop.f32.mrb[22].mxu0  ;;  %v6380_v54 = vmul.f32 %v6252_v30, %v14587_v2  ;;  %v6254_v22 = vmul.f32 0.5, %v6126_v42  ;;  %v12805_v39 = vadd.f32 %v12571_v1, %v12187_v38  ;;  %v14590_v43 = vld [vmem:[#allocation17_spill] sm:$0xff]  ;;  %v14592_v42 = vld [vmem:[#allocation52_spill] sm:$0xff] }
 0x7c0   : > { %14586 = vst [vmem:[#allocation74_spill] sm:$0xff] %v12800_v52  ;;  %v12807_v48 = vpop.f32.mrb[23].mxu1  ;;  %v12809_v18 = vpop.f32.mrb[23].mxu0  ;;  %v5774_v58 = vadd.f32 %v5646_v17, %v12742_v37  ;;  %v6378_v44 = vmul.f32 %v6250_v4, %v14590_v43  ;;  %v5391_v28 = vmul.f32 %v12796_v19, %v12796_v19  ;;  %v12817_v32 = vadd.f32 %v12578_v7, %v12191_v53 }
 0x7c1   : > { %14588 = vst [vmem:[#allocation41_spill] sm:$0xff] %v12807_v48  ;;  %14589 = vst [vmem:[#allocation75_spill] sm:$0xff] %v12809_v18  ;;  %8891 = vtanh.f32 %v5900_v60  ;;  %v6500_v30 = vpack.c.bf16 %v6380_v54, %v6376_v16  ;;  %v6382_v1 = vmul.f32 %v6254_v22, %v14592_v42  ;;  %v5393_v2 = vmul.f32 %v12805_v39, %v12805_v39  ;;  %v14594_v54 = vld [vmem:[#allocation63_spill] sm:$0xff]  ;;  %v14596_v42 = vld [vmem:[#allocation12_spill] sm:$0xff] }
 0x7c2   : > { %14591 = vst [vmem:[#allocation76_spill] sm:$0xff] %v12817_v32  ;;  %v5902_v57 = vmul.f32 0.7978846, %v5774_v58  ;;  %v5519_v17 = vmul.f32 %v5391_v28, %v12796_v19  ;;  %v5392_v4 = vmul.f32 %v12817_v32, %v12817_v32  ;;  %v12827_v43 = vadd.f32 %v12580_v46, %v12193_v12 }
 0x7c3   : > { %v8880_v55 = vpop.eup %8879  ;;  %6862 = vmatprep.mubr.bf16.mxu1 %v6500_v30  ;;  %v6502_v16 = vpack.c.bf16 %v6382_v1, %v6378_v44  ;;  %v5521_v60 = vmul.f32 %v5393_v2, %v12805_v39  ;;  %v12832_v22 = vadd.f32 %v14594_v54, %v12183_v31  ;;  %v14598_v18 = vpack.c.bf16 %v14596_v42, %v14597_v35  ;;  %v14600_v54 = vld [vmem:[#allocation85_spill] sm:$0xff] }
 0x7c4   : > { %14593 = vst [vmem:[#allocation47_spill] sm:$0xff] %v12827_v43  ;;  %v8882_v7 = vpop.eup %8881  ;;  %v6151_v37 = vadd.f32 1.0, %v8880_v55  ;;  %8893 = vtanh.f32 %v5902_v57  ;;  %v5647_v46 = vmul.f32 0.044715, %v5519_v17  ;;  %v5520_v48 = vmul.f32 %v5392_v4, %v12817_v32  ;;  %v14603_v4 = vld [vmem:[#allocation64_spill] sm:$0xff] }
 0x7c5   : > { %v12834_v58 = vpop.eup %8883  ;;  %v6153_v28 = vadd.f32 1.0, %v8882_v7  ;;  %6863 = vmatmul.mubr.bf16.gmra.mrb[52].mxu1 %v14598_v18  ;;  %7023 = vmatprep.mubr.bf16.mxu0 %v6502_v16  ;;  %v5649_v30 = vmul.f32 0.044715, %v5521_v60  ;;  %v5394_v1 = vmul.f32 %v12827_v43, %v12827_v43  ;;  %v5395_v2 = vmul.f32 %v12832_v22, %v12832_v22 }
 0x7c6   : > { %14595 = vst [vmem:[#allocation77_spill] sm:$0xff] %v12834_v58  ;;  %v12840_v55 = vpop.eup %8885  ;;  %v6279_v44 = vmul.f32 0.5, %v6151_v37  ;;  %v14601_v58 = vld [vmem:[#allocation54_spill] sm:$0xff]  ;;  %v5775_v18 = vadd.f32 %v5647_v46, %v12796_v19  ;;  %v5648_v17 = vmul.f32 0.044715, %v5520_v48  ;;  %v12852_v37 = vadd.f32 %v14603_v4, %v12187_v38 }
 0x7c7   : > { %14599 = vst [vmem:[#allocation78_spill] sm:$0xff] %v12840_v55  ;;  %v8888_v7 = vpop.eup %8887  ;;  %v6281_v57 = vmul.f32 0.5, %v6153_v28  ;;  %v14602_v35 = vpack.c.bf16 %v14600_v54, %v14601_v58  ;;  %v5777_v55 = vadd.f32 %v5649_v30, %v12805_v39  ;;  %v5522_v28 = vmul.f32 %v5394_v1, %v12827_v43 }
 0x7c8   : > { %v8890_v16 = vpop.eup %8889  ;;  %v12855_v60 = vmul.f32 %v6279_v44, %v12675_v3  ;;  %v6155_v42 = vadd.f32 1.0, %v8888_v7  ;;  %v12859_v52 = vpop.f32.mrb[24].mxu1  ;;  %v5903_v54 = vmul.f32 0.7978846, %v5775_v18  ;;  %v5523_v1 = vmul.f32 %v5395_v2, %v12832_v22 }
 0x7c9   : > { %7024 = vmatmul.mubr.bf16.gmra.mrb[52].mxu0 %v14602_v35  ;;  %14605 = vst [vmem:[#allocation79_spill] sm:$0xff] %v12859_v52  ;;  %v12861_v58 = vpop.f32.mrb[24].mxu0  ;;  %v12864_v46 = vmul.f32 %v6281_v57, %v12679_v63  ;;  %v6157_v48 = vadd.f32 1.0, %v8890_v16  ;;  %v5776_v35 = vadd.f32 %v5648_v17, %v12817_v32  ;;  %v12867_v4 = vpop.f32.mrb[25].mxu1  ;;  %v5905_v7 = vmul.f32 0.7978846, %v5777_v55 }
 0x7ca   : > { %14604 = vst [vmem:[#allocation50_spill] sm:$0xff] %v12855_v60  ;;  %14606 = vst [vmem:[#allocation80_spill] sm:$0xff] %v12861_v58  ;;  %v12869_v3 = vpop.f32.mrb[25].mxu0  ;;  %v6283_v44 = vmul.f32 0.5, %v6155_v42  ;;  %v5650_v30 = vmul.f32 0.044715, %v5522_v28  ;;  %8895 = vtanh.f32 %v5903_v54  ;;  %v5397_v63 = vmul.f32 %v12852_v37, %v12852_v37 }
 0x7cb   : > { %14607 = vst [vmem:[#allocation45_spill] sm:$0xff] %v12864_v46  ;;  %14608 = vst [vmem:[#allocation81_spill] sm:$0xff] %v12867_v4  ;;  %v12872_v20 = vpop.f32.mrb[26].mxu1  ;;  %v6285_v52 = vmul.f32 0.5, %v6157_v48  ;;  %v5904_v58 = vmul.f32 0.7978846, %v5776_v35  ;;  %v12880_v17 = vpop.eup %8891  ;;  %8897 = vtanh.f32 %v5905_v7 }
 0x7cc   : > { %14609 = vst [vmem:[#allocation82_spill] sm:$0xff] %v12869_v3  ;;  %14610 = vst [vmem:[#allocation49_spill] sm:$0xff] %v12872_v20  ;;  %v12876_v57 = vpop.f32.mrb[26].mxu0  ;;  %v12878_v18 = vpop.f32.mrb[27].mxu1  ;;  %v12883_v16 = vmul.f32 %v6283_v44, %v12700_v9  ;;  %v5778_v55 = vadd.f32 %v5650_v30, %v12827_v43  ;;  %v5651_v2 = vmul.f32 0.044715, %v5523_v1  ;;  %v5525_v48 = vmul.f32 %v5397_v63, %v12852_v37 }
 0x7cd   : > { %14611 = vst [vmem:[#allocation2_spill] sm:$0xff] %v12876_v57  ;;  %14612 = vst [vmem:[#allocation3_spill] sm:$0xff] %v12878_v18  ;;  %v12886_v42 = vpop.f32.mrb[27].mxu0  ;;  %v12889_v28 = vmul.f32 %v6285_v52, %v12718_v41  ;;  %8899 = vtanh.f32 %v5904_v58  ;;  %v14616_v54 = vld [vmem:[#allocation29_spill] sm:$0xff]  ;;  %v14618_v63 = vld [vmem:[#allocation20_spill] sm:$0xff] }
 0x7ce   : > { %14613 = vst [vmem:[#allocation55_spill] sm:$0xff] %v12883_v16  ;;  %14614 = vst [vmem:[#allocation48_spill] sm:$0xff] %v12886_v42  ;;  %v12894_v35 = vadd.f32 %v14616_v54, %v12191_v53  ;;  %v5906_v44 = vmul.f32 0.7978846, %v5778_v55  ;;  %v5779_v7 = vadd.f32 %v5651_v2, %v12832_v22  ;;  %v14617_v30 = vld [vmem:[#allocation65_spill] sm:$0xff]  ;;  %v12903_v43 = vpop.eup %8893  ;;  %v6128_v54 = vadd.f32 1.0, %v14618_v63 }
 0x7cf   : > { %14615 = vst [vmem:[#allocation51_spill] sm:$0xff] %v12889_v28  ;;  %v12901_v1 = vadd.f32 %v14617_v30, %v12193_v12  ;;  %v5653_v52 = vmul.f32 0.044715, %v5525_v48  ;;  %v14619_v2 = vld [vmem:[#allocation86_spill] sm:$0xff]  ;;  %v14620_v57 = vld [vmem:[#allocation8_spill] sm:$0xff]  ;;  %v14621_v28 = vld [vmem:[#allocation59_spill] sm:$0xff] }
 0x7d0   : > { %v5396_v58 = vmul.f32 %v12894_v35, %v12894_v35  ;;  %8901 = vtanh.f32 %v5906_v44  ;;  %v5907_v9 = vmul.f32 0.7978846, %v5779_v7  ;;  %v6132_v32 = vadd.f32 1.0, %v14619_v2  ;;  %v14622_v20 = vld [vmem:[#allocation23_spill] sm:$0xff]  ;;  %v14623_v2 = vld [vmem:[#allocation26_spill] sm:$0xff] }
 0x7d1   : > { %v5398_v55 = vmul.f32 %v12901_v1, %v12901_v1  ;;  %v5781_v30 = vadd.f32 %v5653_v52, %v12852_v37  ;;  %v6256_v18 = vmul.f32 0.5, %v6128_v54  ;;  %v6130_v41 = vadd.f32 1.0, %v14620_v57 }
 0x7d2   : > { %v5524_v42 = vmul.f32 %v5396_v58, %v12894_v35  ;;  %8903 = vtanh.f32 %v5907_v9  ;;  %v6260_v46 = vmul.f32 0.5, %v6132_v32  ;;  %v6134_v63 = vadd.f32 1.0, %v14621_v28  ;;  %v14624_v32 = vld [vmem:[#allocation53_spill] sm:$0xff] }
 0x7d3   : > { %v5526_v48 = vmul.f32 %v5398_v55, %v12901_v1  ;;  %v5909_v44 = vmul.f32 0.7978846, %v5781_v30  ;;  %v6384_v60 = vmul.f32 %v6256_v18, %v14622_v20  ;;  %v6258_v16 = vmul.f32 0.5, %v6130_v41  ;;  %v14625_v41 = vld [vmem:[#allocation91_spill] sm:$0xff] }
 0x7d4   : > { %v5652_v7 = vmul.f32 0.044715, %v5524_v42  ;;  %v6388_v4 = vmul.f32 %v6260_v46, %v14623_v2  ;;  %v6262_v52 = vmul.f32 0.5, %v6134_v63  ;;  %v12922_v58 = vadd.f32 %v12641_v11, %v12183_v31  ;;  %v8896_v57 = vpop.eup %8895  ;;  %v14627_v2 = vld [vmem:[#allocation21_spill] sm:$0xff] }
 0x7d5   : > { %v5654_v3 = vmul.f32 0.044715, %v5526_v48  ;;  %8905 = vtanh.f32 %v5909_v44  ;;  %v6386_v54 = vmul.f32 %v6258_v16, %v14624_v32  ;;  %v12928_v42 = vadd.f32 %v12643_v10, %v12187_v38  ;;  %v8898_v20 = vpop.eup %8897 }
 0x7d6   : > { %v5780_v9 = vadd.f32 %v5652_v7, %v12894_v35  ;;  %v6159_v18 = vadd.f32 1.0, %v8896_v57  ;;  %v6504_v46 = vpack.c.bf16 %v6388_v4, %v6384_v60  ;;  %v6390_v55 = vmul.f32 %v6262_v52, %v14625_v41  ;;  %v14626_v4 = vld [vmem:[#allocation11_spill] sm:$0xff] }
 0x7d7   : > { %v5782_v28 = vadd.f32 %v5654_v3, %v12901_v1  ;;  %v12932_v30 = vpop.eup %8899  ;;  %v6161_v11 = vadd.f32 1.0, %v8898_v20  ;;  %v5399_v63 = vmul.f32 %v12922_v58, %v12922_v58  ;;  %v5401_v16 = vmul.f32 %v12928_v42, %v12928_v42 }
 0x7d8   : > { %v5908_v48 = vmul.f32 0.7978846, %v5780_v9  ;;  %v6287_v44 = vmul.f32 0.5, %v6159_v18  ;;  %6870 = vmatprep.mubr.bf16.mxu1 %v6504_v46  ;;  %v6506_v7 = vpack.c.bf16 %v6390_v55, %v6386_v54  ;;  %v12940_v3 = vadd.f32 %v12649_v25, %v12191_v53  ;;  %v14632_v46 = vld [vmem:[#allocation57_spill] sm:$0xff] }
 0x7d9   : > { %v5910_v10 = vmul.f32 0.7978846, %v5782_v28  ;;  %v6289_v60 = vmul.f32 0.5, %v6161_v11  ;;  %v14628_v52 = vpack.c.bf16 %v14626_v4, %v14627_v2  ;;  %v5527_v57 = vmul.f32 %v5399_v63, %v12922_v58  ;;  %v14631_v28 = vld [vmem:[#allocation60_spill] sm:$0xff] }
 0x7da   : > { %8907 = vtanh.f32 %v5908_v48  ;;  %v5529_v9 = vmul.f32 %v5401_v16, %v12928_v42  ;;  %v12947_v32 = vpop.eup %8901  ;;  %v12950_v20 = vmul.f32 %v6287_v44, %v12796_v19  ;;  %7031 = vmatprep.mubr.bf16.mxu0 %v6506_v7  ;;  %v5400_v25 = vmul.f32 %v12940_v3, %v12940_v3 }
 0x7db   : > { %6871 = vmatmul.mubr.bf16.gmra.mrb[56].mxu1 %v14628_v52  ;;  %8909 = vtanh.f32 %v5910_v10  ;;  %v12956_v54 = vadd.f32 %v12651_v61, %v12193_v12  ;;  %v12959_v18 = vmul.f32 %v6289_v60, %v12805_v39  ;;  %v14633_v41 = vpack.c.bf16 %v14631_v28, %v14632_v46 }
 0x7dc   : > { %v5655_v55 = vmul.f32 0.044715, %v5527_v57  ;;  %v5657_v11 = vmul.f32 0.044715, %v5529_v9  ;;  %v12966_v19 = vadd.f32 %v12657_v29, %v12183_v31  ;;  %v8904_v48 = vpop.eup %8903  ;;  %v5528_v63 = vmul.f32 %v5400_v25, %v12940_v3 }
 0x7dd   : > { %14629 = vst [vmem:[#allocation17_spill] sm:$0xff] %v12956_v54  ;;  %14630 = vst [vmem:[#allocation52_spill] sm:$0xff] %v12959_v18  ;;  %7032 = vmatmul.mubr.bf16.gmra.mrb[56].mxu0 %v14633_v41  ;;  %v5402_v61 = vmul.f32 %v12956_v54, %v12956_v54  ;;  %v12973_v39 = vadd.f32 %v12659_v0, %v12187_v38  ;;  %v12977_v16 = vadd.f32 %v12662_v5, %v12191_v53 }
 0x7de   : > { %v6163_v44 = vadd.f32 1.0, %v8904_v48  ;;  %v5783_v10 = vadd.f32 %v5655_v55, %v12922_v58  ;;  %v5785_v29 = vadd.f32 %v5657_v11, %v12928_v42  ;;  %v5403_v7 = vmul.f32 %v12966_v19, %v12966_v19 }
 0x7df   : > { %v5656_v60 = vmul.f32 0.044715, %v5528_v63  ;;  %v5530_v4 = vmul.f32 %v5402_v61, %v12956_v54  ;;  %v5405_v2 = vmul.f32 %v12973_v39, %v12973_v39  ;;  %v5404_v0 = vmul.f32 %v12977_v16, %v12977_v16  ;;  %v8906_v52 = vpop.eup %8905 }
 0x7e0   : > { %v6291_v5 = vmul.f32 0.5, %v6163_v44  ;;  %v5911_v57 = vmul.f32 0.7978846, %v5783_v10  ;;  %v5913_v9 = vmul.f32 0.7978846, %v5785_v29  ;;  %v5531_v25 = vmul.f32 %v5403_v7, %v12966_v19 }
 0x7e1   : > { %v6165_v28 = vadd.f32 1.0, %v8906_v52  ;;  %v5784_v46 = vadd.f32 %v5656_v60, %v12940_v3  ;;  %v5658_v41 = vmul.f32 0.044715, %v5530_v4  ;;  %v5533_v55 = vmul.f32 %v5405_v2, %v12973_v39 }
 0x7e2   : > { %v12992_v11 = vmul.f32 %v6291_v5, %v12832_v22  ;;  %8911 = vtanh.f32 %v5911_v57  ;;  %v5659_v48 = vmul.f32 0.044715, %v5531_v25  ;;  %v5532_v63 = vmul.f32 %v5404_v0, %v12977_v16 }
 0x7e3   : > { %v6293_v61 = vmul.f32 0.5, %v6165_v28  ;;  %8913 = vtanh.f32 %v5913_v9  ;;  %v5912_v44 = vmul.f32 0.7978846, %v5784_v46  ;;  %v5786_v10 = vadd.f32 %v5658_v41, %v12956_v54  ;;  %v14634_v28 = vld [vmem:[#allocation62_spill] sm:$0xff] }
 0x7e4   : > { %v12996_v29 = vpop.eup %8907  ;;  %v5787_v60 = vadd.f32 %v5659_v48, %v12966_v19  ;;  %v5661_v4 = vmul.f32 0.044715, %v5533_v55  ;;  %v5660_v2 = vmul.f32 0.044715, %v5532_v63  ;;  %v13008_v5 = vadd.f32 %v12667_v56, %v12193_v12 }
 0x7e5   : > { %v13001_v22 = vpop.eup %8909  ;;  %v13004_v52 = vmul.f32 %v6293_v61, %v12852_v37  ;;  %8915 = vtanh.f32 %v5912_v44  ;;  %v5914_v0 = vmul.f32 0.7978846, %v5786_v10  ;;  %v6136_v46 = vadd.f32 1.0, %v14634_v28  ;;  %v14635_v10 = vld [vmem:[#allocation34_spill] sm:$0xff] }
 0x7e6   : > { %v5915_v57 = vmul.f32 0.7978846, %v5787_v60  ;;  %v5789_v9 = vadd.f32 %v5661_v4, %v12973_v39  ;;  %v5788_v25 = vadd.f32 %v5660_v2, %v12977_v16  ;;  %v5406_v37 = vmul.f32 %v13008_v5, %v13008_v5  ;;  %v14636_v2 = vld [vmem:[#allocation56_spill] sm:$0xff] }
 0x7e7   : > { %8917 = vtanh.f32 %v5914_v0  ;;  %v6140_v55 = vadd.f32 1.0, %v12632_v45  ;;  %v6264_v63 = vmul.f32 0.5, %v6136_v46  ;;  %v6138_v60 = vadd.f32 1.0, %v14635_v10  ;;  %v14638_v10 = vld [vmem:[#allocation19_spill] sm:$0xff] }
 0x7e8   : > { %8919 = vtanh.f32 %v5915_v57  ;;  %v5917_v48 = vmul.f32 0.7978846, %v5789_v9  ;;  %v5916_v56 = vmul.f32 0.7978846, %v5788_v25  ;;  %v5534_v61 = vmul.f32 %v5406_v37, %v13008_v5  ;;  %v14637_v9 = vld [vmem:[#allocation58_spill] sm:$0xff] }
 0x7e9   : > { %v6268_v44 = vmul.f32 0.5, %v6140_v55  ;;  %v6142_v4 = vadd.f32 1.0, %v12635_v50  ;;  %v6392_v28 = vmul.f32 %v6264_v63, %v14636_v2  ;;  %v13024_v0 = vadd.f32 %v12727_v59, %v12183_v31  ;;  %v14639_v2 = vld [vmem:[#allocation25_spill] sm:$0xff] }
 0x7ea   : > { %8921 = vtanh.f32 %v5917_v48  ;;  %v13028_v45 = vadd.f32 %v12729_v62, %v12187_v38  ;;  %v5662_v57 = vmul.f32 0.044715, %v5534_v61  ;;  %v6266_v46 = vmul.f32 0.5, %v6138_v60 }
 0x7eb   : > { %8923 = vtanh.f32 %v5916_v56  ;;  %v6396_v25 = vmul.f32 %v6268_v44, %v14637_v9  ;;  %v6270_v55 = vmul.f32 0.5, %v6142_v4  ;;  %v5407_v50 = vmul.f32 %v13024_v0, %v13024_v0 }
 0x7ec   : > { %v8912_v37 = vpop.eup %8911  ;;  %v5409_v48 = vmul.f32 %v13028_v45, %v13028_v45  ;;  %v13037_v59 = vadd.f32 %v12736_v8, %v12191_v53  ;;  %v5790_v56 = vadd.f32 %v5662_v57, %v13008_v5  ;;  %v6394_v44 = vmul.f32 %v6266_v46, %v14638_v10 }
 0x7ed   : > { %v8914_v63 = vpop.eup %8913  ;;  %v6167_v62 = vadd.f32 1.0, %v8912_v37  ;;  %v6508_v61 = vpack.c.bf16 %v6396_v25, %v6392_v28  ;;  %v6398_v4 = vmul.f32 %v6270_v55, %v14639_v2  ;;  %v5535_v9 = vmul.f32 %v5407_v50, %v13024_v0  ;;  %v13052_v57 = vpop.f32.mrb[28].mxu1 }
 0x7ee   : > { %v6169_v60 = vadd.f32 1.0, %v8914_v63  ;;  %v5537_v41 = vmul.f32 %v5409_v48, %v13028_v45  ;;  %v5918_v18 = vmul.f32 0.7978846, %v5790_v56  ;;  %v5408_v8 = vmul.f32 %v13037_v59, %v13037_v59  ;;  %14640 = vst [vmem:[#allocation63_spill] sm:$0xff] %v13052_v57  ;;  %v13054_v25 = vpop.f32.mrb[28].mxu0  ;;  %v13059_v63 = vpop.f32.mrb[29].mxu1 }
 0x7ef   : > { %v13044_v7 = vpop.eup %8915  ;;  %v6295_v54 = vmul.f32 0.5, %v6167_v62  ;;  %6878 = vmatprep.mubr.bf16.mxu1 %v6508_v61  ;;  %v13050_v28 = vadd.f32 %v12738_v27, %v12193_v12  ;;  %14641 = vst [vmem:[#allocation12_spill] sm:$0xff] %v13054_v25  ;;  %v6510_v37 = vpack.c.bf16 %v6398_v4, %v6394_v44  ;;  %v14642_v55 = vpack.c.bf16 %v12638_v40, %v12585_v51  ;;  %v13069_v10 = vpop.f32.mrb[29].mxu0  ;;  %v14649_v4 = vld [vmem:[#allocation66_spill] sm:$0xff]  ;;  %v14665_v57 = vld [vmem:[#allocation33_spill] sm:$0xff] }
 0x7f0   : > { %v6297_v46 = vmul.f32 0.5, %v6169_v60  ;;  %v5663_v50 = vmul.f32 0.044715, %v5535_v9  ;;  %v5665_v48 = vmul.f32 0.044715, %v5537_v41  ;;  %14643 = vst [vmem:[#allocation16_spill] sm:$0xff] %v13059_v63  ;;  %8925 = vtanh.f32 %v5918_v18 }
 0x7f1   : > { %6879 = vmatmul.mubr.bf16.gmra.mrb[60].mxu1 %v14642_v55  ;;  %v13061_v62 = vpop.eup %8917  ;;  %v13064_v56 = vmul.f32 %v6295_v54, %v12922_v58  ;;  %v5536_v27 = vmul.f32 %v5408_v8, %v13037_v59  ;;  %v5410_v61 = vmul.f32 %v13050_v28, %v13050_v28  ;;  %14644 = vst [vmem:[#allocation85_spill] sm:$0xff] %v13069_v10  ;;  %v13071_v44 = vpop.f32.mrb[30].mxu1  ;;  %v14660_v63 = vld [vmem:[#allocation42_spill] sm:$0xff] }
 0x7f2   : > { %14645 = vst [vmem:[#allocation54_spill] sm:$0xff] %v13071_v44  ;;  %v8920_v51 = vpop.eup %8919  ;;  %v13074_v40 = vmul.f32 %v6297_v46, %v12928_v42  ;;  %7039 = vmatprep.mubr.bf16.mxu0 %v6510_v37  ;;  %v5791_v41 = vadd.f32 %v5663_v50, %v13024_v0  ;;  %v5793_v58 = vadd.f32 %v5665_v48, %v13028_v45  ;;  %v13082_v18 = vpop.f32.mrb[30].mxu0 }
 0x7f3   : > { %v13080_v54 = vadd.f32 %v12744_v14, %v12183_v31  ;;  %14647 = vst [vmem:[#allocation29_spill] sm:$0xff] %v13082_v18  ;;  %v13084_v60 = vpop.f32.mrb[31].mxu1  ;;  %v6171_v2 = vadd.f32 1.0, %v8920_v51  ;;  %v14650_v9 = vpack.c.bf16 %v12654_v49, %v14649_v4  ;;  %v5664_v42 = vmul.f32 0.044715, %v5536_v27  ;;  %v13094_v37 = vpop.f32.mrb[31].mxu0 }
 0x7f4   : > { %14646 = vst [vmem:[#allocation64_spill] sm:$0xff] %v13074_v40  ;;  %14648 = vst [vmem:[#allocation65_spill] sm:$0xff] %v13084_v60  ;;  %v5538_v8 = vmul.f32 %v5410_v61, %v13050_v28  ;;  %v13092_v46 = vadd.f32 %v12751_v36, %v12187_v38  ;;  %v8922_v14 = vpop.eup %8921  ;;  %v5919_v55 = vmul.f32 0.7978846, %v5791_v41  ;;  %v5921_v50 = vmul.f32 0.7978846, %v5793_v58 }
 0x7f5   : > { %7040 = vmatmul.mubr.bf16.gmra.mrb[60].mxu0 %v14650_v9  ;;  %14651 = vst [vmem:[#allocation20_spill] sm:$0xff] %v13094_v37  ;;  %v5411_v48 = vmul.f32 %v13080_v54, %v13080_v54  ;;  %v14652_v51 = vld [vmem:[#allocation37_spill] sm:$0xff]  ;;  %v13102_v49 = vpop.eup %8923  ;;  %v6299_v27 = vmul.f32 0.5, %v6171_v2  ;;  %v6173_v61 = vadd.f32 1.0, %v8922_v14  ;;  %v5792_v4 = vadd.f32 %v5664_v42, %v13037_v59 }
 0x7f6   : > { %v13100_v60 = vadd.f32 %v14652_v51, %v12191_v53  ;;  %v5666_v36 = vmul.f32 0.044715, %v5538_v8  ;;  %8927 = vtanh.f32 %v5919_v55  ;;  %v5413_v41 = vmul.f32 %v13092_v46, %v13092_v46 }
 0x7f7   : > { %v5539_v9 = vmul.f32 %v5411_v48, %v13080_v54  ;;  %v13111_v37 = vmul.f32 %v6299_v27, %v12966_v19  ;;  %v6301_v51 = vmul.f32 0.5, %v6173_v61  ;;  %8929 = vtanh.f32 %v5921_v50 }
 0x7f8   : > { %v5412_v58 = vmul.f32 %v13100_v60, %v13100_v60  ;;  %v5920_v18 = vmul.f32 0.7978846, %v5792_v4  ;;  %v5794_v2 = vadd.f32 %v5666_v36, %v13050_v28  ;;  %v5541_v42 = vmul.f32 %v5413_v41, %v13092_v46 }
 0x7f9   : > { %v5667_v14 = vmul.f32 0.044715, %v5539_v9  ;;  %v13119_v48 = vmul.f32 %v6301_v51, %v12973_v39  ;;  %v13123_v19 = vadd.f32 %v12759_v33, %v12193_v12  ;;  %v14654_v39 = vld [vmem:[#allocation70_spill] sm:$0xff]  ;;  %v13134_v55 = vpop.f32.mrb[32].mxu1  ;;  %v13136_v33 = vpop.f32.mrb[32].mxu0 }
 0x7fa   : > { %v5540_v8 = vmul.f32 %v5412_v58, %v13100_v60  ;;  %8931 = vtanh.f32 %v5920_v18  ;;  %v5922_v50 = vmul.f32 0.7978846, %v5794_v2  ;;  %v5669_v61 = vmul.f32 0.044715, %v5541_v42  ;;  %v13126_v36 = vpop.eup %8925  ;;  %v14655_v18 = vld [vmem:[#allocation73_spill] sm:$0xff]  ;;  %14656 = vst [vmem:[#allocation8_spill] sm:$0xff] %v13134_v55 }
 0x7fb   : > { %14653 = vst [vmem:[#allocation86_spill] sm:$0xff] %v13119_v48  ;;  %v5795_v27 = vadd.f32 %v5667_v14, %v13080_v54  ;;  %v5414_v41 = vmul.f32 %v13123_v19, %v13123_v19  ;;  %v6144_v58 = vadd.f32 1.0, %v14654_v39  ;;  %v6148_v51 = vadd.f32 1.0, %v14655_v18  ;;  %14657 = vst [vmem:[#allocation59_spill] sm:$0xff] %v13136_v33  ;;  %v13142_v9 = vpop.f32.mrb[33].mxu0  ;;  %v14664_v33 = vld [vmem:[#allocation31_spill] sm:$0xff] }
 0x7fc   : > { %v5668_v4 = vmul.f32 0.044715, %v5540_v8  ;;  %8933 = vtanh.f32 %v5922_v50  ;;  %v5797_v14 = vadd.f32 %v5669_v61, %v13092_v46  ;;  %v13140_v8 = vpop.f32.mrb[33].mxu1  ;;  %14659 = vst [vmem:[#allocation26_spill] sm:$0xff] %v13142_v9  ;;  %v6146_v18 = vadd.f32 1.0, %v14660_v63  ;;  %v13148_v55 = vpop.f32.mrb[34].mxu0 }
 0x7fd   : > { %v5923_v2 = vmul.f32 0.7978846, %v5795_v27  ;;  %14658 = vst [vmem:[#allocation23_spill] sm:$0xff] %v13140_v8  ;;  %v5542_v44 = vmul.f32 %v5414_v41, %v13123_v19  ;;  %v6272_v10 = vmul.f32 0.5, %v6144_v58  ;;  %v6276_v39 = vmul.f32 0.5, %v6148_v51  ;;  %v13146_v25 = vpop.f32.mrb[34].mxu1 }
 0x7fe   : > { %v5796_v42 = vadd.f32 %v5668_v4, %v13100_v60  ;;  %14661 = vst [vmem:[#allocation53_spill] sm:$0xff] %v13146_v25  ;;  %14662 = vst [vmem:[#allocation91_spill] sm:$0xff] %v13148_v55  ;;  %v5925_v50 = vmul.f32 0.7978846, %v5797_v14  ;;  %v6150_v61 = vadd.f32 1.0, %v12761_v23  ;;  %v13151_v4 = vpop.f32.mrb[35].mxu1  ;;  %v13163_v23 = vadd.f32 %v12785_v15, %v12187_v38 }
 0x7ff   : > { %8935 = vtanh.f32 %v5923_v2  ;;  %14663 = vst [vmem:[#allocation11_spill] sm:$0xff] %v13151_v4  ;;  %v5670_v8 = vmul.f32 0.044715, %v5542_v44  ;;  %v6400_v9 = vmul.f32 %v6272_v10, %v14664_v33  ;;  %v6404_v41 = vmul.f32 %v6276_v39, %v14665_v57  ;;  %v13155_v51 = vpop.f32.mrb[35].mxu0 }
 0x800   : > { %v5924_v27 = vmul.f32 0.7978846, %v5796_v42  ;;  %v6274_v58 = vmul.f32 0.5, %v6146_v18  ;;  %14666 = vst [vmem:[#allocation21_spill] sm:$0xff] %v13155_v51  ;;  %v8928_v63 = vpop.eup %8927  ;;  %8937 = vtanh.f32 %v5925_v50  ;;  %v6278_v25 = vmul.f32 0.5, %v6150_v61  ;;  %v14667_v42 = vld [vmem:[#allocation61_spill] sm:$0xff] }
 0x801   : > { %v13159_v2 = vadd.f32 %v12783_v6, %v12183_v31  ;;  %v8930_v14 = vpop.eup %8929  ;;  %v6175_v44 = vadd.f32 1.0, %v8928_v63  ;;  %v5798_v10 = vadd.f32 %v5670_v8, %v13123_v19  ;;  %v6512_v57 = vpack.c.bf16 %v6404_v41, %v6400_v9  ;;  %v14668_v18 = vld [vmem:[#allocation67_spill] sm:$0xff] }
 0x802   : > { %8939 = vtanh.f32 %v5924_v27  ;;  %v6177_v33 = vadd.f32 1.0, %v8930_v14  ;;  %v6402_v39 = vmul.f32 %v6274_v58, %v14667_v42  ;;  %v6406_v50 = vmul.f32 %v6278_v25, %v14668_v18  ;;  %v14676_v42 = vld [vmem:[#allocation74_spill] sm:$0xff]  ;;  %v14677_v18 = vld [vmem:[#allocation41_spill] sm:$0xff] }
 0x803   : > { %v5415_v61 = vmul.f32 %v13159_v2, %v13159_v2  ;;  %v6303_v51 = vmul.f32 0.5, %v6175_v44  ;;  %v5926_v4 = vmul.f32 0.7978846, %v5798_v10  ;;  %6886 = vmatprep.mubr.bf16.mxu1 %v6512_v57  ;;  %v5417_v15 = vmul.f32 %v13163_v23, %v13163_v23  ;;  %v14674_v10 = vld [vmem:[#allocation69_spill] sm:$0xff] }
 0x804   : > { %v13170_v6 = vpop.eup %8931  ;;  %v13176_v8 = vadd.f32 %v12789_v34, %v12191_v53  ;;  %v6305_v9 = vmul.f32 0.5, %v6177_v33  ;;  %v6514_v27 = vpack.c.bf16 %v6406_v50, %v6402_v39  ;;  %v14669_v25 = vpack.c.bf16 %v12766_v26, %v12670_v47 }
 0x805   : > { %v5543_v41 = vmul.f32 %v5415_v61, %v13159_v2  ;;  %v13184_v58 = vadd.f32 %v12791_v24, %v12193_v12  ;;  %v13187_v63 = vmul.f32 %v6303_v51, %v13024_v0  ;;  %8941 = vtanh.f32 %v5926_v4  ;;  %v13203_v4 = vpop.f32.mrb[36].mxu1  ;;  %v13205_v51 = vpop.f32.mrb[36].mxu0 }
 0x806   : > { %6887 = vmatmul.mubr.bf16.gmra.mrb[64].mxu1 %v14669_v25  ;;  %v5545_v14 = vmul.f32 %v5417_v15, %v13163_v23  ;;  %v5416_v34 = vmul.f32 %v13176_v8, %v13176_v8  ;;  %v13192_v44 = vpop.eup %8933  ;;  %v13195_v47 = vmul.f32 %v6305_v9, %v13028_v45  ;;  %7047 = vmatprep.mubr.bf16.mxu0 %v6514_v27  ;;  %v13221_v61 = vpop.f32.mrb[37].mxu0  ;;  %v14680_v25 = vld [vmem:[#allocation75_spill] sm:$0xff] }
 0x807   : > { %14670 = vst [vmem:[#allocation60_spill] sm:$0xff] %v13187_v63  ;;  %v5671_v26 = vmul.f32 0.044715, %v5543_v41  ;;  %v5418_v24 = vmul.f32 %v13184_v58, %v13184_v58  ;;  %v13201_v0 = vadd.f32 %v12798_v21, %v12183_v31  ;;  %14672 = vst [vmem:[#allocation62_spill] sm:$0xff] %v13203_v4  ;;  %v14675_v57 = vpack.c.bf16 %v12772_v13, %v14674_v10  ;;  %v13219_v21 = vpop.f32.mrb[37].mxu1 }
 0x808   : > { %14671 = vst [vmem:[#allocation57_spill] sm:$0xff] %v13195_v47  ;;  %14673 = vst [vmem:[#allocation34_spill] sm:$0xff] %v13205_v51  ;;  %v5673_v33 = vmul.f32 0.044715, %v5545_v14  ;;  %v5544_v45 = vmul.f32 %v5416_v34, %v13176_v8  ;;  %v13213_v39 = vadd.f32 %v14676_v42, %v12187_v38  ;;  %v13217_v50 = vadd.f32 %v14677_v18, %v12191_v53  ;;  %v13231_v14 = vpop.f32.mrb[38].mxu1  ;;  %v13233_v34 = vpop.f32.mrb[38].mxu0 }
 0x809   : > { %7048 = vmatmul.mubr.bf16.gmra.mrb[64].mxu0 %v14675_v57  ;;  %14678 = vst [vmem:[#allocation56_spill] sm:$0xff] %v13219_v21  ;;  %14679 = vst [vmem:[#allocation58_spill] sm:$0xff] %v13221_v61  ;;  %v8936_v15 = vpop.eup %8935  ;;  %v5799_v9 = vadd.f32 %v5671_v26, %v13159_v2  ;;  %v5546_v13 = vmul.f32 %v5418_v24, %v13184_v58  ;;  %v5419_v27 = vmul.f32 %v13201_v0, %v13201_v0  ;;  %v13238_v18 = vpop.f32.mrb[39].mxu1 }
 0x80a   : > { %v13229_v41 = vadd.f32 %v14680_v25, %v12193_v12  ;;  %14682 = vst [vmem:[#allocation25_spill] sm:$0xff] %v13231_v14  ;;  %14683 = vst [vmem:[#allocation66_spill] sm:$0xff] %v13233_v34  ;;  %v6179_v10 = vadd.f32 1.0, %v8936_v15  ;;  %v5801_v57 = vadd.f32 %v5673_v33, %v13163_v23  ;;  %v5672_v42 = vmul.f32 0.044715, %v5544_v45  ;;  %v13240_v24 = vpop.f32.mrb[39].mxu0  ;;  %v8938_v61 = vpop.eup %8937 }
 0x80b   : > { %v5421_v26 = vmul.f32 %v13213_v39, %v13213_v39  ;;  %14684 = vst [vmem:[#allocation37_spill] sm:$0xff] %v13238_v18  ;;  %14685 = vst [vmem:[#allocation70_spill] sm:$0xff] %v13240_v24  ;;  %v5927_v21 = vmul.f32 0.7978846, %v5799_v9  ;;  %v5674_v51 = vmul.f32 0.044715, %v5546_v13  ;;  %v5547_v25 = vmul.f32 %v5419_v27, %v13201_v0 }
 0x80c   : > { %14681 = vst [vmem:[#allocation19_spill] sm:$0xff] %v13229_v41  ;;  %v5420_v14 = vmul.f32 %v13217_v50, %v13217_v50  ;;  %v13245_v34 = vpop.eup %8939  ;;  %v6307_v15 = vmul.f32 0.5, %v6179_v10  ;;  %v6181_v33 = vadd.f32 1.0, %v8938_v61  ;;  %v5929_v45 = vmul.f32 0.7978846, %v5801_v57 }
 0x80d   : > { %v5800_v4 = vadd.f32 %v5672_v42, %v13176_v8  ;;  %8943 = vtanh.f32 %v5927_v21  ;;  %v5802_v18 = vadd.f32 %v5674_v51, %v13184_v58  ;;  %v5675_v55 = vmul.f32 0.044715, %v5547_v25 }
 0x80e   : > { %v5549_v24 = vmul.f32 %v5421_v26, %v13213_v39  ;;  %v13251_v9 = vmul.f32 %v6307_v15, %v13080_v54  ;;  %v6309_v13 = vmul.f32 0.5, %v6181_v33  ;;  %8945 = vtanh.f32 %v5929_v45  ;;  %v14689_v33 = vld [vmem:[#allocation78_spill] sm:$0xff] }
 0x80f   : > { %v5928_v27 = vmul.f32 0.7978846, %v5800_v4  ;;  %v5930_v40 = vmul.f32 0.7978846, %v5802_v18  ;;  %v5803_v48 = vadd.f32 %v5675_v55, %v13201_v0  ;;  %v5548_v61 = vmul.f32 %v5420_v14, %v13217_v50  ;;  %v13255_v57 = vpop.eup %8941  ;;  %v14688_v18 = vld [vmem:[#allocation77_spill] sm:$0xff] }
 0x810   : > { %14686 = vst [vmem:[#allocation73_spill] sm:$0xff] %v13251_v9  ;;  %v5677_v10 = vmul.f32 0.044715, %v5549_v24  ;;  %v13260_v21 = vmul.f32 %v6309_v13, %v13092_v46  ;;  %v5422_v54 = vmul.f32 %v13229_v41, %v13229_v41  ;;  %v6152_v24 = vadd.f32 1.0, %v14688_v18  ;;  %v14691_v18 = vld [vmem:[#allocation79_spill] sm:$0xff] }
 0x811   : > { %8947 = vtanh.f32 %v5928_v27  ;;  %v5931_v4 = vmul.f32 0.7978846, %v5803_v48  ;;  %v5676_v55 = vmul.f32 0.044715, %v5548_v61  ;;  %v6156_v25 = vadd.f32 1.0, %v12880_v17  ;;  %v13279_v17 = vpop.f32.mrb[40].mxu0 }
 0x812   : > { %14687 = vst [vmem:[#allocation42_spill] sm:$0xff] %v13260_v21  ;;  %8949 = vtanh.f32 %v5930_v40  ;;  %v5805_v42 = vadd.f32 %v5677_v10, %v13213_v39  ;;  %v5550_v26 = vmul.f32 %v5422_v54, %v13229_v41  ;;  %v6154_v45 = vadd.f32 1.0, %v14689_v33  ;;  %v13273_v10 = vpop.f32.mrb[40].mxu1  ;;  %14692 = vst [vmem:[#allocation33_spill] sm:$0xff] %v13279_v17  ;;  %v13286_v33 = vpop.f32.mrb[41].mxu0 }
 0x813   : > { %8951 = vtanh.f32 %v5931_v4  ;;  %v5804_v15 = vadd.f32 %v5676_v55, %v13217_v50  ;;  %v6280_v48 = vmul.f32 0.5, %v6152_v24  ;;  %v6284_v13 = vmul.f32 0.5, %v6156_v25  ;;  %14690 = vst [vmem:[#allocation31_spill] sm:$0xff] %v13273_v10  ;;  %v13281_v4 = vpop.f32.mrb[41].mxu1  ;;  %v14694_v55 = vld [vmem:[#allocation68_spill] sm:$0xff]  ;;  %v14695_v24 = vld [vmem:[#allocation71_spill] sm:$0xff] }
 0x814   : > { %v5933_v46 = vmul.f32 0.7978846, %v5805_v42  ;;  %v5678_v40 = vmul.f32 0.044715, %v5550_v26  ;;  %v6158_v27 = vadd.f32 1.0, %v12903_v43  ;;  %v6282_v54 = vmul.f32 0.5, %v6154_v45 }
 0x815   : > { %v5932_v61 = vmul.f32 0.7978846, %v5804_v15  ;;  %v13277_v14 = vadd.f32 %v14691_v18, %v12183_v31  ;;  %14693 = vst [vmem:[#allocation61_spill] sm:$0xff] %v13281_v4  ;;  %v6408_v26 = vmul.f32 %v6280_v48, %v14694_v55  ;;  %v6412_v25 = vmul.f32 %v6284_v13, %v14695_v24  ;;  %14696 = vst [vmem:[#allocation67_spill] sm:$0xff] %v13286_v33  ;;  %v14698_v45 = vld [vmem:[#allocation39_spill] sm:$0xff]  ;;  %v14699_v4 = vld [vmem:[#allocation80_spill] sm:$0xff] }
 0x816   : > { %8953 = vtanh.f32 %v5933_v46  ;;  %v5806_v42 = vadd.f32 %v5678_v40, %v13229_v41  ;;  %v6286_v43 = vmul.f32 0.5, %v6158_v27  ;;  %v13288_v46 = vpop.f32.mrb[42].mxu1  ;;  %v6410_v18 = vmul.f32 %v6282_v54, %v14698_v45  ;;  %v13297_v40 = vpop.f32.mrb[42].mxu0 }
 0x817   : > { %14697 = vst [vmem:[#allocation69_spill] sm:$0xff] %v13288_v46  ;;  %v8944_v15 = vpop.eup %8943  ;;  %8955 = vtanh.f32 %v5932_v61  ;;  %v5423_v51 = vmul.f32 %v13277_v14, %v13277_v14  ;;  %v13295_v17 = vadd.f32 %v14699_v4, %v12187_v38  ;;  %14700 = vst [vmem:[#allocation74_spill] sm:$0xff] %v13297_v40  ;;  %v13299_v48 = vpop.f32.mrb[43].mxu1  ;;  %v6516_v24 = vpack.c.bf16 %v6412_v25, %v6408_v26  ;;  %v14702_v46 = vld [vmem:[#allocation72_spill] sm:$0xff]  ;;  %v14704_v4 = vld [vmem:[#allocation81_spill] sm:$0xff] }
 0x818   : > { %14701 = vst [vmem:[#allocation41_spill] sm:$0xff] %v13299_v48  ;;  %v8946_v13 = vpop.eup %8945  ;;  %v6183_v27 = vadd.f32 1.0, %v8944_v15  ;;  %v5934_v55 = vmul.f32 0.7978846, %v5806_v42  ;;  %v6414_v33 = vmul.f32 %v6286_v43, %v14702_v46  ;;  %v13302_v61 = vpop.f32.mrb[43].mxu0  ;;  %v13309_v47 = vadd.f32 %v14704_v4, %v12191_v53  ;;  %v14705_v26 = vld [vmem:[#allocation82_spill] sm:$0xff] }
 0x819   : > { %14703 = vst [vmem:[#allocation75_spill] sm:$0xff] %v13302_v61  ;;  %v6185_v54 = vadd.f32 1.0, %v8946_v13  ;;  %v5551_v45 = vmul.f32 %v5423_v51, %v13277_v14  ;;  %v5425_v10 = vmul.f32 %v13295_v17, %v13295_v17  ;;  %6894 = vmatprep.mubr.bf16.mxu1 %v6516_v24  ;;  %v13315_v25 = vadd.f32 %v14705_v26, %v12193_v12  ;;  %v14706_v46 = vld [vmem:[#allocation55_spill] sm:$0xff]  ;;  %v14707_v15 = vld [vmem:[#allocation50_spill] sm:$0xff] }
 0x81a   : > { %v6311_v48 = vmul.f32 0.5, %v6183_v27  ;;  %8957 = vtanh.f32 %v5934_v55  ;;  %v6518_v42 = vpack.c.bf16 %v6414_v33, %v6410_v18  ;;  %v14708_v13 = vpack.c.bf16 %v14706_v46, %v14707_v15  ;;  %v14709_v18 = vld [vmem:[#allocation49_spill] sm:$0xff]  ;;  %v14712_v46 = vld [vmem:[#allocation51_spill] sm:$0xff] }
 0x81b   : > { %v13311_v40 = vpop.eup %8947  ;;  %v6313_v51 = vmul.f32 0.5, %v6185_v54  ;;  %v5679_v61 = vmul.f32 0.044715, %v5551_v45  ;;  %v5553_v4 = vmul.f32 %v5425_v10, %v13295_v17  ;;  %v5424_v27 = vmul.f32 %v13309_v47, %v13309_v47  ;;  %v14710_v54 = vld [vmem:[#allocation2_spill] sm:$0xff]  ;;  %v14713_v15 = vld [vmem:[#allocation45_spill] sm:$0xff] }
 0x81c   : > { %v13317_v43 = vpop.eup %8949  ;;  %6895 = vmatmul.mubr.bf16.gmra.mrb[68].mxu1 %v14708_v13  ;;  %v13326_v55 = vmul.f32 %v6311_v48, %v13159_v2  ;;  %7055 = vmatprep.mubr.bf16.mxu0 %v6518_v42  ;;  %v5426_v33 = vmul.f32 %v13315_v25, %v13315_v25  ;;  %v13332_v24 = vadd.f32 %v14709_v18, %v12183_v31 }
 0x81d   : > { %v13336_v26 = vadd.f32 %v14710_v54, %v12187_v38  ;;  %v8952_v45 = vpop.eup %8951  ;;  %v13339_v10 = vmul.f32 %v6313_v51, %v13163_v23  ;;  %v14714_v2 = vpack.c.bf16 %v14712_v46, %v14713_v15  ;;  %v5807_v48 = vadd.f32 %v5679_v61, %v13277_v14  ;;  %v14715_v15 = vld [vmem:[#allocation3_spill] sm:$0xff] }
 0x81e   : > { %v5681_v42 = vmul.f32 0.044715, %v5553_v4  ;;  %v5552_v13 = vmul.f32 %v5424_v27, %v13309_v47  ;;  %v6187_v21 = vadd.f32 1.0, %v8952_v45  ;;  %v5554_v18 = vmul.f32 %v5426_v33, %v13315_v25  ;;  %v13356_v4 = vpop.f32.mrb[44].mxu1  ;;  %v13358_v27 = vpop.f32.mrb[44].mxu0 }
 0x81f   : > { %14711 = vst [vmem:[#allocation77_spill] sm:$0xff] %v13339_v10  ;;  %7056 = vmatmul.mubr.bf16.gmra.mrb[68].mxu0 %v14714_v2  ;;  %v5427_v54 = vmul.f32 %v13332_v24, %v13332_v24  ;;  %v5429_v63 = vmul.f32 %v13336_v26, %v13336_v26  ;;  %v5935_v51 = vmul.f32 0.7978846, %v5807_v48  ;;  %v13354_v61 = vadd.f32 %v14715_v15, %v12191_v53  ;;  %v13361_v41 = vpop.f32.mrb[45].mxu1  ;;  %v13363_v31 = vpop.f32.mrb[45].mxu0 }
 0x820   : > { %v8954_v23 = vpop.eup %8953  ;;  %v5809_v9 = vadd.f32 %v5681_v42, %v13295_v17  ;;  %v5680_v46 = vmul.f32 0.044715, %v5552_v13  ;;  %14716 = vst [vmem:[#allocation78_spill] sm:$0xff] %v13356_v4  ;;  %14717 = vst [vmem:[#allocation79_spill] sm:$0xff] %v13358_v27  ;;  %v6315_v33 = vmul.f32 0.5, %v6187_v21  ;;  %v13369_v4 = vpop.f32.mrb[46].mxu1 }
 0x821   : > { %v6189_v45 = vadd.f32 1.0, %v8954_v23  ;;  %v5682_v2 = vmul.f32 0.044715, %v5554_v18  ;;  %v5555_v38 = vmul.f32 %v5427_v54, %v13332_v24  ;;  %14718 = vst [vmem:[#allocation68_spill] sm:$0xff] %v13361_v41  ;;  %14719 = vst [vmem:[#allocation71_spill] sm:$0xff] %v13363_v31  ;;  %v13365_v48 = vpop.eup %8955  ;;  %8959 = vtanh.f32 %v5935_v51  ;;  %v13371_v27 = vpop.f32.mrb[46].mxu0 }
 0x822   : > { %v5937_v42 = vmul.f32 0.7978846, %v5809_v9  ;;  %v5808_v13 = vadd.f32 %v5680_v46, %v13309_v47  ;;  %v5557_v15 = vmul.f32 %v5429_v63, %v13336_v26  ;;  %14720 = vst [vmem:[#allocation39_spill] sm:$0xff] %v13369_v4  ;;  %14721 = vst [vmem:[#allocation80_spill] sm:$0xff] %v13371_v27  ;;  %v13374_v21 = vmul.f32 %v6315_v33, %v13201_v0  ;;  %v13377_v31 = vpop.f32.mrb[47].mxu1  ;;  %v13379_v41 = vpop.f32.mrb[47].mxu0 }
 0x823   : > { %v6317_v18 = vmul.f32 0.5, %v6189_v45  ;;  %v5810_v54 = vadd.f32 %v5682_v2, %v13315_v25  ;;  %v5683_v23 = vmul.f32 0.044715, %v5555_v38  ;;  %14722 = vst [vmem:[#allocation72_spill] sm:$0xff] %v13377_v31  ;;  %14723 = vst [vmem:[#allocation81_spill] sm:$0xff] %v13379_v41  ;;  %v5428_v63 = vmul.f32 %v13354_v61, %v13354_v61 }
 0x824   : > { %8961 = vtanh.f32 %v5937_v42  ;;  %v5936_v9 = vmul.f32 0.7978846, %v5808_v13  ;;  %v5685_v51 = vmul.f32 0.044715, %v5557_v15  ;;  %v13383_v46 = vpop.eup %8957  ;;  %v14724_v13 = vld [vmem:[#allocation48_spill] sm:$0xff]  ;;  %v6168_v27 = vadd.f32 1.0, %v13044_v7 }
 0x825   : > { %v13388_v33 = vmul.f32 %v6317_v18, %v13213_v39  ;;  %v5938_v45 = vmul.f32 0.7978846, %v5810_v54  ;;  %v5811_v38 = vadd.f32 %v5683_v23, %v13332_v24  ;;  %v5556_v42 = vmul.f32 %v5428_v63, %v13354_v61 }
 0x826   : > { %8963 = vtanh.f32 %v5936_v9  ;;  %v5813_v2 = vadd.f32 %v5685_v51, %v13336_v26  ;;  %v13395_v15 = vadd.f32 %v14724_v13, %v12193_v12  ;;  %v6160_v39 = vadd.f32 1.0, %v12932_v30  ;;  %v14725_v30 = vld [vmem:[#allocation76_spill] sm:$0xff] }
 0x827   : > { %8965 = vtanh.f32 %v5938_v45  ;;  %v5939_v0 = vmul.f32 0.7978846, %v5811_v38  ;;  %v5684_v54 = vmul.f32 0.044715, %v5556_v42  ;;  %v6164_v9 = vadd.f32 1.0, %v12996_v29 }
 0x828   : > { %v5941_v18 = vmul.f32 0.7978846, %v5813_v2  ;;  %v5430_v23 = vmul.f32 %v13395_v15, %v13395_v15  ;;  %v6288_v51 = vmul.f32 0.5, %v6160_v39  ;;  %v6162_v63 = vadd.f32 1.0, %v12947_v32 }
 0x829   : > { %8967 = vtanh.f32 %v5939_v0  ;;  %v6166_v13 = vadd.f32 1.0, %v13001_v22  ;;  %v5812_v41 = vadd.f32 %v5684_v54, %v13354_v61  ;;  %v6292_v38 = vmul.f32 0.5, %v6164_v9 }
 0x82a   : > { %8969 = vtanh.f32 %v5941_v18  ;;  %v5558_v45 = vmul.f32 %v5430_v23, %v13395_v15  ;;  %v6416_v2 = vmul.f32 %v6288_v51, %v14725_v30  ;;  %v6290_v42 = vmul.f32 0.5, %v6162_v63  ;;  %v14726_v18 = vld [vmem:[#allocation47_spill] sm:$0xff] }
 0x82b   : > { %v6294_v31 = vmul.f32 0.5, %v6166_v13  ;;  %v8960_v4 = vpop.eup %8959  ;;  %v5940_v29 = vmul.f32 0.7978846, %v5812_v41  ;;  %v6420_v39 = vmul.f32 %v6292_v38, %v12894_v35  ;;  %v6172_v32 = vadd.f32 1.0, %v13102_v49 }
 0x82c   : > { %v5686_v0 = vmul.f32 0.044715, %v5558_v45  ;;  %v6191_v22 = vadd.f32 1.0, %v8960_v4  ;;  %v6418_v10 = vmul.f32 %v6290_v42, %v14726_v18  ;;  %v6296_v23 = vmul.f32 0.5, %v6168_v27 }
 0x82d   : > { %v6422_v54 = vmul.f32 %v6294_v31, %v12901_v1  ;;  %8971 = vtanh.f32 %v5940_v29  ;;  %v6520_v63 = vpack.c.bf16 %v6420_v39, %v6416_v2  ;;  %v6300_v13 = vmul.f32 0.5, %v6172_v32 }
 0x82e   : > { %v8962_v9 = vpop.eup %8961  ;;  %v5814_v51 = vadd.f32 %v5686_v0, %v13395_v15  ;;  %v6319_v7 = vmul.f32 0.5, %v6191_v22  ;;  %v6424_v45 = vmul.f32 %v6296_v23, %v12940_v3  ;;  %v6170_v4 = vadd.f32 1.0, %v13061_v62 }
 0x82f   : > { %v6193_v30 = vadd.f32 1.0, %v8962_v9  ;;  %v6522_v41 = vpack.c.bf16 %v6422_v54, %v6418_v10  ;;  %6902 = vmatprep.mubr.bf16.mxu1 %v6520_v63  ;;  %v6428_v49 = vmul.f32 %v6300_v13, %v12977_v16  ;;  %v6174_v31 = vadd.f32 1.0, %v13126_v36  ;;  %v14728_v16 = vld [vmem:[#allocation52_spill] sm:$0xff] }
 0x830   : > { %v8964_v35 = vpop.eup %8963  ;;  %v5942_v38 = vmul.f32 0.7978846, %v5814_v51  ;;  %v13419_v27 = vmul.f32 %v6319_v7, %v13277_v14  ;;  %v14727_v10 = vpack.c.bf16 %v12992_v11, %v12950_v20  ;;  %v6176_v3 = vadd.f32 1.0, %v13170_v6 }
 0x831   : > { %v8966_v1 = vpop.eup %8965  ;;  %v6321_v2 = vmul.f32 0.5, %v6193_v30  ;;  %7063 = vmatprep.mubr.bf16.mxu0 %v6522_v41  ;;  %v6180_v42 = vadd.f32 1.0, %v13245_v34  ;;  %v14729_v62 = vpack.c.bf16 %v13004_v52, %v14728_v16  ;;  %v6524_v36 = vpack.c.bf16 %v6428_v49, %v6424_v45  ;;  %v14730_v34 = vld [vmem:[#allocation17_spill] sm:$0xff] }
 0x832   : > { %6903 = vmatmul.mubr.bf16.gmra.mrb[72].mxu1 %v14727_v10  ;;  %8973 = vtanh.f32 %v5942_v38  ;;  %v6298_v29 = vmul.f32 0.5, %v6170_v4  ;;  %v6302_v0 = vmul.f32 0.5, %v6174_v31  ;;  %v6304_v32 = vmul.f32 0.5, %v6176_v3  ;;  %v14733_v10 = vld [vmem:[#allocation64_spill] sm:$0xff] }
 0x833   : > { %7064 = vmatmul.mubr.bf16.gmra.mrb[72].mxu0 %v14729_v62  ;;  %v8968_v14 = vpop.eup %8967  ;;  %v13430_v39 = vmul.f32 %v6321_v2, %v13295_v17  ;;  %v6308_v22 = vmul.f32 0.5, %v6180_v42  ;;  %v6178_v20 = vadd.f32 1.0, %v13192_v44  ;;  %6910 = vmatprep.mubr.bf16.mxu1 %v6524_v36  ;;  %v6182_v52 = vadd.f32 1.0, %v13255_v57  ;;  %v14732_v2 = vld [vmem:[#allocation86_spill] sm:$0xff] }
 0x834   : > { %v8970_v11 = vpop.eup %8969  ;;  %v6195_v6 = vadd.f32 1.0, %v8968_v14  ;;  %v6426_v18 = vmul.f32 %v6298_v29, %v14730_v34  ;;  %v6430_v54 = vmul.f32 %v6302_v0, %v13008_v5  ;;  %v6432_v9 = vmul.f32 %v6304_v32, %v13037_v59  ;;  %v14735_v29 = vld [vmem:[#allocation13_spill] sm:$0xff]  ;;  %v14736_v0 = vld [vmem:[#allocation63_spill] sm:$0xff] }
 0x835   : > { %v6197_v23 = vadd.f32 1.0, %v8970_v11  ;;  %v6436_v51 = vmul.f32 %v6308_v22, %v13100_v60  ;;  %v6306_v17 = vmul.f32 0.5, %v6178_v20  ;;  %v6310_v7 = vmul.f32 0.5, %v6182_v52 }
 0x836   : > { %v6323_v63 = vmul.f32 0.5, %v6195_v6  ;;  %v6526_v13 = vpack.c.bf16 %v6430_v54, %v6426_v18  ;;  %v6184_v44 = vadd.f32 1.0, %v13311_v40  ;;  %v6188_v38 = vadd.f32 1.0, %v13365_v48  ;;  %v14738_v18 = vld [vmem:[#allocation46_spill] sm:$0xff]  ;;  %v14739_v54 = vld [vmem:[#allocation12_spill] sm:$0xff] }
 0x837   : > { %v6325_v30 = vmul.f32 0.5, %v6197_v23  ;;  %v6528_v41 = vpack.c.bf16 %v6436_v51, %v6432_v9  ;;  %v6434_v45 = vmul.f32 %v6306_v17, %v13050_v28  ;;  %v8972_v5 = vpop.eup %8971  ;;  %v6438_v59 = vmul.f32 %v6310_v7, %v13123_v19  ;;  %v14740_v9 = vld [vmem:[#allocation16_spill] sm:$0xff] }
 0x838   : > { %v13442_v57 = vmul.f32 %v6323_v63, %v13332_v24  ;;  %7071 = vmatprep.mubr.bf16.mxu0 %v6526_v13  ;;  %v6312_v60 = vmul.f32 0.5, %v6184_v44  ;;  %v6186_v49 = vadd.f32 1.0, %v13317_v43  ;;  %v14731_v40 = vpack.c.bf16 %v13111_v37, %v13064_v56  ;;  %v14741_v13 = vld [vmem:[#allocation85_spill] sm:$0xff] }
 0x839   : > { %v13447_v4 = vmul.f32 %v6325_v30, %v13336_v26  ;;  %v6316_v28 = vmul.f32 0.5, %v6188_v38  ;;  %v6190_v48 = vadd.f32 1.0, %v13383_v46  ;;  %v6192_v31 = vadd.f32 1.0, %v8964_v35  ;;  %v14742_v44 = vld [vmem:[#allocation73_spill] sm:$0xff]  ;;  %v14743_v30 = vld [vmem:[#allocation60_spill] sm:$0xff] }
 0x83a   : > { %6911 = vmatmul.mubr.bf16.gmra.mrb[76].mxu1 %v14731_v40  ;;  %v6535_v24 = vpack.c.bf16 %v13442_v57, %v13419_v27  ;;  %v14734_v19 = vpack.c.bf16 %v14732_v2, %v14733_v10  ;;  %v6530_v43 = vpack.c.bf16 %v6438_v59, %v6434_v45  ;;  %v6440_v26 = vmul.f32 %v6312_v60, %v13176_v8  ;;  %v14737_v8 = vld [vmem:[#allocation19_spill] sm:$0xff]  ;;  %v14746_v59 = vld [vmem:[#allocation42_spill] sm:$0xff]  ;;  %v14747_v60 = vld [vmem:[#allocation57_spill] sm:$0xff] }
 0x83b   : > { %6918 = vmatprep.mubr.bf16.mxu1 %v6528_v41  ;;  %v6314_v3 = vmul.f32 0.5, %v6186_v49  ;;  %v6537_v56 = vpack.c.bf16 %v13447_v4, %v13430_v39  ;;  %v6444_v37 = vmul.f32 %v6316_v28, %v13217_v50  ;;  %v6318_v42 = vmul.f32 0.5, %v6190_v48 }
 0x83c   : > { %7072 = vmatmul.mubr.bf16.gmra.mrb[76].mxu0 %v14734_v19  ;;  %v6196_v46 = vadd.f32 1.0, %v8972_v5  ;;  %v8974_v35 = vpop.eup %8973  ;;  %v6320_v62 = vmul.f32 0.5, %v6192_v31  ;;  %v6194_v36 = vadd.f32 1.0, %v8966_v1  ;;  %v13465_v14 = vadd.f32 %v14736_v0, %v14735_v29 }
 0x83d   : > { %7079 = vmatprep.mubr.bf16.mxu0 %v6530_v43  ;;  %v6442_v16 = vmul.f32 %v6314_v3, %v13184_v58  ;;  %v6532_v32 = vpack.c.bf16 %v6444_v37, %v6440_v26  ;;  %v6446_v22 = vmul.f32 %v6318_v42, %v14737_v8  ;;  %v6198_v11 = vadd.f32 1.0, %v8974_v35  ;;  %v14750_v43 = vld [vmem:[#allocation65_spill] sm:$0xff] }
 0x83e   : > { %v6324_v20 = vmul.f32 0.5, %v6196_v46  ;;  %v6448_v6 = vmul.f32 %v6320_v62, %v13309_v47  ;;  %v6322_v50 = vmul.f32 0.5, %v6194_v36  ;;  %v5431_v34 = vmul.f32 %v13465_v14, %v13465_v14  ;;  %v14751_v36 = vld [vmem:[#allocation20_spill] sm:$0xff] }
 0x83f   : > { %v13473_v58 = vadd.f32 %v14739_v54, %v14738_v18  ;;  %v6534_v1 = vpack.c.bf16 %v6446_v22, %v6442_v16  ;;  %v6326_v23 = vmul.f32 0.5, %v6198_v11  ;;  %v13478_v51 = vadd.f32 %v14740_v9, %v12191_v53 }
 0x840   : > { %v6452_v52 = vmul.f32 %v6324_v20, %v13354_v61  ;;  %v6450_v17 = vmul.f32 %v6322_v50, %v13315_v25  ;;  %v5559_v47 = vmul.f32 %v5431_v34, %v13465_v14  ;;  %v13486_v7 = vadd.f32 %v14741_v13, %v12193_v12  ;;  %v14745_v25 = vld [vmem:[#allocation54_spill] sm:$0xff]  ;;  %v14753_v13 = vld [vmem:[#allocation77_spill] sm:$0xff] }
 0x841   : > { %v5433_v63 = vmul.f32 %v13473_v58, %v13473_v58  ;;  %v14744_v41 = vpack.c.bf16 %v14742_v44, %v14743_v30  ;;  %v6454_v45 = vmul.f32 %v6326_v23, %v13395_v15  ;;  %v5432_v38 = vmul.f32 %v13478_v51, %v13478_v51  ;;  %v14749_v15 = vld [vmem:[#allocation29_spill] sm:$0xff] }
 0x842   : > { %v6536_v61 = vpack.c.bf16 %v6452_v52, %v6448_v6  ;;  %v13496_v5 = vadd.f32 %v14745_v25, %v14735_v29  ;;  %v14748_v49 = vpack.c.bf16 %v14746_v59, %v14747_v60  ;;  %v5687_v40 = vmul.f32 0.044715, %v5559_v47 }
 0x843   : > { %6919 = vmatmul.mubr.bf16.gmra.mrb[80].mxu1 %v14744_v41  ;;  %v5561_v28 = vmul.f32 %v5433_v63, %v13473_v58  ;;  %v5434_v48 = vmul.f32 %v13486_v7, %v13486_v7  ;;  %v13506_v31 = vadd.f32 %v14749_v15, %v14738_v18  ;;  %v6538_v2 = vpack.c.bf16 %v6454_v45, %v6450_v17  ;;  %v14755_v45 = vld [vmem:[#allocation8_spill] sm:$0xff] }
 0x844   : > { %7080 = vmatmul.mubr.bf16.gmra.mrb[80].mxu0 %v14748_v49  ;;  %6926 = vmatprep.mubr.bf16.mxu1 %v6532_v32  ;;  %v5560_v10 = vmul.f32 %v5432_v38, %v13478_v51  ;;  %v5435_v19 = vmul.f32 %v13496_v5, %v13496_v5  ;;  %v13513_v26 = vadd.f32 %v14750_v43, %v12191_v53 }
 0x845   : > { %7087 = vmatprep.mubr.bf16.mxu0 %v6534_v1  ;;  %v5815_v3 = vadd.f32 %v5687_v40, %v13465_v14  ;;  %v5689_v37 = vmul.f32 0.044715, %v5561_v28  ;;  %v5562_v42 = vmul.f32 %v5434_v48, %v13486_v7  ;;  %v5437_v46 = vmul.f32 %v13506_v31, %v13506_v31  ;;  %v14757_v28 = vld [vmem:[#allocation23_spill] sm:$0xff] }
 0x846   : > { %v5688_v35 = vmul.f32 0.044715, %v5560_v10  ;;  %v5563_v16 = vmul.f32 %v5435_v19, %v13496_v5  ;;  %v5436_v62 = vmul.f32 %v13513_v26, %v13513_v26  ;;  %v13524_v0 = vadd.f32 %v14751_v36, %v12193_v12  ;;  %v14758_v10 = vld [vmem:[#allocation26_spill] sm:$0xff] }
 0x847   : > { %v5943_v32 = vmul.f32 0.7978846, %v5815_v3  ;;  %v5817_v8 = vadd.f32 %v5689_v37, %v13473_v58  ;;  %v5690_v22 = vmul.f32 0.044715, %v5562_v42  ;;  %v5565_v20 = vmul.f32 %v5437_v46, %v13506_v31  ;;  %v14759_v37 = vld [vmem:[#allocation53_spill] sm:$0xff] }
 0x848   : > { %v5816_v11 = vadd.f32 %v5688_v35, %v13478_v51  ;;  %v5691_v6 = vmul.f32 0.044715, %v5563_v16  ;;  %v5564_v50 = vmul.f32 %v5436_v62, %v13513_v26  ;;  %v5438_v34 = vmul.f32 %v13524_v0, %v13524_v0  ;;  %v14760_v62 = vld [vmem:[#allocation91_spill] sm:$0xff] }
 0x849   : > { %8975 = vtanh.f32 %v5943_v32  ;;  %v5945_v54 = vmul.f32 0.7978846, %v5817_v8  ;;  %v5818_v1 = vadd.f32 %v5690_v22, %v13486_v7  ;;  %v5693_v52 = vmul.f32 0.044715, %v5565_v20  ;;  %v14761_v22 = vld [vmem:[#allocation11_spill] sm:$0xff] }
 0x84a   : > { %v14752_v23 = vpack.c.bf16 %v13374_v21, %v13326_v55  ;;  %v5944_v9 = vmul.f32 0.7978846, %v5816_v11  ;;  %v5819_v17 = vadd.f32 %v5691_v6, %v13496_v5  ;;  %v5692_v47 = vmul.f32 0.044715, %v5564_v50 }
 0x84b   : > { %v5566_v63 = vmul.f32 %v5438_v34, %v13524_v0  ;;  %v14754_v44 = vpack.c.bf16 %v13388_v33, %v14753_v13  ;;  %8977 = vtanh.f32 %v5945_v54  ;;  %v5946_v30 = vmul.f32 0.7978846, %v5818_v1 }
 0x84c   : > { %6927 = vmatmul.mubr.bf16.gmra.mrb[84].mxu1 %v14752_v23  ;;  %v5821_v41 = vadd.f32 %v5693_v52, %v13506_v31  ;;  %v13544_v38 = vadd.f32 %v14755_v45, %v14735_v29  ;;  %8979 = vtanh.f32 %v5944_v9  ;;  %v5947_v55 = vmul.f32 0.7978846, %v5819_v17 }
 0x84d   : > { %7088 = vmatmul.mubr.bf16.gmra.mrb[84].mxu0 %v14754_v44  ;;  %6934 = vmatprep.mubr.bf16.mxu1 %v6536_v61  ;;  %v5820_v21 = vadd.f32 %v5692_v47, %v13513_v26  ;;  %v5694_v25 = vmul.f32 0.044715, %v5566_v63  ;;  %8981 = vtanh.f32 %v5946_v30  ;;  %v14756_v61 = vld [vmem:[#allocation59_spill] sm:$0xff]  ;;  %v13556_v48 = vadd.f32 %v14757_v28, %v12191_v53 }
 0x84e   : > { %7095 = vmatprep.mubr.bf16.mxu0 %v6538_v2  ;;  %v5949_v59 = vmul.f32 0.7978846, %v5821_v41  ;;  %v5439_v33 = vmul.f32 %v13544_v38, %v13544_v38  ;;  %v13551_v60 = vadd.f32 %v14756_v61, %v14738_v18  ;;  %8983 = vtanh.f32 %v5947_v55 }
 0x84f   : > { %v5948_v49 = vmul.f32 0.7978846, %v5820_v21  ;;  %v5822_v40 = vadd.f32 %v5694_v25, %v13524_v0  ;;  %v13563_v19 = vadd.f32 %v14758_v10, %v12193_v12  ;;  %v5440_v3 = vmul.f32 %v13556_v48, %v13556_v48 }
 0x850   : > { %8985 = vtanh.f32 %v5949_v59  ;;  %v5567_v15 = vmul.f32 %v5439_v33, %v13544_v38  ;;  %v5441_v2 = vmul.f32 %v13551_v60, %v13551_v60  ;;  %v13569_v42 = vadd.f32 %v14759_v37, %v14735_v29 }
 0x851   : > { %8987 = vtanh.f32 %v5948_v49  ;;  %v5950_v43 = vmul.f32 0.7978846, %v5822_v40  ;;  %v5442_v16 = vmul.f32 %v13563_v19, %v13563_v19  ;;  %v13576_v36 = vadd.f32 %v14760_v62, %v14738_v18 }
 0x852   : > { %v5695_v46 = vmul.f32 0.044715, %v5567_v15  ;;  %v5569_v35 = vmul.f32 %v5441_v2, %v13551_v60  ;;  %v5568_v32 = vmul.f32 %v5440_v3, %v13556_v48  ;;  %v5443_v8 = vmul.f32 %v13569_v42, %v13569_v42 }
 0x853   : > { %8989 = vtanh.f32 %v5950_v43  ;;  %v13586_v20 = vadd.f32 %v14761_v22, %v12191_v53  ;;  %v8976_v11 = vpop.eup %8975  ;;  %v5570_v27 = vmul.f32 %v5442_v16, %v13563_v19  ;;  %v5445_v57 = vmul.f32 %v13576_v36, %v13576_v36  ;;  %v14762_v16 = vld [vmem:[#allocation21_spill] sm:$0xff] }
 0x854   : > { %6935 = vmatmul.mubr.bf16.gmra.mrb[88].mxu1 %v6535_v24  ;;  %v5823_v6 = vadd.f32 %v5695_v46, %v13544_v38  ;;  %v5697_v50 = vmul.f32 0.044715, %v5569_v35  ;;  %v6199_v24 = vadd.f32 1.0, %v8976_v11  ;;  %v5696_v34 = vmul.f32 0.044715, %v5568_v32  ;;  %v14763_v32 = vld [vmem:[#allocation62_spill] sm:$0xff] }
 0x855   : > { %7096 = vmatmul.mubr.bf16.gmra.mrb[88].mxu0 %v6537_v56  ;;  %v5571_v54 = vmul.f32 %v5443_v8, %v13569_v42  ;;  %v5444_v1 = vmul.f32 %v13586_v20, %v13586_v20  ;;  %v8978_v52 = vpop.eup %8977  ;;  %v5698_v4 = vmul.f32 0.044715, %v5570_v27  ;;  %v5573_v56 = vmul.f32 %v5445_v57, %v13576_v36  ;;  %v14764_v11 = vld [vmem:[#allocation34_spill] sm:$0xff] }
 0x856   : > { %v5951_v23 = vmul.f32 0.7978846, %v5823_v6  ;;  %v5825_v39 = vadd.f32 %v5697_v50, %v13551_v60  ;;  %v13600_v9 = vpop.eup %8979  ;;  %v6327_v17 = vmul.f32 0.5, %v6199_v24  ;;  %v6201_v47 = vadd.f32 1.0, %v8978_v52  ;;  %v14765_v24 = vld [vmem:[#allocation56_spill] sm:$0xff] }
 0x857   : > { %v5824_v63 = vadd.f32 %v5696_v34, %v13556_v48  ;;  %v5699_v13 = vmul.f32 0.044715, %v5571_v54  ;;  %v13603_v44 = vpop.eup %8981  ;;  %v5826_v41 = vadd.f32 %v5698_v4, %v13563_v19  ;;  %v5701_v45 = vmul.f32 0.044715, %v5573_v56 }
 0x858   : > { %8991 = vtanh.f32 %v5951_v23  ;;  %v5953_v30 = vmul.f32 0.7978846, %v5825_v39  ;;  %v8984_v55 = vpop.eup %8983  ;;  %v13607_v21 = vmul.f32 %v6327_v17, %v13465_v14  ;;  %v6329_v25 = vmul.f32 0.5, %v6201_v47 }
 0x859   : > { %v5952_v59 = vmul.f32 0.7978846, %v5824_v63  ;;  %v5827_v33 = vadd.f32 %v5699_v13, %v13569_v42  ;;  %v6203_v49 = vadd.f32 1.0, %v8984_v55  ;;  %v5954_v40 = vmul.f32 0.7978846, %v5826_v41 }
 0x85a   : > { %v8986_v61 = vpop.eup %8985  ;;  %8993 = vtanh.f32 %v5953_v30  ;;  %v5829_v28 = vadd.f32 %v5701_v45, %v13576_v36  ;;  %v13614_v2 = vmul.f32 %v6329_v25, %v13473_v58  ;;  %v5572_v37 = vmul.f32 %v5444_v1, %v13586_v20  ;;  %v14767_v30 = vld [vmem:[#allocation25_spill] sm:$0xff] }
 0x85b   : > { %v13611_v15 = vpop.eup %8987  ;;  %v6205_v10 = vadd.f32 1.0, %v8986_v61  ;;  %8995 = vtanh.f32 %v5952_v59  ;;  %v5955_v43 = vmul.f32 0.7978846, %v5827_v33  ;;  %v6331_v14 = vmul.f32 0.5, %v6203_v49 }
 0x85c   : > { %8997 = vtanh.f32 %v5954_v40  ;;  %v5957_v3 = vmul.f32 0.7978846, %v5829_v28  ;;  %v13621_v62 = vadd.f32 %v14762_v16, %v12193_v12  ;;  %v13625_v58 = vadd.f32 %v14763_v32, %v14735_v29 }
 0x85d   : > { %v13617_v46 = vpop.eup %8989  ;;  %v6333_v35 = vmul.f32 0.5, %v6205_v10  ;;  %8999 = vtanh.f32 %v5955_v43  ;;  %v13628_v8 = vmul.f32 %v6331_v14, %v13496_v5  ;;  %v5700_v22 = vmul.f32 0.044715, %v5572_v37 }
 0x85e   : > { %9001 = vtanh.f32 %v5957_v3  ;;  %v13632_v6 = vadd.f32 %v14764_v11, %v14738_v18  ;;  %v5446_v27 = vmul.f32 %v13621_v62, %v13621_v62  ;;  %v5447_v57 = vmul.f32 %v13625_v58, %v13625_v58 }
 0x85f   : > { %v13635_v50 = vmul.f32 %v6333_v35, %v13506_v31  ;;  %v13643_v34 = vadd.f32 %v14765_v24, %v12191_v53  ;;  %v5828_v54 = vadd.f32 %v5700_v22, %v13586_v20  ;;  %v14766_v31 = vld [vmem:[#allocation58_spill] sm:$0xff]  ;;  %v13665_v41 = vadd.f32 %v14767_v30, %v14735_v29 }
 0x860   : > { %v5449_v1 = vmul.f32 %v13632_v6, %v13632_v6  ;;  %v13652_v52 = vadd.f32 %v14766_v31, %v12193_v12  ;;  %v5574_v39 = vmul.f32 %v5446_v27, %v13621_v62  ;;  %v5575_v4 = vmul.f32 %v5447_v57, %v13625_v58 }
 0x861   : > { %v5448_v56 = vmul.f32 %v13643_v34, %v13643_v34  ;;  %v5956_v47 = vmul.f32 0.7978846, %v5828_v54  ;;  %v5451_v40 = vmul.f32 %v13665_v41, %v13665_v41 }
 0x862   : > { %v8992_v17 = vpop.eup %8991  ;;  %v5577_v63 = vmul.f32 %v5449_v1, %v13632_v6  ;;  %v5450_v13 = vmul.f32 %v13652_v52, %v13652_v52  ;;  %v5702_v55 = vmul.f32 0.044715, %v5574_v39  ;;  %v5703_v25 = vmul.f32 0.044715, %v5575_v4 }
 0x863   : > { %v6207_v45 = vadd.f32 1.0, %v8992_v17  ;;  %v5576_v59 = vmul.f32 %v5448_v56, %v13643_v34  ;;  %9003 = vtanh.f32 %v5956_v47  ;;  %v5579_v22 = vmul.f32 %v5451_v40, %v13665_v41 }
 0x864   : > { %v8994_v33 = vpop.eup %8993  ;;  %v5705_v61 = vmul.f32 0.044715, %v5577_v63  ;;  %v5578_v49 = vmul.f32 %v5450_v13, %v13652_v52  ;;  %v5830_v14 = vadd.f32 %v5702_v55, %v13621_v62  ;;  %v5831_v3 = vadd.f32 %v5703_v25, %v13625_v58  ;;  %v14770_v25 = vld [vmem:[#allocation66_spill] sm:$0xff] }
 0x865   : > { %v13671_v28 = vpop.eup %8995  ;;  %v6335_v10 = vmul.f32 0.5, %v6207_v45  ;;  %v6209_v43 = vadd.f32 1.0, %v8994_v33  ;;  %v5704_v16 = vmul.f32 0.044715, %v5576_v59  ;;  %v5707_v63 = vmul.f32 0.044715, %v5579_v22 }
 0x866   : > { %v13675_v37 = vpop.eup %8997  ;;  %v5833_v35 = vadd.f32 %v5705_v61, %v13632_v6  ;;  %v5706_v32 = vmul.f32 0.044715, %v5578_v49  ;;  %v5958_v24 = vmul.f32 0.7978846, %v5830_v14  ;;  %v5959_v54 = vmul.f32 0.7978846, %v5831_v3 }
 0x867   : > { %v9000_v11 = vpop.eup %8999  ;;  %v13680_v27 = vmul.f32 %v6335_v10, %v13544_v38  ;;  %v6337_v57 = vmul.f32 0.5, %v6209_v43  ;;  %v5832_v4 = vadd.f32 %v5704_v16, %v13643_v34  ;;  %v5835_v55 = vadd.f32 %v5707_v63, %v13665_v41  ;;  %v14773_v49 = vld [vmem:[#allocation70_spill] sm:$0xff]  ;;  %v14780_v63 = vld [vmem:[#allocation67_spill] sm:$0xff] }
 0x868   : > { %v9002_v1 = vpop.eup %9001  ;;  %v6211_v31 = vadd.f32 1.0, %v9000_v11  ;;  %v5961_v39 = vmul.f32 0.7978846, %v5833_v35  ;;  %v5834_v56 = vadd.f32 %v5706_v32, %v13652_v52  ;;  %9005 = vtanh.f32 %v5958_v24  ;;  %v14776_v32 = vld [vmem:[#allocation31_spill] sm:$0xff] }
 0x869   : > { %14768 = vst [vmem:[#allocation82_spill] sm:$0xff] %v13680_v27  ;;  %v13685_v17 = vmul.f32 %v6337_v57, %v13551_v60  ;;  %v6213_v47 = vadd.f32 1.0, %v9002_v1  ;;  %9007 = vtanh.f32 %v5959_v54  ;;  %v5960_v38 = vmul.f32 0.7978846, %v5832_v4  ;;  %v14772_v60 = vld [vmem:[#allocation37_spill] sm:$0xff] }
 0x86a   : > { %v6339_v13 = vmul.f32 0.5, %v6211_v31  ;;  %v5962_v30 = vmul.f32 0.7978846, %v5834_v56  ;;  %9009 = vtanh.f32 %v5961_v39  ;;  %v13690_v59 = vadd.f32 %v14770_v25, %v14738_v18  ;;  %v14777_v57 = vld [vmem:[#allocation33_spill] sm:$0xff] }
 0x86b   : > { %14769 = vst [vmem:[#allocation55_spill] sm:$0xff] %v13685_v17  ;;  %v6341_v45 = vmul.f32 0.5, %v6213_v47  ;;  %9011 = vtanh.f32 %v5960_v38  ;;  %v13697_v61 = vadd.f32 %v14772_v60, %v12191_v53  ;;  %v13701_v40 = vadd.f32 %v14773_v49, %v12193_v12  ;;  %v14778_v39 = vld [vmem:[#allocation61_spill] sm:$0xff] }
 0x86c   : > { %v13693_v33 = vmul.f32 %v6339_v13, %v13569_v42  ;;  %9013 = vtanh.f32 %v5962_v30  ;;  %v5963_v43 = vmul.f32 0.7978846, %v5835_v55  ;;  %v5453_v14 = vmul.f32 %v13690_v59, %v13690_v59  ;;  %v14782_v38 = vld [vmem:[#allocation69_spill] sm:$0xff] }
 0x86d   : > { %14774 = vst [vmem:[#allocation49_spill] sm:$0xff] %v13701_v40  ;;  %v13704_v10 = vmul.f32 %v6341_v45, %v13576_v36  ;;  %v13708_v3 = vpop.eup %9003  ;;  %v5452_v35 = vmul.f32 %v13697_v61, %v13697_v61  ;;  %v5454_v16 = vmul.f32 %v13701_v40, %v13701_v40  ;;  %v13718_v36 = vadd.f32 %v14776_v32, %v14735_v29 }
 0x86e   : > { %14771 = vst [vmem:[#allocation50_spill] sm:$0xff] %v13693_v33  ;;  %9015 = vtanh.f32 %v5963_v43  ;;  %v5581_v11 = vmul.f32 %v5453_v14, %v13690_v59  ;;  %v13725_v24 = vadd.f32 %v14777_v57, %v14738_v18  ;;  %v13733_v4 = vadd.f32 %v14778_v39, %v12191_v53 }
 0x86f   : > { %14775 = vst [vmem:[#allocation2_spill] sm:$0xff] %v13704_v10  ;;  %v5580_v54 = vmul.f32 %v5452_v35, %v13697_v61  ;;  %v5582_v1 = vmul.f32 %v5454_v16, %v13701_v40  ;;  %v5455_v31 = vmul.f32 %v13718_v36, %v13718_v36  ;;  %v13739_v13 = vadd.f32 %v14780_v63, %v12193_v12 }
 0x870   : > { %14779 = vst [vmem:[#allocation51_spill] sm:$0xff] %v13733_v4  ;;  %v5709_v56 = vmul.f32 0.044715, %v5581_v11  ;;  %v5457_v47 = vmul.f32 %v13725_v24, %v13725_v24  ;;  %v13743_v30 = vadd.f32 %v14782_v38, %v14735_v29  ;;  %v5456_v60 = vmul.f32 %v13733_v4, %v13733_v4 }
 0x871   : > { %14781 = vst [vmem:[#allocation45_spill] sm:$0xff] %v13739_v13  ;;  %v5708_v45 = vmul.f32 0.044715, %v5580_v54  ;;  %v5710_v55 = vmul.f32 0.044715, %v5582_v1  ;;  %v5583_v25 = vmul.f32 %v5455_v31, %v13718_v36  ;;  %v5458_v35 = vmul.f32 %v13739_v13, %v13739_v13 }
 0x872   : > { %v13748_v49 = vpop.eup %9005  ;;  %v5837_v43 = vadd.f32 %v5709_v56, %v13690_v59  ;;  %v5585_v14 = vmul.f32 %v5457_v47, %v13725_v24  ;;  %v5459_v16 = vmul.f32 %v13743_v30, %v13743_v30  ;;  %v5584_v1 = vmul.f32 %v5456_v60, %v13733_v4 }
 0x873   : > { %v9008_v32 = vpop.eup %9007  ;;  %v5836_v11 = vadd.f32 %v5708_v45, %v13697_v61  ;;  %v5838_v57 = vadd.f32 %v5710_v55, %v13701_v40  ;;  %v5711_v54 = vmul.f32 0.044715, %v5583_v25  ;;  %v5586_v47 = vmul.f32 %v5458_v35, %v13739_v13 }
 0x874   : > { %v9010_v31 = vpop.eup %9009  ;;  %v6215_v39 = vadd.f32 1.0, %v9008_v32  ;;  %v5965_v63 = vmul.f32 0.7978846, %v5837_v43  ;;  %v5713_v56 = vmul.f32 0.044715, %v5585_v14 }
 0x875   : > { %v13760_v38 = vpop.eup %9011  ;;  %v6217_v22 = vadd.f32 1.0, %v9010_v31  ;;  %v5964_v42 = vmul.f32 0.7978846, %v5836_v11  ;;  %v5966_v23 = vmul.f32 0.7978846, %v5838_v57  ;;  %v5839_v5 = vadd.f32 %v5711_v54, %v13718_v36 }
 0x876   : > { %v13763_v17 = vpop.eup %9013  ;;  %v6343_v45 = vmul.f32 0.5, %v6215_v39  ;;  %9017 = vtanh.f32 %v5965_v63  ;;  %v5841_v55 = vadd.f32 %v5713_v56, %v13725_v24  ;;  %v5712_v25 = vmul.f32 0.044715, %v5584_v1  ;;  %v14786_v63 = vld [vmem:[#allocation41_spill] sm:$0xff] }
 0x877   : > { %v6345_v60 = vmul.f32 0.5, %v6217_v22  ;;  %9019 = vtanh.f32 %v5964_v42  ;;  %v5967_v43 = vmul.f32 0.7978846, %v5839_v5  ;;  %v5714_v14 = vmul.f32 0.044715, %v5586_v47  ;;  %v14785_v42 = vld [vmem:[#allocation74_spill] sm:$0xff] }
 0x878   : > { %v9016_v32 = vpop.eup %9015  ;;  %v13767_v35 = vmul.f32 %v6343_v45, %v13625_v58  ;;  %9021 = vtanh.f32 %v5966_v23  ;;  %v5969_v11 = vmul.f32 0.7978846, %v5841_v55  ;;  %v5840_v57 = vadd.f32 %v5712_v25, %v13733_v4 }
 0x879   : > { %v13771_v54 = vmul.f32 %v6345_v60, %v13632_v6  ;;  %v6219_v31 = vadd.f32 1.0, %v9016_v32  ;;  %9023 = vtanh.f32 %v5967_v43  ;;  %v5842_v39 = vadd.f32 %v5714_v14, %v13739_v13  ;;  %v14787_v6 = vld [vmem:[#allocation75_spill] sm:$0xff] }
 0x87a   : > { %14783 = vst [vmem:[#allocation3_spill] sm:$0xff] %v13767_v35  ;;  %9025 = vtanh.f32 %v5969_v11  ;;  %v5968_v22 = vmul.f32 0.7978846, %v5840_v57  ;;  %v5587_v5 = vmul.f32 %v5459_v16, %v13743_v30  ;;  %v13777_v1 = vadd.f32 %v14785_v42, %v14738_v18  ;;  %v14788_v16 = vld [vmem:[#allocation78_spill] sm:$0xff]  ;;  %v14791_v42 = vld [vmem:[#allocation68_spill] sm:$0xff] }
 0x87b   : > { %14784 = vst [vmem:[#allocation48_spill] sm:$0xff] %v13771_v54  ;;  %v6347_v58 = vmul.f32 0.5, %v6219_v31  ;;  %v5970_v23 = vmul.f32 0.7978846, %v5842_v39  ;;  %v13781_v56 = vadd.f32 %v14786_v63, %v12191_v53  ;;  %v13785_v47 = vadd.f32 %v14787_v6, %v12193_v12  ;;  %v14790_v31 = vld [vmem:[#allocation79_spill] sm:$0xff] }
 0x87c   : > { %9027 = vtanh.f32 %v5968_v22  ;;  %v5715_v45 = vmul.f32 0.044715, %v5587_v5  ;;  %v5461_v55 = vmul.f32 %v13777_v1, %v13777_v1  ;;  %v13791_v25 = vadd.f32 %v14788_v16, %v14735_v29 }
 0x87d   : > { %v13794_v60 = vmul.f32 %v6347_v58, %v13665_v41  ;;  %9029 = vtanh.f32 %v5970_v23  ;;  %v5460_v43 = vmul.f32 %v13781_v56, %v13781_v56  ;;  %v5462_v14 = vmul.f32 %v13785_v47, %v13785_v47 }
 0x87e   : > { %v5843_v32 = vadd.f32 %v5715_v45, %v13743_v30  ;;  %v5589_v11 = vmul.f32 %v5461_v55, %v13777_v1  ;;  %v5463_v57 = vmul.f32 %v13791_v25, %v13791_v25  ;;  %v13806_v39 = vadd.f32 %v14790_v31, %v14738_v18 }
 0x87f   : > { %14789 = vst [vmem:[#allocation76_spill] sm:$0xff] %v13794_v60  ;;  %v5588_v22 = vmul.f32 %v5460_v43, %v13781_v56  ;;  %v5590_v5 = vmul.f32 %v5462_v14, %v13785_v47  ;;  %v13814_v58 = vadd.f32 %v14791_v42, %v12191_v53 }
 0x880   : > { %v9018_v23 = vpop.eup %9017  ;;  %v5971_v63 = vmul.f32 0.7978846, %v5843_v32  ;;  %v5717_v6 = vmul.f32 0.044715, %v5589_v11  ;;  %v5591_v45 = vmul.f32 %v5463_v57, %v13791_v25  ;;  %v5465_v55 = vmul.f32 %v13806_v39, %v13806_v39 }
 0x881   : > { %v13819_v16 = vpop.eup %9019  ;;  %v6221_v31 = vadd.f32 1.0, %v9018_v23  ;;  %v5716_v41 = vmul.f32 0.044715, %v5588_v22  ;;  %v5718_v35 = vmul.f32 0.044715, %v5590_v5  ;;  %v5464_v43 = vmul.f32 %v13814_v58, %v13814_v58 }
 0x882   : > { %v13823_v14 = vpop.eup %9021  ;;  %9031 = vtanh.f32 %v5971_v63  ;;  %v5845_v42 = vadd.f32 %v5717_v6, %v13777_v1  ;;  %v5719_v32 = vmul.f32 0.044715, %v5591_v45  ;;  %v5593_v11 = vmul.f32 %v5465_v55, %v13806_v39 }
 0x883   : > { %v9024_v57 = vpop.eup %9023  ;;  %v6349_v60 = vmul.f32 0.5, %v6221_v31  ;;  %v5844_v10 = vadd.f32 %v5716_v41, %v13781_v56  ;;  %v5846_v13 = vadd.f32 %v5718_v35, %v13785_v47  ;;  %v5592_v22 = vmul.f32 %v5464_v43, %v13814_v58  ;;  %v13837_v43 = vpop.f32.mrb[48].mxu1 }
 0x884   : > { %v9026_v5 = vpop.eup %9025  ;;  %v6223_v23 = vadd.f32 1.0, %v9024_v57  ;;  %v5973_v4 = vmul.f32 0.7978846, %v5845_v42  ;;  %v5847_v40 = vadd.f32 %v5719_v32, %v13791_v25  ;;  %v5721_v27 = vmul.f32 0.044715, %v5593_v11 }
 0x885   : > { %v13832_v63 = vmul.f32 %v6349_v60, %v13690_v59  ;;  %v6225_v6 = vadd.f32 1.0, %v9026_v5  ;;  %v5972_v45 = vmul.f32 0.7978846, %v5844_v10  ;;  %v5974_v55 = vmul.f32 0.7978846, %v5846_v13  ;;  %v13843_v60 = vpop.f32.mrb[49].mxu1 }
 0x886   : > { %v13834_v33 = vpop.eup %9027  ;;  %v6351_v31 = vmul.f32 0.5, %v6223_v23  ;;  %9033 = vtanh.f32 %v5973_v4  ;;  %v5975_v41 = vmul.f32 0.7978846, %v5847_v40  ;;  %v5849_v35 = vadd.f32 %v5721_v27, %v13806_v39  ;;  %14793 = vst [vmem:[#allocation52_spill] sm:$0xff] %v13843_v60  ;;  %v14794_v40 = vld [vmem:[#allocation71_spill] sm:$0xff]  ;;  %v13852_v13 = vpop.f32.mrb[50].mxu1 }
 0x887   : > { %14792 = vst [vmem:[#allocation47_spill] sm:$0xff] %v13832_v63  ;;  %v13839_v57 = vpop.eup %9029  ;;  %v6353_v32 = vmul.f32 0.5, %v6225_v6  ;;  %9035 = vtanh.f32 %v5972_v45  ;;  %v5720_v59 = vmul.f32 0.044715, %v5592_v22  ;;  %v13850_v27 = vadd.f32 %v14794_v40, %v12193_v12  ;;  %14796 = vst [vmem:[#allocation86_spill] sm:$0xff] %v13852_v13  ;;  %v14797_v22 = vld [vmem:[#allocation39_spill] sm:$0xff] }
 0x888   : > { %v13846_v10 = vmul.f32 %v6351_v31, %v13718_v36  ;;  %9037 = vtanh.f32 %v5974_v55  ;;  %v5977_v4 = vmul.f32 0.7978846, %v5849_v35  ;;  %v13860_v23 = vadd.f32 %v14797_v22, %v14735_v29  ;;  %v13862_v36 = vpop.f32.mrb[51].mxu1  ;;  %v14799_v45 = vld [vmem:[#allocation80_spill] sm:$0xff]  ;;  %v14801_v29 = vld [vmem:[#allocation81_spill] sm:$0xff] }
 0x889   : > { %14795 = vst [vmem:[#allocation17_spill] sm:$0xff] %v13850_v27  ;;  %v13855_v11 = vmul.f32 %v6353_v32, %v13725_v24  ;;  %9039 = vtanh.f32 %v5975_v41  ;;  %v5848_v5 = vadd.f32 %v5720_v59, %v13814_v58  ;;  %14798 = vst [vmem:[#allocation64_spill] sm:$0xff] %v13862_v36  ;;  %v5466_v6 = vmul.f32 %v13850_v27, %v13850_v27  ;;  %v14800_v24 = vld [vmem:[#allocation72_spill] sm:$0xff]  ;;  %v13887_v22 = vpop.f32.mrb[48].mxu0 }
 0x88a   : > { %9041 = vtanh.f32 %v5977_v4  ;;  %v13868_v55 = vadd.f32 %v14799_v45, %v14738_v18  ;;  %v13872_v31 = vadd.f32 %v14800_v24, %v12191_v53  ;;  %v5467_v35 = vmul.f32 %v13860_v23, %v13860_v23  ;;  %14802 = vst [vmem:[#allocation13_spill] sm:$0xff] %v13887_v22  ;;  %v13892_v24 = vpop.f32.mrb[49].mxu0 }
 0x88b   : > { %v5976_v41 = vmul.f32 0.7978846, %v5848_v5  ;;  %v13878_v32 = vadd.f32 %v14801_v29, %v12193_v12  ;;  %v6200_v59 = vadd.f32 1.0, %v13600_v9  ;;  %v5594_v40 = vmul.f32 %v5466_v6, %v13850_v27  ;;  %14803 = vst [vmem:[#allocation63_spill] sm:$0xff] %v13892_v24  ;;  %v13896_v63 = vpop.f32.mrb[50].mxu0 }
 0x88c   : > { %v9032_v4 = vpop.eup %9031  ;;  %v5469_v18 = vmul.f32 %v13868_v55, %v13868_v55  ;;  %v5468_v53 = vmul.f32 %v13872_v31, %v13872_v31  ;;  %v6204_v5 = vadd.f32 1.0, %v13611_v15  ;;  %v5595_v12 = vmul.f32 %v5467_v35, %v13860_v23  ;;  %v13899_v13 = vpop.f32.mrb[51].mxu0 }
 0x88d   : > { %v6227_v45 = vadd.f32 1.0, %v9032_v4  ;;  %9043 = vtanh.f32 %v5976_v41  ;;  %v5470_v9 = vmul.f32 %v13878_v32, %v13878_v32  ;;  %v5722_v6 = vmul.f32 0.044715, %v5594_v40  ;;  %14804 = vst [vmem:[#allocation19_spill] sm:$0xff] %v13899_v13 }
 0x88e   : > { %v5597_v29 = vmul.f32 %v5469_v18, %v13868_v55  ;;  %v5596_v42 = vmul.f32 %v5468_v53, %v13872_v31  ;;  %v6328_v54 = vmul.f32 0.5, %v6200_v59  ;;  %v5723_v36 = vmul.f32 0.044715, %v5595_v12 }
 0x88f   : > { %v6355_v15 = vmul.f32 0.5, %v6227_v45  ;;  %v5598_v4 = vmul.f32 %v5470_v9, %v13878_v32  ;;  %v6332_v41 = vmul.f32 0.5, %v6204_v5  ;;  %v5850_v22 = vadd.f32 %v5722_v6, %v13850_v27 }
 0x890   : > { %v9034_v35 = vpop.eup %9033  ;;  %v5725_v60 = vmul.f32 0.044715, %v5597_v29  ;;  %v5724_v24 = vmul.f32 0.044715, %v5596_v42  ;;  %v6456_v40 = vmul.f32 %v6328_v54, %v13478_v51  ;;  %v5851_v45 = vadd.f32 %v5723_v36, %v13860_v23 }
 0x891   : > { %v13903_v18 = vpop.eup %9035  ;;  %v13906_v59 = vmul.f32 %v6355_v15, %v13743_v30  ;;  %v6229_v53 = vadd.f32 1.0, %v9034_v35  ;;  %v5726_v12 = vmul.f32 0.044715, %v5598_v4  ;;  %v5978_v5 = vmul.f32 0.7978846, %v5850_v22 }
 0x892   : > { %v13909_v9 = vpop.eup %9037  ;;  %v5853_v13 = vadd.f32 %v5725_v60, %v13868_v55  ;;  %v5852_v6 = vadd.f32 %v5724_v24, %v13872_v31  ;;  %v6460_v42 = vmul.f32 %v6332_v41, %v13513_v26  ;;  %v5979_v30 = vmul.f32 0.7978846, %v5851_v45 }
 0x893   : > { %v9040_v29 = vpop.eup %9039  ;;  %v6357_v54 = vmul.f32 0.5, %v6229_v53  ;;  %v5854_v15 = vadd.f32 %v5726_v12, %v13878_v32  ;;  %9045 = vtanh.f32 %v5978_v5  ;;  %v6202_v51 = vadd.f32 1.0, %v13603_v44 }
 0x894   : > { %v9042_v35 = vpop.eup %9041  ;;  %v6231_v36 = vadd.f32 1.0, %v9040_v29  ;;  %v5981_v4 = vmul.f32 0.7978846, %v5853_v13  ;;  %v5980_v27 = vmul.f32 0.7978846, %v5852_v6  ;;  %9047 = vtanh.f32 %v5979_v30 }
 0x895   : > { %v13918_v22 = vmul.f32 %v6357_v54, %v13777_v1  ;;  %v6233_v60 = vadd.f32 1.0, %v9042_v35  ;;  %v5982_v24 = vmul.f32 0.7978846, %v5854_v15  ;;  %v6540_v41 = vpack.c.bf16 %v6460_v42, %v6456_v40 }
 0x896   : > { %v6359_v26 = vmul.f32 0.5, %v6231_v36  ;;  %9049 = vtanh.f32 %v5981_v4  ;;  %v6206_v13 = vadd.f32 1.0, %v13617_v46  ;;  %v6330_v5 = vmul.f32 0.5, %v6202_v51 }
 0x897   : > { %v13921_v53 = vpop.eup %9043  ;;  %v6553_v45 = vpack.c.bf16 %v13918_v22, %v13855_v11  ;;  %v6361_v12 = vmul.f32 0.5, %v6233_v60  ;;  %9051 = vtanh.f32 %v5980_v27  ;;  %6942 = vmatprep.mubr.bf16.mxu1 %v6540_v41  ;;  %v6208_v6 = vadd.f32 1.0, %v13671_v28 }
 0x898   : > { %v13927_v1 = vmul.f32 %v6359_v26, %v13791_v25  ;;  %9053 = vtanh.f32 %v5982_v24  ;;  %v6334_v44 = vmul.f32 0.5, %v6206_v13  ;;  %v14805_v42 = vpack.c.bf16 %v13628_v8, %v13607_v21 }
 0x899   : > { %v13931_v40 = vmul.f32 %v6361_v12, %v13806_v39  ;;  %v6212_v27 = vadd.f32 1.0, %v13708_v3  ;;  %v6210_v46 = vadd.f32 1.0, %v13675_v37  ;;  %v6458_v25 = vmul.f32 %v6330_v5, %v13486_v7  ;;  %v13945_v37 = vpop.f32.mrb[52].mxu1 }
 0x89a   : > { %6943 = vmatmul.mubr.bf16.gmra.mrb[92].mxu1 %v14805_v42  ;;  %v6336_v29 = vmul.f32 0.5, %v6208_v6  ;;  %v6214_v54 = vadd.f32 1.0, %v13748_v49  ;;  %v6216_v51 = vadd.f32 1.0, %v13760_v38  ;;  %v6462_v28 = vmul.f32 %v6334_v44, %v13524_v0  ;;  %v13949_v4 = vpop.f32.mrb[53].mxu1 }
 0x89b   : > { %v6340_v39 = vmul.f32 0.5, %v6212_v27  ;;  %v6338_v30 = vmul.f32 0.5, %v6210_v46  ;;  %v6220_v15 = vadd.f32 1.0, %v13819_v16  ;;  %v6218_v3 = vadd.f32 1.0, %v13763_v17  ;;  %v13956_v17 = vpop.f32.mrb[54].mxu1 }
 0x89c   : > { %v6464_v21 = vmul.f32 %v6336_v29, %v13556_v48  ;;  %v6342_v8 = vmul.f32 0.5, %v6214_v54  ;;  %v6344_v35 = vmul.f32 0.5, %v6216_v51  ;;  %v6542_v7 = vpack.c.bf16 %v6462_v28, %v6458_v25  ;;  %v13954_v26 = vpop.f32.mrb[52].mxu0 }
 0x89d   : > { %v6468_v36 = vmul.f32 %v6340_v39, %v13586_v20  ;;  %v6466_v49 = vmul.f32 %v6338_v30, %v13563_v19  ;;  %v6348_v38 = vmul.f32 0.5, %v6220_v15  ;;  %v9046_v0 = vpop.eup %9045  ;;  %v6222_v48 = vadd.f32 1.0, %v13823_v14  ;;  %v7828_v5 = vpop.f32.mrb[53].mxu0  ;;  %v14807_v39 = vld [vmem:[#allocation50_spill] sm:$0xff] }
 0x89e   : > { %v6470_v60 = vmul.f32 %v6342_v8, %v13621_v62  ;;  %v6472_v16 = vmul.f32 %v6344_v35, %v13643_v34  ;;  %v6346_v24 = vmul.f32 0.5, %v6218_v3  ;;  %v9048_v41 = vpop.eup %9047  ;;  %7103 = vmatprep.mubr.bf16.mxu0 %v6542_v7  ;;  %v6224_v12 = vadd.f32 1.0, %v13834_v33  ;;  %v13961_v62 = vpop.f32.mrb[55].mxu1  ;;  %v14808_v30 = vld [vmem:[#allocation82_spill] sm:$0xff]  ;;  %v14811_v35 = vld [vmem:[#allocation51_spill] sm:$0xff] }
 0x89f   : > { %v6544_v20 = vpack.c.bf16 %v6468_v36, %v6464_v21  ;;  %v6476_v19 = vmul.f32 %v6348_v38, %v13697_v61  ;;  %v6228_v13 = vadd.f32 1.0, %v13903_v18  ;;  %v6235_v6 = vadd.f32 1.0, %v9048_v41  ;;  %v7830_v46 = vpop.f32.mrb[54].mxu0 }
 0x8a0   : > { %v9050_v34 = vpop.eup %9049  ;;  %v14806_v14 = vpack.c.bf16 %v13635_v50, %v13614_v2  ;;  %v6546_v44 = vpack.c.bf16 %v6470_v60, %v6466_v49  ;;  %v6350_v42 = vmul.f32 0.5, %v6222_v48  ;;  %v6474_v27 = vmul.f32 %v6346_v24, %v13652_v52  ;;  %v7831_v54 = vpop.f32.mrb[55].mxu0  ;;  %v14810_v2 = vld [vmem:[#allocation49_spill] sm:$0xff] }
 0x8a1   : > { %v9052_v25 = vpop.eup %9051  ;;  %v6237_v61 = vadd.f32 1.0, %v9050_v34  ;;  %6950 = vmatprep.mubr.bf16.mxu1 %v6544_v20  ;;  %v6548_v33 = vpack.c.bf16 %v6476_v19, %v6472_v16  ;;  %v6352_v29 = vmul.f32 0.5, %v6224_v12  ;;  %v6356_v18 = vmul.f32 0.5, %v6228_v13  ;;  %v14812_v20 = vld [vmem:[#allocation45_spill] sm:$0xff] }
 0x8a2   : > { %7104 = vmatmul.mubr.bf16.gmra.mrb[92].mxu0 %v14806_v14  ;;  %v9054_v51 = vpop.eup %9053  ;;  %v6363_v28 = vmul.f32 0.5, %v6235_v6  ;;  %v14809_v15 = vpack.c.bf16 %v14807_v39, %v14808_v30  ;;  %v6478_v50 = vmul.f32 %v6350_v42, %v14810_v2  ;;  %v6226_v21 = vadd.f32 1.0, %v13839_v57  ;;  %v14813_v6 = vld [vmem:[#allocation2_spill] sm:$0xff]  ;;  %v14814_v14 = vld [vmem:[#allocation55_spill] sm:$0xff] }
 0x8a3   : > { %7111 = vmatprep.mubr.bf16.mxu0 %v6546_v44  ;;  %v6230_v52 = vadd.f32 1.0, %v13909_v9  ;;  %v6365_v8 = vmul.f32 0.5, %v6237_v61  ;;  %v6480_v3 = vmul.f32 %v6352_v29, %v14811_v35  ;;  %v6484_v7 = vmul.f32 %v6356_v18, %v13781_v56  ;;  %v14818_v61 = vld [vmem:[#allocation63_spill] sm:$0xff]  ;;  %v14819_v18 = vld [vmem:[#allocation86_spill] sm:$0xff] }
 0x8a4   : > { %6951 = vmatmul.mubr.bf16.gmra.mrb[96].mxu1 %v14809_v15  ;;  %v6232_v36 = vadd.f32 1.0, %v13921_v53  ;;  %v13977_v49 = vmul.f32 %v6363_v28, %v13860_v23  ;;  %v6550_v38 = vpack.c.bf16 %v6478_v50, %v6474_v27  ;;  %v6354_v60 = vmul.f32 0.5, %v6226_v21  ;;  %v14821_v39 = vld [vmem:[#allocation19_spill] sm:$0xff]  ;;  %v14822_v15 = vld [vmem:[#allocation76_spill] sm:$0xff]  ;;  %v14825_v21 = vld [vmem:[#allocation17_spill] sm:$0xff] }
 0x8a5   : > { %6958 = vmatprep.mubr.bf16.mxu1 %v6548_v33  ;;  %v6358_v16 = vmul.f32 0.5, %v6230_v52  ;;  %v13980_v48 = vmul.f32 %v6365_v8, %v13868_v55  ;;  %v6552_v57 = vpack.c.bf16 %v6484_v7, %v6480_v3  ;;  %v6236_v24 = vadd.f32 1.0, %v9052_v25  ;;  %v13992_v55 = vld [vmem:[%s14147_s10] ss:$0 sm:$0xff]  ;;  %v14817_v25 = vld [vmem:[#allocation13_spill] sm:$0xff]  ;;  %v14823_v2 = vld [vmem:[#allocation3_spill] sm:$0xff] }
 0x8a6   : > { %v6360_v9 = vmul.f32 0.5, %v6232_v36  ;;  %v6555_v41 = vpack.c.bf16 %v13977_v49, %v13927_v1  ;;  %v6482_v19 = vmul.f32 %v6354_v60, %v14812_v20  ;;  %v6234_v53 = vadd.f32 1.0, %v9046_v0 }
 0x8a7   : > { %v6486_v56 = vmul.f32 %v6358_v16, %v13785_v47  ;;  %v6557_v23 = vpack.c.bf16 %v13980_v48, %v13931_v40  ;;  %v6364_v12 = vmul.f32 0.5, %v6236_v24  ;;  %v6238_v34 = vadd.f32 1.0, %v9054_v51  ;;  %v14816_v47 = vld [vmem:[#allocation52_spill] sm:$0xff] }
 0x8a8   : > { %v6488_v13 = vmul.f32 %v6360_v9, %v13814_v58  ;;  %v14815_v44 = vpack.c.bf16 %v14813_v6, %v14814_v14  ;;  %v6362_v27 = vmul.f32 0.5, %v6234_v53  ;;  %v7711_v0 = vadd.f32 %v14816_v47, %v13837_v43  ;;  %v14820_v51 = vld [vmem:[#allocation64_spill] sm:$0xff]  ;;  %v14831_v9 = vld [vmem:[#allocation95_spill] sm:$0xff] }
 0x8a9   : > { %v6554_v42 = vpack.c.bf16 %v6486_v56, %v6482_v19  ;;  %v7823_v33 = vadd.f32 %v14818_v61, %v14817_v25  ;;  %v6492_v58 = vmul.f32 %v6364_v12, %v13872_v31  ;;  %v6366_v29 = vmul.f32 0.5, %v6238_v34  ;;  %v14832_v56 = vld [vmem:[#allocation96_spill] sm:$0xff] }
 0x8aa   : > { %7112 = vmatmul.mubr.bf16.gmra.mrb[96].mxu0 %v14815_v44  ;;  %v7714_v28 = vadd.f32 %v14820_v51, %v14819_v18  ;;  %v7826_v30 = vadd.f32 %v14821_v39, %v13896_v63  ;;  %v14824_v50 = vpack.c.bf16 %v14822_v15, %v14823_v2  ;;  %v6490_v43 = vmul.f32 %v6362_v27, %v14825_v21  ;;  %v14835_v51 = vld [vmem:[#allocation84_spill] sm:$0xff] }
 0x8ab   : > { %7119 = vmatprep.mubr.bf16.mxu0 %v6550_v38  ;;  %v6857_v52 = vadd.f32 %v7711_v0, %v13992_v55  ;;  %v7717_v8 = vadd.f32 %v13949_v4, %v13945_v37  ;;  %v7829_v31 = vadd.f32 %v7828_v5, %v13954_v26  ;;  %v6556_v35 = vpack.c.bf16 %v6492_v58, %v6488_v13  ;;  %v14826_v4 = vld [vmem:[#allocation92_spill] sm:$0xff]  ;;  %v14827_v5 = vld [vmem:[#allocation94_spill] sm:$0xff] }
 0x8ac   : > { %6959 = vmatmul.mubr.bf16.gmra.mrb[100].mxu1 %v14824_v50  ;;  %v6494_v3 = vmul.f32 %v6366_v29, %v13878_v32  ;;  %v6860_v7 = vadd.f32 %v7714_v28, %v13992_v55  ;;  %v7720_v63 = vadd.f32 %v13961_v62, %v13956_v17  ;;  %v7832_v60 = vadd.f32 %v7831_v54, %v7830_v46  ;;  %v14828_v54 = vld [vmem:[#allocation47_spill] sm:$0xff]  ;;  %v14834_v58 = vld [vmem:[#allocation6_spill] sm:$0xff]  ;;  %v14836_v48 = vld [vmem:[#allocation4_spill] sm:$0xff] }
 0x8ad   : > { %6966 = vmatprep.mubr.bf16.mxu1 %v6552_v57  ;;  %v7018_v36 = vadd.f32 %v7823_v33, %v6857_v52  ;;  %v6865_v38 = vadd.f32 %v7717_v8, %v13992_v55  ;;  %v14829_v57 = vld [vmem:[#allocation48_spill] sm:$0xff]  ;;  %v14833_v13 = vpack.c.bf16 %v13906_v59, %v13846_v10 }
 0x8ae   : > { %v6558_v16 = vpack.c.bf16 %v6494_v3, %v6490_v43  ;;  %v7021_v32 = vadd.f32 %v7826_v30, %v6860_v7  ;;  %v6868_v37 = vadd.f32 %v7720_v63, %v13992_v55  ;;  %v14830_v24 = vpack.c.bf16 %v14828_v54, %v14829_v57  ;;  %v7721_v19 = vpop.f32.mrb[56].mxu1  ;;  %v14838_v54 = vld [vmem:[#allocation5_spill] sm:$0xff] }
 0x8af   : > { %v7144_v26 = vadd.f32 %v7018_v36, %v14826_v4  ;;  %v7026_v17 = vadd.f32 %v7829_v31, %v6865_v38  ;;  %v7722_v12 = vpop.f32.mrb[57].mxu1  ;;  %v14837_v31 = vld [vmem:[#allocation14_spill] sm:$0xff] }
 0x8b0   : > { %v7145_v62 = vadd.f32 %v7021_v32, %v14827_v5  ;;  %v7029_v46 = vadd.f32 %v7832_v60, %v6868_v37  ;;  %v7833_v34 = vpop.f32.mrb[56].mxu0  ;;  %v7723_v6 = vadd.f32 %v7722_v12, %v7721_v19  ;;  %v7724_v14 = vpop.f32.mrb[58].mxu1 }
 0x8b1   : > { %7176 = vst [vmem:[%s14024_s16] sm:$0xff] %v7144_v26  ;;  %v7146_v20 = vadd.f32 %v7026_v17, %v14831_v9  ;;  %v7834_v44 = vpop.f32.mrb[57].mxu0  ;;  %v7725_v27 = vpop.f32.mrb[59].mxu1  ;;  %v14839_v9 = vld [vmem:[#allocation83_spill] sm:$0xff] }
 0x8b2   : > { %7120 = vmatmul.mubr.bf16.gmra.mrb[100].mxu0 %v14830_v24  ;;  %7177 = vst [vmem:[%s14024_s16 + $0x8] sm:$0xff] %v7145_v62  ;;  %v7147_v53 = vadd.f32 %v7029_v46, %v14832_v56  ;;  %v7835_v47 = vadd.f32 %v7834_v44, %v7833_v34  ;;  %v7836_v0 = vpop.f32.mrb[58].mxu0  ;;  %v7726_v25 = vadd.f32 %v7725_v27, %v7724_v14 }
 0x8b3   : > { %7127 = vmatprep.mubr.bf16.mxu0 %v6554_v42  ;;  %7178 = vst [vmem:[%s14024_s16 + $0x10] sm:$0xff] %v7146_v20  ;;  %v6873_v42 = vadd.f32 %v7723_v6, %v13992_v55  ;;  %v7837_v61 = vpop.f32.mrb[59].mxu0 }
 0x8b4   : > { %6967 = vmatmul.mubr.bf16.gmra.mrb[104].mxu1 %v14833_v13  ;;  %7179 = vst [vmem:[%s14024_s16 + $0x18] sm:$0xff] %v7147_v53  ;;  %v6876_v10 = vadd.f32 %v7726_v25, %v13992_v55  ;;  %v7838_v59 = vadd.f32 %v7837_v61, %v7836_v0 }
 0x8b5   : > { %6974 = vmatprep.mubr.bf16.mxu1 %v6556_v35  ;;  %v7034_v33 = vadd.f32 %v7835_v47, %v6873_v42 }
 0x8b6   : > { %v7037_v18 = vadd.f32 %v7838_v59, %v6876_v10 }
 0x8b7   : > { %v7148_v29 = vadd.f32 %v7034_v33, %v14834_v58  ;;  %v14840_v33 = vld [vmem:[#allocation93_spill] sm:$0xff]  ;;  %v14841_v58 = vld [vmem:[#allocation22_spill] sm:$0xff] }
 0x8b8   : > { %v7149_v28 = vadd.f32 %v7037_v18, %v14835_v51 }
 0x8b9   : > { %7180 = vst [vmem:[%s14024_s16 + $0x20] sm:$0xff] %v7148_v29 }
 0x8ba   : > { %7128 = vmatmul.mubr.bf16.gmra.mrb[104].mxu0 %v6553_v45  ;;  %7181 = vst [vmem:[%s14024_s16 + $0x28] sm:$0xff] %v7149_v28 }
 0x8bb   : > { %7135 = vmatprep.mubr.bf16.mxu0 %v6558_v16 }
 0x8bc   : > { %6975 = vmatmul.mubr.bf16.gmra.mrb[108].mxu1 %v6555_v41 }
 0x8c2   : > { %7136 = vmatmul.mubr.bf16.gmra.mrb[108].mxu0 %v6557_v23 }
 0x8c4   : > { %v7727_v39 = vpop.f32.mrb[60].mxu1 }
 0x8c5   : > { %v7728_v30 = vpop.f32.mrb[61].mxu1 }
 0x8c6   : > { %v7729_v11 = vadd.f32 %v7728_v30, %v7727_v39  ;;  %v7730_v22 = vpop.f32.mrb[62].mxu1 }
 0x8c7   : > { %v7731_v15 = vpop.f32.mrb[63].mxu1 }
 0x8c8   : > { %v7839_v45 = vpop.f32.mrb[60].mxu0  ;;  %v6881_v2 = vadd.f32 %v7729_v11, %v13992_v55  ;;  %v7732_v49 = vadd.f32 %v7731_v15, %v7730_v22 }
 0x8c9   : > { %v7840_v1 = vpop.f32.mrb[61].mxu0 }
 0x8ca   : > { %v7841_v41 = vadd.f32 %v7840_v1, %v7839_v45  ;;  %v7842_v50 = vpop.f32.mrb[62].mxu0  ;;  %v6884_v21 = vadd.f32 %v7732_v49, %v13992_v55 }
 0x8cb   : > { %v7843_v43 = vpop.f32.mrb[63].mxu0 }
 0x8cc   : > { %v7042_v52 = vadd.f32 %v7841_v41, %v6881_v2  ;;  %v7844_v40 = vadd.f32 %v7843_v43, %v7842_v50  ;;  %v14842_v43 = vld [vmem:[#allocation24_spill] sm:$0xff] }
 0x8ce   : > { %v7150_v23 = vadd.f32 %v7042_v52, %v14836_v48  ;;  %v7045_v8 = vadd.f32 %v7844_v40, %v6884_v21 }
 0x8d0   : > { %7182 = vst [vmem:[%s14024_s16 + $0x30] sm:$0xff] %v7150_v23  ;;  %v7151_v35 = vadd.f32 %v7045_v8, %v14837_v31  ;;  %v14843_v31 = vld [vmem:[#allocation10_spill] sm:$0xff] }
 0x8d2   : > { %7183 = vst [vmem:[%s14024_s16 + $0x38] sm:$0xff] %v7151_v35 }
 0x8d9   : > { %v7733_v3 = vpop.f32.mrb[64].mxu1 }
 0x8da   : > { %v7734_v7 = vpop.f32.mrb[65].mxu1 }
 0x8db   : > { %v7735_v63 = vadd.f32 %v7734_v7, %v7733_v3  ;;  %v7736_v36 = vpop.f32.mrb[66].mxu1 }
 0x8dc   : > { %v7845_v38 = vpop.f32.mrb[64].mxu0  ;;  %v7737_v60 = vpop.f32.mrb[67].mxu1 }
 0x8dd   : > { %v6889_v16 = vadd.f32 %v7735_v63, %v13992_v55  ;;  %v7846_v32 = vpop.f32.mrb[65].mxu0  ;;  %v7738_v37 = vadd.f32 %v7737_v60, %v7736_v36 }
 0x8de   : > { %v7847_v4 = vadd.f32 %v7846_v32, %v7845_v38  ;;  %v7848_v26 = vpop.f32.mrb[66].mxu0 }
 0x8df   : > { %v6892_v17 = vadd.f32 %v7738_v37, %v13992_v55  ;;  %v7849_v5 = vpop.f32.mrb[67].mxu0 }
 0x8e0   : > { %v7050_v62 = vadd.f32 %v7847_v4, %v6889_v16  ;;  %v7850_v46 = vadd.f32 %v7849_v5, %v7848_v26  ;;  %v14844_v5 = vld [vmem:[#allocation88_spill] sm:$0xff] }
 0x8e2   : > { %v7152_v57 = vadd.f32 %v7050_v62, %v14838_v54  ;;  %v7053_v24 = vadd.f32 %v7850_v46, %v6892_v17 }
 0x8e4   : > { %7184 = vst [vmem:[%s14024_s16 + $0x40] sm:$0xff] %v7152_v57  ;;  %v7153_v20 = vadd.f32 %v7053_v24, %v14839_v9  ;;  %v14845_v9 = vld [vmem:[#allocation90_spill] sm:$0xff] }
 0x8e6   : > { %7185 = vst [vmem:[%s14024_s16 + $0x48] sm:$0xff] %v7153_v20 }
 0x8ef   : > { %v7739_v19 = vpop.f32.mrb[68].mxu1 }
 0x8f0   : > { %v7740_v56 = vpop.f32.mrb[69].mxu1 }
 0x8f1   : > { %v7741_v12 = vadd.f32 %v7740_v56, %v7739_v19  ;;  %v7742_v13 = vpop.f32.mrb[70].mxu1 }
 0x8f2   : > { %v7851_v53 = vpop.f32.mrb[68].mxu0  ;;  %v7743_v6 = vpop.f32.mrb[71].mxu1 }
 0x8f3   : > { %v7852_v34 = vpop.f32.mrb[69].mxu0  ;;  %v6897_v14 = vadd.f32 %v7741_v12, %v13992_v55  ;;  %v7744_v42 = vadd.f32 %v7743_v6, %v7742_v13 }
 0x8f4   : > { %v7853_v44 = vadd.f32 %v7852_v34, %v7851_v53  ;;  %v7854_v27 = vpop.f32.mrb[70].mxu0 }
 0x8f5   : > { %v7855_v47 = vpop.f32.mrb[71].mxu0  ;;  %v6900_v25 = vadd.f32 %v7744_v42, %v13992_v55 }
 0x8f6   : > { %v7058_v0 = vadd.f32 %v7853_v44, %v6897_v14  ;;  %v7856_v61 = vadd.f32 %v7855_v47, %v7854_v27 }
 0x8f8   : > { %v7154_v10 = vadd.f32 %v7058_v0, %v14840_v33  ;;  %v7061_v59 = vadd.f32 %v7856_v61, %v6900_v25  ;;  %v14846_v0 = vld [vmem:[#allocation27_spill] sm:$0xff] }
 0x8fa   : > { %7186 = vst [vmem:[%s14024_s16 + $0x50] sm:$0xff] %v7154_v10  ;;  %v7155_v29 = vadd.f32 %v7061_v59, %v14841_v58  ;;  %v14847_v58 = vld [vmem:[#allocation28_spill] sm:$0xff] }
 0x8fc   : > { %7187 = vst [vmem:[%s14024_s16 + $0x58] sm:$0xff] %v7155_v29 }
 0x905   : > { %v7745_v18 = vpop.f32.mrb[72].mxu1 }
 0x906   : > { %v7857_v51 = vpop.f32.mrb[72].mxu0  ;;  %v7746_v28 = vpop.f32.mrb[73].mxu1 }
 0x907   : > { %v7747_v39 = vadd.f32 %v7746_v28, %v7745_v18  ;;  %v7858_v30 = vpop.f32.mrb[73].mxu0  ;;  %v7748_v11 = vpop.f32.mrb[74].mxu1 }
 0x908   : > { %v7859_v22 = vadd.f32 %v7858_v30, %v7857_v51  ;;  %v7860_v45 = vpop.f32.mrb[74].mxu0  ;;  %v7749_v15 = vpop.f32.mrb[75].mxu1 }
 0x909   : > { %v6905_v2 = vadd.f32 %v7747_v39, %v13992_v55  ;;  %v7750_v1 = vadd.f32 %v7749_v15, %v7748_v11  ;;  %v7861_v49 = vpop.f32.mrb[75].mxu0 }
 0x90a   : > { %v7862_v41 = vadd.f32 %v7861_v49, %v7860_v45 }
 0x90b   : > { %v7066_v50 = vadd.f32 %v7859_v22, %v6905_v2  ;;  %v6908_v21 = vadd.f32 %v7750_v1, %v13992_v55 }
 0x90d   : > { %v7156_v52 = vadd.f32 %v7066_v50, %v14842_v43  ;;  %v7069_v40 = vadd.f32 %v7862_v41, %v6908_v21  ;;  %v7751_v48 = vpop.f32.mrb[76].mxu1  ;;  %v14848_v41 = vld [vmem:[#allocation7_spill] sm:$0xff] }
 0x90e   : > { %v7752_v8 = vpop.f32.mrb[77].mxu1 }
 0x90f   : > { %v7863_v23 = vpop.f32.mrb[76].mxu0  ;;  %7188 = vst [vmem:[%s14024_s16 + $0x60] sm:$0xff] %v7156_v52  ;;  %v7157_v35 = vadd.f32 %v7069_v40, %v14843_v31  ;;  %v7753_v3 = vadd.f32 %v7752_v8, %v7751_v48  ;;  %v7754_v63 = vpop.f32.mrb[78].mxu1  ;;  %v14849_v48 = vld [vmem:[#allocation30_spill] sm:$0xff] }
 0x910   : > { %v7864_v7 = vpop.f32.mrb[77].mxu0  ;;  %v7755_v60 = vpop.f32.mrb[79].mxu1 }
 0x911   : > { %v7865_v36 = vadd.f32 %v7864_v7, %v7863_v23  ;;  %v7866_v38 = vpop.f32.mrb[78].mxu0  ;;  %7189 = vst [vmem:[%s14024_s16 + $0x68] sm:$0xff] %v7157_v35  ;;  %v6913_v16 = vadd.f32 %v7753_v3, %v13992_v55  ;;  %v7756_v32 = vadd.f32 %v7755_v60, %v7754_v63 }
 0x912   : > { %v7867_v37 = vpop.f32.mrb[79].mxu0 }
 0x913   : > { %v7868_v4 = vadd.f32 %v7867_v37, %v7866_v38  ;;  %v7074_v26 = vadd.f32 %v7865_v36, %v6913_v16  ;;  %v6916_v17 = vadd.f32 %v7756_v32, %v13992_v55 }
 0x915   : > { %v7158_v62 = vadd.f32 %v7074_v26, %v14844_v5  ;;  %v7077_v46 = vadd.f32 %v7868_v4, %v6916_v17  ;;  %v14850_v4 = vld [vmem:[#allocation32_spill] sm:$0xff]  ;;  %v14851_v5 = vld [vmem:[#allocation9_spill] sm:$0xff] }
 0x916   : > { %v7757_v54 = vpop.f32.mrb[80].mxu1 }
 0x917   : > { %v7869_v57 = vpop.f32.mrb[80].mxu0  ;;  %v7758_v24 = vpop.f32.mrb[81].mxu1  ;;  %7190 = vst [vmem:[%s14024_s16 + $0x70] sm:$0xff] %v7158_v62  ;;  %v7159_v20 = vadd.f32 %v7077_v46, %v14845_v9 }
 0x918   : > { %v7759_v19 = vadd.f32 %v7758_v24, %v7757_v54  ;;  %v7870_v56 = vpop.f32.mrb[81].mxu0  ;;  %v7760_v53 = vpop.f32.mrb[82].mxu1 }
 0x919   : > { %v7871_v12 = vadd.f32 %v7870_v56, %v7869_v57  ;;  %v7872_v13 = vpop.f32.mrb[82].mxu0  ;;  %v7761_v34 = vpop.f32.mrb[83].mxu1  ;;  %7191 = vst [vmem:[%s14024_s16 + $0x78] sm:$0xff] %v7159_v20 }
 0x91a   : > { %v6921_v6 = vadd.f32 %v7759_v19, %v13992_v55  ;;  %v7762_v14 = vadd.f32 %v7761_v34, %v7760_v53  ;;  %v7873_v44 = vpop.f32.mrb[83].mxu0 }
 0x91b   : > { %v7874_v27 = vadd.f32 %v7873_v44, %v7872_v13 }
 0x91c   : > { %v7082_v42 = vadd.f32 %v7871_v12, %v6921_v6  ;;  %v6924_v47 = vadd.f32 %v7762_v14, %v13992_v55 }
 0x91e   : > { %v7160_v25 = vadd.f32 %v7082_v42, %v14846_v0  ;;  %v7085_v61 = vadd.f32 %v7874_v27, %v6924_v47 }
 0x91f   : > { %v7763_v33 = vpop.f32.mrb[84].mxu1 }
 0x920   : > { %v7875_v10 = vpop.f32.mrb[84].mxu0  ;;  %v7764_v59 = vpop.f32.mrb[85].mxu1  ;;  %7192 = vst [vmem:[%s14024_s16 + $0x80] sm:$0xff] %v7160_v25  ;;  %v7161_v29 = vadd.f32 %v7085_v61, %v14847_v58  ;;  %v14852_v61 = vld [vmem:[#allocation87_spill] sm:$0xff]  ;;  %v14853_v58 = vld [vmem:[#allocation89_spill] sm:$0xff] }
 0x921   : > { %v7765_v18 = vadd.f32 %v7764_v59, %v7763_v33  ;;  %v7876_v51 = vpop.f32.mrb[85].mxu0  ;;  %v7766_v28 = vpop.f32.mrb[86].mxu1 }
 0x922   : > { %v7877_v39 = vadd.f32 %v7876_v51, %v7875_v10  ;;  %v7878_v30 = vpop.f32.mrb[86].mxu0  ;;  %v7767_v11 = vpop.f32.mrb[87].mxu1  ;;  %7193 = vst [vmem:[%s14024_s16 + $0x88] sm:$0xff] %v7161_v29 }
 0x923   : > { %v6929_v22 = vadd.f32 %v7765_v18, %v13992_v55  ;;  %v7768_v45 = vadd.f32 %v7767_v11, %v7766_v28  ;;  %v7879_v15 = vpop.f32.mrb[87].mxu0 }
 0x924   : > { %v7880_v2 = vadd.f32 %v7879_v15, %v7878_v30 }
 0x925   : > { %v7090_v1 = vadd.f32 %v7877_v39, %v6929_v22  ;;  %v6932_v49 = vadd.f32 %v7768_v45, %v13992_v55 }
 0x927   : > { %v7162_v50 = vadd.f32 %v7090_v1, %v14848_v41  ;;  %v7093_v21 = vadd.f32 %v7880_v2, %v6932_v49  ;;  %v7769_v43 = vpop.f32.mrb[88].mxu1 }
 0x928   : > { %v7881_v52 = vpop.f32.mrb[88].mxu0  ;;  %v7770_v40 = vpop.f32.mrb[89].mxu1 }
 0x929   : > { %7194 = vst [vmem:[%s14024_s16 + $0x90] sm:$0xff] %v7162_v50  ;;  %v7163_v23 = vadd.f32 %v7093_v21, %v14849_v48  ;;  %v7771_v8 = vadd.f32 %v7770_v40, %v7769_v43  ;;  %v7882_v31 = vpop.f32.mrb[89].mxu0  ;;  %v7772_v35 = vpop.f32.mrb[90].mxu1  ;;  %v14854_v21 = vld [vmem:[#allocation35_spill] sm:$0xff]  ;;  %v14855_v48 = vld [vmem:[#allocation36_spill] sm:$0xff] }
 0x92a   : > { %v7883_v3 = vadd.f32 %v7882_v31, %v7881_v52  ;;  %v7884_v7 = vpop.f32.mrb[90].mxu0  ;;  %v7773_v63 = vpop.f32.mrb[91].mxu1 }
 0x92b   : > { %7195 = vst [vmem:[%s14024_s16 + $0x98] sm:$0xff] %v7163_v23  ;;  %v6937_v36 = vadd.f32 %v7771_v8, %v13992_v55  ;;  %v7774_v38 = vadd.f32 %v7773_v63, %v7772_v35  ;;  %v7885_v60 = vpop.f32.mrb[91].mxu0 }
 0x92c   : > { %v7886_v16 = vadd.f32 %v7885_v60, %v7884_v7 }
 0x92d   : > { %v7098_v32 = vadd.f32 %v7883_v3, %v6937_v36  ;;  %v6940_v37 = vadd.f32 %v7774_v38, %v13992_v55 }
 0x92f   : > { %v7164_v26 = vadd.f32 %v7098_v32, %v14850_v4  ;;  %v7101_v17 = vadd.f32 %v7886_v16, %v6940_v37 }
 0x931   : > { %7196 = vst [vmem:[%s14024_s16 + $0xa0] sm:$0xff] %v7164_v26  ;;  %v7165_v62 = vadd.f32 %v7101_v17, %v14851_v5  ;;  %v14856_v17 = vld [vmem:[#allocation15_spill] sm:$0xff] }
 0x933   : > { %7197 = vst [vmem:[%s14024_s16 + $0xa8] sm:$0xff] %v7165_v62 }
 0x96d   : > { %v7775_v46 = vpop.f32.mrb[92].mxu1 }
 0x96e   : > { %v7776_v54 = vpop.f32.mrb[93].mxu1 }
 0x96f   : > { %v7777_v57 = vadd.f32 %v7776_v54, %v7775_v46  ;;  %v7778_v24 = vpop.f32.mrb[94].mxu1  ;;  %v14857_v54 = vld [vmem:[#allocation38_spill] sm:$0xff] }
 0x970   : > { %v7779_v9 = vpop.f32.mrb[95].mxu1 }
 0x971   : > { %v7780_v20 = vadd.f32 %v7779_v9, %v7778_v24  ;;  %v6945_v56 = vadd.f32 %v7777_v57, %v13992_v55 }
 0x973   : > { %v6948_v34 = vadd.f32 %v7780_v20, %v13992_v55 }
 0x975   : > { %v7887_v19 = vpop.f32.mrb[92].mxu0 }
 0x976   : > { %v7888_v53 = vpop.f32.mrb[93].mxu0 }
 0x977   : > { %v7889_v12 = vadd.f32 %v7888_v53, %v7887_v19  ;;  %v7890_v13 = vpop.f32.mrb[94].mxu0  ;;  %v7781_v6 = vpop.f32.mrb[96].mxu1 }
 0x978   : > { %v7891_v14 = vpop.f32.mrb[95].mxu0  ;;  %v7782_v44 = vpop.f32.mrb[97].mxu1 }
 0x979   : > { %v7106_v27 = vadd.f32 %v7889_v12, %v6945_v56  ;;  %v7892_v42 = vadd.f32 %v7891_v14, %v7890_v13  ;;  %v7783_v47 = vadd.f32 %v7782_v44, %v7781_v6  ;;  %v7784_v0 = vpop.f32.mrb[98].mxu1 }
 0x97a   : > { %v7785_v25 = vpop.f32.mrb[99].mxu1 }
 0x97b   : > { %v7166_v33 = vadd.f32 %v7106_v27, %v14852_v61  ;;  %v7109_v10 = vadd.f32 %v7892_v42, %v6948_v34  ;;  %v7786_v59 = vadd.f32 %v7785_v25, %v7784_v0  ;;  %v6953_v51 = vadd.f32 %v7783_v47, %v13992_v55  ;;  %v14858_v47 = vld [vmem:[#allocation40_spill] sm:$0xff] }
 0x97d   : > { %7198 = vst [vmem:[%s14024_s16 + $0xb0] sm:$0xff] %v7166_v33  ;;  %v7167_v29 = vadd.f32 %v7109_v10, %v14853_v58  ;;  %v7893_v18 = vpop.f32.mrb[96].mxu0  ;;  %v6956_v11 = vadd.f32 %v7786_v59, %v13992_v55  ;;  %v14859_v33 = vld [vmem:[#allocation18_spill] sm:$0xff] }
 0x97e   : > { %v7894_v28 = vpop.f32.mrb[97].mxu0 }
 0x97f   : > { %7199 = vst [vmem:[%s14024_s16 + $0xb8] sm:$0xff] %v7167_v29  ;;  %v7895_v39 = vadd.f32 %v7894_v28, %v7893_v18  ;;  %v7896_v30 = vpop.f32.mrb[98].mxu0  ;;  %v7787_v22 = vpop.f32.mrb[100].mxu1 }
 0x980   : > { %v7897_v45 = vpop.f32.mrb[99].mxu0  ;;  %v7788_v15 = vpop.f32.mrb[101].mxu1 }
 0x981   : > { %v7114_v2 = vadd.f32 %v7895_v39, %v6953_v51  ;;  %v7898_v1 = vadd.f32 %v7897_v45, %v7896_v30  ;;  %v7789_v49 = vadd.f32 %v7788_v15, %v7787_v22  ;;  %v7790_v41 = vpop.f32.mrb[102].mxu1  ;;  %v14860_v22 = vld [vmem:[#allocation43_spill] sm:$0xff] }
 0x982   : > { %v7791_v50 = vpop.f32.mrb[103].mxu1 }
 0x983   : > { %v7168_v43 = vadd.f32 %v7114_v2, %v14854_v21  ;;  %v7117_v52 = vadd.f32 %v7898_v1, %v6956_v11  ;;  %v7792_v40 = vadd.f32 %v7791_v50, %v7790_v41  ;;  %v6961_v31 = vadd.f32 %v7789_v49, %v13992_v55  ;;  %v14861_v2 = vld [vmem:[#allocation44_spill] sm:$0xff] }
 0x985   : > { %7200 = vst [vmem:[%s14024_s16 + $0xc0] sm:$0xff] %v7168_v43  ;;  %v7169_v23 = vadd.f32 %v7117_v52, %v14855_v48  ;;  %v7899_v8 = vpop.f32.mrb[100].mxu0  ;;  %v6964_v63 = vadd.f32 %v7792_v40, %v13992_v55 }
 0x986   : > { %v7900_v35 = vpop.f32.mrb[101].mxu0 }
 0x987   : > { %7201 = vst [vmem:[%s14024_s16 + $0xc8] sm:$0xff] %v7169_v23  ;;  %v7901_v3 = vadd.f32 %v7900_v35, %v7899_v8  ;;  %v7902_v7 = vpop.f32.mrb[102].mxu0  ;;  %v7793_v36 = vpop.f32.mrb[104].mxu1 }
 0x988   : > { %v7903_v38 = vpop.f32.mrb[103].mxu0  ;;  %v7794_v60 = vpop.f32.mrb[105].mxu1 }
 0x989   : > { %v7122_v16 = vadd.f32 %v7901_v3, %v6961_v31  ;;  %v7904_v32 = vadd.f32 %v7903_v38, %v7902_v7  ;;  %v7795_v37 = vadd.f32 %v7794_v60, %v7793_v36  ;;  %v7796_v4 = vpop.f32.mrb[106].mxu1 }
 0x98a   : > { %v7797_v26 = vpop.f32.mrb[107].mxu1 }
 0x98b   : > { %v7170_v5 = vadd.f32 %v7122_v16, %v14856_v17  ;;  %v7125_v62 = vadd.f32 %v7904_v32, %v6964_v63  ;;  %v7798_v46 = vadd.f32 %v7797_v26, %v7796_v4  ;;  %v6969_v9 = vadd.f32 %v7795_v37, %v13992_v55 }
 0x98d   : > { %7202 = vst [vmem:[%s14024_s16 + $0xd0] sm:$0xff] %v7170_v5  ;;  %v7171_v57 = vadd.f32 %v7125_v62, %v14857_v54  ;;  %v7905_v24 = vpop.f32.mrb[104].mxu0  ;;  %v6972_v53 = vadd.f32 %v7798_v46, %v13992_v55 }
 0x98e   : > { %v7906_v20 = vpop.f32.mrb[105].mxu0 }
 0x98f   : > { %7203 = vst [vmem:[%s14024_s16 + $0xd8] sm:$0xff] %v7171_v57  ;;  %v7907_v19 = vadd.f32 %v7906_v20, %v7905_v24  ;;  %v7908_v56 = vpop.f32.mrb[106].mxu0  ;;  %v7799_v12 = vpop.f32.mrb[108].mxu1 }
 0x990   : > { %v7909_v13 = vpop.f32.mrb[107].mxu0  ;;  %v7800_v34 = vpop.f32.mrb[109].mxu1 }
 0x991   : > { %v7130_v6 = vadd.f32 %v7907_v19, %v6969_v9  ;;  %v7910_v14 = vadd.f32 %v7909_v13, %v7908_v56  ;;  %v7801_v44 = vadd.f32 %v7800_v34, %v7799_v12  ;;  %v7802_v27 = vpop.f32.mrb[110].mxu1 }
 0x992   : > { %v7803_v42 = vpop.f32.mrb[111].mxu1 }
 0x993   : > { %v7172_v0 = vadd.f32 %v7130_v6, %v14858_v47  ;;  %v7133_v25 = vadd.f32 %v7910_v14, %v6972_v53  ;;  %v7804_v61 = vadd.f32 %v7803_v42, %v7802_v27  ;;  %v6977_v58 = vadd.f32 %v7801_v44, %v13992_v55 }
 0x995   : > { %7204 = vst [vmem:[%s14024_s16 + $0xe0] sm:$0xff] %v7172_v0  ;;  %v7173_v10 = vadd.f32 %v7133_v25, %v14859_v33  ;;  %v7911_v59 = vpop.f32.mrb[108].mxu0  ;;  %v6980_v28 = vadd.f32 %v7804_v61, %v13992_v55 }
 0x996   : > { %v7912_v29 = vpop.f32.mrb[109].mxu0 }
 0x997   : > { %7205 = vst [vmem:[%s14024_s16 + $0xe8] sm:$0xff] %v7173_v10  ;;  %v7913_v18 = vadd.f32 %v7912_v29, %v7911_v59  ;;  %v7914_v51 = vpop.f32.mrb[110].mxu0 }
 0x998   : > { %v7915_v39 = vpop.f32.mrb[111].mxu0 }
 0x999   : > { %v7138_v30 = vadd.f32 %v7913_v18, %v6977_v58  ;;  %v7916_v11 = vadd.f32 %v7915_v39, %v7914_v51 }
 0x99b   : > { %v7174_v45 = vadd.f32 %v7138_v30, %v14860_v22  ;;  %v7141_v15 = vadd.f32 %v7916_v11, %v6980_v28 }
 0x99d   : > { %7206 = vst [vmem:[%s14024_s16 + $0xf0] sm:$0xff] %v7174_v45  ;;  %v7175_v1 = vadd.f32 %v7141_v15, %v14861_v2 }
 0x99f   : > { %7207 = vst [vmem:[%s14024_s16 + $0xf8] sm:$0xff] %v7175_v1 }
 0x9a0 PF: > { %s21_s17 = sadd.s32 1, %s9093_s17  }
 0x9a1   : > { %p18_p4 = scmp.ge.s32.totalorder %s21_s17, 6  }
 0x9a3   :  { %20 = sbr.rel (!%p18_p4) target bundleno = 1 (0x1), region = 94 }

</bundles_post_ra>
